<compile_context>
chip_gen: v5e
topology: v5e:2x2
jax: 0.10.0
libtpu: 0.0.40
codegen_flags: <defaults>
</compile_context>

<pallas_src>
import functools

import jax
import jax.numpy as jnp
from jax.experimental import pallas as pl
from jax.experimental.pallas import tpu as pltpu


def _vmem_limit_bytes():
    # ~85% of physical VMEM (≈54 MiB on v7x, ≈109 MiB on v5e/v6e); None -> default.
    try:
        return int(pltpu.get_tpu_info().vmem_capacity_bytes * 0.85)
    except Exception:
        return None


def _largest_divisor(n, cap):
    for k in range(min(cap, n), 0, -1):
        if n % k == 0:
            return k
    return 1


# -----------------------------------------------------------------------------
# Kernel 1: fused FiLM1 + residual + FiLM2 + residual + LSTM layer-0 input proj
#           (row-tiled over N = seq * batch)
# -----------------------------------------------------------------------------
def _film_proj_kernel(vis_ref, goal_ref, f1w_ref, f1b_ref, f2w_ref, f2b_ref,
                      wih0_ref, b0_ref, gates_ref, *, E):
    x = vis_ref[...]                                    # (TN, E) f32
    g16 = goal_ref[...].astype(jnp.bfloat16)            # (TN, L) bf16 for the MXU

    # FiLM1(x, g) + x   (residual folded into the gamma bias: +1 pre-added)
    gb1 = jnp.dot(g16, f1w_ref[...],
                  preferred_element_type=jnp.float32) + f1b_ref[...]
    s1 = gb1[:, :E] * x + gb1[:, E:]

    # FiLM2(s1, g) + s1
    gb2 = jnp.dot(g16, f2w_ref[...],
                  preferred_element_type=jnp.float32) + f2b_ref[...]
    s2 = gb2[:, :E] * s1 + gb2[:, E:]

    # Hoisted LSTM layer-0 input projection: (TN, E) @ (E, 4H) + (b_ih0 + b_hh0)
    gates_ref[...] = jnp.dot(s2.astype(jnp.bfloat16), wih0_ref[...],
                             preferred_element_type=jnp.float32) + b0_ref[...]


def film_lstm_input_proj(vis, goal, f1w, f1b, f2w, f2b, wih0, b0):
    """vis:(N,E) f32, goal:(N,L) f32, weights bf16, biases f32 -> pre-gates (N,4H) f32."""
    N, E = vis.shape
    L = goal.shape[1]
    four_h = wih0.shape[1]

    # Row tile: 512 keeps 2x(vis+goal+gates) + single-buffered weights inside v7x VMEM
    # at E=H=1024; N is a multiple of 8 (batch padded in the wrapper).
    TN = min(512, N)

    row = lambda i: (i, 0)
    const = lambda i: (0, 0)
    buf1 = pl.Buffered(1)

    return pl.pallas_call(
        functools.partial(_film_proj_kernel, E=E),
        out_shape=jax.ShapeDtypeStruct((N, four_h), jnp.float32),
        grid=(pl.cdiv(N, TN),),
        in_specs=[
            pl.BlockSpec((TN, E), row),                                   # vis tile
            pl.BlockSpec((TN, L), row),                                   # goal tile
            pl.BlockSpec((L, 2 * E), const, pipeline_mode=buf1),          # film1_w
            pl.BlockSpec((1, 2 * E), const),                              # film1_b
            pl.BlockSpec((L, 2 * E), const, pipeline_mode=buf1),          # film2_w
            pl.BlockSpec((1, 2 * E), const),                              # film2_b
            pl.BlockSpec((E, four_h), const, pipeline_mode=buf1),         # wih0
            pl.BlockSpec((1, four_h), const),                             # b0
        ],
        out_specs=pl.BlockSpec((TN, four_h), row),
        compiler_params=pltpu.CompilerParams(
            dimension_semantics=("parallel",),
            vmem_limit_bytes=_vmem_limit_bytes(),
        ),
    )(vis, goal, f1w, f1b, f2w, f2b, wih0, b0)


# -----------------------------------------------------------------------------
# Kernel 2: 2-layer LSTM recurrence (K timesteps per grid step) fused with the
#           fc_1 / relu / fc_2 head (run once per grid step on K*B rows)
# -----------------------------------------------------------------------------
def _lstm_head_kernel(gates0_ref, hinit_ref, cinit_ref,
                      whh0_ref, wih1_ref, whh1_ref, b1_ref,
                      fc1w_ref, fc1b_ref, fc2w_ref, fc2b_ref,
                      logits_ref, hn_ref, cn_ref,
                      h16, c32, h1_stack, *, H, K, TB):
    t = pl.program_id(1)

    @pl.when(t == 0)
    def _():
        h16[...] = hinit_ref[...].astype(jnp.bfloat16)   # (2, TB, H) bf16 carry
        c32[...] = cinit_ref[...]                        # (2, TB, H) f32 carry

    def cell(pre_gates, h_prev16, c_prev, whh_ref):
        gates = pre_gates + jnp.dot(h_prev16, whh_ref[...],
                                    preferred_element_type=jnp.float32)
        # PyTorch gate order: i, f, g, o  (f32 gate math)
        i = jax.nn.sigmoid(gates[:, 0:H])
        f = jax.nn.sigmoid(gates[:, H:2 * H])
        g = jnp.tanh(gates[:, 2 * H:3 * H])
        o = jax.nn.sigmoid(gates[:, 3 * H:4 * H])
        c_new = f * c_prev + i * g
        h_new16 = (o * jnp.tanh(c_new)).astype(jnp.bfloat16)
        return h_new16, c_new

    h0 = h16[0]
    h1 = h16[1]
    c0 = c32[0]
    c1 = c32[1]

    # Static unroll over the K timesteps of this block (layer-0 input projection
    # was hoisted into kernel 1, so each step is two h_prev @ W_hh-style matmuls).
    for k in range(K):
        h0, c0 = cell(gates0_ref[k], h0, c0, whh0_ref)
        # TODO(synk): nn.LSTM dropout=0.2 between layers applies only in training mode.
        pre1 = jnp.dot(h0, wih1_ref[...],
                       preferred_element_type=jnp.float32) + b1_ref[...]
        h1, c1 = cell(pre1, h1, c1, whh1_ref)
        h1_stack[k] = h1

    h16[0] = h0
    h16[1] = h1
    c32[0] = c0
    c32[1] = c1

    # Fused head once per grid step on all K timesteps: fc_1 -> relu -> fc_2.
    hs = h1_stack[...].reshape(K * TB, H)                # bf16 (K*TB, H)
    z = jnp.maximum(
        jnp.dot(hs, fc1w_ref[...],
                preferred_element_type=jnp.float32) + fc1b_ref[...], 0.0)
    logits = jnp.dot(z.astype(jnp.bfloat16), fc2w_ref[...],
                     preferred_element_type=jnp.float32) + fc2b_ref[...]
    logits_ref[...] = logits.reshape(K, TB, logits.shape[-1])

    @pl.when(t == pl.num_programs(1) - 1)
    def _():
        hn_ref[...] = h16[...].astype(jnp.float32)
        cn_ref[...] = c32[...]


def lstm_head(gates0_tm, h_init, c_init, whh0, wih1, whh1, b1,
              fc1w, fc1b, fc2w, fc2b):
    """gates0_tm:(T,B,4H) f32 time-major pre-gates; returns (logits:(T,B,Apad), h_n, c_n)."""
    T, B, four_h = gates0_tm.shape
    H = four_h // 4
    h_half = fc1w.shape[1]
    a_pad = fc2w.shape[1]

    # K timesteps per grid step: amortizes grid overhead, makes the pre-gate DMA /
    # logits writeback dense, and lets the head matmuls run on K*TB rows.
    K = _largest_divisor(T, 8)
    # Batch tile: split across the two v7x TensorCores when the batch is large enough.
    TB = B if (B < 16 or B % 16 != 0) else B // 2
    nb, nt = B // TB, T // K

    row3 = lambda b, t: (t, b, 0)      # time-varying blocks
    state3 = lambda b, t: (0, b, 0)    # per-batch-block resident blocks
    const2 = lambda b, t: (0, 0)       # grid-invariant weights / biases
    buf1 = pl.Buffered(1)              # single-buffer the grid-invariant weights

    return pl.pallas_call(
        functools.partial(_lstm_head_kernel, H=H, K=K, TB=TB),
        out_shape=(jax.ShapeDtypeStruct((T, B, a_pad), jnp.float32),
                   jax.ShapeDtypeStruct((2, B, H), jnp.float32),
                   jax.ShapeDtypeStruct((2, B, H), jnp.float32)),
        grid=(nb, nt),
        in_specs=[
            pl.BlockSpec((K, TB, four_h), row3),                          # pre-gates
            pl.BlockSpec((2, TB, H), state3),                             # h_init
            pl.BlockSpec((2, TB, H), state3),                             # c_init
            pl.BlockSpec((H, four_h), const2, pipeline_mode=buf1),        # whh0
            pl.BlockSpec((H, four_h), const2, pipeline_mode=buf1),        # wih1
            pl.BlockSpec((H, four_h), const2, pipeline_mode=buf1),        # whh1
            pl.BlockSpec((1, four_h), const2),                            # b1 = b_ih1+b_hh1
            pl.BlockSpec((H, h_half), const2, pipeline_mode=buf1),        # fc1_w
            pl.BlockSpec((1, h_half), const2),                            # fc1_b
            pl.BlockSpec((h_half, a_pad), const2, pipeline_mode=buf1),    # fc2_w (padded)
            pl.BlockSpec((1, a_pad), const2),                             # fc2_b (padded)
        ],
        out_specs=(
            pl.BlockSpec((K, TB, a_pad), row3),                           # per-block logits
            pl.BlockSpec((2, TB, H), state3),                             # h_n
            pl.BlockSpec((2, TB, H), state3),                             # c_n
        ),
        scratch_shapes=[
            pltpu.VMEM((2, TB, H), jnp.bfloat16),   # h carry (bf16, MXU-ready)
            pltpu.VMEM((2, TB, H), jnp.float32),    # c carry (f32)
            pltpu.VMEM((K, TB, H), jnp.bfloat16),   # stacked layer-1 h for the head
        ],
        compiler_params=pltpu.CompilerParams(
            dimension_semantics=("parallel", "arbitrary"),
            vmem_limit_bytes=_vmem_limit_bytes(),
        ),
    )(gates0_tm, h_init, c_init, whh0, wih1, whh1, b1, fc1w, fc1b, fc2w, fc2b)


# -----------------------------------------------------------------------------
# DecisionMaker forward (glue in plain JAX; hot paths are the two kernels above)
# -----------------------------------------------------------------------------
def decision_maker_forward(p, vis_emb, goal_emb, hidden_states=None,
                           cell_states=None, *, action_size, single_step=False):
    bs, seq, E = vis_emb.shape
    H = p["whh0"].shape[0]

    # goal_emb conditions every frame; accept (bs*seq, L) or (bs, seq, L)
    goal_bsl = goal_emb.reshape(bs, seq, -1)
    L = goal_bsl.shape[-1]

    # Pad batch to a sublane multiple (8) so all (B, H) vregs / stores are dense.
    B_pad = max(8, -(-bs // 8) * 8)
    if B_pad != bs:
        pad = [(0, 0), (0, B_pad - bs), (0, 0)]
        vis_p = jnp.pad(jnp.transpose(vis_emb, (1, 0, 2)), pad)      # (T, B_pad, E)
        goal_p = jnp.pad(jnp.transpose(goal_bsl, (1, 0, 2)), pad)    # (T, B_pad, L)
    else:
        vis_p = jnp.transpose(vis_emb, (1, 0, 2))
        goal_p = jnp.transpose(goal_bsl, (1, 0, 2))

    # Tiny time-major re-layout of the *inputs* only (the big (T,B,H) LSTM output
    # never round-trips through HBM).
    vis_tm = vis_p.reshape(seq * B_pad, E)
    goal_tm = goal_p.reshape(seq * B_pad, L)

    gates0 = film_lstm_input_proj(vis_tm, goal_tm,
                                  p["film1_w"], p["film1_b"],
                                  p["film2_w"], p["film2_b"],
                                  p["wih0"], p["b0"])
    gates0 = gates0.reshape(seq, B_pad, 4 * H)

    use_state = single_step and (hidden_states is not None) and (cell_states is not None)
    if use_state:
        h0 = jnp.zeros((2, B_pad, H), jnp.float32).at[:, :bs].set(hidden_states)
        c0 = jnp.zeros((2, B_pad, H), jnp.float32).at[:, :bs].set(cell_states)
    else:
        h0 = jnp.zeros((2, B_pad, H), jnp.float32)
        c0 = jnp.zeros((2, B_pad, H), jnp.float32)

    logits_pad, h_n, c_n = lstm_head(gates0, h0, c0,
                                     p["whh0"], p["wih1"], p["whh1"], p["b1"],
                                     p["fc1_w"], p["fc1_b"], p["fc2_w"], p["fc2_b"])

    x = jnp.transpose(logits_pad, (1, 0, 2))[:bs, :, :action_size]   # (bs, seq, action)
    return x, h_n[:, :bs], c_n[:, :bs]


# -----------------------------------------------------------------------------
# Parameter construction (weights bf16 for MXU, biases f32; LSTM biases folded;
# FiLM residual folded into the gamma bias)
# -----------------------------------------------------------------------------
def init_params(key, *, state_emb, lang_emb, hidden, action_size):
    ks = jax.random.split(key, 12)
    s = 0.05
    it = iter(range(12))

    def w(shape):
        return (s * jax.random.normal(ks[next(it)], shape, jnp.float32)).astype(jnp.bfloat16)

    def zb(m):
        return jnp.zeros((1, m), jnp.float32)

    a_pad = -(-action_size // 128) * 128

    p = {}
    # Stand-in FiLM generators: lang_emb -> (gamma, beta); the "+ x" residual is
    # folded in by pre-adding 1.0 to the gamma part of the bias.
    p["film1_w"] = w((lang_emb, 2 * state_emb))
    p["film1_b"] = zb(2 * state_emb).at[:, :state_emb].add(1.0)
    p["film2_w"] = w((lang_emb, 2 * state_emb))
    p["film2_b"] = zb(2 * state_emb).at[:, :state_emb].add(1.0)
    # 2-layer LSTM; weights pre-transposed to (in, 4H), b = b_ih + b_hh folded
    p["wih0"], p["whh0"], p["b0"] = (w((state_emb, 4 * hidden)),
                                     w((hidden, 4 * hidden)), zb(4 * hidden))
    p["wih1"], p["whh1"], p["b1"] = (w((hidden, 4 * hidden)),
                                     w((hidden, 4 * hidden)), zb(4 * hidden))
    # head: fc_1 (H -> H/2), fc_2 (H/2 -> action_size, lane-padded to 128)
    p["fc1_w"], p["fc1_b"] = w((hidden, hidden // 2)), zb(hidden // 2)
    fc2 = s * jax.random.normal(ks[next(it)], (hidden // 2, action_size), jnp.float32)
    p["fc2_w"] = (jnp.zeros((hidden // 2, a_pad), jnp.float32)
                  .at[:, :action_size].set(fc2).astype(jnp.bfloat16))
    p["fc2_b"] = jnp.zeros((1, a_pad), jnp.float32)
    return p


# -----------------------------------------------------------------------------
if __name__ == "__main__":
    bs, seq = 2, 8
    state_emb = 128     # config.state_emb_size
    lang_emb = 128      # config.lang_emb_size
    hidden = 128        # hidden_size (scaled down from 1024 for the demo)
    action_size = 7

    key = jax.random.PRNGKey(0)
    kp, kv, kg = jax.random.split(key, 3)

    params = init_params(kp, state_emb=state_emb, lang_emb=lang_emb,
                         hidden=hidden, action_size=action_size)

    vis_emb = jax.random.normal(kv, (bs, seq, state_emb), jnp.float32)
    goal_emb = jax.random.normal(kg, (bs * seq, lang_emb), jnp.float32)

    fwd = jax.jit(functools.partial(decision_maker_forward, action_size=action_size))
    x, h_n, c_n = fwd(params, vis_emb, goal_emb)
    jax.block_until_ready((x, h_n, c_n))

    assert x.shape == (bs, seq, action_size)
    assert h_n.shape == (2, bs, hidden) and c_n.shape == (2, bs, hidden)

    # single_step continuation with carried (h, c), as in the PyTorch module
    fwd_step = jax.jit(functools.partial(decision_maker_forward,
                                         action_size=action_size, single_step=True))
    x1, h1, c1 = fwd_step(params, vis_emb[:, :1, :], goal_emb[:bs, :], h_n, c_n)
    jax.block_until_ready((x1, h1, c1))
    assert x1.shape == (bs, 1, action_size)
    assert h1.shape == (2, bs, hidden) and c1.shape == (2, bs, hidden)

    print("KERNEL_OK")
</pallas_src>

<mosaic_0001>
module attributes {stable_mosaic.version = 11 : i64} {
  func.func @_film_proj_kernel(%arg0: i32, %arg1: memref<64x128xf32, #tpu.memory_space<vmem>>, %arg2: memref<64x128xf32, #tpu.memory_space<vmem>>, %arg3: memref<128x256xbf16, #tpu.memory_space<vmem>>, %arg4: memref<1x256xf32, #tpu.memory_space<vmem>>, %arg5: memref<128x256xbf16, #tpu.memory_space<vmem>>, %arg6: memref<1x256xf32, #tpu.memory_space<vmem>>, %arg7: memref<128x512xbf16, #tpu.memory_space<vmem>>, %arg8: memref<1x512xf32, #tpu.memory_space<vmem>>, %arg9: memref<64x512xf32, #tpu.memory_space<vmem>>) attributes {dimension_semantics = [#tpu.dimension_semantics<parallel>], iteration_bounds = array<i64: 1>, scalar_prefetch = 0 : i64, scratch_operands = 0 : i64, tpu.core_type = #tpu.core_type<tc>, window_params = [{transform_indices = @transform_0, window_bounds = array<i64: 64, 128>}, {transform_indices = @transform_1, window_bounds = array<i64: 64, 128>}, {pipeline_mode = #tpu.pipeline_mode<synchronous>, transform_indices = @transform_2, window_bounds = array<i64: 128, 256>}, {pipeline_mode = #tpu.pipeline_mode<synchronous>, transform_indices = @transform_3, window_bounds = array<i64: 1, 256>}, {pipeline_mode = #tpu.pipeline_mode<synchronous>, transform_indices = @transform_4, window_bounds = array<i64: 128, 256>}, {pipeline_mode = #tpu.pipeline_mode<synchronous>, transform_indices = @transform_5, window_bounds = array<i64: 1, 256>}, {pipeline_mode = #tpu.pipeline_mode<synchronous>, transform_indices = @transform_6, window_bounds = array<i64: 128, 512>}, {pipeline_mode = #tpu.pipeline_mode<synchronous>, transform_indices = @transform_7, window_bounds = array<i64: 1, 512>}, {transform_indices = @transform_8, window_bounds = array<i64: 64, 512>}]} {
    %c0 = arith.constant 0 : index
    %c0_0 = arith.constant 0 : index
    %0 = vector.load %arg1[%c0, %c0_0] : memref<64x128xf32, #tpu.memory_space<vmem>>, vector<64x128xf32>
    %c0_1 = arith.constant 0 : index
    %c0_2 = arith.constant 0 : index
    %1 = vector.load %arg2[%c0_1, %c0_2] : memref<64x128xf32, #tpu.memory_space<vmem>>, vector<64x128xf32>
    %2 = arith.truncf %1 : vector<64x128xf32> to vector<64x128xbf16>
    %c0_3 = arith.constant 0 : index
    %c0_4 = arith.constant 0 : index
    %3 = vector.load %arg3[%c0_3, %c0_4] : memref<128x256xbf16, #tpu.memory_space<vmem>>, vector<128x256xbf16>
    %cst = arith.constant dense<0.000000e+00> : vector<64x256xf32>
    %4 = tpu.matmul %2, %3, %cst {dimension_numbers = #tpu.dot_dimension_numbers<[1], [0], [0], [1], [0, 0, 1, 1], [], []>} : vector<64x128xbf16>, vector<128x256xbf16>, vector<64x256xf32> -> vector<64x256xf32>
    %c0_5 = arith.constant 0 : index
    %c0_6 = arith.constant 0 : index
    %5 = vector.load %arg4[%c0_5, %c0_6] : memref<1x256xf32, #tpu.memory_space<vmem>>, vector<1x256xf32>
    %6 = vector.broadcast %5 : vector<1x256xf32> to vector<64x256xf32>
    %7 = arith.addf %4, %6 : vector<64x256xf32>
    %8 = vector.extract_strided_slice %7 {offsets = [0, 0], sizes = [64, 128], strides = [1, 1]} : vector<64x256xf32> to vector<64x128xf32>
    %9 = arith.mulf %8, %0 : vector<64x128xf32>
    %10 = vector.extract_strided_slice %7 {offsets = [0, 128], sizes = [64, 128], strides = [1, 1]} : vector<64x256xf32> to vector<64x128xf32>
    %11 = arith.addf %9, %10 : vector<64x128xf32>
    %c0_7 = arith.constant 0 : index
    %c0_8 = arith.constant 0 : index
    %12 = vector.load %arg5[%c0_7, %c0_8] : memref<128x256xbf16, #tpu.memory_space<vmem>>, vector<128x256xbf16>
    %cst_9 = arith.constant dense<0.000000e+00> : vector<64x256xf32>
    %13 = tpu.matmul %2, %12, %cst_9 {dimension_numbers = #tpu.dot_dimension_numbers<[1], [0], [0], [1], [0, 0, 1, 1], [], []>} : vector<64x128xbf16>, vector<128x256xbf16>, vector<64x256xf32> -> vector<64x256xf32>
    %c0_10 = arith.constant 0 : index
    %c0_11 = arith.constant 0 : index
    %14 = vector.load %arg6[%c0_10, %c0_11] : memref<1x256xf32, #tpu.memory_space<vmem>>, vector<1x256xf32>
    %15 = vector.broadcast %14 : vector<1x256xf32> to vector<64x256xf32>
    %16 = arith.addf %13, %15 : vector<64x256xf32>
    %17 = vector.extract_strided_slice %16 {offsets = [0, 0], sizes = [64, 128], strides = [1, 1]} : vector<64x256xf32> to vector<64x128xf32>
    %18 = arith.mulf %17, %11 : vector<64x128xf32>
    %19 = vector.extract_strided_slice %16 {offsets = [0, 128], sizes = [64, 128], strides = [1, 1]} : vector<64x256xf32> to vector<64x128xf32>
    %20 = arith.addf %18, %19 : vector<64x128xf32>
    %21 = arith.truncf %20 : vector<64x128xf32> to vector<64x128xbf16>
    %c0_12 = arith.constant 0 : index
    %c0_13 = arith.constant 0 : index
    %22 = vector.load %arg7[%c0_12, %c0_13] : memref<128x512xbf16, #tpu.memory_space<vmem>>, vector<128x512xbf16>
    %cst_14 = arith.constant dense<0.000000e+00> : vector<64x512xf32>
    %23 = tpu.matmul %21, %22, %cst_14 {dimension_numbers = #tpu.dot_dimension_numbers<[1], [0], [0], [1], [0, 0, 1, 1], [], []>} : vector<64x128xbf16>, vector<128x512xbf16>, vector<64x512xf32> -> vector<64x512xf32>
    %c0_15 = arith.constant 0 : index
    %c0_16 = arith.constant 0 : index
    %24 = vector.load %arg8[%c0_15, %c0_16] : memref<1x512xf32, #tpu.memory_space<vmem>>, vector<1x512xf32>
    %25 = vector.broadcast %24 : vector<1x512xf32> to vector<64x512xf32>
    %26 = arith.addf %23, %25 : vector<64x512xf32>
    %c0_17 = arith.constant 0 : index
    %c0_18 = arith.constant 0 : index
    %27 = vector.load %arg9[%c0_17, %c0_18] : memref<64x512xf32, #tpu.memory_space<vmem>>, vector<64x512xf32>
    tpu.vector_store %arg9[%c0_17, %c0_18], %26 {strides = array<i32>} : memref<64x512xf32, #tpu.memory_space<vmem>>, vector<64x512xf32>,
    return
  }
  func.func @transform_0(%arg0: i32) -> (i32, i32) {
    %c0_i32 = arith.constant 0 : i32
    %c0_i32_0 = arith.constant 0 : i32
    return %arg0, %c0_i32 : i32, i32
  }
  func.func @transform_1(%arg0: i32) -> (i32, i32) {
    %c0_i32 = arith.constant 0 : i32
    %c0_i32_0 = arith.constant 0 : i32
    return %arg0, %c0_i32 : i32, i32
  }
  func.func @transform_2(%arg0: i32) -> (i32, i32) {
    %c0_i32 = arith.constant 0 : i32
    %c0_i32_0 = arith.constant 0 : i32
    %c0_i32_1 = arith.constant 0 : i32
    return %c0_i32, %c0_i32_0 : i32, i32
  }
  func.func @transform_3(%arg0: i32) -> (i32, i32) {
    %c0_i32 = arith.constant 0 : i32
    %c0_i32_0 = arith.constant 0 : i32
    %c0_i32_1 = arith.constant 0 : i32
    return %c0_i32, %c0_i32_0 : i32, i32
  }
  func.func @transform_4(%arg0: i32) -> (i32, i32) {
    %c0_i32 = arith.constant 0 : i32
    %c0_i32_0 = arith.constant 0 : i32
    %c0_i32_1 = arith.constant 0 : i32
    return %c0_i32, %c0_i32_0 : i32, i32
  }
  func.func @transform_5(%arg0: i32) -> (i32, i32) {
    %c0_i32 = arith.constant 0 : i32
    %c0_i32_0 = arith.constant 0 : i32
    %c0_i32_1 = arith.constant 0 : i32
    return %c0_i32, %c0_i32_0 : i32, i32
  }
  func.func @transform_6(%arg0: i32) -> (i32, i32) {
    %c0_i32 = arith.constant 0 : i32
    %c0_i32_0 = arith.constant 0 : i32
    %c0_i32_1 = arith.constant 0 : i32
    return %c0_i32, %c0_i32_0 : i32, i32
  }
  func.func @transform_7(%arg0: i32) -> (i32, i32) {
    %c0_i32 = arith.constant 0 : i32
    %c0_i32_0 = arith.constant 0 : i32
    %c0_i32_1 = arith.constant 0 : i32
    return %c0_i32, %c0_i32_0 : i32, i32
  }
  func.func @transform_8(%arg0: i32) -> (i32, i32) {
    %c0_i32 = arith.constant 0 : i32
    %c0_i32_0 = arith.constant 0 : i32
    return %arg0, %c0_i32 : i32, i32
  }
}

module attributes {stable_mosaic.version = 11 : i64} {
  func.func @_lstm_head_kernel(%arg0: i32, %arg1: i32, %arg2: memref<8x8x512xf32, #tpu.memory_space<vmem>>, %arg3: memref<2x8x128xf32, #tpu.memory_space<vmem>>, %arg4: memref<2x8x128xf32, #tpu.memory_space<vmem>>, %arg5: memref<128x512xbf16, #tpu.memory_space<vmem>>, %arg6: memref<128x512xbf16, #tpu.memory_space<vmem>>, %arg7: memref<128x512xbf16, #tpu.memory_space<vmem>>, %arg8: memref<1x512xf32, #tpu.memory_space<vmem>>, %arg9: memref<128x64xbf16, #tpu.memory_space<vmem>>, %arg10: memref<1x64xf32, #tpu.memory_space<vmem>>, %arg11: memref<64x128xbf16, #tpu.memory_space<vmem>>, %arg12: memref<1x128xf32, #tpu.memory_space<vmem>>, %arg13: memref<8x8x128xf32, #tpu.memory_space<vmem>>, %arg14: memref<2x8x128xf32, #tpu.memory_space<vmem>>, %arg15: memref<2x8x128xf32, #tpu.memory_space<vmem>>, %arg16: memref<2x8x128xbf16, #tpu.memory_space<vmem>>, %arg17: memref<2x8x128xf32, #tpu.memory_space<vmem>>, %arg18: memref<8x8x128xbf16, #tpu.memory_space<vmem>>) attributes {dimension_semantics = [#tpu.dimension_semantics<parallel>, #tpu.dimension_semantics<arbitrary>], iteration_bounds = array<i64: 1, 1>, scalar_prefetch = 0 : i64, scratch_operands = 3 : i64, tpu.core_type = #tpu.core_type<tc>, window_params = [{transform_indices = @transform_0, window_bounds = array<i64: 8, 8, 512>}, {transform_indices = @transform_1, window_bounds = array<i64: 2, 8, 128>}, {transform_indices = @transform_2, window_bounds = array<i64: 2, 8, 128>}, {pipeline_mode = #tpu.pipeline_mode<synchronous>, transform_indices = @transform_3, window_bounds = array<i64: 128, 512>}, {pipeline_mode = #tpu.pipeline_mode<synchronous>, transform_indices = @transform_4, window_bounds = array<i64: 128, 512>}, {pipeline_mode = #tpu.pipeline_mode<synchronous>, transform_indices = @transform_5, window_bounds = array<i64: 128, 512>}, {pipeline_mode = #tpu.pipeline_mode<synchronous>, transform_indices = @transform_6, window_bounds = array<i64: 1, 512>}, {pipeline_mode = #tpu.pipeline_mode<synchronous>, transform_indices = @transform_7, window_bounds = array<i64: 128, 64>}, {pipeline_mode = #tpu.pipeline_mode<synchronous>, transform_indices = @transform_8, window_bounds = array<i64: 1, 64>}, {pipeline_mode = #tpu.pipeline_mode<synchronous>, transform_indices = @transform_9, window_bounds = array<i64: 64, 128>}, {pipeline_mode = #tpu.pipeline_mode<synchronous>, transform_indices = @transform_10, window_bounds = array<i64: 1, 128>}, {transform_indices = @transform_11, window_bounds = array<i64: 8, 8, 128>}, {transform_indices = @transform_12, window_bounds = array<i64: 2, 8, 128>}, {transform_indices = @transform_13, window_bounds = array<i64: 2, 8, 128>}]} {
    %c0_i32 = arith.constant 0 : i32
    %0 = arith.cmpi eq, %arg1, %c0_i32 : i32
    %1 = arith.extui %0 : i1 to i32
    %c0_i32_0 = arith.constant 0 : i32
    %2 = arith.cmpi ne, %1, %c0_i32_0 : i32
    scf.if %2 {
      %c0_219 = arith.constant 0 : index
      %c0_220 = arith.constant 0 : index
      %c0_221 = arith.constant 0 : index
      %587 = vector.load %arg3[%c0_219, %c0_220, %c0_221] : memref<2x8x128xf32, #tpu.memory_space<vmem>>, vector<2x8x128xf32>
      %588 = arith.truncf %587 : vector<2x8x128xf32> to vector<2x8x128xbf16>
      %c0_222 = arith.constant 0 : index
      %c0_223 = arith.constant 0 : index
      %c0_224 = arith.constant 0 : index
      %589 = vector.load %arg16[%c0_222, %c0_223, %c0_224] : memref<2x8x128xbf16, #tpu.memory_space<vmem>>, vector<2x8x128xbf16>
      tpu.vector_store %arg16[%c0_222, %c0_223, %c0_224], %588 {strides = array<i32>} : memref<2x8x128xbf16, #tpu.memory_space<vmem>>, vector<2x8x128xbf16>,
      %c0_225 = arith.constant 0 : index
      %c0_226 = arith.constant 0 : index
      %c0_227 = arith.constant 0 : index
      %590 = vector.load %arg4[%c0_225, %c0_226, %c0_227] : memref<2x8x128xf32, #tpu.memory_space<vmem>>, vector<2x8x128xf32>
      %c0_228 = arith.constant 0 : index
      %c0_229 = arith.constant 0 : index
      %c0_230 = arith.constant 0 : index
      %591 = vector.load %arg17[%c0_228, %c0_229, %c0_230] : memref<2x8x128xf32, #tpu.memory_space<vmem>>, vector<2x8x128xf32>
      tpu.vector_store %arg17[%c0_228, %c0_229, %c0_230], %590 {strides = array<i32>} : memref<2x8x128xf32, #tpu.memory_space<vmem>>, vector<2x8x128xf32>,
    } else {
    }
    %c0 = arith.constant 0 : index
    %c0_1 = arith.constant 0 : index
    %c0_2 = arith.constant 0 : index
    %3 = vector.load %arg16[%c0, %c0_1, %c0_2] : memref<2x8x128xbf16, #tpu.memory_space<vmem>>, vector<1x8x128xbf16>
    %4 = vector.shape_cast %3 : vector<1x8x128xbf16> to vector<8x128xbf16>
    %c1 = arith.constant 1 : index
    %c0_3 = arith.constant 0 : index
    %c0_4 = arith.constant 0 : index
    %5 = vector.load %arg16[%c1, %c0_3, %c0_4] : memref<2x8x128xbf16, #tpu.memory_space<vmem>>, vector<1x8x128xbf16>
    %6 = vector.shape_cast %5 : vector<1x8x128xbf16> to vector<8x128xbf16>
    %c0_5 = arith.constant 0 : index
    %c0_6 = arith.constant 0 : index
    %c0_7 = arith.constant 0 : index
    %7 = vector.load %arg17[%c0_5, %c0_6, %c0_7] : memref<2x8x128xf32, #tpu.memory_space<vmem>>, vector<1x8x128xf32>
    %8 = vector.shape_cast %7 : vector<1x8x128xf32> to vector<8x128xf32>
    %c1_8 = arith.constant 1 : index
    %c0_9 = arith.constant 0 : index
    %c0_10 = arith.constant 0 : index
    %9 = vector.load %arg17[%c1_8, %c0_9, %c0_10] : memref<2x8x128xf32, #tpu.memory_space<vmem>>, vector<1x8x128xf32>
    %10 = vector.shape_cast %9 : vector<1x8x128xf32> to vector<8x128xf32>
    %c0_11 = arith.constant 0 : index
    %c0_12 = arith.constant 0 : index
    %c0_13 = arith.constant 0 : index
    %11 = vector.load %arg2[%c0_11, %c0_12, %c0_13] : memref<8x8x512xf32, #tpu.memory_space<vmem>>, vector<1x8x512xf32>
    %12 = vector.shape_cast %11 : vector<1x8x512xf32> to vector<8x512xf32>
    %c0_14 = arith.constant 0 : index
    %c0_15 = arith.constant 0 : index
    %13 = vector.load %arg5[%c0_14, %c0_15] : memref<128x512xbf16, #tpu.memory_space<vmem>>, vector<128x512xbf16>
    %cst = arith.constant dense<0.000000e+00> : vector<8x512xf32>
    %14 = tpu.matmul %4, %13, %cst {dimension_numbers = #tpu.dot_dimension_numbers<[1], [0], [0], [1], [0, 0, 1, 1], [], []>} : vector<8x128xbf16>, vector<128x512xbf16>, vector<8x512xf32> -> vector<8x512xf32>
    %15 = arith.addf %12, %14 : vector<8x512xf32>
    %16 = vector.extract_strided_slice %15 {offsets = [0, 0], sizes = [8, 128], strides = [1, 1]} : vector<8x512xf32> to vector<8x128xf32>
    %17 = arith.negf %16 : vector<8x128xf32>
    %18 = math.exp %17 : vector<8x128xf32>
    %cst_16 = arith.constant 1.000000e+00 : f32
    %19 = vector.broadcast %cst_16 : f32 to vector<8x128xf32>
    %20 = arith.addf %19, %18 : vector<8x128xf32>
    %21 = arith.divf %19, %20 : vector<8x128xf32>
    %22 = vector.extract_strided_slice %15 {offsets = [0, 128], sizes = [8, 128], strides = [1, 1]} : vector<8x512xf32> to vector<8x128xf32>
    %23 = arith.negf %22 : vector<8x128xf32>
    %24 = math.exp %23 : vector<8x128xf32>
    %cst_17 = arith.constant 1.000000e+00 : f32
    %25 = vector.broadcast %cst_17 : f32 to vector<8x128xf32>
    %26 = arith.addf %25, %24 : vector<8x128xf32>
    %27 = arith.divf %25, %26 : vector<8x128xf32>
    %28 = vector.extract_strided_slice %15 {offsets = [0, 256], sizes = [8, 128], strides = [1, 1]} : vector<8x512xf32> to vector<8x128xf32>
    %29 = math.tanh %28 : vector<8x128xf32>
    %30 = vector.extract_strided_slice %15 {offsets = [0, 384], sizes = [8, 128], strides = [1, 1]} : vector<8x512xf32> to vector<8x128xf32>
    %31 = arith.negf %30 : vector<8x128xf32>
    %32 = math.exp %31 : vector<8x128xf32>
    %cst_18 = arith.constant 1.000000e+00 : f32
    %33 = vector.broadcast %cst_18 : f32 to vector<8x128xf32>
    %34 = arith.addf %33, %32 : vector<8x128xf32>
    %35 = arith.divf %33, %34 : vector<8x128xf32>
    %36 = arith.mulf %27, %8 : vector<8x128xf32>
    %37 = arith.mulf %21, %29 : vector<8x128xf32>
    %38 = arith.addf %36, %37 : vector<8x128xf32>
    %39 = math.tanh %38 : vector<8x128xf32>
    %40 = arith.mulf %35, %39 : vector<8x128xf32>
    %41 = arith.truncf %40 : vector<8x128xf32> to vector<8x128xbf16>
    %c0_19 = arith.constant 0 : index
    %c0_20 = arith.constant 0 : index
    %42 = vector.load %arg6[%c0_19, %c0_20] : memref<128x512xbf16, #tpu.memory_space<vmem>>, vector<128x512xbf16>
    %cst_21 = arith.constant dense<0.000000e+00> : vector<8x512xf32>
    %43 = tpu.matmul %41, %42, %cst_21 {dimension_numbers = #tpu.dot_dimension_numbers<[1], [0], [0], [1], [0, 0, 1, 1], [], []>} : vector<8x128xbf16>, vector<128x512xbf16>, vector<8x512xf32> -> vector<8x512xf32>
    %c0_22 = arith.constant 0 : index
    %c0_23 = arith.constant 0 : index
    %44 = vector.load %arg8[%c0_22, %c0_23] : memref<1x512xf32, #tpu.memory_space<vmem>>, vector<1x512xf32>
    %45 = vector.broadcast %44 : vector<1x512xf32> to vector<8x512xf32>
    %46 = arith.addf %43, %45 : vector<8x512xf32>
    %c0_24 = arith.constant 0 : index
    %c0_25 = arith.constant 0 : index
    %47 = vector.load %arg7[%c0_24, %c0_25] : memref<128x512xbf16, #tpu.memory_space<vmem>>, vector<128x512xbf16>
    %cst_26 = arith.constant dense<0.000000e+00> : vector<8x512xf32>
    %48 = tpu.matmul %6, %47, %cst_26 {dimension_numbers = #tpu.dot_dimension_numbers<[1], [0], [0], [1], [0, 0, 1, 1], [], []>} : vector<8x128xbf16>, vector<128x512xbf16>, vector<8x512xf32> -> vector<8x512xf32>
    %49 = arith.addf %46, %48 : vector<8x512xf32>
    %50 = vector.extract_strided_slice %49 {offsets = [0, 0], sizes = [8, 128], strides = [1, 1]} : vector<8x512xf32> to vector<8x128xf32>
    %51 = arith.negf %50 : vector<8x128xf32>
    %52 = math.exp %51 : vector<8x128xf32>
    %cst_27 = arith.constant 1.000000e+00 : f32
    %53 = vector.broadcast %cst_27 : f32 to vector<8x128xf32>
    %54 = arith.addf %53, %52 : vector<8x128xf32>
    %55 = arith.divf %53, %54 : vector<8x128xf32>
    %56 = vector.extract_strided_slice %49 {offsets = [0, 128], sizes = [8, 128], strides = [1, 1]} : vector<8x512xf32> to vector<8x128xf32>
    %57 = arith.negf %56 : vector<8x128xf32>
    %58 = math.exp %57 : vector<8x128xf32>
    %cst_28 = arith.constant 1.000000e+00 : f32
    %59 = vector.broadcast %cst_28 : f32 to vector<8x128xf32>
    %60 = arith.addf %59, %58 : vector<8x128xf32>
    %61 = arith.divf %59, %60 : vector<8x128xf32>
    %62 = vector.extract_strided_slice %49 {offsets = [0, 256], sizes = [8, 128], strides = [1, 1]} : vector<8x512xf32> to vector<8x128xf32>
    %63 = math.tanh %62 : vector<8x128xf32>
    %64 = vector.extract_strided_slice %49 {offsets = [0, 384], sizes = [8, 128], strides = [1, 1]} : vector<8x512xf32> to vector<8x128xf32>
    %65 = arith.negf %64 : vector<8x128xf32>
    %66 = math.exp %65 : vector<8x128xf32>
    %cst_29 = arith.constant 1.000000e+00 : f32
    %67 = vector.broadcast %cst_29 : f32 to vector<8x128xf32>
    %68 = arith.addf %67, %66 : vector<8x128xf32>
    %69 = arith.divf %67, %68 : vector<8x128xf32>
    %70 = arith.mulf %61, %10 : vector<8x128xf32>
    %71 = arith.mulf %55, %63 : vector<8x128xf32>
    %72 = arith.addf %70, %71 : vector<8x128xf32>
    %73 = math.tanh %72 : vector<8x128xf32>
    %74 = arith.mulf %69, %73 : vector<8x128xf32>
    %75 = arith.truncf %74 : vector<8x128xf32> to vector<8x128xbf16>
    %c0_30 = arith.constant 0 : index
    %c0_31 = arith.constant 0 : index
    %c0_32 = arith.constant 0 : index
    %76 = vector.load %arg18[%c0_30, %c0_31, %c0_32] : memref<8x8x128xbf16, #tpu.memory_space<vmem>>, vector<1x8x128xbf16>
    %77 = vector.shape_cast %76 : vector<1x8x128xbf16> to vector<8x128xbf16>
    %78 = vector.shape_cast %75 : vector<8x128xbf16> to vector<1x8x128xbf16>
    tpu.vector_store %arg18[%c0_30, %c0_31, %c0_32], %78 {strides = array<i32>} : memref<8x8x128xbf16, #tpu.memory_space<vmem>>, vector<1x8x128xbf16>,
    %c1_33 = arith.constant 1 : index
    %c0_34 = arith.constant 0 : index
    %c0_35 = arith.constant 0 : index
    %79 = vector.load %arg2[%c1_33, %c0_34, %c0_35] : memref<8x8x512xf32, #tpu.memory_space<vmem>>, vector<1x8x512xf32>
    %80 = vector.shape_cast %79 : vector<1x8x512xf32> to vector<8x512xf32>
    %c0_36 = arith.constant 0 : index
    %c0_37 = arith.constant 0 : index
    %81 = vector.load %arg5[%c0_36, %c0_37] : memref<128x512xbf16, #tpu.memory_space<vmem>>, vector<128x512xbf16>
    %cst_38 = arith.constant dense<0.000000e+00> : vector<8x512xf32>
    %82 = tpu.matmul %41, %81, %cst_38 {dimension_numbers = #tpu.dot_dimension_numbers<[1], [0], [0], [1], [0, 0, 1, 1], [], []>} : vector<8x128xbf16>, vector<128x512xbf16>, vector<8x512xf32> -> vector<8x512xf32>
    %83 = arith.addf %80, %82 : vector<8x512xf32>
    %84 = vector.extract_strided_slice %83 {offsets = [0, 0], sizes = [8, 128], strides = [1, 1]} : vector<8x512xf32> to vector<8x128xf32>
    %85 = arith.negf %84 : vector<8x128xf32>
    %86 = math.exp %85 : vector<8x128xf32>
    %cst_39 = arith.constant 1.000000e+00 : f32
    %87 = vector.broadcast %cst_39 : f32 to vector<8x128xf32>
    %88 = arith.addf %87, %86 : vector<8x128xf32>
    %89 = arith.divf %87, %88 : vector<8x128xf32>
    %90 = vector.extract_strided_slice %83 {offsets = [0, 128], sizes = [8, 128], strides = [1, 1]} : vector<8x512xf32> to vector<8x128xf32>
    %91 = arith.negf %90 : vector<8x128xf32>
    %92 = math.exp %91 : vector<8x128xf32>
    %cst_40 = arith.constant 1.000000e+00 : f32
    %93 = vector.broadcast %cst_40 : f32 to vector<8x128xf32>
    %94 = arith.addf %93, %92 : vector<8x128xf32>
    %95 = arith.divf %93, %94 : vector<8x128xf32>
    %96 = vector.extract_strided_slice %83 {offsets = [0, 256], sizes = [8, 128], strides = [1, 1]} : vector<8x512xf32> to vector<8x128xf32>
    %97 = math.tanh %96 : vector<8x128xf32>
    %98 = vector.extract_strided_slice %83 {offsets = [0, 384], sizes = [8, 128], strides = [1, 1]} : vector<8x512xf32> to vector<8x128xf32>
    %99 = arith.negf %98 : vector<8x128xf32>
    %100 = math.exp %99 : vector<8x128xf32>
    %cst_41 = arith.constant 1.000000e+00 : f32
    %101 = vector.broadcast %cst_41 : f32 to vector<8x128xf32>
    %102 = arith.addf %101, %100 : vector<8x128xf32>
    %103 = arith.divf %101, %102 : vector<8x128xf32>
    %104 = arith.mulf %95, %38 : vector<8x128xf32>
    %105 = arith.mulf %89, %97 : vector<8x128xf32>
    %106 = arith.addf %104, %105 : vector<8x128xf32>
    %107 = math.tanh %106 : vector<8x128xf32>
    %108 = arith.mulf %103, %107 : vector<8x128xf32>
    %109 = arith.truncf %108 : vector<8x128xf32> to vector<8x128xbf16>
    %c0_42 = arith.constant 0 : index
    %c0_43 = arith.constant 0 : index
    %110 = vector.load %arg6[%c0_42, %c0_43] : memref<128x512xbf16, #tpu.memory_space<vmem>>, vector<128x512xbf16>
    %cst_44 = arith.constant dense<0.000000e+00> : vector<8x512xf32>
    %111 = tpu.matmul %109, %110, %cst_44 {dimension_numbers = #tpu.dot_dimension_numbers<[1], [0], [0], [1], [0, 0, 1, 1], [], []>} : vector<8x128xbf16>, vector<128x512xbf16>, vector<8x512xf32> -> vector<8x512xf32>
    %c0_45 = arith.constant 0 : index
    %c0_46 = arith.constant 0 : index
    %112 = vector.load %arg8[%c0_45, %c0_46] : memref<1x512xf32, #tpu.memory_space<vmem>>, vector<1x512xf32>
    %113 = vector.broadcast %112 : vector<1x512xf32> to vector<8x512xf32>
    %114 = arith.addf %111, %113 : vector<8x512xf32>
    %c0_47 = arith.constant 0 : index
    %c0_48 = arith.constant 0 : index
    %115 = vector.load %arg7[%c0_47, %c0_48] : memref<128x512xbf16, #tpu.memory_space<vmem>>, vector<128x512xbf16>
    %cst_49 = arith.constant dense<0.000000e+00> : vector<8x512xf32>
    %116 = tpu.matmul %75, %115, %cst_49 {dimension_numbers = #tpu.dot_dimension_numbers<[1], [0], [0], [1], [0, 0, 1, 1], [], []>} : vector<8x128xbf16>, vector<128x512xbf16>, vector<8x512xf32> -> vector<8x512xf32>
    %117 = arith.addf %114, %116 : vector<8x512xf32>
    %118 = vector.extract_strided_slice %117 {offsets = [0, 0], sizes = [8, 128], strides = [1, 1]} : vector<8x512xf32> to vector<8x128xf32>
    %119 = arith.negf %118 : vector<8x128xf32>
    %120 = math.exp %119 : vector<8x128xf32>
    %cst_50 = arith.constant 1.000000e+00 : f32
    %121 = vector.broadcast %cst_50 : f32 to vector<8x128xf32>
    %122 = arith.addf %121, %120 : vector<8x128xf32>
    %123 = arith.divf %121, %122 : vector<8x128xf32>
    %124 = vector.extract_strided_slice %117 {offsets = [0, 128], sizes = [8, 128], strides = [1, 1]} : vector<8x512xf32> to vector<8x128xf32>
    %125 = arith.negf %124 : vector<8x128xf32>
    %126 = math.exp %125 : vector<8x128xf32>
    %cst_51 = arith.constant 1.000000e+00 : f32
    %127 = vector.broadcast %cst_51 : f32 to vector<8x128xf32>
    %128 = arith.addf %127, %126 : vector<8x128xf32>
    %129 = arith.divf %127, %128 : vector<8x128xf32>
    %130 = vector.extract_strided_slice %117 {offsets = [0, 256], sizes = [8, 128], strides = [1, 1]} : vector<8x512xf32> to vector<8x128xf32>
    %131 = math.tanh %130 : vector<8x128xf32>
    %132 = vector.extract_strided_slice %117 {offsets = [0, 384], sizes = [8, 128], strides = [1, 1]} : vector<8x512xf32> to vector<8x128xf32>
    %133 = arith.negf %132 : vector<8x128xf32>
    %134 = math.exp %133 : vector<8x128xf32>
    %cst_52 = arith.constant 1.000000e+00 : f32
    %135 = vector.broadcast %cst_52 : f32 to vector<8x128xf32>
    %136 = arith.addf %135, %134 : vector<8x128xf32>
    %137 = arith.divf %135, %136 : vector<8x128xf32>
    %138 = arith.mulf %129, %72 : vector<8x128xf32>
    %139 = arith.mulf %123, %131 : vector<8x128xf32>
    %140 = arith.addf %138, %139 : vector<8x128xf32>
    %141 = math.tanh %140 : vector<8x128xf32>
    %142 = arith.mulf %137, %141 : vector<8x128xf32>
    %143 = arith.truncf %142 : vector<8x128xf32> to vector<8x128xbf16>
    %c1_53 = arith.constant 1 : index
    %c0_54 = arith.constant 0 : index
    %c0_55 = arith.constant 0 : index
    %144 = vector.load %arg18[%c1_53, %c0_54, %c0_55] : memref<8x8x128xbf16, #tpu.memory_space<vmem>>, vector<1x8x128xbf16>
    %145 = vector.shape_cast %144 : vector<1x8x128xbf16> to vector<8x128xbf16>
    %146 = vector.shape_cast %143 : vector<8x128xbf16> to vector<1x8x128xbf16>
    tpu.vector_store %arg18[%c1_53, %c0_54, %c0_55], %146 {strides = array<i32>} : memref<8x8x128xbf16, #tpu.memory_space<vmem>>, vector<1x8x128xbf16>,
    %c2 = arith.constant 2 : index
    %c0_56 = arith.constant 0 : index
    %c0_57 = arith.constant 0 : index
    %147 = vector.load %arg2[%c2, %c0_56, %c0_57] : memref<8x8x512xf32, #tpu.memory_space<vmem>>, vector<1x8x512xf32>
    %148 = vector.shape_cast %147 : vector<1x8x512xf32> to vector<8x512xf32>
    %c0_58 = arith.constant 0 : index
    %c0_59 = arith.constant 0 : index
    %149 = vector.load %arg5[%c0_58, %c0_59] : memref<128x512xbf16, #tpu.memory_space<vmem>>, vector<128x512xbf16>
    %cst_60 = arith.constant dense<0.000000e+00> : vector<8x512xf32>
    %150 = tpu.matmul %109, %149, %cst_60 {dimension_numbers = #tpu.dot_dimension_numbers<[1], [0], [0], [1], [0, 0, 1, 1], [], []>} : vector<8x128xbf16>, vector<128x512xbf16>, vector<8x512xf32> -> vector<8x512xf32>
    %151 = arith.addf %148, %150 : vector<8x512xf32>
    %152 = vector.extract_strided_slice %151 {offsets = [0, 0], sizes = [8, 128], strides = [1, 1]} : vector<8x512xf32> to vector<8x128xf32>
    %153 = arith.negf %152 : vector<8x128xf32>
    %154 = math.exp %153 : vector<8x128xf32>
    %cst_61 = arith.constant 1.000000e+00 : f32
    %155 = vector.broadcast %cst_61 : f32 to vector<8x128xf32>
    %156 = arith.addf %155, %154 : vector<8x128xf32>
    %157 = arith.divf %155, %156 : vector<8x128xf32>
    %158 = vector.extract_strided_slice %151 {offsets = [0, 128], sizes = [8, 128], strides = [1, 1]} : vector<8x512xf32> to vector<8x128xf32>
    %159 = arith.negf %158 : vector<8x128xf32>
    %160 = math.exp %159 : vector<8x128xf32>
    %cst_62 = arith.constant 1.000000e+00 : f32
    %161 = vector.broadcast %cst_62 : f32 to vector<8x128xf32>
    %162 = arith.addf %161, %160 : vector<8x128xf32>
    %163 = arith.divf %161, %162 : vector<8x128xf32>
    %164 = vector.extract_strided_slice %151 {offsets = [0, 256], sizes = [8, 128], strides = [1, 1]} : vector<8x512xf32> to vector<8x128xf32>
    %165 = math.tanh %164 : vector<8x128xf32>
    %166 = vector.extract_strided_slice %151 {offsets = [0, 384], sizes = [8, 128], strides = [1, 1]} : vector<8x512xf32> to vector<8x128xf32>
    %167 = arith.negf %166 : vector<8x128xf32>
    %168 = math.exp %167 : vector<8x128xf32>
    %cst_63 = arith.constant 1.000000e+00 : f32
    %169 = vector.broadcast %cst_63 : f32 to vector<8x128xf32>
    %170 = arith.addf %169, %168 : vector<8x128xf32>
    %171 = arith.divf %169, %170 : vector<8x128xf32>
    %172 = arith.mulf %163, %106 : vector<8x128xf32>
    %173 = arith.mulf %157, %165 : vector<8x128xf32>
    %174 = arith.addf %172, %173 : vector<8x128xf32>
    %175 = math.tanh %174 : vector<8x128xf32>
    %176 = arith.mulf %171, %175 : vector<8x128xf32>
    %177 = arith.truncf %176 : vector<8x128xf32> to vector<8x128xbf16>
    %c0_64 = arith.constant 0 : index
    %c0_65 = arith.constant 0 : index
    %178 = vector.load %arg6[%c0_64, %c0_65] : memref<128x512xbf16, #tpu.memory_space<vmem>>, vector<128x512xbf16>
    %cst_66 = arith.constant dense<0.000000e+00> : vector<8x512xf32>
    %179 = tpu.matmul %177, %178, %cst_66 {dimension_numbers = #tpu.dot_dimension_numbers<[1], [0], [0], [1], [0, 0, 1, 1], [], []>} : vector<8x128xbf16>, vector<128x512xbf16>, vector<8x512xf32> -> vector<8x512xf32>
    %c0_67 = arith.constant 0 : index
    %c0_68 = arith.constant 0 : index
    %180 = vector.load %arg8[%c0_67, %c0_68] : memref<1x512xf32, #tpu.memory_space<vmem>>, vector<1x512xf32>
    %181 = vector.broadcast %180 : vector<1x512xf32> to vector<8x512xf32>
    %182 = arith.addf %179, %181 : vector<8x512xf32>
    %c0_69 = arith.constant 0 : index
    %c0_70 = arith.constant 0 : index
    %183 = vector.load %arg7[%c0_69, %c0_70] : memref<128x512xbf16, #tpu.memory_space<vmem>>, vector<128x512xbf16>
    %cst_71 = arith.constant dense<0.000000e+00> : vector<8x512xf32>
    %184 = tpu.matmul %143, %183, %cst_71 {dimension_numbers = #tpu.dot_dimension_numbers<[1], [0], [0], [1], [0, 0, 1, 1], [], []>} : vector<8x128xbf16>, vector<128x512xbf16>, vector<8x512xf32> -> vector<8x512xf32>
    %185 = arith.addf %182, %184 : vector<8x512xf32>
    %186 = vector.extract_strided_slice %185 {offsets = [0, 0], sizes = [8, 128], strides = [1, 1]} : vector<8x512xf32> to vector<8x128xf32>
    %187 = arith.negf %186 : vector<8x128xf32>
    %188 = math.exp %187 : vector<8x128xf32>
    %cst_72 = arith.constant 1.000000e+00 : f32
    %189 = vector.broadcast %cst_72 : f32 to vector<8x128xf32>
    %190 = arith.addf %189, %188 : vector<8x128xf32>
    %191 = arith.divf %189, %190 : vector<8x128xf32>
    %192 = vector.extract_strided_slice %185 {offsets = [0, 128], sizes = [8, 128], strides = [1, 1]} : vector<8x512xf32> to vector<8x128xf32>
    %193 = arith.negf %192 : vector<8x128xf32>
    %194 = math.exp %193 : vector<8x128xf32>
    %cst_73 = arith.constant 1.000000e+00 : f32
    %195 = vector.broadcast %cst_73 : f32 to vector<8x128xf32>
    %196 = arith.addf %195, %194 : vector<8x128xf32>
    %197 = arith.divf %195, %196 : vector<8x128xf32>
    %198 = vector.extract_strided_slice %185 {offsets = [0, 256], sizes = [8, 128], strides = [1, 1]} : vector<8x512xf32> to vector<8x128xf32>
    %199 = math.tanh %198 : vector<8x128xf32>
    %200 = vector.extract_strided_slice %185 {offsets = [0, 384], sizes = [8, 128], strides = [1, 1]} : vector<8x512xf32> to vector<8x128xf32>
    %201 = arith.negf %200 : vector<8x128xf32>
    %202 = math.exp %201 : vector<8x128xf32>
    %cst_74 = arith.constant 1.000000e+00 : f32
    %203 = vector.broadcast %cst_74 : f32 to vector<8x128xf32>
    %204 = arith.addf %203, %202 : vector<8x128xf32>
    %205 = arith.divf %203, %204 : vector<8x128xf32>
    %206 = arith.mulf %197, %140 : vector<8x128xf32>
    %207 = arith.mulf %191, %199 : vector<8x128xf32>
    %208 = arith.addf %206, %207 : vector<8x128xf32>
    %209 = math.tanh %208 : vector<8x128xf32>
    %210 = arith.mulf %205, %209 : vector<8x128xf32>
    %211 = arith.truncf %210 : vector<8x128xf32> to vector<8x128xbf16>
    %c2_75 = arith.constant 2 : index
    %c0_76 = arith.constant 0 : index
    %c0_77 = arith.constant 0 : index
    %212 = vector.load %arg18[%c2_75, %c0_76, %c0_77] : memref<8x8x128xbf16, #tpu.memory_space<vmem>>, vector<1x8x128xbf16>
    %213 = vector.shape_cast %212 : vector<1x8x128xbf16> to vector<8x128xbf16>
    %214 = vector.shape_cast %211 : vector<8x128xbf16> to vector<1x8x128xbf16>
    tpu.vector_store %arg18[%c2_75, %c0_76, %c0_77], %214 {strides = array<i32>} : memref<8x8x128xbf16, #tpu.memory_space<vmem>>, vector<1x8x128xbf16>,
    %c3 = arith.constant 3 : index
    %c0_78 = arith.constant 0 : index
    %c0_79 = arith.constant 0 : index
    %215 = vector.load %arg2[%c3, %c0_78, %c0_79] : memref<8x8x512xf32, #tpu.memory_space<vmem>>, vector<1x8x512xf32>
    %216 = vector.shape_cast %215 : vector<1x8x512xf32> to vector<8x512xf32>
    %c0_80 = arith.constant 0 : index
    %c0_81 = arith.constant 0 : index
    %217 = vector.load %arg5[%c0_80, %c0_81] : memref<128x512xbf16, #tpu.memory_space<vmem>>, vector<128x512xbf16>
    %cst_82 = arith.constant dense<0.000000e+00> : vector<8x512xf32>
    %218 = tpu.matmul %177, %217, %cst_82 {dimension_numbers = #tpu.dot_dimension_numbers<[1], [0], [0], [1], [0, 0, 1, 1], [], []>} : vector<8x128xbf16>, vector<128x512xbf16>, vector<8x512xf32> -> vector<8x512xf32>
    %219 = arith.addf %216, %218 : vector<8x512xf32>
    %220 = vector.extract_strided_slice %219 {offsets = [0, 0], sizes = [8, 128], strides = [1, 1]} : vector<8x512xf32> to vector<8x128xf32>
    %221 = arith.negf %220 : vector<8x128xf32>
    %222 = math.exp %221 : vector<8x128xf32>
    %cst_83 = arith.constant 1.000000e+00 : f32
    %223 = vector.broadcast %cst_83 : f32 to vector<8x128xf32>
    %224 = arith.addf %223, %222 : vector<8x128xf32>
    %225 = arith.divf %223, %224 : vector<8x128xf32>
    %226 = vector.extract_strided_slice %219 {offsets = [0, 128], sizes = [8, 128], strides = [1, 1]} : vector<8x512xf32> to vector<8x128xf32>
    %227 = arith.negf %226 : vector<8x128xf32>
    %228 = math.exp %227 : vector<8x128xf32>
    %cst_84 = arith.constant 1.000000e+00 : f32
    %229 = vector.broadcast %cst_84 : f32 to vector<8x128xf32>
    %230 = arith.addf %229, %228 : vector<8x128xf32>
    %231 = arith.divf %229, %230 : vector<8x128xf32>
    %232 = vector.extract_strided_slice %219 {offsets = [0, 256], sizes = [8, 128], strides = [1, 1]} : vector<8x512xf32> to vector<8x128xf32>
    %233 = math.tanh %232 : vector<8x128xf32>
    %234 = vector.extract_strided_slice %219 {offsets = [0, 384], sizes = [8, 128], strides = [1, 1]} : vector<8x512xf32> to vector<8x128xf32>
    %235 = arith.negf %234 : vector<8x128xf32>
    %236 = math.exp %235 : vector<8x128xf32>
    %cst_85 = arith.constant 1.000000e+00 : f32
    %237 = vector.broadcast %cst_85 : f32 to vector<8x128xf32>
    %238 = arith.addf %237, %236 : vector<8x128xf32>
    %239 = arith.divf %237, %238 : vector<8x128xf32>
    %240 = arith.mulf %231, %174 : vector<8x128xf32>
    %241 = arith.mulf %225, %233 : vector<8x128xf32>
    %242 = arith.addf %240, %241 : vector<8x128xf32>
    %243 = math.tanh %242 : vector<8x128xf32>
    %244 = arith.mulf %239, %243 : vector<8x128xf32>
    %245 = arith.truncf %244 : vector<8x128xf32> to vector<8x128xbf16>
    %c0_86 = arith.constant 0 : index
    %c0_87 = arith.constant 0 : index
    %246 = vector.load %arg6[%c0_86, %c0_87] : memref<128x512xbf16, #tpu.memory_space<vmem>>, vector<128x512xbf16>
    %cst_88 = arith.constant dense<0.000000e+00> : vector<8x512xf32>
    %247 = tpu.matmul %245, %246, %cst_88 {dimension_numbers = #tpu.dot_dimension_numbers<[1], [0], [0], [1], [0, 0, 1, 1], [], []>} : vector<8x128xbf16>, vector<128x512xbf16>, vector<8x512xf32> -> vector<8x512xf32>
    %c0_89 = arith.constant 0 : index
    %c0_90 = arith.constant 0 : index
    %248 = vector.load %arg8[%c0_89, %c0_90] : memref<1x512xf32, #tpu.memory_space<vmem>>, vector<1x512xf32>
    %249 = vector.broadcast %248 : vector<1x512xf32> to vector<8x512xf32>
    %250 = arith.addf %247, %249 : vector<8x512xf32>
    %c0_91 = arith.constant 0 : index
    %c0_92 = arith.constant 0 : index
    %251 = vector.load %arg7[%c0_91, %c0_92] : memref<128x512xbf16, #tpu.memory_space<vmem>>, vector<128x512xbf16>
    %cst_93 = arith.constant dense<0.000000e+00> : vector<8x512xf32>
    %252 = tpu.matmul %211, %251, %cst_93 {dimension_numbers = #tpu.dot_dimension_numbers<[1], [0], [0], [1], [0, 0, 1, 1], [], []>} : vector<8x128xbf16>, vector<128x512xbf16>, vector<8x512xf32> -> vector<8x512xf32>
    %253 = arith.addf %250, %252 : vector<8x512xf32>
    %254 = vector.extract_strided_slice %253 {offsets = [0, 0], sizes = [8, 128], strides = [1, 1]} : vector<8x512xf32> to vector<8x128xf32>
    %255 = arith.negf %254 : vector<8x128xf32>
    %256 = math.exp %255 : vector<8x128xf32>
    %cst_94 = arith.constant 1.000000e+00 : f32
    %257 = vector.broadcast %cst_94 : f32 to vector<8x128xf32>
    %258 = arith.addf %257, %256 : vector<8x128xf32>
    %259 = arith.divf %257, %258 : vector<8x128xf32>
    %260 = vector.extract_strided_slice %253 {offsets = [0, 128], sizes = [8, 128], strides = [1, 1]} : vector<8x512xf32> to vector<8x128xf32>
    %261 = arith.negf %260 : vector<8x128xf32>
    %262 = math.exp %261 : vector<8x128xf32>
    %cst_95 = arith.constant 1.000000e+00 : f32
    %263 = vector.broadcast %cst_95 : f32 to vector<8x128xf32>
    %264 = arith.addf %263, %262 : vector<8x128xf32>
    %265 = arith.divf %263, %264 : vector<8x128xf32>
    %266 = vector.extract_strided_slice %253 {offsets = [0, 256], sizes = [8, 128], strides = [1, 1]} : vector<8x512xf32> to vector<8x128xf32>
    %267 = math.tanh %266 : vector<8x128xf32>
    %268 = vector.extract_strided_slice %253 {offsets = [0, 384], sizes = [8, 128], strides = [1, 1]} : vector<8x512xf32> to vector<8x128xf32>
    %269 = arith.negf %268 : vector<8x128xf32>
    %270 = math.exp %269 : vector<8x128xf32>
    %cst_96 = arith.constant 1.000000e+00 : f32
    %271 = vector.broadcast %cst_96 : f32 to vector<8x128xf32>
    %272 = arith.addf %271, %270 : vector<8x128xf32>
    %273 = arith.divf %271, %272 : vector<8x128xf32>
    %274 = arith.mulf %265, %208 : vector<8x128xf32>
    %275 = arith.mulf %259, %267 : vector<8x128xf32>
    %276 = arith.addf %274, %275 : vector<8x128xf32>
    %277 = math.tanh %276 : vector<8x128xf32>
    %278 = arith.mulf %273, %277 : vector<8x128xf32>
    %279 = arith.truncf %278 : vector<8x128xf32> to vector<8x128xbf16>
    %c3_97 = arith.constant 3 : index
    %c0_98 = arith.constant 0 : index
    %c0_99 = arith.constant 0 : index
    %280 = vector.load %arg18[%c3_97, %c0_98, %c0_99] : memref<8x8x128xbf16, #tpu.memory_space<vmem>>, vector<1x8x128xbf16>
    %281 = vector.shape_cast %280 : vector<1x8x128xbf16> to vector<8x128xbf16>
    %282 = vector.shape_cast %279 : vector<8x128xbf16> to vector<1x8x128xbf16>
    tpu.vector_store %arg18[%c3_97, %c0_98, %c0_99], %282 {strides = array<i32>} : memref<8x8x128xbf16, #tpu.memory_space<vmem>>, vector<1x8x128xbf16>,
    %c4 = arith.constant 4 : index
    %c0_100 = arith.constant 0 : index
    %c0_101 = arith.constant 0 : index
    %283 = vector.load %arg2[%c4, %c0_100, %c0_101] : memref<8x8x512xf32, #tpu.memory_space<vmem>>, vector<1x8x512xf32>
    %284 = vector.shape_cast %283 : vector<1x8x512xf32> to vector<8x512xf32>
    %c0_102 = arith.constant 0 : index
    %c0_103 = arith.constant 0 : index
    %285 = vector.load %arg5[%c0_102, %c0_103] : memref<128x512xbf16, #tpu.memory_space<vmem>>, vector<128x512xbf16>
    %cst_104 = arith.constant dense<0.000000e+00> : vector<8x512xf32>
    %286 = tpu.matmul %245, %285, %cst_104 {dimension_numbers = #tpu.dot_dimension_numbers<[1], [0], [0], [1], [0, 0, 1, 1], [], []>} : vector<8x128xbf16>, vector<128x512xbf16>, vector<8x512xf32> -> vector<8x512xf32>
    %287 = arith.addf %284, %286 : vector<8x512xf32>
    %288 = vector.extract_strided_slice %287 {offsets = [0, 0], sizes = [8, 128], strides = [1, 1]} : vector<8x512xf32> to vector<8x128xf32>
    %289 = arith.negf %288 : vector<8x128xf32>
    %290 = math.exp %289 : vector<8x128xf32>
    %cst_105 = arith.constant 1.000000e+00 : f32
    %291 = vector.broadcast %cst_105 : f32 to vector<8x128xf32>
    %292 = arith.addf %291, %290 : vector<8x128xf32>
    %293 = arith.divf %291, %292 : vector<8x128xf32>
    %294 = vector.extract_strided_slice %287 {offsets = [0, 128], sizes = [8, 128], strides = [1, 1]} : vector<8x512xf32> to vector<8x128xf32>
    %295 = arith.negf %294 : vector<8x128xf32>
    %296 = math.exp %295 : vector<8x128xf32>
    %cst_106 = arith.constant 1.000000e+00 : f32
    %297 = vector.broadcast %cst_106 : f32 to vector<8x128xf32>
    %298 = arith.addf %297, %296 : vector<8x128xf32>
    %299 = arith.divf %297, %298 : vector<8x128xf32>
    %300 = vector.extract_strided_slice %287 {offsets = [0, 256], sizes = [8, 128], strides = [1, 1]} : vector<8x512xf32> to vector<8x128xf32>
    %301 = math.tanh %300 : vector<8x128xf32>
    %302 = vector.extract_strided_slice %287 {offsets = [0, 384], sizes = [8, 128], strides = [1, 1]} : vector<8x512xf32> to vector<8x128xf32>
    %303 = arith.negf %302 : vector<8x128xf32>
    %304 = math.exp %303 : vector<8x128xf32>
    %cst_107 = arith.constant 1.000000e+00 : f32
    %305 = vector.broadcast %cst_107 : f32 to vector<8x128xf32>
    %306 = arith.addf %305, %304 : vector<8x128xf32>
    %307 = arith.divf %305, %306 : vector<8x128xf32>
    %308 = arith.mulf %299, %242 : vector<8x128xf32>
    %309 = arith.mulf %293, %301 : vector<8x128xf32>
    %310 = arith.addf %308, %309 : vector<8x128xf32>
    %311 = math.tanh %310 : vector<8x128xf32>
    %312 = arith.mulf %307, %311 : vector<8x128xf32>
    %313 = arith.truncf %312 : vector<8x128xf32> to vector<8x128xbf16>
    %c0_108 = arith.constant 0 : index
    %c0_109 = arith.constant 0 : index
    %314 = vector.load %arg6[%c0_108, %c0_109] : memref<128x512xbf16, #tpu.memory_space<vmem>>, vector<128x512xbf16>
    %cst_110 = arith.constant dense<0.000000e+00> : vector<8x512xf32>
    %315 = tpu.matmul %313, %314, %cst_110 {dimension_numbers = #tpu.dot_dimension_numbers<[1], [0], [0], [1], [0, 0, 1, 1], [], []>} : vector<8x128xbf16>, vector<128x512xbf16>, vector<8x512xf32> -> vector<8x512xf32>
    %c0_111 = arith.constant 0 : index
    %c0_112 = arith.constant 0 : index
    %316 = vector.load %arg8[%c0_111, %c0_112] : memref<1x512xf32, #tpu.memory_space<vmem>>, vector<1x512xf32>
    %317 = vector.broadcast %316 : vector<1x512xf32> to vector<8x512xf32>
    %318 = arith.addf %315, %317 : vector<8x512xf32>
    %c0_113 = arith.constant 0 : index
    %c0_114 = arith.constant 0 : index
    %319 = vector.load %arg7[%c0_113, %c0_114] : memref<128x512xbf16, #tpu.memory_space<vmem>>, vector<128x512xbf16>
    %cst_115 = arith.constant dense<0.000000e+00> : vector<8x512xf32>
    %320 = tpu.matmul %279, %319, %cst_115 {dimension_numbers = #tpu.dot_dimension_numbers<[1], [0], [0], [1], [0, 0, 1, 1], [], []>} : vector<8x128xbf16>, vector<128x512xbf16>, vector<8x512xf32> -> vector<8x512xf32>
    %321 = arith.addf %318, %320 : vector<8x512xf32>
    %322 = vector.extract_strided_slice %321 {offsets = [0, 0], sizes = [8, 128], strides = [1, 1]} : vector<8x512xf32> to vector<8x128xf32>
    %323 = arith.negf %322 : vector<8x128xf32>
    %324 = math.exp %323 : vector<8x128xf32>
    %cst_116 = arith.constant 1.000000e+00 : f32
    %325 = vector.broadcast %cst_116 : f32 to vector<8x128xf32>
    %326 = arith.addf %325, %324 : vector<8x128xf32>
    %327 = arith.divf %325, %326 : vector<8x128xf32>
    %328 = vector.extract_strided_slice %321 {offsets = [0, 128], sizes = [8, 128], strides = [1, 1]} : vector<8x512xf32> to vector<8x128xf32>
    %329 = arith.negf %328 : vector<8x128xf32>
    %330 = math.exp %329 : vector<8x128xf32>
    %cst_117 = arith.constant 1.000000e+00 : f32
    %331 = vector.broadcast %cst_117 : f32 to vector<8x128xf32>
    %332 = arith.addf %331, %330 : vector<8x128xf32>
    %333 = arith.divf %331, %332 : vector<8x128xf32>
    %334 = vector.extract_strided_slice %321 {offsets = [0, 256], sizes = [8, 128], strides = [1, 1]} : vector<8x512xf32> to vector<8x128xf32>
    %335 = math.tanh %334 : vector<8x128xf32>
    %336 = vector.extract_strided_slice %321 {offsets = [0, 384], sizes = [8, 128], strides = [1, 1]} : vector<8x512xf32> to vector<8x128xf32>
    %337 = arith.negf %336 : vector<8x128xf32>
    %338 = math.exp %337 : vector<8x128xf32>
    %cst_118 = arith.constant 1.000000e+00 : f32
    %339 = vector.broadcast %cst_118 : f32 to vector<8x128xf32>
    %340 = arith.addf %339, %338 : vector<8x128xf32>
    %341 = arith.divf %339, %340 : vector<8x128xf32>
    %342 = arith.mulf %333, %276 : vector<8x128xf32>
    %343 = arith.mulf %327, %335 : vector<8x128xf32>
    %344 = arith.addf %342, %343 : vector<8x128xf32>
    %345 = math.tanh %344 : vector<8x128xf32>
    %346 = arith.mulf %341, %345 : vector<8x128xf32>
    %347 = arith.truncf %346 : vector<8x128xf32> to vector<8x128xbf16>
    %c4_119 = arith.constant 4 : index
    %c0_120 = arith.constant 0 : index
    %c0_121 = arith.constant 0 : index
    %348 = vector.load %arg18[%c4_119, %c0_120, %c0_121] : memref<8x8x128xbf16, #tpu.memory_space<vmem>>, vector<1x8x128xbf16>
    %349 = vector.shape_cast %348 : vector<1x8x128xbf16> to vector<8x128xbf16>
    %350 = vector.shape_cast %347 : vector<8x128xbf16> to vector<1x8x128xbf16>
    tpu.vector_store %arg18[%c4_119, %c0_120, %c0_121], %350 {strides = array<i32>} : memref<8x8x128xbf16, #tpu.memory_space<vmem>>, vector<1x8x128xbf16>,
    %c5 = arith.constant 5 : index
    %c0_122 = arith.constant 0 : index
    %c0_123 = arith.constant 0 : index
    %351 = vector.load %arg2[%c5, %c0_122, %c0_123] : memref<8x8x512xf32, #tpu.memory_space<vmem>>, vector<1x8x512xf32>
    %352 = vector.shape_cast %351 : vector<1x8x512xf32> to vector<8x512xf32>
    %c0_124 = arith.constant 0 : index
    %c0_125 = arith.constant 0 : index
    %353 = vector.load %arg5[%c0_124, %c0_125] : memref<128x512xbf16, #tpu.memory_space<vmem>>, vector<128x512xbf16>
    %cst_126 = arith.constant dense<0.000000e+00> : vector<8x512xf32>
    %354 = tpu.matmul %313, %353, %cst_126 {dimension_numbers = #tpu.dot_dimension_numbers<[1], [0], [0], [1], [0, 0, 1, 1], [], []>} : vector<8x128xbf16>, vector<128x512xbf16>, vector<8x512xf32> -> vector<8x512xf32>
    %355 = arith.addf %352, %354 : vector<8x512xf32>
    %356 = vector.extract_strided_slice %355 {offsets = [0, 0], sizes = [8, 128], strides = [1, 1]} : vector<8x512xf32> to vector<8x128xf32>
    %357 = arith.negf %356 : vector<8x128xf32>
    %358 = math.exp %357 : vector<8x128xf32>
    %cst_127 = arith.constant 1.000000e+00 : f32
    %359 = vector.broadcast %cst_127 : f32 to vector<8x128xf32>
    %360 = arith.addf %359, %358 : vector<8x128xf32>
    %361 = arith.divf %359, %360 : vector<8x128xf32>
    %362 = vector.extract_strided_slice %355 {offsets = [0, 128], sizes = [8, 128], strides = [1, 1]} : vector<8x512xf32> to vector<8x128xf32>
    %363 = arith.negf %362 : vector<8x128xf32>
    %364 = math.exp %363 : vector<8x128xf32>
    %cst_128 = arith.constant 1.000000e+00 : f32
    %365 = vector.broadcast %cst_128 : f32 to vector<8x128xf32>
    %366 = arith.addf %365, %364 : vector<8x128xf32>
    %367 = arith.divf %365, %366 : vector<8x128xf32>
    %368 = vector.extract_strided_slice %355 {offsets = [0, 256], sizes = [8, 128], strides = [1, 1]} : vector<8x512xf32> to vector<8x128xf32>
    %369 = math.tanh %368 : vector<8x128xf32>
    %370 = vector.extract_strided_slice %355 {offsets = [0, 384], sizes = [8, 128], strides = [1, 1]} : vector<8x512xf32> to vector<8x128xf32>
    %371 = arith.negf %370 : vector<8x128xf32>
    %372 = math.exp %371 : vector<8x128xf32>
    %cst_129 = arith.constant 1.000000e+00 : f32
    %373 = vector.broadcast %cst_129 : f32 to vector<8x128xf32>
    %374 = arith.addf %373, %372 : vector<8x128xf32>
    %375 = arith.divf %373, %374 : vector<8x128xf32>
    %376 = arith.mulf %367, %310 : vector<8x128xf32>
    %377 = arith.mulf %361, %369 : vector<8x128xf32>
    %378 = arith.addf %376, %377 : vector<8x128xf32>
    %379 = math.tanh %378 : vector<8x128xf32>
    %380 = arith.mulf %375, %379 : vector<8x128xf32>
    %381 = arith.truncf %380 : vector<8x128xf32> to vector<8x128xbf16>
    %c0_130 = arith.constant 0 : index
    %c0_131 = arith.constant 0 : index
    %382 = vector.load %arg6[%c0_130, %c0_131] : memref<128x512xbf16, #tpu.memory_space<vmem>>, vector<128x512xbf16>
    %cst_132 = arith.constant dense<0.000000e+00> : vector<8x512xf32>
    %383 = tpu.matmul %381, %382, %cst_132 {dimension_numbers = #tpu.dot_dimension_numbers<[1], [0], [0], [1], [0, 0, 1, 1], [], []>} : vector<8x128xbf16>, vector<128x512xbf16>, vector<8x512xf32> -> vector<8x512xf32>
    %c0_133 = arith.constant 0 : index
    %c0_134 = arith.constant 0 : index
    %384 = vector.load %arg8[%c0_133, %c0_134] : memref<1x512xf32, #tpu.memory_space<vmem>>, vector<1x512xf32>
    %385 = vector.broadcast %384 : vector<1x512xf32> to vector<8x512xf32>
    %386 = arith.addf %383, %385 : vector<8x512xf32>
    %c0_135 = arith.constant 0 : index
    %c0_136 = arith.constant 0 : index
    %387 = vector.load %arg7[%c0_135, %c0_136] : memref<128x512xbf16, #tpu.memory_space<vmem>>, vector<128x512xbf16>
    %cst_137 = arith.constant dense<0.000000e+00> : vector<8x512xf32>
    %388 = tpu.matmul %347, %387, %cst_137 {dimension_numbers = #tpu.dot_dimension_numbers<[1], [0], [0], [1], [0, 0, 1, 1], [], []>} : vector<8x128xbf16>, vector<128x512xbf16>, vector<8x512xf32> -> vector<8x512xf32>
    %389 = arith.addf %386, %388 : vector<8x512xf32>
    %390 = vector.extract_strided_slice %389 {offsets = [0, 0], sizes = [8, 128], strides = [1, 1]} : vector<8x512xf32> to vector<8x128xf32>
    %391 = arith.negf %390 : vector<8x128xf32>
    %392 = math.exp %391 : vector<8x128xf32>
    %cst_138 = arith.constant 1.000000e+00 : f32
    %393 = vector.broadcast %cst_138 : f32 to vector<8x128xf32>
    %394 = arith.addf %393, %392 : vector<8x128xf32>
    %395 = arith.divf %393, %394 : vector<8x128xf32>
    %396 = vector.extract_strided_slice %389 {offsets = [0, 128], sizes = [8, 128], strides = [1, 1]} : vector<8x512xf32> to vector<8x128xf32>
    %397 = arith.negf %396 : vector<8x128xf32>
    %398 = math.exp %397 : vector<8x128xf32>
    %cst_139 = arith.constant 1.000000e+00 : f32
    %399 = vector.broadcast %cst_139 : f32 to vector<8x128xf32>
    %400 = arith.addf %399, %398 : vector<8x128xf32>
    %401 = arith.divf %399, %400 : vector<8x128xf32>
    %402 = vector.extract_strided_slice %389 {offsets = [0, 256], sizes = [8, 128], strides = [1, 1]} : vector<8x512xf32> to vector<8x128xf32>
    %403 = math.tanh %402 : vector<8x128xf32>
    %404 = vector.extract_strided_slice %389 {offsets = [0, 384], sizes = [8, 128], strides = [1, 1]} : vector<8x512xf32> to vector<8x128xf32>
    %405 = arith.negf %404 : vector<8x128xf32>
    %406 = math.exp %405 : vector<8x128xf32>
    %cst_140 = arith.constant 1.000000e+00 : f32
    %407 = vector.broadcast %cst_140 : f32 to vector<8x128xf32>
    %408 = arith.addf %407, %406 : vector<8x128xf32>
    %409 = arith.divf %407, %408 : vector<8x128xf32>
    %410 = arith.mulf %401, %344 : vector<8x128xf32>
    %411 = arith.mulf %395, %403 : vector<8x128xf32>
    %412 = arith.addf %410, %411 : vector<8x128xf32>
    %413 = math.tanh %412 : vector<8x128xf32>
    %414 = arith.mulf %409, %413 : vector<8x128xf32>
    %415 = arith.truncf %414 : vector<8x128xf32> to vector<8x128xbf16>
    %c5_141 = arith.constant 5 : index
    %c0_142 = arith.constant 0 : index
    %c0_143 = arith.constant 0 : index
    %416 = vector.load %arg18[%c5_141, %c0_142, %c0_143] : memref<8x8x128xbf16, #tpu.memory_space<vmem>>, vector<1x8x128xbf16>
    %417 = vector.shape_cast %416 : vector<1x8x128xbf16> to vector<8x128xbf16>
    %418 = vector.shape_cast %415 : vector<8x128xbf16> to vector<1x8x128xbf16>
    tpu.vector_store %arg18[%c5_141, %c0_142, %c0_143], %418 {strides = array<i32>} : memref<8x8x128xbf16, #tpu.memory_space<vmem>>, vector<1x8x128xbf16>,
    %c6 = arith.constant 6 : index
    %c0_144 = arith.constant 0 : index
    %c0_145 = arith.constant 0 : index
    %419 = vector.load %arg2[%c6, %c0_144, %c0_145] : memref<8x8x512xf32, #tpu.memory_space<vmem>>, vector<1x8x512xf32>
    %420 = vector.shape_cast %419 : vector<1x8x512xf32> to vector<8x512xf32>
    %c0_146 = arith.constant 0 : index
    %c0_147 = arith.constant 0 : index
    %421 = vector.load %arg5[%c0_146, %c0_147] : memref<128x512xbf16, #tpu.memory_space<vmem>>, vector<128x512xbf16>
    %cst_148 = arith.constant dense<0.000000e+00> : vector<8x512xf32>
    %422 = tpu.matmul %381, %421, %cst_148 {dimension_numbers = #tpu.dot_dimension_numbers<[1], [0], [0], [1], [0, 0, 1, 1], [], []>} : vector<8x128xbf16>, vector<128x512xbf16>, vector<8x512xf32> -> vector<8x512xf32>
    %423 = arith.addf %420, %422 : vector<8x512xf32>
    %424 = vector.extract_strided_slice %423 {offsets = [0, 0], sizes = [8, 128], strides = [1, 1]} : vector<8x512xf32> to vector<8x128xf32>
    %425 = arith.negf %424 : vector<8x128xf32>
    %426 = math.exp %425 : vector<8x128xf32>
    %cst_149 = arith.constant 1.000000e+00 : f32
    %427 = vector.broadcast %cst_149 : f32 to vector<8x128xf32>
    %428 = arith.addf %427, %426 : vector<8x128xf32>
    %429 = arith.divf %427, %428 : vector<8x128xf32>
    %430 = vector.extract_strided_slice %423 {offsets = [0, 128], sizes = [8, 128], strides = [1, 1]} : vector<8x512xf32> to vector<8x128xf32>
    %431 = arith.negf %430 : vector<8x128xf32>
    %432 = math.exp %431 : vector<8x128xf32>
    %cst_150 = arith.constant 1.000000e+00 : f32
    %433 = vector.broadcast %cst_150 : f32 to vector<8x128xf32>
    %434 = arith.addf %433, %432 : vector<8x128xf32>
    %435 = arith.divf %433, %434 : vector<8x128xf32>
    %436 = vector.extract_strided_slice %423 {offsets = [0, 256], sizes = [8, 128], strides = [1, 1]} : vector<8x512xf32> to vector<8x128xf32>
    %437 = math.tanh %436 : vector<8x128xf32>
    %438 = vector.extract_strided_slice %423 {offsets = [0, 384], sizes = [8, 128], strides = [1, 1]} : vector<8x512xf32> to vector<8x128xf32>
    %439 = arith.negf %438 : vector<8x128xf32>
    %440 = math.exp %439 : vector<8x128xf32>
    %cst_151 = arith.constant 1.000000e+00 : f32
    %441 = vector.broadcast %cst_151 : f32 to vector<8x128xf32>
    %442 = arith.addf %441, %440 : vector<8x128xf32>
    %443 = arith.divf %441, %442 : vector<8x128xf32>
    %444 = arith.mulf %435, %378 : vector<8x128xf32>
    %445 = arith.mulf %429, %437 : vector<8x128xf32>
    %446 = arith.addf %444, %445 : vector<8x128xf32>
    %447 = math.tanh %446 : vector<8x128xf32>
    %448 = arith.mulf %443, %447 : vector<8x128xf32>
    %449 = arith.truncf %448 : vector<8x128xf32> to vector<8x128xbf16>
    %c0_152 = arith.constant 0 : index
    %c0_153 = arith.constant 0 : index
    %450 = vector.load %arg6[%c0_152, %c0_153] : memref<128x512xbf16, #tpu.memory_space<vmem>>, vector<128x512xbf16>
    %cst_154 = arith.constant dense<0.000000e+00> : vector<8x512xf32>
    %451 = tpu.matmul %449, %450, %cst_154 {dimension_numbers = #tpu.dot_dimension_numbers<[1], [0], [0], [1], [0, 0, 1, 1], [], []>} : vector<8x128xbf16>, vector<128x512xbf16>, vector<8x512xf32> -> vector<8x512xf32>
    %c0_155 = arith.constant 0 : index
    %c0_156 = arith.constant 0 : index
    %452 = vector.load %arg8[%c0_155, %c0_156] : memref<1x512xf32, #tpu.memory_space<vmem>>, vector<1x512xf32>
    %453 = vector.broadcast %452 : vector<1x512xf32> to vector<8x512xf32>
    %454 = arith.addf %451, %453 : vector<8x512xf32>
    %c0_157 = arith.constant 0 : index
    %c0_158 = arith.constant 0 : index
    %455 = vector.load %arg7[%c0_157, %c0_158] : memref<128x512xbf16, #tpu.memory_space<vmem>>, vector<128x512xbf16>
    %cst_159 = arith.constant dense<0.000000e+00> : vector<8x512xf32>
    %456 = tpu.matmul %415, %455, %cst_159 {dimension_numbers = #tpu.dot_dimension_numbers<[1], [0], [0], [1], [0, 0, 1, 1], [], []>} : vector<8x128xbf16>, vector<128x512xbf16>, vector<8x512xf32> -> vector<8x512xf32>
    %457 = arith.addf %454, %456 : vector<8x512xf32>
    %458 = vector.extract_strided_slice %457 {offsets = [0, 0], sizes = [8, 128], strides = [1, 1]} : vector<8x512xf32> to vector<8x128xf32>
    %459 = arith.negf %458 : vector<8x128xf32>
    %460 = math.exp %459 : vector<8x128xf32>
    %cst_160 = arith.constant 1.000000e+00 : f32
    %461 = vector.broadcast %cst_160 : f32 to vector<8x128xf32>
    %462 = arith.addf %461, %460 : vector<8x128xf32>
    %463 = arith.divf %461, %462 : vector<8x128xf32>
    %464 = vector.extract_strided_slice %457 {offsets = [0, 128], sizes = [8, 128], strides = [1, 1]} : vector<8x512xf32> to vector<8x128xf32>
    %465 = arith.negf %464 : vector<8x128xf32>
    %466 = math.exp %465 : vector<8x128xf32>
    %cst_161 = arith.constant 1.000000e+00 : f32
    %467 = vector.broadcast %cst_161 : f32 to vector<8x128xf32>
    %468 = arith.addf %467, %466 : vector<8x128xf32>
    %469 = arith.divf %467, %468 : vector<8x128xf32>
    %470 = vector.extract_strided_slice %457 {offsets = [0, 256], sizes = [8, 128], strides = [1, 1]} : vector<8x512xf32> to vector<8x128xf32>
    %471 = math.tanh %470 : vector<8x128xf32>
    %472 = vector.extract_strided_slice %457 {offsets = [0, 384], sizes = [8, 128], strides = [1, 1]} : vector<8x512xf32> to vector<8x128xf32>
    %473 = arith.negf %472 : vector<8x128xf32>
    %474 = math.exp %473 : vector<8x128xf32>
    %cst_162 = arith.constant 1.000000e+00 : f32
    %475 = vector.broadcast %cst_162 : f32 to vector<8x128xf32>
    %476 = arith.addf %475, %474 : vector<8x128xf32>
    %477 = arith.divf %475, %476 : vector<8x128xf32>
    %478 = arith.mulf %469, %412 : vector<8x128xf32>
    %479 = arith.mulf %463, %471 : vector<8x128xf32>
    %480 = arith.addf %478, %479 : vector<8x128xf32>
    %481 = math.tanh %480 : vector<8x128xf32>
    %482 = arith.mulf %477, %481 : vector<8x128xf32>
    %483 = arith.truncf %482 : vector<8x128xf32> to vector<8x128xbf16>
    %c6_163 = arith.constant 6 : index
    %c0_164 = arith.constant 0 : index
    %c0_165 = arith.constant 0 : index
    %484 = vector.load %arg18[%c6_163, %c0_164, %c0_165] : memref<8x8x128xbf16, #tpu.memory_space<vmem>>, vector<1x8x128xbf16>
    %485 = vector.shape_cast %484 : vector<1x8x128xbf16> to vector<8x128xbf16>
    %486 = vector.shape_cast %483 : vector<8x128xbf16> to vector<1x8x128xbf16>
    tpu.vector_store %arg18[%c6_163, %c0_164, %c0_165], %486 {strides = array<i32>} : memref<8x8x128xbf16, #tpu.memory_space<vmem>>, vector<1x8x128xbf16>,
    %c7 = arith.constant 7 : index
    %c0_166 = arith.constant 0 : index
    %c0_167 = arith.constant 0 : index
    %487 = vector.load %arg2[%c7, %c0_166, %c0_167] : memref<8x8x512xf32, #tpu.memory_space<vmem>>, vector<1x8x512xf32>
    %488 = vector.shape_cast %487 : vector<1x8x512xf32> to vector<8x512xf32>
    %c0_168 = arith.constant 0 : index
    %c0_169 = arith.constant 0 : index
    %489 = vector.load %arg5[%c0_168, %c0_169] : memref<128x512xbf16, #tpu.memory_space<vmem>>, vector<128x512xbf16>
    %cst_170 = arith.constant dense<0.000000e+00> : vector<8x512xf32>
    %490 = tpu.matmul %449, %489, %cst_170 {dimension_numbers = #tpu.dot_dimension_numbers<[1], [0], [0], [1], [0, 0, 1, 1], [], []>} : vector<8x128xbf16>, vector<128x512xbf16>, vector<8x512xf32> -> vector<8x512xf32>
    %491 = arith.addf %488, %490 : vector<8x512xf32>
    %492 = vector.extract_strided_slice %491 {offsets = [0, 0], sizes = [8, 128], strides = [1, 1]} : vector<8x512xf32> to vector<8x128xf32>
    %493 = arith.negf %492 : vector<8x128xf32>
    %494 = math.exp %493 : vector<8x128xf32>
    %cst_171 = arith.constant 1.000000e+00 : f32
    %495 = vector.broadcast %cst_171 : f32 to vector<8x128xf32>
    %496 = arith.addf %495, %494 : vector<8x128xf32>
    %497 = arith.divf %495, %496 : vector<8x128xf32>
    %498 = vector.extract_strided_slice %491 {offsets = [0, 128], sizes = [8, 128], strides = [1, 1]} : vector<8x512xf32> to vector<8x128xf32>
    %499 = arith.negf %498 : vector<8x128xf32>
    %500 = math.exp %499 : vector<8x128xf32>
    %cst_172 = arith.constant 1.000000e+00 : f32
    %501 = vector.broadcast %cst_172 : f32 to vector<8x128xf32>
    %502 = arith.addf %501, %500 : vector<8x128xf32>
    %503 = arith.divf %501, %502 : vector<8x128xf32>
    %504 = vector.extract_strided_slice %491 {offsets = [0, 256], sizes = [8, 128], strides = [1, 1]} : vector<8x512xf32> to vector<8x128xf32>
    %505 = math.tanh %504 : vector<8x128xf32>
    %506 = vector.extract_strided_slice %491 {offsets = [0, 384], sizes = [8, 128], strides = [1, 1]} : vector<8x512xf32> to vector<8x128xf32>
    %507 = arith.negf %506 : vector<8x128xf32>
    %508 = math.exp %507 : vector<8x128xf32>
    %cst_173 = arith.constant 1.000000e+00 : f32
    %509 = vector.broadcast %cst_173 : f32 to vector<8x128xf32>
    %510 = arith.addf %509, %508 : vector<8x128xf32>
    %511 = arith.divf %509, %510 : vector<8x128xf32>
    %512 = arith.mulf %503, %446 : vector<8x128xf32>
    %513 = arith.mulf %497, %505 : vector<8x128xf32>
    %514 = arith.addf %512, %513 : vector<8x128xf32>
    %515 = math.tanh %514 : vector<8x128xf32>
    %516 = arith.mulf %511, %515 : vector<8x128xf32>
    %517 = arith.truncf %516 : vector<8x128xf32> to vector<8x128xbf16>
    %c0_174 = arith.constant 0 : index
    %c0_175 = arith.constant 0 : index
    %518 = vector.load %arg6[%c0_174, %c0_175] : memref<128x512xbf16, #tpu.memory_space<vmem>>, vector<128x512xbf16>
    %cst_176 = arith.constant dense<0.000000e+00> : vector<8x512xf32>
    %519 = tpu.matmul %517, %518, %cst_176 {dimension_numbers = #tpu.dot_dimension_numbers<[1], [0], [0], [1], [0, 0, 1, 1], [], []>} : vector<8x128xbf16>, vector<128x512xbf16>, vector<8x512xf32> -> vector<8x512xf32>
    %c0_177 = arith.constant 0 : index
    %c0_178 = arith.constant 0 : index
    %520 = vector.load %arg8[%c0_177, %c0_178] : memref<1x512xf32, #tpu.memory_space<vmem>>, vector<1x512xf32>
    %521 = vector.broadcast %520 : vector<1x512xf32> to vector<8x512xf32>
    %522 = arith.addf %519, %521 : vector<8x512xf32>
    %c0_179 = arith.constant 0 : index
    %c0_180 = arith.constant 0 : index
    %523 = vector.load %arg7[%c0_179, %c0_180] : memref<128x512xbf16, #tpu.memory_space<vmem>>, vector<128x512xbf16>
    %cst_181 = arith.constant dense<0.000000e+00> : vector<8x512xf32>
    %524 = tpu.matmul %483, %523, %cst_181 {dimension_numbers = #tpu.dot_dimension_numbers<[1], [0], [0], [1], [0, 0, 1, 1], [], []>} : vector<8x128xbf16>, vector<128x512xbf16>, vector<8x512xf32> -> vector<8x512xf32>
    %525 = arith.addf %522, %524 : vector<8x512xf32>
    %526 = vector.extract_strided_slice %525 {offsets = [0, 0], sizes = [8, 128], strides = [1, 1]} : vector<8x512xf32> to vector<8x128xf32>
    %527 = arith.negf %526 : vector<8x128xf32>
    %528 = math.exp %527 : vector<8x128xf32>
    %cst_182 = arith.constant 1.000000e+00 : f32
    %529 = vector.broadcast %cst_182 : f32 to vector<8x128xf32>
    %530 = arith.addf %529, %528 : vector<8x128xf32>
    %531 = arith.divf %529, %530 : vector<8x128xf32>
    %532 = vector.extract_strided_slice %525 {offsets = [0, 128], sizes = [8, 128], strides = [1, 1]} : vector<8x512xf32> to vector<8x128xf32>
    %533 = arith.negf %532 : vector<8x128xf32>
    %534 = math.exp %533 : vector<8x128xf32>
    %cst_183 = arith.constant 1.000000e+00 : f32
    %535 = vector.broadcast %cst_183 : f32 to vector<8x128xf32>
    %536 = arith.addf %535, %534 : vector<8x128xf32>
    %537 = arith.divf %535, %536 : vector<8x128xf32>
    %538 = vector.extract_strided_slice %525 {offsets = [0, 256], sizes = [8, 128], strides = [1, 1]} : vector<8x512xf32> to vector<8x128xf32>
    %539 = math.tanh %538 : vector<8x128xf32>
    %540 = vector.extract_strided_slice %525 {offsets = [0, 384], sizes = [8, 128], strides = [1, 1]} : vector<8x512xf32> to vector<8x128xf32>
    %541 = arith.negf %540 : vector<8x128xf32>
    %542 = math.exp %541 : vector<8x128xf32>
    %cst_184 = arith.constant 1.000000e+00 : f32
    %543 = vector.broadcast %cst_184 : f32 to vector<8x128xf32>
    %544 = arith.addf %543, %542 : vector<8x128xf32>
    %545 = arith.divf %543, %544 : vector<8x128xf32>
    %546 = arith.mulf %537, %480 : vector<8x128xf32>
    %547 = arith.mulf %531, %539 : vector<8x128xf32>
    %548 = arith.addf %546, %547 : vector<8x128xf32>
    %549 = math.tanh %548 : vector<8x128xf32>
    %550 = arith.mulf %545, %549 : vector<8x128xf32>
    %551 = arith.truncf %550 : vector<8x128xf32> to vector<8x128xbf16>
    %c7_185 = arith.constant 7 : index
    %c0_186 = arith.constant 0 : index
    %c0_187 = arith.constant 0 : index
    %552 = vector.load %arg18[%c7_185, %c0_186, %c0_187] : memref<8x8x128xbf16, #tpu.memory_space<vmem>>, vector<1x8x128xbf16>
    %553 = vector.shape_cast %552 : vector<1x8x128xbf16> to vector<8x128xbf16>
    %554 = vector.shape_cast %551 : vector<8x128xbf16> to vector<1x8x128xbf16>
    tpu.vector_store %arg18[%c7_185, %c0_186, %c0_187], %554 {strides = array<i32>} : memref<8x8x128xbf16, #tpu.memory_space<vmem>>, vector<1x8x128xbf16>,
    %c0_188 = arith.constant 0 : index
    %c0_189 = arith.constant 0 : index
    %c0_190 = arith.constant 0 : index
    %555 = vector.load %arg16[%c0_188, %c0_189, %c0_190] : memref<2x8x128xbf16, #tpu.memory_space<vmem>>, vector<1x8x128xbf16>
    %556 = vector.shape_cast %555 : vector<1x8x128xbf16> to vector<8x128xbf16>
    %557 = vector.shape_cast %517 : vector<8x128xbf16> to vector<1x8x128xbf16>
    tpu.vector_store %arg16[%c0_188, %c0_189, %c0_190], %557 {strides = array<i32>} : memref<2x8x128xbf16, #tpu.memory_space<vmem>>, vector<1x8x128xbf16>,
    %c1_191 = arith.constant 1 : index
    %c0_192 = arith.constant 0 : index
    %c0_193 = arith.constant 0 : index
    %558 = vector.load %arg16[%c1_191, %c0_192, %c0_193] : memref<2x8x128xbf16, #tpu.memory_space<vmem>>, vector<1x8x128xbf16>
    %559 = vector.shape_cast %558 : vector<1x8x128xbf16> to vector<8x128xbf16>
    %560 = vector.shape_cast %551 : vector<8x128xbf16> to vector<1x8x128xbf16>
    tpu.vector_store %arg16[%c1_191, %c0_192, %c0_193], %560 {strides = array<i32>} : memref<2x8x128xbf16, #tpu.memory_space<vmem>>, vector<1x8x128xbf16>,
    %c0_194 = arith.constant 0 : index
    %c0_195 = arith.constant 0 : index
    %c0_196 = arith.constant 0 : index
    %561 = vector.load %arg17[%c0_194, %c0_195, %c0_196] : memref<2x8x128xf32, #tpu.memory_space<vmem>>, vector<1x8x128xf32>
    %562 = vector.shape_cast %561 : vector<1x8x128xf32> to vector<8x128xf32>
    %563 = vector.shape_cast %514 : vector<8x128xf32> to vector<1x8x128xf32>
    tpu.vector_store %arg17[%c0_194, %c0_195, %c0_196], %563 {strides = array<i32>} : memref<2x8x128xf32, #tpu.memory_space<vmem>>, vector<1x8x128xf32>,
    %c1_197 = arith.constant 1 : index
    %c0_198 = arith.constant 0 : index
    %c0_199 = arith.constant 0 : index
    %564 = vector.load %arg17[%c1_197, %c0_198, %c0_199] : memref<2x8x128xf32, #tpu.memory_space<vmem>>, vector<1x8x128xf32>
    %565 = vector.shape_cast %564 : vector<1x8x128xf32> to vector<8x128xf32>
    %566 = vector.shape_cast %548 : vector<8x128xf32> to vector<1x8x128xf32>
    tpu.vector_store %arg17[%c1_197, %c0_198, %c0_199], %566 {strides = array<i32>} : memref<2x8x128xf32, #tpu.memory_space<vmem>>, vector<1x8x128xf32>,
    %c0_200 = arith.constant 0 : index
    %c0_201 = arith.constant 0 : index
    %c0_202 = arith.constant 0 : index
    %567 = vector.load %arg18[%c0_200, %c0_201, %c0_202] : memref<8x8x128xbf16, #tpu.memory_space<vmem>>, vector<8x8x128xbf16>
    %568 = vector.shape_cast %567 : vector<8x8x128xbf16> to vector<64x128xbf16>
    %c0_203 = arith.constant 0 : index
    %c0_204 = arith.constant 0 : index
    %569 = vector.load %arg9[%c0_203, %c0_204] : memref<128x64xbf16, #tpu.memory_space<vmem>>, vector<128x64xbf16>
    %cst_205 = arith.constant dense<0.000000e+00> : vector<64x64xf32>
    %570 = tpu.matmul %568, %569, %cst_205 {dimension_numbers = #tpu.dot_dimension_numbers<[1], [0], [0], [1], [0, 0, 1, 1], [], []>} : vector<64x128xbf16>, vector<128x64xbf16>, vector<64x64xf32> -> vector<64x64xf32>
    %c0_206 = arith.constant 0 : index
    %c0_207 = arith.constant 0 : index
    %571 = vector.load %arg10[%c0_206, %c0_207] : memref<1x64xf32, #tpu.memory_space<vmem>>, vector<1x64xf32>
    %572 = vector.broadcast %571 : vector<1x64xf32> to vector<64x64xf32>
    %573 = arith.addf %570, %572 : vector<64x64xf32>
    %cst_208 = arith.constant 0.000000e+00 : f32
    %574 = vector.broadcast %cst_208 : f32 to vector<64x64xf32>
    %575 = arith.maximumf %573, %574 : vector<64x64xf32>
    %576 = arith.truncf %575 : vector<64x64xf32> to vector<64x64xbf16>
    %c0_209 = arith.constant 0 : index
    %c0_210 = arith.constant 0 : index
    %577 = vector.load %arg11[%c0_209, %c0_210] : memref<64x128xbf16, #tpu.memory_space<vmem>>, vector<64x128xbf16>
    %cst_211 = arith.constant dense<0.000000e+00> : vector<64x128xf32>
    %578 = tpu.matmul %576, %577, %cst_211 {dimension_numbers = #tpu.dot_dimension_numbers<[1], [0], [0], [1], [0, 0, 1, 1], [], []>} : vector<64x64xbf16>, vector<64x128xbf16>, vector<64x128xf32> -> vector<64x128xf32>
    %c0_212 = arith.constant 0 : index
    %c0_213 = arith.constant 0 : index
    %579 = vector.load %arg12[%c0_212, %c0_213] : memref<1x128xf32, #tpu.memory_space<vmem>>, vector<1x128xf32>
    %580 = vector.broadcast %579 : vector<1x128xf32> to vector<64x128xf32>
    %581 = arith.addf %578, %580 : vector<64x128xf32>
    %582 = vector.shape_cast %581 : vector<64x128xf32> to vector<8x8x128xf32>
    %c0_214 = arith.constant 0 : index
    %c0_215 = arith.constant 0 : index
    %c0_216 = arith.constant 0 : index
    %583 = vector.load %arg13[%c0_214, %c0_215, %c0_216] : memref<8x8x128xf32, #tpu.memory_space<vmem>>, vector<8x8x128xf32>
    tpu.vector_store %arg13[%c0_214, %c0_215, %c0_216], %582 {strides = array<i32>} : memref<8x8x128xf32, #tpu.memory_space<vmem>>, vector<8x8x128xf32>,
    %c0_i32_217 = arith.constant 0 : i32
    %584 = arith.cmpi eq, %arg1, %c0_i32_217 : i32
    %585 = arith.extui %584 : i1 to i32
    %c0_i32_218 = arith.constant 0 : i32
    %586 = arith.cmpi ne, %585, %c0_i32_218 : i32
    scf.if %586 {
      %c0_219 = arith.constant 0 : index
      %c0_220 = arith.constant 0 : index
      %c0_221 = arith.constant 0 : index
      %587 = vector.load %arg16[%c0_219, %c0_220, %c0_221] : memref<2x8x128xbf16, #tpu.memory_space<vmem>>, vector<2x8x128xbf16>
      %588 = arith.extf %587 : vector<2x8x128xbf16> to vector<2x8x128xf32>
      %c0_222 = arith.constant 0 : index
      %c0_223 = arith.constant 0 : index
      %c0_224 = arith.constant 0 : index
      %589 = vector.load %arg14[%c0_222, %c0_223, %c0_224] : memref<2x8x128xf32, #tpu.memory_space<vmem>>, vector<2x8x128xf32>
      tpu.vector_store %arg14[%c0_222, %c0_223, %c0_224], %588 {strides = array<i32>} : memref<2x8x128xf32, #tpu.memory_space<vmem>>, vector<2x8x128xf32>,
      %c0_225 = arith.constant 0 : index
      %c0_226 = arith.constant 0 : index
      %c0_227 = arith.constant 0 : index
      %590 = vector.load %arg17[%c0_225, %c0_226, %c0_227] : memref<2x8x128xf32, #tpu.memory_space<vmem>>, vector<2x8x128xf32>
      %c0_228 = arith.constant 0 : index
      %c0_229 = arith.constant 0 : index
      %c0_230 = arith.constant 0 : index
      %591 = vector.load %arg15[%c0_228, %c0_229, %c0_230] : memref<2x8x128xf32, #tpu.memory_space<vmem>>, vector<2x8x128xf32>
      tpu.vector_store %arg15[%c0_228, %c0_229, %c0_230], %590 {strides = array<i32>} : memref<2x8x128xf32, #tpu.memory_space<vmem>>, vector<2x8x128xf32>,
    } else {
    }
    return
  }
  func.func @transform_0(%arg0: i32, %arg1: i32) -> (i32, i32, i32) {
    %c0_i32 = arith.constant 0 : i32
    %c0_i32_0 = arith.constant 0 : i32
    return %arg1, %arg0, %c0_i32 : i32, i32, i32
  }
  func.func @transform_1(%arg0: i32, %arg1: i32) -> (i32, i32, i32) {
    %c0_i32 = arith.constant 0 : i32
    %c0_i32_0 = arith.constant 0 : i32
    %c0_i32_1 = arith.constant 0 : i32
    return %c0_i32, %arg0, %c0_i32_0 : i32, i32, i32
  }
  func.func @transform_2(%arg0: i32, %arg1: i32) -> (i32, i32, i32) {
    %c0_i32 = arith.constant 0 : i32
    %c0_i32_0 = arith.constant 0 : i32
    %c0_i32_1 = arith.constant 0 : i32
    return %c0_i32, %arg0, %c0_i32_0 : i32, i32, i32
  }
  func.func @transform_3(%arg0: i32, %arg1: i32) -> (i32, i32) {
    %c0_i32 = arith.constant 0 : i32
    %c0_i32_0 = arith.constant 0 : i32
    %c0_i32_1 = arith.constant 0 : i32
    return %c0_i32, %c0_i32_0 : i32, i32
  }
  func.func @transform_4(%arg0: i32, %arg1: i32) -> (i32, i32) {
    %c0_i32 = arith.constant 0 : i32
    %c0_i32_0 = arith.constant 0 : i32
    %c0_i32_1 = arith.constant 0 : i32
    return %c0_i32, %c0_i32_0 : i32, i32
  }
  func.func @transform_5(%arg0: i32, %arg1: i32) -> (i32, i32) {
    %c0_i32 = arith.constant 0 : i32
    %c0_i32_0 = arith.constant 0 : i32
    %c0_i32_1 = arith.constant 0 : i32
    return %c0_i32, %c0_i32_0 : i32, i32
  }
  func.func @transform_6(%arg0: i32, %arg1: i32) -> (i32, i32) {
    %c0_i32 = arith.constant 0 : i32
    %c0_i32_0 = arith.constant 0 : i32
    %c0_i32_1 = arith.constant 0 : i32
    return %c0_i32, %c0_i32_0 : i32, i32
  }
  func.func @transform_7(%arg0: i32, %arg1: i32) -> (i32, i32) {
    %c0_i32 = arith.constant 0 : i32
    %c0_i32_0 = arith.constant 0 : i32
    %c0_i32_1 = arith.constant 0 : i32
    return %c0_i32, %c0_i32_0 : i32, i32
  }
  func.func @transform_8(%arg0: i32, %arg1: i32) -> (i32, i32) {
    %c0_i32 = arith.constant 0 : i32
    %c0_i32_0 = arith.constant 0 : i32
    %c0_i32_1 = arith.constant 0 : i32
    return %c0_i32, %c0_i32_0 : i32, i32
  }
  func.func @transform_9(%arg0: i32, %arg1: i32) -> (i32, i32) {
    %c0_i32 = arith.constant 0 : i32
    %c0_i32_0 = arith.constant 0 : i32
    %c0_i32_1 = arith.constant 0 : i32
    return %c0_i32, %c0_i32_0 : i32, i32
  }
  func.func @transform_10(%arg0: i32, %arg1: i32) -> (i32, i32) {
    %c0_i32 = arith.constant 0 : i32
    %c0_i32_0 = arith.constant 0 : i32
    %c0_i32_1 = arith.constant 0 : i32
    return %c0_i32, %c0_i32_0 : i32, i32
  }
  func.func @transform_11(%arg0: i32, %arg1: i32) -> (i32, i32, i32) {
    %c0_i32 = arith.constant 0 : i32
    %c0_i32_0 = arith.constant 0 : i32
    return %arg1, %arg0, %c0_i32 : i32, i32, i32
  }
  func.func @transform_12(%arg0: i32, %arg1: i32) -> (i32, i32, i32) {
    %c0_i32 = arith.constant 0 : i32
    %c0_i32_0 = arith.constant 0 : i32
    %c0_i32_1 = arith.constant 0 : i32
    return %c0_i32, %arg0, %c0_i32_0 : i32, i32, i32
  }
  func.func @transform_13(%arg0: i32, %arg1: i32) -> (i32, i32, i32) {
    %c0_i32 = arith.constant 0 : i32
    %c0_i32_0 = arith.constant 0 : i32
    %c0_i32_1 = arith.constant 0 : i32
    return %c0_i32, %arg0, %c0_i32_0 : i32, i32, i32
  }
}

</mosaic_0001>

<bundles_post_ra>
// kernel: decision_maker_forward.2
= control target key start
LH: loop header
LB: loop body
LE: loop exit
PB: predicated region body
PF: predicated region fallthrough
CT: control target
= control target key end

     0   :  { %13 = vsyncpa [#allocation3], 0  ;;  %s1557_s0 = inlined_call_operand.vmem [shape: f32[64,128], index: 0, kind: input, shape index: {}]   ;;  %s1558_s1 = inlined_call_operand.vmem [shape: f32[64,128], index: 1, kind: input, shape index: {}]   ;;  %s1559_s2 = inlined_call_operand.vmem [shape: bf16[128,256], index: 2, kind: input, shape index: {}]   ;;  %s1560_s3 = inlined_call_operand.vmem [shape: f32[1,256], index: 3, kind: input, shape index: {}]   ;;  %s1561_s4 = inlined_call_operand.hbm [shape: bf16[128,256], index: 4, kind: input, shape index: {}]   ;;  %s1562_s5 = inlined_call_operand.vmem [shape: f32[1,256], index: 5, kind: input, shape index: {}]   ;;  %s1563_s6 = inlined_call_operand.hbm [shape: bf16[128,512], index: 6, kind: input, shape index: {}]   ;;  %s1564_s7 = inlined_call_operand.vmem [shape: f32[1,512], index: 7, kind: input, shape index: {}]   ;;  %s1565_s8 = inlined_call_operand.vmem [shape: f32[64,512], index: 8, kind: output, shape index: {}]  }
   0x1   :  { %s27_s29 = sshll.u32 %s1561_s4, 4  ;;  %s28_s29 = int_to_ptr.hbm [resolvable:$true] %s27_s29 }
   0x2   :  { %14 = vsyncpa [#allocation5], 0  ;;  %s1171_s30 = smov [#allocation2]   ;;  %s42_s12 = sshll.u32 %s1563_s6, 4  ;;  %s43_s12 = int_to_ptr.hbm [resolvable:$true] %s42_s12 }
   0x3   :  { %s29_s9 = sshll.u32 %s1171_s30, 4  ;;  %s1172_s13 = smov 128   ;;  %s30_s9 = int_to_ptr.vmem [resolvable:$true] %s29_s9 }
   0x4   :  { %s1173_s14 = smov 8   ;;  %s1174_s15 = smov [#allocation4]  }
   0x5   :  { %35 = dma.hbm_to_vmem [thread:$0]  %s28_s29, 2048, %s30_s9, [#allocation3], %s1172_s13, %s1172_s13, %s1173_s14  }
   0x6   :  { %s44_s16 = sshll.u32 %s1174_s15, 4  ;;  %s1175_s17 = smov 256   ;;  %s45_s16 = int_to_ptr.vmem [resolvable:$true] %s44_s16 }
   0x7   :  { %s1176_s18 = smov 16  }
   0x8   :  { %50 = dma.hbm_to_vmem [thread:$0]  %s43_s12, 4096, %s45_s16, [#allocation5], %s1175_s17, %s1175_s17, %s1176_s18  }
   0x9   :  { %1167 = dma.done.wait [#allocation3], 2048  }
   0xa   :  { %1168 = vsyncadd [#allocation3], 4294965248 }
   0xb   :  { %1169 = dma.done.wait [#allocation5], 4096  }
   0xc   :  { %1170 = vsyncadd [#allocation5], 4294963200  ;;  %v851_v0 = vld [vmem:[%s1559_s2 + $0x70] sm:$0xf]  ;;  %v1064_v1 = vld [vmem:[%s1559_s2 + $0x74] sm:$0xf0] }
   0xd   :  { %v1063_v2 = vld [vmem:[%s1559_s2 + $0x74] sm:$0xf]  ;;  %v852_v3 = vor.u32 %v1064_v1, %v851_v0  ;;  %v853_v4 = vld [vmem:[%s1559_s2 + $0x78] sm:$0xf0]  ;;  %v915_v5 = vld [vmem:[#allocation2 + $0x70] sm:$0xf] }
   0xe   :  { %v1080_v6 = vld [vmem:[#allocation2 + $0x74] sm:$0xf0]  ;;  %v856_v7 = vor.u32 %v1063_v2, %v853_v4  ;;  %v1079_v9 = vld [vmem:[#allocation2 + $0x74] sm:$0xf]  ;;  %v917_v10 = vld [vmem:[#allocation2 + $0x78] sm:$0xf0] }
   0xf   :  { %v916_v8 = vor.u32 %v1080_v6, %v915_v5  ;;  %v843_v11 = vld [vmem:[%s1559_s2 + $0x60] sm:$0xf]  ;;  %183 = vmatpush.bf16.msra.mxu0 %v852_v3  ;;  %v920_v12 = vor.u32 %v1079_v9, %v917_v10  ;;  %v1062_v13 = vld [vmem:[%s1559_s2 + $0x64] sm:$0xf0]  ;;  %v1061_v14 = vld [vmem:[%s1559_s2 + $0x64] sm:$0xf] }
  0x10   :  { %v845_v15 = vld [vmem:[%s1559_s2 + $0x68] sm:$0xf0]  ;;  %212 = vmatpush.bf16.msra.mxu1 %v856_v7  ;;  %v844_v16 = vor.u32 %v1062_v13, %v843_v11  ;;  %v907_v18 = vld [vmem:[#allocation2 + $0x60] sm:$0xf]  ;;  %v1078_v19 = vld [vmem:[#allocation2 + $0x64] sm:$0xf0] }
  0x11   :  { %359 = vmatpush.bf16.msra.mxu2 %v916_v8  ;;  %v848_v17 = vor.u32 %v1061_v14, %v845_v15  ;;  %v1077_v20 = vld [vmem:[#allocation2 + $0x64] sm:$0xf]  ;;  %388 = vmatpush.bf16.msra.mxu3 %v920_v12  ;;  %v908_v21 = vor.u32 %v1078_v19, %v907_v18  ;;  %v909_v22 = vld [vmem:[#allocation2 + $0x68] sm:$0xf0]  ;;  %v835_v23 = vld [vmem:[%s1559_s2 + $0x50] sm:$0xf] }
  0x12   :  { %v1060_v24 = vld [vmem:[%s1559_s2 + $0x54] sm:$0xf0]  ;;  %v912_v25 = vor.u32 %v1077_v20, %v909_v22  ;;  %v1059_v26 = vld [vmem:[%s1559_s2 + $0x54] sm:$0xf]  ;;  %v837_v27 = vld [vmem:[%s1559_s2 + $0x58] sm:$0xf0] }
  0x13   :  { %v899_v28 = vld [vmem:[#allocation2 + $0x50] sm:$0xf]  ;;  %184 = vmatpush.bf16.msra.mxu0 %v844_v16  ;;  %v836_v29 = vor.u32 %v1060_v24, %v835_v23  ;;  %v1076_v30 = vld [vmem:[#allocation2 + $0x54] sm:$0xf0]  ;;  %v1075_v31 = vld [vmem:[#allocation2 + $0x54] sm:$0xf]  ;;  %v840_v33 = vor.u32 %v1059_v26, %v837_v27 }
  0x14   :  { %v901_v32 = vld [vmem:[#allocation2 + $0x58] sm:$0xf0]  ;;  %213 = vmatpush.bf16.msra.mxu1 %v848_v17  ;;  %v900_v34 = vor.u32 %v1076_v30, %v899_v28  ;;  %v827_v35 = vld [vmem:[%s1559_s2 + $0x40] sm:$0xf]  ;;  %v1058_v36 = vld [vmem:[%s1559_s2 + $0x44] sm:$0xf0] }
  0x15   :  { %360 = vmatpush.bf16.msra.mxu2 %v908_v21  ;;  %v1057_v37 = vld [vmem:[%s1559_s2 + $0x44] sm:$0xf]  ;;  %389 = vmatpush.bf16.msra.mxu3 %v912_v25  ;;  %v904_v38 = vor.u32 %v1075_v31, %v901_v32  ;;  %v829_v39 = vld [vmem:[%s1559_s2 + $0x48] sm:$0xf0]  ;;  %v891_v40 = vld [vmem:[#allocation2 + $0x40] sm:$0xf]  ;;  %v828_v44 = vor.u32 %v1058_v36, %v827_v35 }
  0x16   :  { %v1074_v41 = vld [vmem:[#allocation2 + $0x44] sm:$0xf0]  ;;  %v1073_v42 = vld [vmem:[#allocation2 + $0x44] sm:$0xf]  ;;  %v893_v43 = vld [vmem:[#allocation2 + $0x48] sm:$0xf0]  ;;  %v832_v45 = vor.u32 %v1057_v37, %v829_v39 }
  0x17   :  { %185 = vmatpush.bf16.msra.mxu0 %v836_v29  ;;  %v892_v46 = vor.u32 %v1074_v41, %v891_v40  ;;  %v819_v47 = vld [vmem:[%s1559_s2 + $0x30] sm:$0xf]  ;;  %v1056_v48 = vld [vmem:[%s1559_s2 + $0x34] sm:$0xf0]  ;;  %v1055_v49 = vld [vmem:[%s1559_s2 + $0x34] sm:$0xf]  ;;  %v896_v50 = vor.u32 %v1073_v42, %v893_v43 }
  0x18   :  { %214 = vmatpush.bf16.msra.mxu1 %v840_v33  ;;  %v821_v51 = vld [vmem:[%s1559_s2 + $0x38] sm:$0xf0]  ;;  %v883_v52 = vld [vmem:[#allocation2 + $0x30] sm:$0xf]  ;;  %v1072_v53 = vld [vmem:[#allocation2 + $0x34] sm:$0xf0]  ;;  %v820_v56 = vor.u32 %v1056_v48, %v819_v47 }
  0x19   :  { %361 = vmatpush.bf16.msra.mxu2 %v900_v34  ;;  %390 = vmatpush.bf16.msra.mxu3 %v904_v38  ;;  %v1071_v54 = vld [vmem:[#allocation2 + $0x34] sm:$0xf]  ;;  %v885_v55 = vld [vmem:[#allocation2 + $0x38] sm:$0xf0]  ;;  %v824_v57 = vor.u32 %v1055_v49, %v821_v51  ;;  %v884_v58 = vor.u32 %v1072_v53, %v883_v52  ;;  %v811_v59 = vld [vmem:[%s1559_s2 + $0x20] sm:$0xf] }
  0x1a   :  { %v1054_v60 = vld [vmem:[%s1559_s2 + $0x24] sm:$0xf0]  ;;  %v1053_v61 = vld [vmem:[%s1559_s2 + $0x24] sm:$0xf]  ;;  %v888_v62 = vor.u32 %v1071_v54, %v885_v55  ;;  %v813_v63 = vld [vmem:[%s1559_s2 + $0x28] sm:$0xf0] }
  0x1b   :  { %186 = vmatpush.bf16.msra.mxu0 %v828_v44  ;;  %v875_v0 = vld [vmem:[#allocation2 + $0x20] sm:$0xf]  ;;  %v1070_v1 = vld [vmem:[#allocation2 + $0x24] sm:$0xf0]  ;;  %v1069_v2 = vld [vmem:[#allocation2 + $0x24] sm:$0xf]  ;;  %v812_v4 = vor.u32 %v1054_v60, %v811_v59  ;;  %v816_v5 = vor.u32 %v1053_v61, %v813_v63 }
  0x1c   :  { %215 = vmatpush.bf16.msra.mxu1 %v832_v45  ;;  %v877_v3 = vld [vmem:[#allocation2 + $0x28] sm:$0xf0]  ;;  %v876_v6 = vor.u32 %v1070_v1, %v875_v0  ;;  %v803_v7 = vld [vmem:[%s1559_s2 + $0x10] sm:$0xf]  ;;  %v1052_v8 = vld [vmem:[%s1559_s2 + $0x14] sm:$0xf0] }
  0x1d   :  { %362 = vmatpush.bf16.msra.mxu2 %v892_v46  ;;  %391 = vmatpush.bf16.msra.mxu3 %v896_v50  ;;  %v1051_v9 = vld [vmem:[%s1559_s2 + $0x14] sm:$0xf]  ;;  %v880_v10 = vor.u32 %v1069_v2, %v877_v3  ;;  %v805_v11 = vld [vmem:[%s1559_s2 + $0x18] sm:$0xf0]  ;;  %v867_v12 = vld [vmem:[#allocation2 + $0x10] sm:$0xf]  ;;  %v804_v16 = vor.u32 %v1052_v8, %v803_v7 }
  0x1e   :  { %v1068_v13 = vld [vmem:[#allocation2 + $0x14] sm:$0xf0]  ;;  %v1067_v14 = vld [vmem:[#allocation2 + $0x14] sm:$0xf]  ;;  %v869_v15 = vld [vmem:[#allocation2 + $0x18] sm:$0xf0]  ;;  %v808_v17 = vor.u32 %v1051_v9, %v805_v11 }
  0x1f   :  { %187 = vmatpush.bf16.msra.mxu0 %v820_v56  ;;  %v868_v18 = vor.u32 %v1068_v13, %v867_v12  ;;  %v795_v19 = vld [vmem:[%s1559_s2] sm:$0xf]  ;;  %v1050_v20 = vld [vmem:[%s1559_s2 + $0x4] sm:$0xf0]  ;;  %v1049_v21 = vld [vmem:[%s1559_s2 + $0x4] sm:$0xf]  ;;  %v872_v22 = vor.u32 %v1067_v14, %v869_v15 }
  0x20   :  { %216 = vmatpush.bf16.msra.mxu1 %v824_v57  ;;  %v797_v23 = vld [vmem:[%s1559_s2 + $0x8] sm:$0xf0]  ;;  %v859_v24 = vld [vmem:[#allocation2] sm:$0xf]  ;;  %v1066_v25 = vld [vmem:[#allocation2 + $0x4] sm:$0xf0]  ;;  %v796_v28 = vor.u32 %v1050_v20, %v795_v19 }
  0x21   :  { %363 = vmatpush.bf16.msra.mxu2 %v884_v58  ;;  %392 = vmatpush.bf16.msra.mxu3 %v888_v62  ;;  %v1065_v26 = vld [vmem:[#allocation2 + $0x4] sm:$0xf]  ;;  %v861_v27 = vld [vmem:[#allocation2 + $0x8] sm:$0xf0]  ;;  %v800_v31 = vor.u32 %v1049_v21, %v797_v23  ;;  %v860_v32 = vor.u32 %v1066_v25, %v859_v24  ;;  %v71_v35 = vld [vmem:[%s1558_s1 + $0x10] sm:$0xff] }
  0x22   :  { %v69_v29 = vld [vmem:[%s1558_s1] sm:$0xff]  ;;  %v70_v30 = vld [vmem:[%s1558_s1 + $0x8] sm:$0xff]  ;;  %v864_v33 = vor.u32 %v1065_v26, %v861_v27  ;;  %v72_v36 = vld [vmem:[%s1558_s1 + $0x18] sm:$0xff] }
  0x23   :  { %188 = vmatpush.bf16.msra.mxu0 %v812_v4  ;;  %v77_v34 = vpack.c.bf16 %v70_v30, %v69_v29  ;;  %v78_v37 = vpack.c.bf16 %v72_v36, %v71_v35  ;;  %v1043_v38 = vld [vmem:[#allocation4 + $0xe8] sm:$0xf]  ;;  %v1112_v39 = vld [vmem:[#allocation4 + $0xf4] sm:$0xf0]  ;;  %v1110_v40 = vld [vmem:[#allocation4 + $0xec] sm:$0xf] }
  0x24   :  { %217 = vmatpush.bf16.msra.mxu1 %v816_v5  ;;  %v1044_v41 = vor.u32 %v1112_v39, %v1043_v38  ;;  %v1045_v42 = vld [vmem:[#allocation4 + $0xf8] sm:$0xf0]  ;;  %v1035_v43 = vld [vmem:[#allocation4 + $0xe0] sm:$0xf]  ;;  %v1111_v44 = vld [vmem:[#allocation4 + $0xec] sm:$0xf0] }
  0x25   :  { %364 = vmatpush.bf16.msra.mxu2 %v876_v6  ;;  %393 = vmatpush.bf16.msra.mxu3 %v880_v10  ;;  %v1048_v45 = vor.u32 %v1110_v40, %v1045_v42  ;;  %v1036_v46 = vor.u32 %v1111_v44, %v1035_v43  ;;  %v1109_v47 = vld [vmem:[#allocation4 + $0xe4] sm:$0xf]  ;;  %v1037_v48 = vld [vmem:[#allocation4 + $0xf0] sm:$0xf0]  ;;  %v1027_v49 = vld [vmem:[#allocation4 + $0xc8] sm:$0xf] }
  0x26   :  { %v1040_v50 = vor.u32 %v1109_v47, %v1037_v48  ;;  %v1108_v51 = vld [vmem:[#allocation4 + $0xd4] sm:$0xf0]  ;;  %v1106_v52 = vld [vmem:[#allocation4 + $0xcc] sm:$0xf]  ;;  %v1029_v53 = vld [vmem:[#allocation4 + $0xd8] sm:$0xf0] }
  0x27   :  { %189 = vmatpush.bf16.msra.mxu0 %v804_v16  ;;  %v1028_v54 = vor.u32 %v1108_v51, %v1027_v49  ;;  %v1032_v55 = vor.u32 %v1106_v52, %v1029_v53  ;;  %v1019_v56 = vld [vmem:[#allocation4 + $0xc0] sm:$0xf]  ;;  %v1107_v57 = vld [vmem:[#allocation4 + $0xcc] sm:$0xf0]  ;;  %v1105_v58 = vld [vmem:[#allocation4 + $0xc4] sm:$0xf] }
  0x28   :  { %218 = vmatpush.bf16.msra.mxu1 %v808_v17  ;;  %v73_v59 = vld [vmem:[%s1558_s1 + $0x20] sm:$0xff]  ;;  %v74_v60 = vld [vmem:[%s1558_s1 + $0x28] sm:$0xff]  ;;  %v1020_v61 = vor.u32 %v1107_v57, %v1019_v56  ;;  %v1021_v62 = vld [vmem:[#allocation4 + $0xd0] sm:$0xf0] }
  0x29   :  { %365 = vmatpush.bf16.msra.mxu2 %v868_v18  ;;  %394 = vmatpush.bf16.msra.mxu3 %v872_v22  ;;  %v1011_v63 = vld [vmem:[#allocation4 + $0xa8] sm:$0xf]  ;;  %v1104_v0 = vld [vmem:[#allocation4 + $0xb4] sm:$0xf0]  ;;  %v1024_v1 = vor.u32 %v1105_v58, %v1021_v62  ;;  %v1102_v2 = vld [vmem:[#allocation4 + $0xac] sm:$0xf]  ;;  %v79_v15 = vpack.c.bf16 %v74_v60, %v73_v59 }
  0x2a   :  { %v1013_v3 = vld [vmem:[#allocation4 + $0xb8] sm:$0xf0]  ;;  %v1003_v4 = vld [vmem:[#allocation4 + $0xa0] sm:$0xf]  ;;  %v1012_v5 = vor.u32 %v1104_v0, %v1011_v63  ;;  %v1103_v6 = vld [vmem:[#allocation4 + $0xac] sm:$0xf0] }
  0x2b   :  { %190 = vmatpush.bf16.msra.mxu0 %v796_v28  ;;  %v1101_v7 = vld [vmem:[#allocation4 + $0xa4] sm:$0xf]  ;;  %v1005_v8 = vld [vmem:[#allocation4 + $0xb0] sm:$0xf0]  ;;  %v1016_v9 = vor.u32 %v1102_v2, %v1013_v3  ;;  %v1004_v10 = vor.u32 %v1103_v6, %v1003_v4  ;;  %v995_v12 = vld [vmem:[#allocation4 + $0x88] sm:$0xf] }
  0x2c   :  { %219 = vmatpush.bf16.msra.mxu1 %v800_v31  ;;  %v1008_v11 = vor.u32 %v1101_v7, %v1005_v8  ;;  %v1100_v13 = vld [vmem:[#allocation4 + $0x94] sm:$0xf0]  ;;  %v1098_v14 = vld [vmem:[#allocation4 + $0x8c] sm:$0xf]  ;;  %v997_v16 = vld [vmem:[#allocation4 + $0x98] sm:$0xf0] }
  0x2d   :  { %366 = vmatpush.bf16.msra.mxu2 %v860_v32  ;;  %395 = vmatpush.bf16.msra.mxu3 %v864_v33  ;;  %v987_v17 = vld [vmem:[#allocation4 + $0x80] sm:$0xf]  ;;  %v1099_v18 = vld [vmem:[#allocation4 + $0x8c] sm:$0xf0]  ;;  %v1097_v19 = vld [vmem:[#allocation4 + $0x84] sm:$0xf]  ;;  %v996_v21 = vor.u32 %v1100_v13, %v995_v12  ;;  %v1000_v22 = vor.u32 %v1098_v14, %v997_v16 }
  0x2e   :  { %191 = vmatmul.bf16.vlgmr.msra.gmra.mxu0 %v77_v34  ;;  %v989_v20 = vld [vmem:[#allocation4 + $0x90] sm:$0xf0]  ;;  %v988_v23 = vor.u32 %v1099_v18, %v987_v17  ;;  %v979_v24 = vld [vmem:[#allocation4 + $0x68] sm:$0xf]  ;;  %v1096_v25 = vld [vmem:[#allocation4 + $0x74] sm:$0xf0] }
  0x2f   :  { %220 = vmatmul.bf16.vlgmr.msra.gmra.mxu1 %v77_v34  ;;  %639 = vmatpush.bf16.msrb.mxu0 %v1036_v46  ;;  %v1094_v26 = vld [vmem:[#allocation4 + $0x6c] sm:$0xf]  ;;  %v992_v27 = vor.u32 %v1097_v19, %v989_v20  ;;  %v981_v28 = vld [vmem:[#allocation4 + $0x78] sm:$0xf0]  ;;  %v971_v29 = vld [vmem:[#allocation4 + $0x60] sm:$0xf]  ;;  %v980_v33 = vor.u32 %v1096_v25, %v979_v24 }
  0x30   :  { %367 = vmatmul.bf16.vlgmr.msra.gmra.mxu2 %v77_v34  ;;  %396 = vmatmul.bf16.vlgmr.msra.gmra.mxu3 %v77_v34  ;;  %v1095_v30 = vld [vmem:[#allocation4 + $0x6c] sm:$0xf0]  ;;  %v1093_v31 = vld [vmem:[#allocation4 + $0x64] sm:$0xf]  ;;  %v973_v32 = vld [vmem:[#allocation4 + $0x70] sm:$0xf0]  ;;  %v984_v34 = vor.u32 %v1094_v26, %v981_v28 }
  0x31   :  { %697 = vmatpush.bf16.msrb.mxu2 %v1044_v41  ;;  %726 = vmatpush.bf16.msrb.mxu3 %v1048_v45  ;;  %v972_v35 = vor.u32 %v1095_v30, %v971_v29  ;;  %v963_v36 = vld [vmem:[#allocation4 + $0x48] sm:$0xf]  ;;  %v976_v38 = vor.u32 %v1093_v31, %v973_v32  ;;  %v1090_v39 = vld [vmem:[#allocation4 + $0x4c] sm:$0xf]  ;;  %v965_v40 = vld [vmem:[#allocation4 + $0x58] sm:$0xf0] }
  0x32   :  { %668 = vmatpush.bf16.msrb.mxu1 %v1040_v50  ;;  %v968_v42 = vor.u32 %v1090_v39, %v965_v40  ;;  %v75_v43 = vld [vmem:[%s1558_s1 + $0x30] sm:$0xff]  ;;  %v76_v44 = vld [vmem:[%s1558_s1 + $0x38] sm:$0xff]  ;;  %v955_v46 = vld [vmem:[#allocation4 + $0x40] sm:$0xf] }
  0x33   :  { %640 = vmatpush.bf16.msrb.mxu0 %v1020_v61  ;;  %v80_v45 = vpack.c.bf16 %v76_v44, %v75_v43  ;;  %v1091_v47 = vld [vmem:[#allocation4 + $0x4c] sm:$0xf0]  ;;  %v1089_v48 = vld [vmem:[#allocation4 + $0x44] sm:$0xf]  ;;  %v957_v50 = vld [vmem:[#allocation4 + $0x50] sm:$0xf0] }
  0x34   :  { %v956_v49 = vor.u32 %v1091_v47, %v955_v46  ;;  %v960_v51 = vor.u32 %v1089_v48, %v957_v50  ;;  %v947_v52 = vld [vmem:[#allocation4 + $0x28] sm:$0xf]  ;;  %v1088_v53 = vld [vmem:[#allocation4 + $0x34] sm:$0xf0]  ;;  %v949_v56 = vld [vmem:[#allocation4 + $0x38] sm:$0xf0] }
  0x35   :  { %698 = vmatpush.bf16.msrb.mxu2 %v1028_v54  ;;  %727 = vmatpush.bf16.msrb.mxu3 %v1032_v55  ;;  %v1086_v54 = vld [vmem:[#allocation4 + $0x2c] sm:$0xf]  ;;  %v948_v55 = vor.u32 %v1088_v53, %v947_v52  ;;  %v939_v57 = vld [vmem:[#allocation4 + $0x20] sm:$0xf]  ;;  %v1087_v59 = vld [vmem:[#allocation4 + $0x2c] sm:$0xf0] }
  0x36   :  { %669 = vmatpush.bf16.msrb.mxu1 %v1024_v1  ;;  %v952_v58 = vor.u32 %v1086_v54, %v949_v56  ;;  %v1085_v60 = vld [vmem:[#allocation4 + $0x24] sm:$0xf]  ;;  %v941_v61 = vld [vmem:[#allocation4 + $0x30] sm:$0xf0]  ;;  %v940_v62 = vor.u32 %v1087_v59, %v939_v57  ;;  %v931_v0 = vld [vmem:[#allocation4 + $0x8] sm:$0xf] }
  0x37   :  { %641 = vmatpush.bf16.msrb.mxu0 %v1004_v10  ;;  %v944_v63 = vor.u32 %v1085_v60, %v941_v61  ;;  %v1084_v1 = vld [vmem:[#allocation4 + $0x14] sm:$0xf0]  ;;  %v1082_v2 = vld [vmem:[#allocation4 + $0xc] sm:$0xf]  ;;  %v933_v4 = vld [vmem:[#allocation4 + $0x18] sm:$0xf0] }
  0x38   :  { %v932_v3 = vor.u32 %v1084_v1, %v931_v0  ;;  %v1083_v6 = vld [vmem:[#allocation4 + $0xc] sm:$0xf0]  ;;  %v936_v7 = vor.u32 %v1082_v2, %v933_v4  ;;  %v925_v10 = vld [vmem:[#allocation4 + $0x10] sm:$0xf0]  ;;  %v97_v12 = vld [vmem:[%s1560_s3] sm:$0x3] }
  0x39   :  { %699 = vmatpush.bf16.msrb.mxu2 %v1012_v5  ;;  %728 = vmatpush.bf16.msrb.mxu3 %v1016_v9  ;;  %v923_v5 = vld [vmem:[#allocation4] sm:$0xf]  ;;  %v1081_v9 = vld [vmem:[#allocation4 + $0x4] sm:$0xf]  ;;  %v1351_v13 = vperm.slane %v97_v12, 0  ;;  %v1354_v17 = vperm.slane %v97_v12, 1 }
  0x3a   :  { %670 = vmatpush.bf16.msrb.mxu1 %v1008_v11  ;;  %v924_v8 = vor.u32 %v1083_v6, %v923_v5  ;;  %v928_v11 = vor.u32 %v1081_v9, %v925_v10  ;;  %v61_v18 = vld [vmem:[%s1557_s0] sm:$0xff]  ;;  %v62_v26 = vld [vmem:[%s1557_s0 + $0x8] sm:$0xff]  ;;  %v63_v47 = vld [vmem:[%s1557_s0 + $0x10] sm:$0xff] }
  0x3b   :  { %642 = vmatpush.bf16.msrb.mxu0 %v988_v23  ;;  %v273_v19 = vld [vmem:[%s1562_s5] sm:$0x3]  ;;  %v64_v54 = vld [vmem:[%s1557_s0 + $0x18] sm:$0xff] }
  0x3c   :  { %v1363_v23 = vperm.slane %v273_v19, 0  ;;  %v1370_v31 = vperm.slane %v273_v19, 1  ;;  %v65_v10 = vld [vmem:[%s1557_s0 + $0x20] sm:$0xff]  ;;  %v66_v19 = vld [vmem:[%s1557_s0 + $0x28] sm:$0xff] }
  0x3d   :  { %700 = vmatpush.bf16.msrb.mxu2 %v996_v21  ;;  %729 = vmatpush.bf16.msrb.mxu3 %v1000_v22 }
  0x3e   :  { %196 = vmatmul.bf16.gmra.mxu0 %v78_v37  ;;  %671 = vmatpush.bf16.msrb.mxu1 %v992_v27 }
  0x3f   :  { %225 = vmatmul.bf16.gmra.mxu1 %v78_v37  ;;  %643 = vmatpush.bf16.msrb.mxu0 %v972_v35 }
  0x40   :  { %372 = vmatmul.bf16.gmra.mxu2 %v78_v37  ;;  %401 = vmatmul.bf16.gmra.mxu3 %v78_v37  ;;  %v1092_v37 = vld [vmem:[#allocation4 + $0x54] sm:$0xf0] }
  0x41   :  { %701 = vmatpush.bf16.msrb.mxu2 %v980_v33  ;;  %v964_v41 = vor.u32 %v1092_v37, %v963_v36  ;;  %730 = vmatpush.bf16.msrb.mxu3 %v984_v34 }
  0x42   :  { %672 = vmatpush.bf16.msrb.mxu1 %v976_v38 }
  0x43   :  { %644 = vmatpush.bf16.msrb.mxu0 %v956_v49 }
  0x45   :  { %702 = vmatpush.bf16.msrb.mxu2 %v964_v41  ;;  %731 = vmatpush.bf16.msrb.mxu3 %v968_v42 }
  0x46   :  { %673 = vmatpush.bf16.msrb.mxu1 %v960_v51 }
  0x47   :  { %645 = vmatpush.bf16.msrb.mxu0 %v940_v62 }
  0x49   :  { %703 = vmatpush.bf16.msrb.mxu2 %v948_v55  ;;  %732 = vmatpush.bf16.msrb.mxu3 %v952_v58 }
  0x4a   :  { %674 = vmatpush.bf16.msrb.mxu1 %v944_v63 }
  0x4b   :  { %646 = vmatpush.bf16.msrb.mxu0 %v924_v8 }
  0x4d   :  { %704 = vmatpush.bf16.msrb.mxu2 %v932_v3  ;;  %733 = vmatpush.bf16.msrb.mxu3 %v936_v7 }
  0x4e   :  { %201 = vmatmul.bf16.gmra.mxu0 %v79_v15  ;;  %675 = vmatpush.bf16.msrb.mxu1 %v928_v11 }
  0x4f   :  { %230 = vmatmul.bf16.gmra.mxu1 %v79_v15 }
  0x50   :  { %377 = vmatmul.bf16.gmra.mxu2 %v79_v15  ;;  %406 = vmatmul.bf16.gmra.mxu3 %v79_v15 }
  0x5e   :  { %206 = vmatmul.bf16.gmra.mxu0 %v80_v45 }
  0x5f   :  { %235 = vmatmul.bf16.gmra.mxu1 %v80_v45 }
  0x60   :  { %382 = vmatmul.bf16.gmra.mxu2 %v80_v45  ;;  %411 = vmatmul.bf16.gmra.mxu3 %v80_v45 }
  0xab   :  { %v192_v14 = vpop.f32.mrf.mxu0 }
  0xac   :  { %v221_v15 = vpop.f32.mrf.mxu1  ;;  %v193_v16 = vadd.f32 %v192_v14, %v1351_v13 }
  0xad   :  { %v222_v22 = vadd.f32 %v221_v15, %v1354_v17 }
  0xae   :  { %v241_v21 = vmul.f32 %v193_v16, %v61_v18 }
  0xb0   :  { %v249_v29 = vadd.f32 %v241_v21, %v222_v22 }
  0xb3   :  { %v368_v20 = vpop.f32.mrf.mxu2  ;;  %v397_v24 = vpop.f32.mrf.mxu3 }
  0xb4   :  { %v194_v25 = vpop.f32.mrf.mxu0  ;;  %v223_v28 = vpop.f32.mrf.mxu1  ;;  %v369_v30 = vadd.f32 %v368_v20, %v1363_v23  ;;  %v398_v36 = vadd.f32 %v397_v24, %v1370_v31 }
  0xb5   :  { %v195_v27 = vadd.f32 %v194_v25, %v1351_v13  ;;  %v224_v33 = vadd.f32 %v223_v28, %v1354_v17 }
  0xb6   :  { %v417_v35 = vmul.f32 %v369_v30, %v249_v29 }
  0xb7   :  { %v242_v32 = vmul.f32 %v195_v27, %v62_v26 }
  0xb8   :  { %v425_v44 = vadd.f32 %v417_v35, %v398_v36 }
  0xb9   :  { %v250_v37 = vadd.f32 %v242_v32, %v224_v33 }
  0xbb   :  { %v370_v34 = vpop.f32.mrf.mxu2  ;;  %v399_v39 = vpop.f32.mrf.mxu3 }
  0xbc   :  { %v371_v38 = vadd.f32 %v370_v34, %v1363_v23  ;;  %v197_v40 = vpop.f32.mrf.mxu0  ;;  %v226_v41 = vpop.f32.mrf.mxu1  ;;  %v400_v43 = vadd.f32 %v399_v39, %v1370_v31 }
  0xbd   :  { %v198_v46 = vadd.f32 %v197_v40, %v1351_v13  ;;  %v227_v51 = vadd.f32 %v226_v41, %v1354_v17  ;;  %v67_v41 = vld [vmem:[%s1557_s0 + $0x30] sm:$0xff] }
  0xbe   :  { %v418_v42 = vmul.f32 %v371_v38, %v250_v37 }
  0xbf   :  { %v243_v50 = vmul.f32 %v198_v46, %v63_v47 }
  0xc0   :  { %v426_v45 = vadd.f32 %v418_v42, %v400_v43 }
  0xc1   :  { %v251_v57 = vadd.f32 %v243_v50, %v227_v51 }
  0xc2   :  { %v433_v48 = vpack.c.bf16 %v426_v45, %v425_v44 }
  0xc3   :  { %v373_v49 = vpop.f32.mrf.mxu2  ;;  %v402_v52 = vpop.f32.mrf.mxu3 }
  0xc4   :  { %647 = vmatmul.bf16.vlgmr.msrb.gmra.mxu0 %v433_v48  ;;  %676 = vmatmul.bf16.vlgmr.msrb.gmra.mxu1 %v433_v48  ;;  %v199_v53 = vpop.f32.mrf.mxu0  ;;  %v228_v56 = vpop.f32.mrf.mxu1  ;;  %v374_v58 = vadd.f32 %v373_v49, %v1363_v23  ;;  %v403_v63 = vadd.f32 %v402_v52, %v1370_v31 }
  0xc5   :  { %705 = vmatmul.bf16.vlgmr.msrb.gmra.mxu2 %v433_v48  ;;  %734 = vmatmul.bf16.vlgmr.msrb.gmra.mxu3 %v433_v48  ;;  %v200_v55 = vadd.f32 %v199_v53, %v1351_v13  ;;  %v229_v60 = vadd.f32 %v228_v56, %v1354_v17  ;;  %v68_v48 = vld [vmem:[%s1557_s0 + $0x38] sm:$0xff] }
  0xc6   :  { %v419_v62 = vmul.f32 %v374_v58, %v251_v57 }
  0xc7   :  { %v244_v59 = vmul.f32 %v200_v55, %v64_v54 }
  0xc8   :  { %v427_v7 = vadd.f32 %v419_v62, %v403_v63 }
  0xc9   :  { %v252_v0 = vadd.f32 %v244_v59, %v229_v60 }
  0xcb   :  { %v375_v61 = vpop.f32.mrf.mxu2  ;;  %v404_v2 = vpop.f32.mrf.mxu3 }
  0xcc   :  { %v376_v1 = vadd.f32 %v375_v61, %v1363_v23  ;;  %v202_v3 = vpop.f32.mrf.mxu0  ;;  %v231_v4 = vpop.f32.mrf.mxu1  ;;  %v405_v6 = vadd.f32 %v404_v2, %v1370_v31 }
  0xcd   :  { %v203_v9 = vadd.f32 %v202_v3, %v1351_v13  ;;  %v232_v15 = vadd.f32 %v231_v4, %v1354_v17 }
  0xce   :  { %v420_v5 = vmul.f32 %v376_v1, %v252_v0 }
  0xcf   :  { %v245_v14 = vmul.f32 %v203_v9, %v65_v10 }
  0xd0   :  { %v428_v8 = vadd.f32 %v420_v5, %v405_v6 }
  0xd1   :  { %v253_v22 = vadd.f32 %v245_v14, %v232_v15 }
  0xd2   :  { %v434_v11 = vpack.c.bf16 %v428_v8, %v427_v7 }
  0xd3   :  { %v378_v12 = vpop.f32.mrf.mxu2  ;;  %v407_v16 = vpop.f32.mrf.mxu3 }
  0xd4   :  { %652 = vmatmul.bf16.gmra.mxu0 %v434_v11  ;;  %681 = vmatmul.bf16.gmra.mxu1 %v434_v11  ;;  %v204_v18 = vpop.f32.mrf.mxu0  ;;  %v233_v21 = vpop.f32.mrf.mxu1  ;;  %v379_v24 = vadd.f32 %v378_v12, %v1363_v23  ;;  %v408_v29 = vadd.f32 %v407_v16, %v1370_v31 }
  0xd5   :  { %710 = vmatmul.bf16.gmra.mxu2 %v434_v11  ;;  %739 = vmatmul.bf16.gmra.mxu3 %v434_v11  ;;  %v205_v20 = vadd.f32 %v204_v18, %v1351_v13  ;;  %v234_v26 = vadd.f32 %v233_v21, %v1354_v17 }
  0xd6   :  { %v421_v28 = vmul.f32 %v379_v24, %v253_v22 }
  0xd7   :  { %v246_v25 = vmul.f32 %v205_v20, %v66_v19 }
  0xd8   :  { %v429_v38 = vadd.f32 %v421_v28, %v408_v29 }
  0xd9   :  { %v254_v30 = vadd.f32 %v246_v25, %v234_v26 }
  0xdb   :  { %v380_v27 = vpop.f32.mrf.mxu2  ;;  %v409_v33 = vpop.f32.mrf.mxu3 }
  0xdc   :  { %v381_v32 = vadd.f32 %v380_v27, %v1363_v23  ;;  %v207_v34 = vpop.f32.mrf.mxu0  ;;  %v236_v35 = vpop.f32.mrf.mxu1  ;;  %v410_v37 = vadd.f32 %v409_v33, %v1370_v31 }
  0xdd   :  { %v208_v40 = vadd.f32 %v207_v34, %v1351_v13  ;;  %v237_v45 = vadd.f32 %v236_v35, %v1354_v17 }
  0xde   :  { %v422_v36 = vmul.f32 %v381_v32, %v254_v30 }
  0xdf   :  { %v247_v44 = vmul.f32 %v208_v40, %v67_v41 }
  0xe0   :  { %v430_v39 = vadd.f32 %v422_v36, %v410_v37 }
  0xe1   :  { %v255_v51 = vadd.f32 %v247_v44, %v237_v45 }
  0xe2   :  { %v435_v42 = vpack.c.bf16 %v430_v39, %v429_v38 }
  0xe3   :  { %v383_v43 = vpop.f32.mrf.mxu2  ;;  %v412_v46 = vpop.f32.mrf.mxu3 }
  0xe4   :  { %657 = vmatmul.bf16.gmra.mxu0 %v435_v42  ;;  %686 = vmatmul.bf16.gmra.mxu1 %v435_v42  ;;  %v209_v47 = vpop.f32.mrf.mxu0  ;;  %v238_v50 = vpop.f32.mrf.mxu1  ;;  %v384_v52 = vadd.f32 %v383_v43, %v1363_v23  ;;  %v413_v57 = vadd.f32 %v412_v46, %v1370_v31 }
  0xe5   :  { %715 = vmatmul.bf16.gmra.mxu2 %v435_v42  ;;  %744 = vmatmul.bf16.gmra.mxu3 %v435_v42  ;;  %v210_v49 = vadd.f32 %v209_v47, %v1351_v13  ;;  %v239_v54 = vadd.f32 %v238_v50, %v1354_v17  ;;  %v469_v17 = vld [vmem:[%s1564_s7] sm:$0xf] }
  0xe6   :  { %v423_v56 = vmul.f32 %v384_v52, %v255_v51  ;;  %v1421_v1 = vperm.slane %v469_v17, 0  ;;  %v1423_v2 = vperm.slane %v469_v17, 1  ;;  %v1433_v5 = vperm.slane %v469_v17, 2 }
  0xe7   :  { %v248_v53 = vmul.f32 %v210_v49, %v68_v48  ;;  %v1435_v6 = vperm.slane %v469_v17, 3 }
  0xe8   :  { %v431_v63 = vadd.f32 %v423_v56, %v413_v57 }
  0xe9   :  { %v256_v58 = vadd.f32 %v248_v53, %v239_v54 }
  0xeb   :  { %v385_v55 = vpop.f32.mrf.mxu2  ;;  %v414_v60 = vpop.f32.mrf.mxu3 }
  0xec   :  { %v386_v59 = vadd.f32 %v385_v55, %v1363_v23  ;;  %v415_v62 = vadd.f32 %v414_v60, %v1370_v31 }
  0xee   :  { %v424_v61 = vmul.f32 %v386_v59, %v256_v58 }
  0xf0   :  { %v432_v13 = vadd.f32 %v424_v61, %v415_v62 }
  0xf2   :  { %v436_v0 = vpack.c.bf16 %v432_v13, %v431_v63 }
  0xf4   :  { %662 = vmatmul.bf16.gmra.mxu0 %v436_v0  ;;  %691 = vmatmul.bf16.gmra.mxu1 %v436_v0 }
  0xf5   :  { %720 = vmatmul.bf16.gmra.mxu2 %v436_v0  ;;  %749 = vmatmul.bf16.gmra.mxu3 %v436_v0 }
 0x141   :  { %v648_v23 = vpop.f32.mrf.mxu0  ;;  %v677_v3 = vpop.f32.mrf.mxu1 }
 0x142   :  { %v649_v4 = vadd.f32 %v648_v23, %v1421_v1  ;;  %v678_v31 = vadd.f32 %v677_v3, %v1423_v2 }
 0x144   :  { %755 = vst [vmem:[%s1565_s8] sm:$0xff] %v649_v4 }
 0x145   :  { %756 = vst [vmem:[%s1565_s8 + $0x8] sm:$0xff] %v678_v31 }
 0x148   :  { %v706_v7 = vpop.f32.mrf.mxu2  ;;  %v735_v8 = vpop.f32.mrf.mxu3 }
 0x149   :  { %v707_v9 = vadd.f32 %v706_v7, %v1433_v5  ;;  %v736_v10 = vadd.f32 %v735_v8, %v1435_v6  ;;  %v650_v11 = vpop.f32.mrf.mxu0  ;;  %v679_v12 = vpop.f32.mrf.mxu1 }
 0x14a   :  { %v651_v14 = vadd.f32 %v650_v11, %v1421_v1  ;;  %v680_v15 = vadd.f32 %v679_v12, %v1423_v2 }
 0x14b   :  { %757 = vst [vmem:[%s1565_s8 + $0x10] sm:$0xff] %v707_v9 }
 0x14c   :  { %758 = vst [vmem:[%s1565_s8 + $0x18] sm:$0xff] %v736_v10 }
 0x14d   :  { %759 = vst [vmem:[%s1565_s8 + $0x20] sm:$0xff] %v651_v14 }
 0x14e   :  { %760 = vst [vmem:[%s1565_s8 + $0x28] sm:$0xff] %v680_v15 }
 0x150   :  { %v708_v16 = vpop.f32.mrf.mxu2  ;;  %v737_v18 = vpop.f32.mrf.mxu3 }
 0x151   :  { %v709_v19 = vadd.f32 %v708_v16, %v1433_v5  ;;  %v738_v20 = vadd.f32 %v737_v18, %v1435_v6  ;;  %v653_v21 = vpop.f32.mrf.mxu0  ;;  %v682_v22 = vpop.f32.mrf.mxu1 }
 0x152   :  { %v654_v24 = vadd.f32 %v653_v21, %v1421_v1  ;;  %v683_v25 = vadd.f32 %v682_v22, %v1423_v2 }
 0x153   :  { %761 = vst [vmem:[%s1565_s8 + $0x30] sm:$0xff] %v709_v19 }
 0x154   :  { %762 = vst [vmem:[%s1565_s8 + $0x38] sm:$0xff] %v738_v20 }
 0x155   :  { %763 = vst [vmem:[%s1565_s8 + $0x40] sm:$0xff] %v654_v24 }
 0x156   :  { %764 = vst [vmem:[%s1565_s8 + $0x48] sm:$0xff] %v683_v25 }
 0x158   :  { %v711_v26 = vpop.f32.mrf.mxu2  ;;  %v740_v27 = vpop.f32.mrf.mxu3 }
 0x159   :  { %v712_v28 = vadd.f32 %v711_v26, %v1433_v5  ;;  %v741_v29 = vadd.f32 %v740_v27, %v1435_v6  ;;  %v655_v30 = vpop.f32.mrf.mxu0  ;;  %v684_v32 = vpop.f32.mrf.mxu1 }
 0x15a   :  { %v656_v33 = vadd.f32 %v655_v30, %v1421_v1  ;;  %v685_v34 = vadd.f32 %v684_v32, %v1423_v2 }
 0x15b   :  { %765 = vst [vmem:[%s1565_s8 + $0x50] sm:$0xff] %v712_v28 }
 0x15c   :  { %766 = vst [vmem:[%s1565_s8 + $0x58] sm:$0xff] %v741_v29 }
 0x15d   :  { %767 = vst [vmem:[%s1565_s8 + $0x60] sm:$0xff] %v656_v33 }
 0x15e   :  { %768 = vst [vmem:[%s1565_s8 + $0x68] sm:$0xff] %v685_v34 }
 0x160   :  { %v713_v35 = vpop.f32.mrf.mxu2  ;;  %v742_v36 = vpop.f32.mrf.mxu3 }
 0x161   :  { %v714_v37 = vadd.f32 %v713_v35, %v1433_v5  ;;  %v743_v38 = vadd.f32 %v742_v36, %v1435_v6  ;;  %v658_v39 = vpop.f32.mrf.mxu0  ;;  %v687_v40 = vpop.f32.mrf.mxu1 }
 0x162   :  { %v659_v41 = vadd.f32 %v658_v39, %v1421_v1  ;;  %v688_v42 = vadd.f32 %v687_v40, %v1423_v2 }
 0x163   :  { %769 = vst [vmem:[%s1565_s8 + $0x70] sm:$0xff] %v714_v37 }
 0x164   :  { %770 = vst [vmem:[%s1565_s8 + $0x78] sm:$0xff] %v743_v38 }
 0x165   :  { %771 = vst [vmem:[%s1565_s8 + $0x80] sm:$0xff] %v659_v41 }
 0x166   :  { %772 = vst [vmem:[%s1565_s8 + $0x88] sm:$0xff] %v688_v42 }
 0x168   :  { %v716_v43 = vpop.f32.mrf.mxu2  ;;  %v745_v44 = vpop.f32.mrf.mxu3 }
 0x169   :  { %v717_v45 = vadd.f32 %v716_v43, %v1433_v5  ;;  %v746_v46 = vadd.f32 %v745_v44, %v1435_v6  ;;  %v660_v47 = vpop.f32.mrf.mxu0  ;;  %v689_v48 = vpop.f32.mrf.mxu1 }
 0x16a   :  { %v661_v49 = vadd.f32 %v660_v47, %v1421_v1  ;;  %v690_v50 = vadd.f32 %v689_v48, %v1423_v2 }
 0x16b   :  { %773 = vst [vmem:[%s1565_s8 + $0x90] sm:$0xff] %v717_v45 }
 0x16c   :  { %774 = vst [vmem:[%s1565_s8 + $0x98] sm:$0xff] %v746_v46 }
 0x16d   :  { %775 = vst [vmem:[%s1565_s8 + $0xa0] sm:$0xff] %v661_v49 }
 0x16e   :  { %776 = vst [vmem:[%s1565_s8 + $0xa8] sm:$0xff] %v690_v50 }
 0x170   :  { %v718_v51 = vpop.f32.mrf.mxu2  ;;  %v747_v52 = vpop.f32.mrf.mxu3 }
 0x171   :  { %v719_v53 = vadd.f32 %v718_v51, %v1433_v5  ;;  %v748_v54 = vadd.f32 %v747_v52, %v1435_v6  ;;  %v663_v55 = vpop.f32.mrf.mxu0  ;;  %v692_v56 = vpop.f32.mrf.mxu1 }
 0x172   :  { %v664_v57 = vadd.f32 %v663_v55, %v1421_v1  ;;  %v693_v58 = vadd.f32 %v692_v56, %v1423_v2 }
 0x173   :  { %777 = vst [vmem:[%s1565_s8 + $0xb0] sm:$0xff] %v719_v53 }
 0x174   :  { %778 = vst [vmem:[%s1565_s8 + $0xb8] sm:$0xff] %v748_v54 }
 0x175   :  { %779 = vst [vmem:[%s1565_s8 + $0xc0] sm:$0xff] %v664_v57 }
 0x176   :  { %780 = vst [vmem:[%s1565_s8 + $0xc8] sm:$0xff] %v693_v58 }
 0x178   :  { %v721_v59 = vpop.f32.mrf.mxu2  ;;  %v750_v60 = vpop.f32.mrf.mxu3 }
 0x179   :  { %v722_v61 = vadd.f32 %v721_v59, %v1433_v5  ;;  %v751_v62 = vadd.f32 %v750_v60, %v1435_v6  ;;  %v665_v63 = vpop.f32.mrf.mxu0  ;;  %v694_v13 = vpop.f32.mrf.mxu1 }
 0x17a   :  { %v666_v0 = vadd.f32 %v665_v63, %v1421_v1  ;;  %v695_v17 = vadd.f32 %v694_v13, %v1423_v2 }
 0x17b   :  { %781 = vst [vmem:[%s1565_s8 + $0xd0] sm:$0xff] %v722_v61 }
 0x17c   :  { %782 = vst [vmem:[%s1565_s8 + $0xd8] sm:$0xff] %v751_v62 }
 0x17d   :  { %783 = vst [vmem:[%s1565_s8 + $0xe0] sm:$0xff] %v666_v0 }
 0x17e   :  { %784 = vst [vmem:[%s1565_s8 + $0xe8] sm:$0xff] %v695_v17 }
 0x180   :  { %v723_v23 = vpop.f32.mrf.mxu2  ;;  %v752_v1 = vpop.f32.mrf.mxu3 }
 0x181   :  { %v724_v2 = vadd.f32 %v723_v23, %v1433_v5  ;;  %v753_v3 = vadd.f32 %v752_v1, %v1435_v6 }
 0x183   :  { %785 = vst [vmem:[%s1565_s8 + $0xf0] sm:$0xff] %v724_v2 }
 0x184   :  { %786 = vst [vmem:[%s1565_s8 + $0xf8] sm:$0xff] %v753_v3 }
 0x185   :  { %791 = vsyncpa [#allocation3], 1 }
 0x186   :  { %792 = vsyncpa [#allocation5], 1 }

// kernel: decision_maker_forward.3
= control target key start
LH: loop header
LB: loop body
LE: loop exit
PB: predicated region body
PF: predicated region fallthrough
CT: control target
= control target key end

     0   :  { %19 = vsyncpa [#allocation6], 0  ;;  %s13521_s0 = inlined_call_operand.vmem [shape: f32[8,8,512], index: 0, kind: input, shape index: {}]   ;;  %s13522_s1 = inlined_call_operand.vmem [shape: f32[2,8,128], index: 1, kind: input, shape index: {}, may-alias: {1,2}]   ;;  %s13523_s2 = inlined_call_operand.vmem [shape: f32[2,8,128], index: 2, kind: input, shape index: {}, may-alias: {1,2}]   ;;  %s13524_s3 = inlined_call_operand.hbm [shape: bf16[128,512], index: 3, kind: input, shape index: {}]   ;;  %s13525_s4 = inlined_call_operand.hbm [shape: bf16[128,512], index: 4, kind: input, shape index: {}]   ;;  %s13526_s5 = inlined_call_operand.hbm [shape: bf16[128,512], index: 5, kind: input, shape index: {}]   ;;  %s13527_s6 = inlined_call_operand.vmem [shape: f32[1,512], index: 6, kind: input, shape index: {}]   ;;  %s13528_s7 = inlined_call_operand.vmem [shape: bf16[128,64], index: 7, kind: input, shape index: {}]   ;;  %s13529_s8 = inlined_call_operand.vmem [shape: f32[1,64], index: 8, kind: input, shape index: {}]   ;;  %s13530_s9 = inlined_call_operand.vmem [shape: bf16[64,128], index: 9, kind: input, shape index: {}]   ;;  %s13531_s10 = inlined_call_operand.vmem [shape: f32[1,128], index: 10, kind: input, shape index: {}]   ;;  %s13532_s11 = inlined_call_operand.vmem [shape: f32[8,8,128], index: 11, kind: output, shape index: {0}]   ;;  %s13533_s12 = inlined_call_operand.vmem [shape: f32[2,8,128], index: 12, kind: output, shape index: {1}]   ;;  %s13534_s13 = inlined_call_operand.vmem [shape: f32[2,8,128], index: 13, kind: output, shape index: {2}]  }
   0x1   :  { %20 = vsyncpa [#allocation8], 0  ;;  %s44_s27 = sshll.u32 %s13525_s4, 4  ;;  %s11798_s28 = smov [#allocation7]   ;;  %s45_s27 = int_to_ptr.hbm [resolvable:$true] %s44_s27 }
   0x2   :  { %s46_s29 = sshll.u32 %s11798_s28, 4  ;;  %s31_s15 = sshll.u32 %s13524_s3, 4  ;;  %s47_s29 = int_to_ptr.vmem [resolvable:$true] %s46_s29  ;;  %s32_s15 = int_to_ptr.hbm [resolvable:$true] %s31_s15 }
   0x3   :  { %s11799_s16 = smov 256   ;;  %s11800_s17 = smov 16  }
   0x4   :  { %52 = dma.hbm_to_vmem [thread:$0]  %s45_s27, 4096, %s47_s29, [#allocation8], %s11799_s16, %s11799_s16, %s11800_s17  }
   0x5   :  { %s11801_s18 = smov [#allocation5]   ;;  %s57_s22 = sshll.u32 %s13526_s5, 4  ;;  %s58_s22 = int_to_ptr.hbm [resolvable:$true] %s57_s22 }
   0x6   :  { %s33_s19 = sshll.u32 %s11801_s18, 4  ;;  %s11802_s4 = smov [#allocation9]   ;;  %s34_s19 = int_to_ptr.vmem [resolvable:$true] %s33_s19 }
   0x7   :  { %39 = dma.hbm_to_vmem [thread:$0]  %s32_s15, 4096, %s34_s19, [#allocation6], %s11799_s16, %s11799_s16, %s11800_s17  }
   0x8   :  { %s59_s23 = sshll.u32 %s11802_s4, 4  ;;  %s60_s23 = int_to_ptr.vmem [resolvable:$true] %s59_s23 }
   0x9   :  { %65 = dma.hbm_to_vmem [thread:$0]  %s58_s22, 4096, %s60_s23, [#allocation8], %s11799_s16, %s11799_s16, %s11800_s17  }
   0xa   :  { %11794 = dma.done.wait [#allocation6], 4096  }
   0xb   :  { %11795 = vsyncadd [#allocation6], 4294963200 }
   0xc   :  { %11796 = dma.done.wait [#allocation8], 8192  }
   0xd   :  { %11797 = vsyncadd [#allocation8], 4294959104  ;;  %v7559_v0 = vld [vmem:[#allocation5 + $0xe0] sm:$0xf]  ;;  %v10691_v1 = vld [vmem:[#allocation5 + $0xec] sm:$0xf0] }
   0xe   :  { %v10689_v2 = vld [vmem:[#allocation5 + $0xe4] sm:$0xf]  ;;  %v7560_v3 = vor.u32 %v10691_v1, %v7559_v0  ;;  %v7561_v4 = vld [vmem:[#allocation5 + $0xf0] sm:$0xf0]  ;;  %v7543_v5 = vld [vmem:[#allocation5 + $0xc0] sm:$0xf] }
   0xf   :  { %v10687_v6 = vld [vmem:[#allocation5 + $0xcc] sm:$0xf0]  ;;  %v7564_v7 = vor.u32 %v10689_v2, %v7561_v4  ;;  %v10685_v8 = vld [vmem:[#allocation5 + $0xc4] sm:$0xf]  ;;  %v7545_v9 = vld [vmem:[#allocation5 + $0xd0] sm:$0xf0] }
  0x10   :  { %305 = vmatpush.bf16.msra.mxu2 %v7560_v3  ;;  %v7544_v10 = vor.u32 %v10687_v6, %v7543_v5  ;;  %v7548_v11 = vor.u32 %v10685_v8, %v7545_v9  ;;  %v7527_v12 = vld [vmem:[#allocation5 + $0xa0] sm:$0xf]  ;;  %v10683_v13 = vld [vmem:[#allocation5 + $0xac] sm:$0xf0]  ;;  %v10681_v14 = vld [vmem:[#allocation5 + $0xa4] sm:$0xf] }
  0x11   :  { %318 = vmatpush.bf16.msra.mxu3 %v7564_v7  ;;  %v7529_v15 = vld [vmem:[#allocation5 + $0xb0] sm:$0xf0]  ;;  %v7528_v16 = vor.u32 %v10683_v13, %v7527_v12  ;;  %v7511_v18 = vld [vmem:[#allocation5 + $0x80] sm:$0xf]  ;;  %v10679_v19 = vld [vmem:[#allocation5 + $0x8c] sm:$0xf0] }
  0x12   :  { %v7532_v17 = vor.u32 %v10681_v14, %v7529_v15  ;;  %v10677_v20 = vld [vmem:[#allocation5 + $0x84] sm:$0xf]  ;;  %v7513_v21 = vld [vmem:[#allocation5 + $0x90] sm:$0xf0]  ;;  %v7512_v22 = vor.u32 %v10679_v19, %v7511_v18  ;;  %v7495_v23 = vld [vmem:[#allocation5 + $0x60] sm:$0xf] }
  0x13   :  { %v7516_v24 = vor.u32 %v10677_v20, %v7513_v21  ;;  %v10675_v25 = vld [vmem:[#allocation5 + $0x6c] sm:$0xf0]  ;;  %v93_v26 = vld [vmem:[%s13522_s1] sm:$0xff]  ;;  %v94_v27 = vld [vmem:[%s13522_s1 + $0x8] sm:$0xff] }
  0x14   :  { %306 = vmatpush.bf16.msra.mxu2 %v7544_v10  ;;  %v10673_v28 = vld [vmem:[#allocation5 + $0x64] sm:$0xf]  ;;  %v7497_v29 = vld [vmem:[#allocation5 + $0x70] sm:$0xf0]  ;;  %v11448_v30 = vpack.c.bf16 %v94_v27, %v93_v26  ;;  %v7496_v31 = vor.u32 %v10675_v25, %v7495_v23  ;;  %v7479_v33 = vld [vmem:[#allocation5 + $0x40] sm:$0xf] }
  0x15   :  { %319 = vmatpush.bf16.msra.mxu3 %v7548_v11  ;;  %v7500_v32 = vor.u32 %v10673_v28, %v7497_v29  ;;  %v10671_v34 = vld [vmem:[#allocation5 + $0x4c] sm:$0xf0]  ;;  %v10669_v35 = vld [vmem:[#allocation5 + $0x44] sm:$0xf]  ;;  %v7481_v36 = vld [vmem:[#allocation5 + $0x50] sm:$0xf0] }
  0x16   :  { %11449 = vst [vmem:[#allocation2] sm:$0xff] %v11448_v30   ;;  %v7480_v37 = vor.u32 %v10671_v34, %v7479_v33  ;;  %v7484_v38 = vor.u32 %v10669_v35, %v7481_v36  ;;  %v7463_v39 = vld [vmem:[#allocation5 + $0x20] sm:$0xf]  ;;  %v10667_v40 = vld [vmem:[#allocation5 + $0x2c] sm:$0xf0] }
  0x17   :  { %v10665_v41 = vld [vmem:[#allocation5 + $0x24] sm:$0xf]  ;;  %v7465_v42 = vld [vmem:[#allocation5 + $0x30] sm:$0xf0]  ;;  %v7464_v43 = vor.u32 %v10667_v40, %v7463_v39  ;;  %v7447_v45 = vld [vmem:[#allocation5] sm:$0xf] }
  0x18   :  { %307 = vmatpush.bf16.msra.mxu2 %v7528_v16  ;;  %v7468_v44 = vor.u32 %v10665_v41, %v7465_v42  ;;  %v10663_v46 = vld [vmem:[#allocation5 + $0xc] sm:$0xf0]  ;;  %v10661_v47 = vld [vmem:[#allocation5 + $0x4] sm:$0xf]  ;;  %v7449_v48 = vld [vmem:[#allocation5 + $0x10] sm:$0xf0] }
  0x19   :  { %320 = vmatpush.bf16.msra.mxu3 %v7532_v17  ;;  %v7567_v49 = vld [vmem:[#allocation5 + $0xe8] sm:$0xf]  ;;  %v10692_v50 = vld [vmem:[#allocation5 + $0xf4] sm:$0xf0]  ;;  %v10690_v51 = vld [vmem:[#allocation5 + $0xec] sm:$0xf]  ;;  %v7448_v53 = vor.u32 %v10663_v46, %v7447_v45  ;;  %v7452_v54 = vor.u32 %v10661_v47, %v7449_v48 }
  0x1a   :  { %v7569_v52 = vld [vmem:[#allocation5 + $0xf8] sm:$0xf0]  ;;  %v7568_v55 = vor.u32 %v10692_v50, %v7567_v49  ;;  %v7551_v57 = vld [vmem:[#allocation5 + $0xc8] sm:$0xf]  ;;  %v10688_v58 = vld [vmem:[#allocation5 + $0xd4] sm:$0xf0] }
  0x1b   :  { %v7572_v56 = vor.u32 %v10690_v51, %v7569_v52  ;;  %v10686_v59 = vld [vmem:[#allocation5 + $0xcc] sm:$0xf]  ;;  %v7553_v60 = vld [vmem:[#allocation5 + $0xd8] sm:$0xf0]  ;;  %v7552_v62 = vor.u32 %v10688_v58, %v7551_v57  ;;  %v7535_v0 = vld [vmem:[#allocation5 + $0xa8] sm:$0xf] }
  0x1c   :  { %308 = vmatpush.bf16.msra.mxu2 %v7512_v22  ;;  %v7556_v63 = vor.u32 %v10686_v59, %v7553_v60  ;;  %v10684_v1 = vld [vmem:[#allocation5 + $0xb4] sm:$0xf0]  ;;  %v10682_v2 = vld [vmem:[#allocation5 + $0xac] sm:$0xf]  ;;  %v7537_v3 = vld [vmem:[#allocation5 + $0xb8] sm:$0xf0] }
  0x1d   :  { %321 = vmatpush.bf16.msra.mxu3 %v7516_v24  ;;  %v103_v61 = vld [vmem:[#allocation2] sm:$0xf]  ;;  %v7536_v4 = vor.u32 %v10684_v1, %v7535_v0  ;;  %v7540_v5 = vor.u32 %v10682_v2, %v7537_v3  ;;  %v7519_v6 = vld [vmem:[#allocation5 + $0x88] sm:$0xf]  ;;  %v10678_v8 = vld [vmem:[#allocation5 + $0x8c] sm:$0xf] }
  0x1e   :  { %v10680_v7 = vld [vmem:[#allocation5 + $0x94] sm:$0xf0]  ;;  %v7521_v9 = vld [vmem:[#allocation5 + $0x98] sm:$0xf0]  ;;  %v7503_v12 = vld [vmem:[#allocation5 + $0x68] sm:$0xf] }
  0x1f   :  { %v7520_v10 = vor.u32 %v10680_v7, %v7519_v6  ;;  %v7524_v11 = vor.u32 %v10678_v8, %v7521_v9  ;;  %v10676_v13 = vld [vmem:[#allocation5 + $0x74] sm:$0xf0]  ;;  %v10674_v14 = vld [vmem:[#allocation5 + $0x6c] sm:$0xf]  ;;  %v7505_v15 = vld [vmem:[#allocation5 + $0x78] sm:$0xf0] }
  0x20   :  { %309 = vmatpush.bf16.msra.mxu2 %v7496_v31  ;;  %v7504_v16 = vor.u32 %v10676_v13, %v7503_v12  ;;  %v7508_v17 = vor.u32 %v10674_v14, %v7505_v15  ;;  %v7487_v18 = vld [vmem:[#allocation5 + $0x48] sm:$0xf]  ;;  %v10672_v19 = vld [vmem:[#allocation5 + $0x54] sm:$0xf0]  ;;  %v10670_v20 = vld [vmem:[#allocation5 + $0x4c] sm:$0xf] }
  0x21   :  { %322 = vmatpush.bf16.msra.mxu3 %v7500_v32  ;;  %v7489_v21 = vld [vmem:[#allocation5 + $0x58] sm:$0xf0]  ;;  %v7488_v22 = vor.u32 %v10672_v19, %v7487_v18  ;;  %v7471_v24 = vld [vmem:[#allocation5 + $0x28] sm:$0xf]  ;;  %v10668_v25 = vld [vmem:[#allocation5 + $0x34] sm:$0xf0] }
  0x22   :  { %v7492_v23 = vor.u32 %v10670_v20, %v7489_v21  ;;  %v10666_v26 = vld [vmem:[#allocation5 + $0x2c] sm:$0xf]  ;;  %v7473_v27 = vld [vmem:[#allocation5 + $0x38] sm:$0xf0]  ;;  %v7472_v28 = vor.u32 %v10668_v25, %v7471_v24  ;;  %v7455_v30 = vld [vmem:[#allocation5 + $0x8] sm:$0xf] }
  0x23   :  { %v7476_v29 = vor.u32 %v10666_v26, %v7473_v27  ;;  %v10664_v31 = vld [vmem:[#allocation5 + $0x14] sm:$0xf0]  ;;  %v10662_v32 = vld [vmem:[#allocation5 + $0xc] sm:$0xf]  ;;  %v7457_v33 = vld [vmem:[#allocation5 + $0x18] sm:$0xf0] }
  0x24   :  { %310 = vmatpush.bf16.msra.mxu2 %v7480_v37  ;;  %v7456_v34 = vor.u32 %v10664_v31, %v7455_v30  ;;  %v7460_v35 = vor.u32 %v10662_v32, %v7457_v33  ;;  %v7690_v36 = vld [vmem:[#allocation7 + $0xe0] sm:$0xf]  ;;  %v10723_v37 = vld [vmem:[#allocation7 + $0xec] sm:$0xf0]  ;;  %v7692_v40 = vld [vmem:[#allocation7 + $0xf0] sm:$0xf0] }
  0x25   :  { %323 = vmatpush.bf16.msra.mxu3 %v7484_v38  ;;  %v10721_v38 = vld [vmem:[#allocation7 + $0xe4] sm:$0xf]  ;;  %v7691_v39 = vor.u32 %v10723_v37, %v7690_v36  ;;  %v7698_v41 = vld [vmem:[#allocation7 + $0xe8] sm:$0xf]  ;;  %v7700_v45 = vld [vmem:[#allocation7 + $0xf8] sm:$0xf0] }
  0x26   :  { %v7695_v42 = vor.u32 %v10721_v38, %v7692_v40  ;;  %v7674_v48 = vld [vmem:[#allocation7 + $0xc0] sm:$0xf]  ;;  %v10719_v49 = vld [vmem:[#allocation7 + $0xcc] sm:$0xf0]  ;;  %v10717_v50 = vld [vmem:[#allocation7 + $0xc4] sm:$0xf] }
  0x27   :  { %627 = vmatpush.bf16.msra.mxu0 %v7691_v39  ;;  %v7675_v51 = vor.u32 %v10719_v49, %v7674_v48  ;;  %v7676_v52 = vld [vmem:[#allocation7 + $0xd0] sm:$0xf0]  ;;  %v10718_v57 = vld [vmem:[#allocation7 + $0xcc] sm:$0xf]  ;;  %v7684_v58 = vld [vmem:[#allocation7 + $0xd8] sm:$0xf0] }
  0x28   :  { %311 = vmatpush.bf16.msra.mxu2 %v7464_v43  ;;  %v10724_v43 = vld [vmem:[#allocation7 + $0xf4] sm:$0xf0]  ;;  %640 = vmatpush.bf16.msra.mxu1 %v7695_v42  ;;  %v7687_v59 = vor.u32 %v10718_v57, %v7684_v58  ;;  %v7658_v60 = vld [vmem:[#allocation7 + $0xa0] sm:$0xf]  ;;  %v7660_v0 = vld [vmem:[#allocation7 + $0xb0] sm:$0xf0] }
  0x29   :  { %324 = vmatpush.bf16.msra.mxu3 %v7468_v44  ;;  %v10722_v44 = vld [vmem:[#allocation7 + $0xec] sm:$0xf]  ;;  %v7699_v46 = vor.u32 %v10724_v43, %v7698_v41  ;;  %v7666_v1 = vld [vmem:[#allocation7 + $0xa8] sm:$0xf]  ;;  %v10716_v2 = vld [vmem:[#allocation7 + $0xb4] sm:$0xf0] }
  0x2a   :  { %v7703_v47 = vor.u32 %v10722_v44, %v7700_v45  ;;  %v7668_v6 = vld [vmem:[#allocation7 + $0xb8] sm:$0xf0]  ;;  %v7642_v8 = vld [vmem:[#allocation7 + $0x80] sm:$0xf]  ;;  %v10711_v9 = vld [vmem:[#allocation7 + $0x8c] sm:$0xf0] }
  0x2b   :  { %628 = vmatpush.bf16.msra.mxu0 %v7675_v51  ;;  %v7644_v12 = vld [vmem:[#allocation7 + $0x90] sm:$0xf0]  ;;  %v7650_v13 = vld [vmem:[#allocation7 + $0x88] sm:$0xf]  ;;  %v10712_v14 = vld [vmem:[#allocation7 + $0x94] sm:$0xf0] }
  0x2c   :  { %312 = vmatpush.bf16.msra.mxu2 %v7448_v53  ;;  %v7682_v53 = vld [vmem:[#allocation7 + $0xc8] sm:$0xf]  ;;  %v7652_v18 = vld [vmem:[#allocation7 + $0x98] sm:$0xf0]  ;;  %v7626_v20 = vld [vmem:[#allocation7 + $0x60] sm:$0xf] }
  0x2d   :  { %325 = vmatpush.bf16.msra.mxu3 %v7452_v54  ;;  %v10720_v54 = vld [vmem:[#allocation7 + $0xd4] sm:$0xf0]  ;;  %v10707_v21 = vld [vmem:[#allocation7 + $0x6c] sm:$0xf0]  ;;  %v7628_v24 = vld [vmem:[#allocation7 + $0x70] sm:$0xf0] }
  0x2e   :  { %v7634_v25 = vld [vmem:[#allocation7 + $0x68] sm:$0xf]  ;;  %v10708_v26 = vld [vmem:[#allocation7 + $0x74] sm:$0xf0]  ;;  %v7636_v30 = vld [vmem:[#allocation7 + $0x78] sm:$0xf0] }
  0x2f   :  { %313 = vmatmul.bf16.vlgmr.msra.gmra.mxu2 %v103_v61  ;;  %v7610_v32 = vld [vmem:[#allocation7 + $0x40] sm:$0xf]  ;;  %v10703_v33 = vld [vmem:[#allocation7 + $0x4c] sm:$0xf0]  ;;  %v7612_v36 = vld [vmem:[#allocation7 + $0x50] sm:$0xf0] }
  0x30   :  { %331 = vmatpush.bf16.msrb.mxu2 %v7568_v55  ;;  %326 = vmatmul.bf16.vlgmr.msra.gmra.mxu3 %v103_v61  ;;  %v7679_v55 = vor.u32 %v10717_v50, %v7676_v52  ;;  %v7618_v37 = vld [vmem:[#allocation7 + $0x48] sm:$0xf]  ;;  %v10704_v38 = vld [vmem:[#allocation7 + $0x54] sm:$0xf0]  ;;  %v10702_v41 = vld [vmem:[#allocation7 + $0x4c] sm:$0xf] }
  0x31   :  { %344 = vmatpush.bf16.msrb.mxu3 %v7572_v56  ;;  %v7683_v56 = vor.u32 %v10720_v54, %v7682_v53  ;;  %v7619_v40 = vor.u32 %v10704_v38, %v7618_v37  ;;  %v7620_v42 = vld [vmem:[#allocation7 + $0x58] sm:$0xf0]  ;;  %v110_v44 = vld [vmem:[%s13521_s0 + $0x8] sm:$0xff]  ;;  %v7596_v50 = vld [vmem:[#allocation7 + $0x30] sm:$0xf0] }
  0x32   :  { %641 = vmatpush.bf16.msra.mxu1 %v7679_v55  ;;  %v7623_v43 = vor.u32 %v10702_v41, %v7620_v42  ;;  %v7594_v45 = vld [vmem:[#allocation7 + $0x20] sm:$0xf]  ;;  %v109_v48 = vld [vmem:[%s13521_s0] sm:$0xff]  ;;  %v7602_v51 = vld [vmem:[#allocation7 + $0x28] sm:$0xf] }
  0x33   :  { %v10700_v53 = vld [vmem:[#allocation7 + $0x34] sm:$0xf0]  ;;  %v10698_v54 = vld [vmem:[#allocation7 + $0x2c] sm:$0xf]  ;;  %v7604_v55 = vld [vmem:[#allocation7 + $0x38] sm:$0xf0] }
  0x34   :  { %332 = vmatpush.bf16.msrb.mxu2 %v7552_v62  ;;  %v10713_v62 = vld [vmem:[#allocation7 + $0xa4] sm:$0xf]  ;;  %v7603_v57 = vor.u32 %v10700_v53, %v7602_v51  ;;  %v7607_v58 = vor.u32 %v10698_v54, %v7604_v55  ;;  %v7786_v38 = vld [vmem:[#allocation9 + $0xa0] sm:$0xf]  ;;  %v10743_v55 = vld [vmem:[#allocation9 + $0x8c] sm:$0xf0] }
  0x35   :  { %345 = vmatpush.bf16.msrb.mxu3 %v7556_v63  ;;  %v7663_v3 = vor.u32 %v10713_v62, %v7660_v0  ;;  %v10695_v62 = vld [vmem:[#allocation7 + $0xc] sm:$0xf0]  ;;  %v7770_v54 = vld [vmem:[#allocation9 + $0x80] sm:$0xf] }
  0x37   :  { %642 = vmatpush.bf16.msra.mxu1 %v7663_v3  ;;  %v7586_v3 = vld [vmem:[#allocation7 + $0x8] sm:$0xf] }
  0x38   :  { %333 = vmatpush.bf16.msrb.mxu2 %v7536_v4  ;;  %v7667_v4 = vor.u32 %v10716_v2, %v7666_v1  ;;  %v7580_v2 = vld [vmem:[#allocation7 + $0x10] sm:$0xf0] }
  0x39   :  { %346 = vmatpush.bf16.msrb.mxu3 %v7540_v5  ;;  %v10714_v5 = vld [vmem:[#allocation7 + $0xac] sm:$0xf] }
  0x3a   :  { %v7671_v7 = vor.u32 %v10714_v5, %v7668_v6 }
  0x3c   :  { %334 = vmatpush.bf16.msrb.mxu2 %v7520_v10  ;;  %v10709_v10 = vld [vmem:[#allocation7 + $0x84] sm:$0xf] }
  0x3d   :  { %347 = vmatpush.bf16.msrb.mxu3 %v7524_v11  ;;  %v7643_v11 = vor.u32 %v10711_v9, %v7642_v8  ;;  %v7647_v15 = vor.u32 %v10709_v10, %v7644_v12  ;;  %v10694_v8 = vld [vmem:[#allocation7 + $0xc] sm:$0xf]  ;;  %v7588_v9 = vld [vmem:[#allocation7 + $0x18] sm:$0xf0]  ;;  %v7818_v12 = vld [vmem:[#allocation9 + $0xe0] sm:$0xf] }
  0x3f   :  { %643 = vmatpush.bf16.msra.mxu1 %v7647_v15  ;;  %v10753_v15 = vld [vmem:[#allocation9 + $0xe4] sm:$0xf] }
  0x40   :  { %335 = vmatpush.bf16.msrb.mxu2 %v7504_v16  ;;  %v7651_v16 = vor.u32 %v10712_v14, %v7650_v13  ;;  %v10755_v13 = vld [vmem:[#allocation9 + $0xec] sm:$0xf0] }
  0x41   :  { %348 = vmatpush.bf16.msrb.mxu3 %v7508_v17  ;;  %v10710_v17 = vld [vmem:[#allocation7 + $0x8c] sm:$0xf]  ;;  %v7819_v14 = vor.u32 %v10755_v13, %v7818_v12  ;;  %v7764_v12 = vld [vmem:[#allocation9 + $0x78] sm:$0xf0] }
  0x42   :  { %v7655_v19 = vor.u32 %v10710_v17, %v7652_v18  ;;  %v7826_v17 = vld [vmem:[#allocation9 + $0xe8] sm:$0xf] }
  0x44   :  { %336 = vmatpush.bf16.msrb.mxu2 %v7488_v22  ;;  %v10705_v22 = vld [vmem:[#allocation7 + $0x64] sm:$0xf] }
  0x45   :  { %349 = vmatpush.bf16.msrb.mxu3 %v7492_v23  ;;  %v7627_v23 = vor.u32 %v10707_v21, %v7626_v20  ;;  %v7631_v27 = vor.u32 %v10705_v22, %v7628_v24  ;;  %v10754_v20 = vld [vmem:[#allocation9 + $0xec] sm:$0xf]  ;;  %v7828_v21 = vld [vmem:[#allocation9 + $0xf8] sm:$0xf0]  ;;  %v7802_v24 = vld [vmem:[#allocation9 + $0xc0] sm:$0xf] }
  0x47   :  { %644 = vmatpush.bf16.msra.mxu1 %v7631_v27 }
  0x48   :  { %337 = vmatpush.bf16.msrb.mxu2 %v7472_v28  ;;  %v7635_v28 = vor.u32 %v10708_v26, %v7634_v25  ;;  %v10751_v25 = vld [vmem:[#allocation9 + $0xcc] sm:$0xf0]  ;;  %v10749_v26 = vld [vmem:[#allocation9 + $0xc4] sm:$0xf] }
  0x49   :  { %350 = vmatpush.bf16.msrb.mxu3 %v7476_v29  ;;  %v10706_v29 = vld [vmem:[#allocation7 + $0x6c] sm:$0xf] }
  0x4a   :  { %v7639_v31 = vor.u32 %v10706_v29, %v7636_v30  ;;  %v7804_v29 = vld [vmem:[#allocation9 + $0xd0] sm:$0xf0]  ;;  %v7810_v30 = vld [vmem:[#allocation9 + $0xc8] sm:$0xf] }
  0x4c   :  { %338 = vmatpush.bf16.msrb.mxu2 %v7456_v34  ;;  %v10701_v34 = vld [vmem:[#allocation7 + $0x44] sm:$0xf] }
  0x4d   :  { %351 = vmatpush.bf16.msrb.mxu3 %v7460_v35  ;;  %v7611_v35 = vor.u32 %v10703_v33, %v7610_v32  ;;  %v7615_v39 = vor.u32 %v10701_v34, %v7612_v36  ;;  %v7807_v33 = vor.u32 %v10749_v26, %v7804_v29  ;;  %v7812_v36 = vld [vmem:[#allocation9 + $0xd8] sm:$0xf0] }
  0x4e   :  { %v7748_v26 = vld [vmem:[#allocation9 + $0x58] sm:$0xf0] }
  0x4f   :  { %339 = vmatmul.bf16.vlgmr.msrb.gmra.mxu2 %v103_v61  ;;  %645 = vmatpush.bf16.msra.mxu1 %v7615_v39  ;;  %v10747_v39 = vld [vmem:[#allocation9 + $0xac] sm:$0xf0] }
  0x50   :  { %352 = vmatmul.bf16.vlgmr.msrb.gmra.mxu3 %v103_v61  ;;  %653 = vmatpush.bf16.msra.mxu2 %v7699_v46  ;;  %v10715_v61 = vld [vmem:[#allocation7 + $0xac] sm:$0xf0]  ;;  %v7787_v42 = vor.u32 %v10747_v39, %v7786_v38  ;;  %v10730_v39 = vld [vmem:[#allocation9 + $0x2c] sm:$0xf] }
  0x51   :  { %666 = vmatpush.bf16.msra.mxu3 %v7703_v47  ;;  %v7659_v63 = vor.u32 %v10715_v61, %v7658_v60  ;;  %v10699_v46 = vld [vmem:[#allocation7 + $0x2c] sm:$0xf0]  ;;  %v10697_v47 = vld [vmem:[#allocation7 + $0x24] sm:$0xf]  ;;  %v7578_v61 = vld [vmem:[#allocation7] sm:$0xf] }
  0x52   :  { %v7595_v49 = vor.u32 %v10699_v46, %v7594_v45  ;;  %v7599_v52 = vor.u32 %v10697_v47, %v7596_v50  ;;  %v7579_v1 = vor.u32 %v10695_v62, %v7578_v61  ;;  %v10748_v45 = vld [vmem:[#allocation9 + $0xb4] sm:$0xf0]  ;;  %v7796_v50 = vld [vmem:[#allocation9 + $0xb8] sm:$0xf0] }
  0x53   :  { %629 = vmatpush.bf16.msra.mxu0 %v7659_v63  ;;  %v10693_v63 = vld [vmem:[#allocation7 + $0x4] sm:$0xf]  ;;  %v10744_v61 = vld [vmem:[#allocation9 + $0x94] sm:$0xf0] }
  0x54   :  { %654 = vmatpush.bf16.msra.mxu2 %v7683_v56  ;;  %646 = vmatpush.bf16.msra.mxu1 %v7599_v52  ;;  %v7583_v6 = vor.u32 %v10693_v63, %v7580_v2  ;;  %v10742_v63 = vld [vmem:[#allocation9 + $0x8c] sm:$0xf] }
  0x55   :  { %667 = vmatpush.bf16.msra.mxu3 %v7687_v59 }
  0x57   :  { %630 = vmatpush.bf16.msra.mxu0 %v7643_v11  ;;  %v7591_v11 = vor.u32 %v10694_v8, %v7588_v9  ;;  %v7762_v8 = vld [vmem:[#allocation9 + $0x68] sm:$0xf]  ;;  %v10740_v9 = vld [vmem:[#allocation9 + $0x74] sm:$0xf0] }
  0x58   :  { %655 = vmatpush.bf16.msra.mxu2 %v7667_v4  ;;  %v10696_v4 = vld [vmem:[#allocation7 + $0x14] sm:$0xf0]  ;;  %647 = vmatpush.bf16.msra.mxu1 %v7583_v6 }
  0x59   :  { %668 = vmatpush.bf16.msra.mxu3 %v7671_v7  ;;  %v7587_v7 = vor.u32 %v10696_v4, %v7586_v3  ;;  %v10739_v3 = vld [vmem:[#allocation9 + $0x6c] sm:$0xf0]  ;;  %v10737_v4 = vld [vmem:[#allocation9 + $0x64] sm:$0xf] }
  0x5b   :  { %631 = vmatpush.bf16.msra.mxu0 %v7627_v23  ;;  %v7831_v23 = vor.u32 %v10754_v20, %v7828_v21  ;;  %v7740_v20 = vld [vmem:[#allocation9 + $0x50] sm:$0xf0] }
  0x5c   :  { %656 = vmatpush.bf16.msra.mxu2 %v7651_v16  ;;  %v7820_v16 = vld [vmem:[#allocation9 + $0xf0] sm:$0xf0] }
  0x5d   :  { %669 = vmatpush.bf16.msra.mxu3 %v7655_v19  ;;  %v7823_v18 = vor.u32 %v10753_v15, %v7820_v16  ;;  %v10756_v19 = vld [vmem:[#allocation9 + $0xf4] sm:$0xf0]  ;;  %v7738_v15 = vld [vmem:[#allocation9 + $0x40] sm:$0xf]  ;;  %v10735_v16 = vld [vmem:[#allocation9 + $0x4c] sm:$0xf0] }
  0x5e   :  { %v7827_v22 = vor.u32 %v10756_v19, %v7826_v17  ;;  %v10733_v19 = vld [vmem:[#allocation9 + $0x44] sm:$0xf] }
  0x5f   :  { %632 = vmatpush.bf16.msra.mxu0 %v7611_v35  ;;  %884 = vmatpush.bf16.msrb.mxu1 %v7823_v18  ;;  %v10750_v35 = vld [vmem:[#allocation9 + $0xcc] sm:$0xf]  ;;  %v7739_v18 = vor.u32 %v10735_v16, %v7738_v15  ;;  %v7743_v21 = vor.u32 %v10733_v19, %v7740_v20  ;;  %v99_v20 = vld [vmem:[%s13523_s2] sm:$0xff] }
  0x60   :  { %657 = vmatpush.bf16.msra.mxu2 %v7635_v28  ;;  %v7803_v28 = vor.u32 %v10751_v25, %v7802_v24  ;;  %v7815_v37 = vor.u32 %v10750_v35, %v7812_v36  ;;  %v10734_v25 = vld [vmem:[#allocation9 + $0x4c] sm:$0xf]  ;;  %v7730_v35 = vld [vmem:[#allocation9 + $0x28] sm:$0xf]  ;;  %v10732_v36 = vld [vmem:[#allocation9 + $0x34] sm:$0xf0] }
  0x61   :  { %670 = vmatpush.bf16.msra.mxu3 %v7639_v31  ;;  %v10752_v31 = vld [vmem:[#allocation9 + $0xd4] sm:$0xf0]  ;;  %v7751_v29 = vor.u32 %v10734_v25, %v7748_v26 }
  0x62   :  { %v7811_v34 = vor.u32 %v10752_v31, %v7810_v30  ;;  %v7722_v30 = vld [vmem:[#allocation9 + $0x20] sm:$0xf]  ;;  %v10731_v31 = vld [vmem:[#allocation9 + $0x2c] sm:$0xf0] }
  0x63   :  { %633 = vmatpush.bf16.msra.mxu0 %v7595_v49  ;;  %885 = vmatpush.bf16.msrb.mxu1 %v7807_v33  ;;  %v10746_v49 = vld [vmem:[#allocation9 + $0xac] sm:$0xf]  ;;  %v7723_v33 = vor.u32 %v10731_v31, %v7722_v30 }
  0x64   :  { %658 = vmatpush.bf16.msra.mxu2 %v7619_v40  ;;  %v10745_v40 = vld [vmem:[#allocation9 + $0xa4] sm:$0xf]  ;;  %v7799_v53 = vor.u32 %v10746_v49, %v7796_v50  ;;  %v7706_v50 = vld [vmem:[#allocation9] sm:$0xf] }
  0x65   :  { %671 = vmatpush.bf16.msra.mxu3 %v7623_v43  ;;  %v7788_v43 = vld [vmem:[#allocation9 + $0xb0] sm:$0xf0] }
  0x67   :  { %634 = vmatpush.bf16.msra.mxu0 %v7579_v1  ;;  %v7754_v1 = vld [vmem:[#allocation9 + $0x60] sm:$0xf] }
  0x68   :  { %659 = vmatpush.bf16.msra.mxu2 %v7603_v57  ;;  %v10741_v57 = vld [vmem:[#allocation9 + $0x84] sm:$0xf]  ;;  %v7755_v6 = vor.u32 %v10739_v3, %v7754_v1 }
  0x69   :  { %672 = vmatpush.bf16.msra.mxu3 %v7607_v58  ;;  %v7772_v58 = vld [vmem:[#allocation9 + $0x90] sm:$0xf0] }
  0x6b   :  { %871 = vmatpush.bf16.msrb.mxu0 %v7819_v14 }
  0x6c   :  { %660 = vmatpush.bf16.msra.mxu2 %v7587_v7 }
  0x6d   :  { %673 = vmatpush.bf16.msra.mxu3 %v7591_v11  ;;  %v7763_v11 = vor.u32 %v10740_v9, %v7762_v8  ;;  %v7905_v8 = vld [vmem:[#allocation5 + $0x80] sm:$0xf] }
  0x6f   :  { %872 = vmatpush.bf16.msrb.mxu0 %v7803_v28 }
  0x70   :  { %897 = vmatpush.bf16.msrb.mxu2 %v7827_v22  ;;  %v7746_v22 = vld [vmem:[#allocation9 + $0x48] sm:$0xf] }
  0x71   :  { %910 = vmatpush.bf16.msrb.mxu3 %v7831_v23  ;;  %v10736_v23 = vld [vmem:[#allocation9 + $0x54] sm:$0xf0] }
  0x72   :  { %v7747_v24 = vor.u32 %v10736_v23, %v7746_v22 }
  0x73   :  { %873 = vmatpush.bf16.msrb.mxu0 %v7787_v42  ;;  %v7731_v42 = vor.u32 %v10732_v36, %v7730_v35  ;;  %v10785_v36 = vld [vmem:[#allocation5 + $0xe4] sm:$0xf] }
  0x74   :  { %898 = vmatpush.bf16.msrb.mxu2 %v7811_v34  ;;  %v7724_v34 = vld [vmem:[#allocation9 + $0x30] sm:$0xf0] }
  0x75   :  { %911 = vmatpush.bf16.msrb.mxu3 %v7815_v37  ;;  %v112_v37 = vld [vmem:[%s13521_s0 + $0x18] sm:$0xff] }
  0x79   :  { %912 = vmatpush.bf16.msrb.mxu3 %v7799_v53  ;;  %v10725_v53 = vld [vmem:[#allocation9 + $0x4] sm:$0xf] }
  0xb2   :  { %v314_v56 = vpop.f32.mrf.mxu2 }
  0xb3   :  { %v327_v59 = vpop.f32.mrf.mxu3  ;;  %v357_v60 = vadd.f32 %v314_v56, %v109_v48  ;;  %v7791_v48 = vor.u32 %v10745_v40, %v7788_v43  ;;  %v7771_v56 = vor.u32 %v10743_v55, %v7770_v54  ;;  %v7732_v40 = vld [vmem:[#allocation9 + $0x38] sm:$0xf0]  ;;  %v7708_v55 = vld [vmem:[#allocation9 + $0x10] sm:$0xf0] }
  0xb4   :  { %v358_v0 = vadd.f32 %v327_v59, %v110_v44  ;;  %v7794_v44 = vld [vmem:[#allocation9 + $0xa8] sm:$0xf]  ;;  %v7775_v59 = vor.u32 %v10741_v57, %v7772_v58  ;;  %v7735_v43 = vor.u32 %v10730_v39, %v7732_v40  ;;  %v10728_v57 = vld [vmem:[#allocation9 + $0x14] sm:$0xf0] }
  0xb5   :  { %v7573_v5 = vmul.f32 -1.442695, %v357_v60  ;;  %v7795_v52 = vor.u32 %v10748_v45, %v7794_v44  ;;  %886 = vmatpush.bf16.msrb.mxu1 %v7791_v48  ;;  %v7778_v60 = vld [vmem:[#allocation9 + $0x88] sm:$0xf]  ;;  %874 = vmatpush.bf16.msrb.mxu0 %v7771_v56  ;;  %v10788_v40 = vld [vmem:[#allocation5 + $0xf4] sm:$0xf0] }
  0xb6   :  { %v7574_v10 = vmul.f32 -1.442695, %v358_v0  ;;  %v7779_v62 = vor.u32 %v10744_v61, %v7778_v60  ;;  %v7780_v0 = vld [vmem:[#allocation9 + $0x98] sm:$0xf0]  ;;  %v7714_v56 = vld [vmem:[#allocation9 + $0x8] sm:$0xf]  ;;  %v7711_v60 = vor.u32 %v10725_v53, %v7708_v55 }
  0xb7   :  { %11466 = vpow2.f32 %v7573_v5  ;;  %899 = vmatpush.bf16.msrb.mxu2 %v7795_v52  ;;  %v7783_v2 = vor.u32 %v10742_v63, %v7780_v0  ;;  %v7756_v5 = vld [vmem:[#allocation9 + $0x70] sm:$0xf0]  ;;  %v10727_v52 = vld [vmem:[#allocation9 + $0xc] sm:$0xf0]  ;;  %v7715_v61 = vor.u32 %v10728_v57, %v7714_v56  ;;  %v7716_v63 = vld [vmem:[#allocation9 + $0x18] sm:$0xf0] }
  0xb8   :  { %11468 = vpow2.f32 %v7574_v10  ;;  %v7759_v7 = vor.u32 %v10737_v4, %v7756_v5  ;;  %v10738_v10 = vld [vmem:[#allocation9 + $0x6c] sm:$0xf]  ;;  %v7707_v54 = vor.u32 %v10727_v52, %v7706_v50  ;;  %v10781_v52 = vld [vmem:[#allocation5 + $0xc4] sm:$0xf]  ;;  %v7939_v53 = vld [vmem:[#allocation5 + $0xd0] sm:$0xf0] }
  0xb9   :  { %887 = vmatpush.bf16.msrb.mxu1 %v7775_v59  ;;  %913 = vmatpush.bf16.msrb.mxu3 %v7783_v2  ;;  %v7767_v14 = vor.u32 %v10738_v10, %v7764_v12  ;;  %v10784_v55 = vld [vmem:[#allocation5 + $0xd4] sm:$0xf0]  ;;  %v10782_v56 = vld [vmem:[#allocation5 + $0xcc] sm:$0xf]  ;;  %v7947_v57 = vld [vmem:[#allocation5 + $0xd8] sm:$0xf0] }
  0xba   :  { %v316_v27 = vpop.f32.mrf.mxu2  ;;  %875 = vmatpush.bf16.msrb.mxu0 %v7755_v6 }
  0xbb   :  { %v329_v32 = vpop.f32.mrf.mxu3  ;;  %900 = vmatpush.bf16.msrb.mxu2 %v7779_v62  ;;  %v10726_v62 = vld [vmem:[#allocation9 + $0xc] sm:$0xf] }
  0xbc   :  { %v10729_v32 = vld [vmem:[#allocation9 + $0x24] sm:$0xf]  ;;  %v7719_v2 = vor.u32 %v10726_v62, %v7716_v63  ;;  %v7950_v63 = vor.u32 %v10782_v56, %v7947_v57  ;;  %v7867_v56 = vld [vmem:[#allocation5 + $0x38] sm:$0xf0] }
  0xbd   :  { %v11467_v41 = vpop.eup %11466  ;;  %888 = vmatpush.bf16.msrb.mxu1 %v7759_v7  ;;  %914 = vmatpush.bf16.msrb.mxu3 %v7767_v14  ;;  %v7727_v38 = vor.u32 %v10729_v32, %v7724_v34  ;;  %v7953_v32 = vld [vmem:[#allocation5 + $0xe0] sm:$0xf] }
  0xbe   :  { %v11469_v46 = vpop.eup %11468  ;;  %v11894_v47 = vadd.f32 1.0, %v11467_v41  ;;  %876 = vmatpush.bf16.msrb.mxu0 %v7739_v18 }
  0xbf   :  { %v11896_v51 = vadd.f32 1.0, %v11469_v46  ;;  %901 = vmatpush.bf16.msrb.mxu2 %v7763_v11  ;;  %v111_v46 = vld [vmem:[%s13521_s0 + $0x10] sm:$0xff] }
  0xc0   :  { %11470 = vrcp.f32 %v11894_v47  ;;  %vm370_vm0 = vweird.f32 %v11894_v47  ;;  %v374_v4 = vand.u32 2147483647, %v11894_v47  ;;  %v376_v5 = vand.u32 2147483648, %v11894_v47 }
  0xc1   :  { %11472 = vrcp.f32 %v11896_v51  ;;  %889 = vmatpush.bf16.msrb.mxu1 %v7743_v21  ;;  %915 = vmatpush.bf16.msrb.mxu3 %v7751_v29  ;;  %vm389_vm2 = vweird.f32 %v11896_v51  ;;  %v395_v3 = vand.u32 2147483648, %v11896_v51  ;;  %v393_v10 = vand.u32 2147483647, %v11896_v51 }
  0xc2   :  { %877 = vmatpush.bf16.msrb.mxu0 %v7723_v33  ;;  %vm375_vm6 = vcmp.eq.f32.partialorder %v374_v4, 8.507059e+37  ;;  %v377_v15 = vor.u32 1.1754944e-38, %v376_v5  ;;  %v10787_v33 = vld [vmem:[#allocation5 + $0xec] sm:$0xf0]  ;;  %v10778_v4 = vld [vmem:[#allocation5 + $0xac] sm:$0xf] }
  0xc3   :  { %902 = vmatpush.bf16.msrb.mxu2 %v7747_v24  ;;  %v396_v14 = vor.u32 1.1754944e-38, %v395_v3  ;;  %vm394_vm7 = vcmp.eq.f32.partialorder %v393_v10, 8.507059e+37  ;;  %v10780_v3 = vld [vmem:[#allocation5 + $0xb4] sm:$0xf0]  ;;  %v7931_v5 = vld [vmem:[#allocation5 + $0xb8] sm:$0xf0] }
  0xc5   :  { %890 = vmatpush.bf16.msrb.mxu1 %v7727_v38  ;;  %916 = vmatpush.bf16.msrb.mxu3 %v7735_v43  ;;  %v7961_v38 = vld [vmem:[#allocation5 + $0xe8] sm:$0xf] }
  0xc6   :  { %v11900_v13 = vpop.eup %11470  ;;  %878 = vmatpush.bf16.msrb.mxu0 %v7707_v54  ;;  %v7945_v54 = vld [vmem:[#allocation5 + $0xc8] sm:$0xf] }
  0xc7   :  { %v11902_v17 = vpop.eup %11472  ;;  %v366_v28 = vmul.f32 %v11900_v13, %v11894_v47  ;;  %903 = vmatpush.bf16.msrb.mxu2 %v7731_v42  ;;  %vm371_vm1 = vweird.f32 %v11900_v13  ;;  %v7963_v42 = vld [vmem:[#allocation5 + $0xf8] sm:$0xf0]  ;;  %v7946_v62 = vor.u32 %v10784_v55, %v7945_v54  ;;  %v10764_v54 = vld [vmem:[#allocation5 + $0x34] sm:$0xf0]  ;;  %v10762_v55 = vld [vmem:[#allocation5 + $0x2c] sm:$0xf] }
  0xc8   :  { %v385_v27 = vmul.f32 %v11902_v17, %v11896_v51  ;;  %vm390_vm3 = vweird.f32 %v11902_v17  ;;  %vm11926_vm4 = vmor %vm370_vm0, %vm371_vm1 }
  0xc9   :  { %v367_v45 = vsub.f32 1.0, %v366_v28  ;;  %891 = vmatpush.bf16.msrb.mxu1 %v7711_v60  ;;  %917 = vmatpush.bf16.msrb.mxu3 %v7719_v2  ;;  %vm391_vm5 = vmor %vm389_vm2, %vm390_vm3  ;;  %v7921_v60 = vld [vmem:[#allocation5 + $0xa0] sm:$0xf]  ;;  %v7929_v2 = vld [vmem:[#allocation5 + $0xa8] sm:$0xf] }
  0xca   :  { %v386_v44 = vsub.f32 1.0, %v385_v27  ;;  %v7930_v10 = vor.u32 %v10780_v3, %v7929_v2  ;;  %v10760_v2 = vld [vmem:[#allocation5 + $0x14] sm:$0xf0]  ;;  %v10758_v3 = vld [vmem:[#allocation5 + $0xc] sm:$0xf] }
  0xcb   :  { %v368_v1 = vmul.f32 %v11900_v13, %v367_v45  ;;  %904 = vmatpush.bf16.msrb.mxu2 %v7715_v61  ;;  %v10779_v61 = vld [vmem:[#allocation5 + $0xac] sm:$0xf0] }
  0xcc   :  { %v387_v0 = vmul.f32 %v11902_v17, %v386_v44  ;;  %v7954_v44 = vor.u32 %v10787_v33, %v7953_v32  ;;  %v7873_v32 = vld [vmem:[#allocation5 + $0x40] sm:$0xf]  ;;  %v10767_v33 = vld [vmem:[#allocation5 + $0x4c] sm:$0xf0] }
  0xcd   :  { %v369_v7 = vadd.f32 %v11900_v13, %v368_v1  ;;  %v7923_v1 = vld [vmem:[#allocation5 + $0xb0] sm:$0xf0] }
  0xce   :  { %v388_v9 = vadd.f32 %v11902_v17, %v387_v0  ;;  %v10777_v0 = vld [vmem:[#allocation5 + $0xa4] sm:$0xf] }
  0xcf   :  { %v373_v47 = vsel %vm11926_vm4, %v11900_v13, %v369_v7  ;;  %v7926_v7 = vor.u32 %v10777_v0, %v7923_v1  ;;  %v7843_v0 = vld [vmem:[#allocation5 + $0x10] sm:$0xf0]  ;;  %v7849_v1 = vld [vmem:[#allocation5 + $0x8] sm:$0xf] }
  0xd0   :  { %v392_v16 = vsel %vm391_vm5, %v11902_v17, %v388_v9  ;;  %v378_v51 = vsel %vm375_vm6, %v377_v15, %v373_v47  ;;  %v10775_v9 = vld [vmem:[#allocation5 + $0x8c] sm:$0xf0]  ;;  %v7913_v15 = vld [vmem:[#allocation5 + $0x88] sm:$0xf]  ;;  %v10776_v47 = vld [vmem:[#allocation5 + $0x94] sm:$0xf0] }
  0xd1   :  { %v397_v21 = vsel %vm394_vm7, %v396_v14, %v392_v16  ;;  %v7907_v14 = vld [vmem:[#allocation5 + $0x90] sm:$0xf0]  ;;  %v10774_v16 = vld [vmem:[#allocation5 + $0x8c] sm:$0xf] }
  0xd2   :  { %v340_v41 = vpop.f32.mrf.mxu2  ;;  %v419_v23 = vmul.f32 %v397_v21, %v99_v20  ;;  %v10771_v21 = vld [vmem:[#allocation5 + $0x6c] sm:$0xf0] }
  0xd3   :  { %v353_v48 = vpop.f32.mrf.mxu3  ;;  %v359_v58 = vadd.f32 %v340_v41, %v111_v46  ;;  %v10786_v41 = vld [vmem:[#allocation5 + $0xec] sm:$0xf]  ;;  %v7937_v46 = vld [vmem:[#allocation5 + $0xc0] sm:$0xf] }
  0xd4   :  { %v360_v49 = vadd.f32 %v353_v48, %v112_v37  ;;  %v7955_v37 = vld [vmem:[#allocation5 + $0xf0] sm:$0xf0]  ;;  %v10783_v48 = vld [vmem:[#allocation5 + $0xcc] sm:$0xf0]  ;;  %v7966_v50 = vor.u32 %v10786_v41, %v7963_v42  ;;  %v7883_v41 = vld [vmem:[#allocation5 + $0x58] sm:$0xf0]  ;;  %v7874_v42 = vor.u32 %v10767_v33, %v7873_v32 }
  0xd5   :  { %v7958_v45 = vor.u32 %v10785_v36, %v7955_v37  ;;  %v10765_v36 = vld [vmem:[#allocation5 + $0x44] sm:$0xf]  ;;  %v7875_v37 = vld [vmem:[#allocation5 + $0x50] sm:$0xf0]  ;;  %v10811_v32 = vld [vmem:[#allocation7 + $0xac] sm:$0xf0] }
  0xd6   :  { %v7575_v59 = vmul.f32 -1.442695, %v360_v49  ;;  %v7962_v49 = vor.u32 %v10788_v40, %v7961_v38  ;;  %v7881_v38 = vld [vmem:[#allocation5 + $0x48] sm:$0xf]  ;;  %v10766_v40 = vld [vmem:[#allocation5 + $0x4c] sm:$0xf] }
  0xd7   :  { %v10809_v33 = vld [vmem:[#allocation7 + $0xa4] sm:$0xf] }
  0xd8   :  { %11474 = vpow2.f32 %v7575_v59  ;;  %v7942_v59 = vor.u32 %v10781_v52, %v7939_v53  ;;  %v7859_v52 = vld [vmem:[#allocation5 + $0x30] sm:$0xf0]  ;;  %v7865_v53 = vld [vmem:[#allocation5 + $0x28] sm:$0xf] }
  0xd9   :  { %11476 = vtanh.f32 %v359_v58  ;;  %v7938_v58 = vor.u32 %v10783_v48, %v7937_v46  ;;  %v10763_v46 = vld [vmem:[#allocation5 + $0x2c] sm:$0xf0] }
  0xda   :  { %v342_v6 = vpop.f32.mrf.mxu2 }
  0xdb   :  { %v355_v11 = vpop.f32.mrf.mxu3  ;;  %v7922_v6 = vor.u32 %v10779_v61, %v7921_v60  ;;  %v10759_v60 = vld [vmem:[#allocation5 + $0xc] sm:$0xf0]  ;;  %v7866_v61 = vor.u32 %v10764_v54, %v7865_v53  ;;  %v8044_v54 = vld [vmem:[#allocation7 + $0x88] sm:$0xf] }
  0xdc   :  { %v7934_v11 = vor.u32 %v10778_v4, %v7931_v5  ;;  %v7851_v4 = vld [vmem:[#allocation5 + $0x18] sm:$0xf0] }
  0xde   :  { %v11475_v12 = vpop.eup %11474 }
  0xdf   :  { %v403_v18 = vadd.f32 1.0, %v11475_v12  ;;  %v11477_v19 = vpop.eup %11476  ;;  %v10773_v12 = vld [vmem:[#allocation5 + $0x84] sm:$0xf] }
  0xe0   :  { %v420_v22 = vmul.f32 %v11477_v19, %v378_v51  ;;  %v7906_v19 = vor.u32 %v10775_v9, %v7905_v8  ;;  %v7910_v20 = vor.u32 %v10773_v12, %v7907_v14  ;;  %v7889_v51 = vld [vmem:[#allocation5 + $0x60] sm:$0xf]  ;;  %v7854_v8 = vor.u32 %v10758_v3, %v7851_v4  ;;  %v8086_v14 = vld [vmem:[#allocation7 + $0xf0] sm:$0xf0]  ;;  %v11957_v3 = vld [vmem:[%s13527_s6] sm:$0xf] }
  0xe1   :  { %11478 = vrcp.f32 %v403_v18  ;;  %v415_v13 = vand.u32 2147483648, %v403_v18  ;;  %v413_v28 = vand.u32 2147483647, %v403_v18  ;;  %vm409_vm9 = vweird.f32 %v403_v18  ;;  %v8084_v9 = vld [vmem:[#allocation7 + $0xe0] sm:$0xf] }
  0xe2   :  { %v11941_v25 = vadd.f32 %v420_v22, %v419_v23  ;;  %v7914_v22 = vor.u32 %v10776_v47, %v7913_v15  ;;  %v8092_v15 = vld [vmem:[#allocation7 + $0xe8] sm:$0xf]  ;;  %v10820_v47 = vld [vmem:[#allocation7 + $0xf4] sm:$0xf0] }
  0xe3   :  { %v416_v30 = vor.u32 1.1754944e-38, %v415_v13  ;;  %vm414_vm11 = vcmp.eq.f32.partialorder %v413_v28, 8.507059e+37  ;;  %v10772_v13 = vld [vmem:[#allocation5 + $0x74] sm:$0xf0]  ;;  %v7899_v28 = vld [vmem:[#allocation5 + $0x78] sm:$0xf0] }
  0xe4   :  { %11480 = vtanh.f32 %v11941_v25 }
  0xe7   :  { %v11479_v24 = vpop.eup %11478 }
  0xe8   :  { %v405_v26 = vmul.f32 %v11479_v24, %v403_v18  ;;  %vm410_vm8 = vweird.f32 %v11479_v24  ;;  %v7915_v18 = vld [vmem:[#allocation5 + $0x98] sm:$0xf0] }
  0xe9   :  { %vm411_vm10 = vmor %vm409_vm9, %vm410_vm8  ;;  %v7918_v23 = vor.u32 %v10774_v16, %v7915_v18  ;;  %v8093_v18 = vor.u32 %v10820_v47, %v8092_v15  ;;  %v460_v15 = vperm.slane %v11957_v3, 1  ;;  %v8004_v47 = vld [vmem:[#allocation7 + $0x40] sm:$0xf] }
  0xea   :  { %v406_v27 = vsub.f32 1.0, %v405_v26  ;;  %v11481_v34 = vpop.eup %11480  ;;  %v7891_v26 = vld [vmem:[#allocation5 + $0x70] sm:$0xf0] }
  0xec   :  { %v407_v17 = vmul.f32 %v11479_v24, %v406_v27  ;;  %v7897_v27 = vld [vmem:[#allocation5 + $0x68] sm:$0xf] }
  0xee   :  { %v408_v29 = vadd.f32 %v11479_v24, %v407_v17  ;;  %v10770_v17 = vld [vmem:[#allocation5 + $0x6c] sm:$0xf] }
  0xf0   :  { %v412_v31 = vsel %vm411_vm10, %v11479_v24, %v408_v29  ;;  %v10769_v24 = vld [vmem:[#allocation5 + $0x64] sm:$0xf]  ;;  %v105_v29 = vld [vmem:[#allocation2 + $0x4] sm:$0xf] }
  0xf1   :  { %v417_v35 = vsel %vm414_vm11, %v416_v30, %v412_v31  ;;  %v7890_v30 = vor.u32 %v10771_v21, %v7889_v51  ;;  %v7894_v31 = vor.u32 %v10769_v24, %v7891_v26  ;;  %v8068_v21 = vld [vmem:[#allocation7 + $0xc0] sm:$0xf]  ;;  %v8070_v24 = vld [vmem:[#allocation7 + $0xd0] sm:$0xf0]  ;;  %v8076_v26 = vld [vmem:[#allocation7 + $0xc8] sm:$0xf] }
  0xf2   :  { %v423_v39 = vmul.f32 %v11481_v34, %v417_v35  ;;  %v7898_v34 = vor.u32 %v10772_v13, %v7897_v27  ;;  %v7902_v35 = vor.u32 %v10770_v17, %v7899_v28  ;;  %v10816_v27 = vld [vmem:[#allocation7 + $0xd4] sm:$0xf0]  ;;  %v10814_v28 = vld [vmem:[#allocation7 + $0xcc] sm:$0xf] }
  0xf3   :  { %v8077_v17 = vor.u32 %v10816_v27, %v8076_v26  ;;  %v7988_v27 = vld [vmem:[#allocation7 + $0x20] sm:$0xf] }
  0xf4   :  { %v11944_v43 = vpack.c.bf16 %v423_v39, %v423_v39  ;;  %v10768_v39 = vld [vmem:[#allocation5 + $0x54] sm:$0xf0] }
  0xf5   :  { %v7882_v48 = vor.u32 %v10768_v39, %v7881_v38 }
  0xf6   :  { %635 = vmatmul.bf16.vlgmr.msra.gmra.mxu0 %v11944_v43  ;;  %648 = vmatmul.bf16.vlgmr.msra.gmra.mxu1 %v11944_v43 }
  0xf7   :  { %661 = vmatmul.bf16.vlgmr.msra.gmra.mxu2 %v11944_v43  ;;  %674 = vmatmul.bf16.vlgmr.msra.gmra.mxu3 %v11944_v43 }
  0xf8   :  { %1189 = vmatpush.bf16.msra.mxu0 %v7954_v44  ;;  %1202 = vmatpush.bf16.msra.mxu1 %v7958_v45  ;;  %v7878_v44 = vor.u32 %v10765_v36, %v7875_v37  ;;  %v7857_v45 = vld [vmem:[#allocation5 + $0x20] sm:$0xf]  ;;  %v8060_v36 = vld [vmem:[#allocation7 + $0xa8] sm:$0xf]  ;;  %v10812_v37 = vld [vmem:[#allocation7 + $0xb4] sm:$0xf0] }
  0xf9   :  { %1215 = vmatpush.bf16.msra.mxu2 %v7962_v49  ;;  %1228 = vmatpush.bf16.msra.mxu3 %v7966_v50  ;;  %v7886_v49 = vor.u32 %v10766_v40, %v7883_v41  ;;  %v10761_v50 = vld [vmem:[#allocation5 + $0x24] sm:$0xf]  ;;  %v7858_v57 = vor.u32 %v10763_v46, %v7857_v45  ;;  %v8061_v39 = vor.u32 %v10812_v37, %v8060_v36  ;;  %v10810_v40 = vld [vmem:[#allocation7 + $0xac] sm:$0xf]  ;;  %v8062_v41 = vld [vmem:[#allocation7 + $0xb8] sm:$0xf0] }
  0xfa   :  { %v8036_v46 = vld [vmem:[#allocation7 + $0x80] sm:$0xf]  ;;  %v461_v36 = vperm.slane %v11957_v3, 2 }
  0xfc   :  { %1190 = vmatpush.bf16.msra.mxu0 %v7938_v58  ;;  %1203 = vmatpush.bf16.msra.mxu1 %v7942_v59  ;;  %v7862_v58 = vor.u32 %v10761_v50, %v7859_v52  ;;  %v7841_v59 = vld [vmem:[#allocation5] sm:$0xf]  ;;  %v8038_v52 = vld [vmem:[#allocation7 + $0x90] sm:$0xf0] }
  0xfd   :  { %1216 = vmatpush.bf16.msra.mxu2 %v7946_v62  ;;  %1229 = vmatpush.bf16.msra.mxu3 %v7950_v63  ;;  %v7870_v62 = vor.u32 %v10762_v55, %v7867_v56  ;;  %v10757_v63 = vld [vmem:[#allocation5 + $0x4] sm:$0xf]  ;;  %v7842_v5 = vor.u32 %v10759_v60, %v7841_v59  ;;  %v10808_v55 = vld [vmem:[#allocation7 + $0x94] sm:$0xf0]  ;;  %v10806_v56 = vld [vmem:[#allocation7 + $0x8c] sm:$0xf] }
  0xfe   :  { %v8020_v60 = vld [vmem:[#allocation7 + $0x60] sm:$0xf] }
 0x100   :  { %1191 = vmatpush.bf16.msra.mxu0 %v7922_v6  ;;  %1204 = vmatpush.bf16.msra.mxu1 %v7926_v7  ;;  %v7846_v6 = vor.u32 %v10757_v63, %v7843_v0  ;;  %v7850_v7 = vor.u32 %v10760_v2, %v7849_v1  ;;  %v8022_v0 = vld [vmem:[#allocation7 + $0x70] sm:$0xf0]  ;;  %v8028_v1 = vld [vmem:[#allocation7 + $0x68] sm:$0xf]  ;;  %v10804_v2 = vld [vmem:[#allocation7 + $0x74] sm:$0xf0] }
 0x101   :  { %1217 = vmatpush.bf16.msra.mxu2 %v7930_v10  ;;  %1230 = vmatpush.bf16.msra.mxu3 %v7934_v11  ;;  %v10819_v10 = vld [vmem:[#allocation7 + $0xec] sm:$0xf0]  ;;  %v10817_v11 = vld [vmem:[#allocation7 + $0xe4] sm:$0xf] }
 0x102   :  { %v8085_v12 = vor.u32 %v10819_v10, %v8084_v9  ;;  %v8089_v16 = vor.u32 %v10817_v11, %v8086_v14  ;;  %v8030_v9 = vld [vmem:[#allocation7 + $0x78] sm:$0xf0]  ;;  %v459_v14 = vperm.slane %v11957_v3, 0 }
 0x104   :  { %1192 = vmatpush.bf16.msra.mxu0 %v7906_v19  ;;  %1205 = vmatpush.bf16.msra.mxu1 %v7910_v20  ;;  %v10818_v19 = vld [vmem:[#allocation7 + $0xec] sm:$0xf]  ;;  %v8094_v20 = vld [vmem:[#allocation7 + $0xf8] sm:$0xf0] }
 0x105   :  { %1218 = vmatpush.bf16.msra.mxu2 %v7914_v22  ;;  %1231 = vmatpush.bf16.msra.mxu3 %v7918_v23  ;;  %v8097_v51 = vor.u32 %v10818_v19, %v8094_v20  ;;  %v10815_v22 = vld [vmem:[#allocation7 + $0xcc] sm:$0xf0]  ;;  %v10813_v23 = vld [vmem:[#allocation7 + $0xc4] sm:$0xf]  ;;  %v8006_v19 = vld [vmem:[#allocation7 + $0x50] sm:$0xf0] }
 0x106   :  { %879 = vmatmul.bf16.vlgmr.msrb.gmra.mxu0 %v105_v29  ;;  %892 = vmatmul.bf16.vlgmr.msrb.gmra.mxu1 %v105_v29  ;;  %v8073_v13 = vor.u32 %v10813_v23, %v8070_v24  ;;  %v10798_v23 = vld [vmem:[#allocation7 + $0x4c] sm:$0xf]  ;;  %v8014_v24 = vld [vmem:[#allocation7 + $0x58] sm:$0xf0] }
 0x107   :  { %905 = vmatmul.bf16.vlgmr.msrb.gmra.mxu2 %v105_v29  ;;  %918 = vmatmul.bf16.vlgmr.msrb.gmra.mxu3 %v105_v29  ;;  %v8078_v29 = vld [vmem:[#allocation7 + $0xd8] sm:$0xf0]  ;;  %v8017_v26 = vor.u32 %v10798_v23, %v8014_v24  ;;  %v8204_v24 = vld [vmem:[#allocation9 + $0xc8] sm:$0xf] }
 0x108   :  { %1193 = vmatpush.bf16.msra.mxu0 %v7890_v30  ;;  %1206 = vmatpush.bf16.msra.mxu1 %v7894_v31  ;;  %v8081_v30 = vor.u32 %v10814_v28, %v8078_v29  ;;  %v8052_v31 = vld [vmem:[#allocation7 + $0xa0] sm:$0xf] }
 0x109   :  { %1219 = vmatpush.bf16.msra.mxu2 %v7898_v34  ;;  %1232 = vmatpush.bf16.msra.mxu3 %v7902_v35  ;;  %v8053_v34 = vor.u32 %v10811_v32, %v8052_v31  ;;  %v8054_v35 = vld [vmem:[#allocation7 + $0xb0] sm:$0xf0] }
 0x10a   :  { %v8057_v38 = vor.u32 %v10809_v33, %v8054_v35  ;;  %v7990_v33 = vld [vmem:[#allocation7 + $0x30] sm:$0xf0]  ;;  %v10796_v35 = vld [vmem:[#allocation7 + $0x34] sm:$0xf0] }
 0x10c   :  { %1194 = vmatpush.bf16.msra.mxu0 %v7874_v42  ;;  %1207 = vmatpush.bf16.msra.mxu1 %v7878_v44  ;;  %v8065_v42 = vor.u32 %v10810_v40, %v8062_v41  ;;  %v10794_v41 = vld [vmem:[#allocation7 + $0x2c] sm:$0xf] }
 0x10d   :  { %1220 = vmatpush.bf16.msra.mxu2 %v7882_v48  ;;  %1233 = vmatpush.bf16.msra.mxu3 %v7886_v49  ;;  %v10807_v48 = vld [vmem:[#allocation7 + $0x8c] sm:$0xf0]  ;;  %v10805_v49 = vld [vmem:[#allocation7 + $0x84] sm:$0xf] }
 0x10e   :  { %v8037_v50 = vor.u32 %v10807_v48, %v8036_v46  ;;  %v8041_v53 = vor.u32 %v10805_v49, %v8038_v52  ;;  %v462_v46 = vperm.slane %v11957_v3, 3  ;;  %v7972_v49 = vld [vmem:[#allocation7] sm:$0xf]  ;;  %v10789_v52 = vld [vmem:[#allocation7 + $0x4] sm:$0xf]  ;;  %v7835_v3 = vld [vmem:[%s13521_s0 + $0x20] sm:$0xff] }
 0x110   :  { %1195 = vmatpush.bf16.msra.mxu0 %v7858_v57  ;;  %1208 = vmatpush.bf16.msra.mxu1 %v7862_v58  ;;  %v8045_v57 = vor.u32 %v10808_v55, %v8044_v54  ;;  %v8046_v58 = vld [vmem:[#allocation7 + $0x98] sm:$0xf0] }
 0x111   :  { %1221 = vmatpush.bf16.msra.mxu2 %v7866_v61  ;;  %1234 = vmatpush.bf16.msra.mxu3 %v7870_v62  ;;  %v8049_v59 = vor.u32 %v10806_v56, %v8046_v58  ;;  %v10803_v61 = vld [vmem:[#allocation7 + $0x6c] sm:$0xf0]  ;;  %v10801_v62 = vld [vmem:[#allocation7 + $0x64] sm:$0xf]  ;;  %v7974_v56 = vld [vmem:[#allocation7 + $0x10] sm:$0xf0] }
 0x112   :  { %v8021_v63 = vor.u32 %v10803_v61, %v8020_v60  ;;  %v7980_v58 = vld [vmem:[#allocation7 + $0x8] sm:$0xf]  ;;  %v10790_v60 = vld [vmem:[#allocation7 + $0xc] sm:$0xf] }
 0x114   :  { %1196 = vmatpush.bf16.msra.mxu0 %v7842_v5  ;;  %1209 = vmatpush.bf16.msra.mxu1 %v7846_v6  ;;  %v8025_v6 = vor.u32 %v10801_v62, %v8022_v0  ;;  %v7982_v62 = vld [vmem:[#allocation7 + $0x18] sm:$0xf0]  ;;  %v10851_v0 = vld [vmem:[#allocation9 + $0xec] sm:$0xf0] }
 0x115   :  { %1222 = vmatpush.bf16.msra.mxu2 %v7850_v7  ;;  %1235 = vmatpush.bf16.msra.mxu3 %v7854_v8  ;;  %v8029_v7 = vor.u32 %v10804_v2, %v8028_v1  ;;  %v10802_v8 = vld [vmem:[#allocation7 + $0x6c] sm:$0xf]  ;;  %v7985_v2 = vor.u32 %v10790_v60, %v7982_v62 }
 0x117   :  { %1197 = vmatmul.bf16.vlgmr.msra.gmra.mxu0 %v11944_v43  ;;  %1210 = vmatmul.bf16.vlgmr.msra.gmra.mxu1 %v11944_v43 }
 0x118   :  { %1223 = vmatmul.bf16.vlgmr.msra.gmra.mxu2 %v11944_v43  ;;  %1236 = vmatmul.bf16.vlgmr.msra.gmra.mxu3 %v11944_v43  ;;  %v8069_v43 = vor.u32 %v10815_v22, %v8068_v21  ;;  %v8012_v21 = vld [vmem:[#allocation7 + $0x48] sm:$0xf]  ;;  %v10800_v22 = vld [vmem:[#allocation7 + $0x54] sm:$0xf0] }
 0x119   :  { %1511 = vmatpush.bf16.msrb.mxu0 %v8085_v12  ;;  %1524 = vmatpush.bf16.msrb.mxu1 %v8089_v16  ;;  %v8033_v12 = vor.u32 %v10802_v8, %v8030_v9  ;;  %v10799_v16 = vld [vmem:[#allocation7 + $0x4c] sm:$0xf0]  ;;  %v8214_v8 = vld [vmem:[#allocation9 + $0xf0] sm:$0xf0]  ;;  %v8220_v9 = vld [vmem:[#allocation9 + $0xe8] sm:$0xf] }
 0x11a   :  { %1537 = vmatpush.bf16.msrb.mxu2 %v8093_v18  ;;  %1550 = vmatpush.bf16.msrb.mxu3 %v8097_v51  ;;  %v10797_v18 = vld [vmem:[#allocation7 + $0x44] sm:$0xf]  ;;  %v8005_v20 = vor.u32 %v10799_v16, %v8004_v47  ;;  %v8222_v47 = vld [vmem:[#allocation9 + $0xf8] sm:$0xf0] }
 0x11b   :  { %v8009_v51 = vor.u32 %v10797_v18, %v8006_v19 }
 0x11d   :  { %1512 = vmatpush.bf16.msrb.mxu0 %v8069_v43  ;;  %1525 = vmatpush.bf16.msrb.mxu1 %v8073_v13  ;;  %v8013_v43 = vor.u32 %v10800_v22, %v8012_v21  ;;  %v10795_v13 = vld [vmem:[#allocation7 + $0x2c] sm:$0xf0]  ;;  %v10845_v21 = vld [vmem:[#allocation9 + $0xc4] sm:$0xf] }
 0x11e   :  { %1538 = vmatpush.bf16.msrb.mxu2 %v8077_v17  ;;  %1551 = vmatpush.bf16.msrb.mxu3 %v8081_v30  ;;  %v10793_v17 = vld [vmem:[#allocation7 + $0x24] sm:$0xf]  ;;  %v7989_v32 = vor.u32 %v10795_v13, %v7988_v27 }
 0x121   :  { %1513 = vmatpush.bf16.msrb.mxu0 %v8053_v34  ;;  %1526 = vmatpush.bf16.msrb.mxu1 %v8057_v38  ;;  %v7996_v34 = vld [vmem:[#allocation7 + $0x28] sm:$0xf] }
 0x122   :  { %1539 = vmatpush.bf16.msrb.mxu2 %v8061_v39  ;;  %1552 = vmatpush.bf16.msrb.mxu3 %v8065_v42  ;;  %v7993_v39 = vor.u32 %v10793_v17, %v7990_v33  ;;  %v7997_v40 = vor.u32 %v10796_v35, %v7996_v34  ;;  %v7998_v42 = vld [vmem:[#allocation7 + $0x38] sm:$0xf0]  ;;  %v10843_v33 = vld [vmem:[#allocation9 + $0xac] sm:$0xf0]  ;;  %v10841_v34 = vld [vmem:[#allocation9 + $0xa4] sm:$0xf] }
 0x123   :  { %v8001_v48 = vor.u32 %v10794_v41, %v7998_v42 }
 0x125   :  { %1514 = vmatpush.bf16.msrb.mxu0 %v8037_v50  ;;  %1527 = vmatpush.bf16.msrb.mxu1 %v8041_v53  ;;  %v10791_v50 = vld [vmem:[#allocation7 + $0xc] sm:$0xf0] }
 0x126   :  { %1540 = vmatpush.bf16.msrb.mxu2 %v8045_v57  ;;  %1553 = vmatpush.bf16.msrb.mxu3 %v8049_v59  ;;  %v7973_v55 = vor.u32 %v10791_v50, %v7972_v49  ;;  %v7977_v57 = vor.u32 %v10789_v52, %v7974_v56  ;;  %v10792_v59 = vld [vmem:[#allocation7 + $0x14] sm:$0xf0] }
 0x127   :  { %v7981_v61 = vor.u32 %v10792_v59, %v7980_v58  ;;  %v10839_v58 = vld [vmem:[#allocation9 + $0x8c] sm:$0xf0]  ;;  %v10837_v59 = vld [vmem:[#allocation9 + $0x84] sm:$0xf] }
 0x129   :  { %1515 = vmatpush.bf16.msrb.mxu0 %v8021_v63  ;;  %1528 = vmatpush.bf16.msrb.mxu1 %v8025_v6  ;;  %v8212_v63 = vld [vmem:[#allocation9 + $0xe0] sm:$0xf] }
 0x12a   :  { %1541 = vmatpush.bf16.msrb.mxu2 %v8029_v7  ;;  %1554 = vmatpush.bf16.msrb.mxu3 %v8033_v12  ;;  %v8213_v6 = vor.u32 %v10851_v0, %v8212_v63  ;;  %v10849_v7 = vld [vmem:[#allocation9 + $0xe4] sm:$0xf]  ;;  %v8166_v0 = vld [vmem:[#allocation9 + $0x90] sm:$0xf0] }
 0x12b   :  { %v8217_v12 = vor.u32 %v10849_v7, %v8214_v8  ;;  %v8169_v8 = vor.u32 %v10837_v59, %v8166_v0  ;;  %v8116_v0 = vld [vmem:[#allocation9 + $0x20] sm:$0xf] }
 0x12d   :  { %1516 = vmatpush.bf16.msrb.mxu0 %v8005_v20  ;;  %1529 = vmatpush.bf16.msrb.mxu1 %v8009_v51  ;;  %v8196_v20 = vld [vmem:[#allocation9 + $0xc0] sm:$0xf]  ;;  %v10847_v51 = vld [vmem:[#allocation9 + $0xcc] sm:$0xf0] }
 0x12e   :  { %1542 = vmatpush.bf16.msrb.mxu2 %v8013_v43  ;;  %1555 = vmatpush.bf16.msrb.mxu3 %v8017_v26  ;;  %v8197_v23 = vor.u32 %v10847_v51, %v8196_v20  ;;  %v8198_v43 = vld [vmem:[#allocation9 + $0xd0] sm:$0xf0]  ;;  %v10848_v26 = vld [vmem:[#allocation9 + $0xd4] sm:$0xf0]  ;;  %v10833_v51 = vld [vmem:[#allocation9 + $0x64] sm:$0xf] }
 0x12f   :  { %v8201_v13 = vor.u32 %v10845_v21, %v8198_v43  ;;  %v8205_v17 = vor.u32 %v10848_v26, %v8204_v24  ;;  %v8156_v43 = vld [vmem:[#allocation9 + $0x68] sm:$0xf]  ;;  %v10836_v24 = vld [vmem:[#allocation9 + $0x74] sm:$0xf0] }
 0x131   :  { %1517 = vmatpush.bf16.msrb.mxu0 %v7989_v32  ;;  %1530 = vmatpush.bf16.msrb.mxu1 %v7993_v39  ;;  %v8180_v32 = vld [vmem:[#allocation9 + $0xa0] sm:$0xf]  ;;  %v8182_v39 = vld [vmem:[#allocation9 + $0xb0] sm:$0xf0] }
 0x132   :  { %1543 = vmatpush.bf16.msrb.mxu2 %v7997_v40  ;;  %1556 = vmatpush.bf16.msrb.mxu3 %v8001_v48  ;;  %v8188_v40 = vld [vmem:[#allocation9 + $0xa8] sm:$0xf]  ;;  %v8190_v48 = vld [vmem:[#allocation9 + $0xb8] sm:$0xf0] }
 0x135   :  { %1518 = vmatpush.bf16.msrb.mxu0 %v7973_v55  ;;  %1531 = vmatpush.bf16.msrb.mxu1 %v7977_v57 }
 0x136   :  { %1544 = vmatpush.bf16.msrb.mxu2 %v7981_v61  ;;  %1557 = vmatpush.bf16.msrb.mxu3 %v7985_v2 }
 0x139   :  { %1755 = vmatpush.bf16.msra.mxu0 %v8213_v6  ;;  %1768 = vmatpush.bf16.msra.mxu1 %v8217_v12 }
 0x13d   :  { %1756 = vmatpush.bf16.msra.mxu0 %v8197_v23  ;;  %1769 = vmatpush.bf16.msra.mxu1 %v8201_v13  ;;  %v8150_v23 = vld [vmem:[#allocation9 + $0x70] sm:$0xf0]  ;;  %v8100_v13 = vld [vmem:[#allocation9] sm:$0xf] }
 0x173   :  { %v636_v44 = vpop.f32.mrf.mxu0  ;;  %v649_v45 = vpop.f32.mrf.mxu1 }
 0x174   :  { %v637_v28 = vadd.f32 %v636_v44, %v459_v14  ;;  %v650_v29 = vadd.f32 %v649_v45, %v460_v15  ;;  %v10852_v14 = vld [vmem:[#allocation9 + $0xf4] sm:$0xf0]  ;;  %v10850_v15 = vld [vmem:[#allocation9 + $0xec] sm:$0xf] }
 0x175   :  { %v8225_v22 = vor.u32 %v10850_v15, %v8222_v47  ;;  %v8148_v47 = vld [vmem:[#allocation9 + $0x60] sm:$0xf] }
 0x177   :  { %1794 = vmatpush.bf16.msra.mxu3 %v8225_v22 }
 0x17a   :  { %v11959_v4 = vpop.f32.mrf.mxu2  ;;  %v11961_v5 = vpop.f32.mrf.mxu3 }
 0x17b   :  { %v638_v10 = vpop.f32.mrf.mxu0  ;;  %v651_v11 = vpop.f32.mrf.mxu1  ;;  %v676_v1 = vadd.f32 %v11961_v5, %v462_v46  ;;  %v8221_v5 = vor.u32 %v10852_v14, %v8220_v9  ;;  %v663_v41 = vadd.f32 %v11959_v4, %v461_v36  ;;  %v8185_v46 = vor.u32 %v10841_v34, %v8182_v39  ;;  %v7836_v4 = vld [vmem:[%s13521_s0 + $0x28] sm:$0xff]  ;;  %v10840_v9 = vld [vmem:[#allocation9 + $0x94] sm:$0xf0] }
 0x17c   :  { %v8164_v36 = vld [vmem:[#allocation9 + $0x80] sm:$0xf] }
 0x17d   :  { %1781 = vmatpush.bf16.msra.mxu2 %v8221_v5  ;;  %1770 = vmatpush.bf16.msra.mxu1 %v8185_v46  ;;  %v8165_v63 = vor.u32 %v10839_v58, %v8164_v36  ;;  %v8132_v34 = vld [vmem:[#allocation9 + $0x40] sm:$0xf]  ;;  %v10829_v46 = vld [vmem:[#allocation9 + $0x44] sm:$0xf] }
 0x181   :  { %1782 = vmatpush.bf16.msra.mxu2 %v8205_v17  ;;  %1771 = vmatpush.bf16.msra.mxu1 %v8169_v8  ;;  %v8118_v8 = vld [vmem:[#allocation9 + $0x30] sm:$0xf0] }
 0x182   :  { %v664_v30 = vpop.f32.mrf.mxu2  ;;  %v677_v31 = vpop.f32.mrf.mxu3 }
 0x183   :  { %v880_v37 = vpop.f32.mrf.mxu0  ;;  %v893_v38 = vpop.f32.mrf.mxu1 }
 0x184   :  { %v923_v44 = vadd.f32 %v880_v37, %v637_v28  ;;  %v924_v45 = vadd.f32 %v893_v38, %v650_v29  ;;  %v10846_v28 = vld [vmem:[#allocation9 + $0xcc] sm:$0xf]  ;;  %v8206_v29 = vld [vmem:[#allocation9 + $0xd8] sm:$0xf0]  ;;  %v8181_v38 = vor.u32 %v10843_v33, %v8180_v32  ;;  %v8157_v32 = vor.u32 %v10836_v24, %v8156_v43 }
 0x185   :  { %v8209_v31 = vor.u32 %v10846_v28, %v8206_v29  ;;  %v7838_v28 = vld [vmem:[%s13521_s0 + $0x38] sm:$0xff]  ;;  %v10834_v29 = vld [vmem:[#allocation9 + $0x6c] sm:$0xf]  ;;  %v8158_v33 = vld [vmem:[#allocation9 + $0x78] sm:$0xf0] }
 0x186   :  { %v7832_v53 = vmul.f32 -1.442695, %v923_v44  ;;  %v7833_v54 = vmul.f32 -1.442695, %v924_v45  ;;  %v10844_v44 = vld [vmem:[#allocation9 + $0xb4] sm:$0xf0]  ;;  %1757 = vmatpush.bf16.msra.mxu0 %v8181_v38 }
 0x187   :  { %v10842_v45 = vld [vmem:[#allocation9 + $0xac] sm:$0xf]  ;;  %1795 = vmatpush.bf16.msra.mxu3 %v8209_v31  ;;  %v8189_v56 = vor.u32 %v10844_v44, %v8188_v40  ;;  %v8153_v31 = vor.u32 %v10833_v51, %v8150_v23  ;;  %v8161_v40 = vor.u32 %v10834_v29, %v8158_v33  ;;  %v8102_v29 = vld [vmem:[#allocation9 + $0x10] sm:$0xf0]  ;;  %v10824_v33 = vld [vmem:[#allocation9 + $0x14] sm:$0xf0] }
 0x188   :  { %11482 = vpow2.f32 %v7832_v53  ;;  %v8193_v57 = vor.u32 %v10842_v45, %v8190_v48  ;;  %v10826_v51 = vld [vmem:[#allocation9 + $0x2c] sm:$0xf] }
 0x189   :  { %11484 = vpow2.f32 %v7833_v54  ;;  %1783 = vmatpush.bf16.msra.mxu2 %v8189_v56  ;;  %1772 = vmatpush.bf16.msra.mxu1 %v8153_v31  ;;  %v10830_v56 = vld [vmem:[#allocation9 + $0x4c] sm:$0xf] }
 0x18a   :  { %v906_v10 = vpop.f32.mrf.mxu2  ;;  %v919_v11 = vpop.f32.mrf.mxu3  ;;  %1758 = vmatpush.bf16.msra.mxu0 %v8165_v63 }
 0x18b   :  { %v926_v16 = vadd.f32 %v919_v11, %v676_v1  ;;  %v882_v18 = vpop.f32.mrf.mxu0  ;;  %v895_v19 = vpop.f32.mrf.mxu1  ;;  %v925_v49 = vadd.f32 %v906_v10, %v663_v41  ;;  %v8172_v1 = vld [vmem:[#allocation9 + $0x88] sm:$0xf]  ;;  %v10838_v10 = vld [vmem:[#allocation9 + $0x8c] sm:$0xf]  ;;  %v8174_v11 = vld [vmem:[#allocation9 + $0x98] sm:$0xf0]  ;;  %1796 = vmatpush.bf16.msra.mxu3 %v8193_v57 }
 0x18c   :  { %v8173_v14 = vor.u32 %v10840_v9, %v8172_v1  ;;  %v8177_v15 = vor.u32 %v10838_v10, %v8174_v11  ;;  %v10831_v41 = vld [vmem:[#allocation9 + $0x4c] sm:$0xf0]  ;;  %v8142_v57 = vld [vmem:[#allocation9 + $0x58] sm:$0xf0]  ;;  %v8124_v9 = vld [vmem:[#allocation9 + $0x28] sm:$0xf] }
 0x18d   :  { %v7834_v27 = vmul.f32 -1.442695, %v926_v16  ;;  %v10835_v16 = vld [vmem:[#allocation9 + $0x6c] sm:$0xf0]  ;;  %v8145_v63 = vor.u32 %v10830_v56, %v8142_v57  ;;  %v100_v11 = vld [vmem:[%s13523_s2 + $0x8] sm:$0xff] }
 0x18e   :  { %v11483_v30 = vpop.eup %11482  ;;  %v8149_v20 = vor.u32 %v10835_v16, %v8148_v47  ;;  %1784 = vmatpush.bf16.msra.mxu2 %v8173_v14  ;;  %v10827_v1 = vld [vmem:[#allocation9 + $0x2c] sm:$0xf0]  ;;  %v10828_v16 = vld [vmem:[#allocation9 + $0x34] sm:$0xf0] }
 0x18f   :  { %v11485_v35 = vpop.eup %11484  ;;  %v11968_v37 = vadd.f32 1.0, %v11483_v30  ;;  %11486 = vpow2.f32 %v7834_v27  ;;  %1797 = vmatpush.bf16.msra.mxu3 %v8177_v15  ;;  %v8125_v24 = vor.u32 %v10828_v16, %v8124_v9 }
 0x190   :  { %v11973_v42 = vadd.f32 1.0, %v11485_v35  ;;  %1759 = vmatpush.bf16.msra.mxu0 %v8149_v20 }
 0x191   :  { %11488 = vrcp.f32 %v11968_v37  ;;  %v940_v50 = vand.u32 2147483647, %v11968_v37  ;;  %v942_v55 = vand.u32 2147483648, %v11968_v37  ;;  %vm936_vm14 = vweird.f32 %v11968_v37 }
 0x192   :  { %11490 = vrcp.f32 %v11973_v42  ;;  %v908_v52 = vpop.f32.mrf.mxu2  ;;  %v921_v53 = vpop.f32.mrf.mxu3  ;;  %v961_v54 = vand.u32 2147483648, %v11973_v42  ;;  %v959_v60 = vand.u32 2147483647, %v11973_v42  ;;  %1785 = vmatpush.bf16.msra.mxu2 %v8157_v32  ;;  %vm955_vm1 = vweird.f32 %v11973_v42  ;;  %v8108_v32 = vld [vmem:[#allocation9 + $0x8] sm:$0xf] }
 0x193   :  { %11492 = vtanh.f32 %v925_v49  ;;  %vm12000_vm12 = vcmp.eq.f32.partialorder %v940_v50, 8.507059e+37  ;;  %v12004_v17 = vor.u32 1.1754944e-38, %v942_v55  ;;  %v8133_v50 = vor.u32 %v10831_v41, %v8132_v34  ;;  %v8134_v52 = vld [vmem:[#allocation9 + $0x50] sm:$0xf0]  ;;  %v8140_v53 = vld [vmem:[#allocation9 + $0x48] sm:$0xf]  ;;  %1798 = vmatpush.bf16.msra.mxu3 %v8161_v40 }
 0x194   :  { %v1198_v61 = vpop.f32.mrf.mxu0  ;;  %v1211_v62 = vpop.f32.mrf.mxu1  ;;  %v11998_v27 = vor.u32 1.1754944e-38, %v961_v54  ;;  %v8137_v54 = vor.u32 %v10829_v46, %v8134_v52  ;;  %vm960_vm3 = vcmp.eq.f32.partialorder %v959_v60, 8.507059e+37  ;;  %v10821_v60 = vld [vmem:[#allocation9 + $0x4] sm:$0xf]  ;;  %v10822_v34 = vld [vmem:[#allocation9 + $0xc] sm:$0xf] }
 0x195   :  { %v11487_v2 = vpop.eup %11486  ;;  %v1241_v6 = vadd.f32 %v7835_v3, %v1198_v61  ;;  %v1242_v7 = vadd.f32 %v7836_v4, %v1211_v62  ;;  %v10832_v3 = vld [vmem:[#allocation9 + $0x54] sm:$0xf0]  ;;  %1760 = vmatpush.bf16.msra.mxu0 %v8133_v50  ;;  %v8105_v41 = vor.u32 %v10821_v60, %v8102_v29  ;;  %v8110_v46 = vld [vmem:[#allocation9 + $0x18] sm:$0xf0]  ;;  %v10881_v29 = vld [vmem:[#allocation5 + $0xe4] sm:$0xf] }
 0x196   :  { %v11987_v12 = vadd.f32 1.0, %v11487_v2  ;;  %v8141_v55 = vor.u32 %v10832_v3, %v8140_v53  ;;  %1773 = vmatpush.bf16.msra.mxu1 %v8137_v54  ;;  %v8113_v50 = vor.u32 %v10822_v34, %v8110_v46  ;;  %v10882_v34 = vld [vmem:[#allocation5 + $0xec] sm:$0xf]  ;;  %v8331_v46 = vld [vmem:[#allocation5 + $0xc0] sm:$0xf] }
 0x197   :  { %v11989_v18 = vpop.eup %11488  ;;  %v7967_v19 = vmul.f32 -1.442695, %v1241_v6  ;;  %v7968_v5 = vmul.f32 -1.442695, %v1242_v7  ;;  %v8117_v6 = vor.u32 %v10827_v1, %v8116_v0  ;;  %v10825_v7 = vld [vmem:[#allocation9 + $0x24] sm:$0xf]  ;;  %1799 = vmatpush.bf16.msra.mxu3 %v8145_v63 }
 0x198   :  { %v11991_v21 = vpop.eup %11490  ;;  %v932_v22 = vmul.f32 %v11989_v18, %v11968_v37  ;;  %11494 = vrcp.f32 %v11987_v12  ;;  %vm937_vm13 = vweird.f32 %v11989_v18  ;;  %v8121_v47 = vor.u32 %v10825_v7, %v8118_v8  ;;  %1786 = vmatpush.bf16.msra.mxu2 %v8141_v55 }
 0x199   :  { %v951_v26 = vmul.f32 %v11991_v21, %v11973_v42  ;;  %11496 = vpow2.f32 %v7967_v19  ;;  %v11493_v4 = vpop.eup %11492  ;;  %vm956_vm15 = vweird.f32 %v11991_v21  ;;  %vm12023_vm0 = vmor %vm936_vm14, %vm937_vm13  ;;  %1761 = vmatpush.bf16.msra.mxu0 %v8117_v6  ;;  %v10823_v42 = vld [vmem:[#allocation9 + $0xc] sm:$0xf0]  ;;  %vm975_vm5 = vweird.f32 %v11987_v12 }
 0x19a   :  { %v933_v30 = vsub.f32 1.0, %v932_v22  ;;  %11498 = vpow2.f32 %v7968_v5  ;;  %vm12031_vm2 = vmor %vm955_vm1, %vm956_vm15  ;;  %1774 = vmatpush.bf16.msra.mxu1 %v8121_v47  ;;  %v8101_v40 = vor.u32 %v10823_v42, %v8100_v13 }
 0x19b   :  { %v952_v35 = vsub.f32 1.0, %v951_v26  ;;  %v12010_v38 = vpop.f32.mrf.mxu2  ;;  %v1237_v39 = vpop.f32.mrf.mxu3  ;;  %v8126_v26 = vld [vmem:[#allocation9 + $0x38] sm:$0xf0] }
 0x19c   :  { %v934_v44 = vmul.f32 %v11989_v18, %v933_v30  ;;  %v1244_v45 = vadd.f32 %v7838_v28, %v1237_v39  ;;  %v1200_v48 = vpop.f32.mrf.mxu0  ;;  %v1213_v49 = vpop.f32.mrf.mxu1  ;;  %1787 = vmatpush.bf16.msra.mxu2 %v8125_v24  ;;  %v8129_v31 = vor.u32 %v10826_v51, %v8126_v26  ;;  %v7837_v39 = vld [vmem:[%s13521_s0 + $0x30] sm:$0xff] }
 0x19d   :  { %v953_v36 = vmul.f32 %v11991_v21, %v952_v35  ;;  %1762 = vmatpush.bf16.msra.mxu0 %v8101_v40  ;;  %v8109_v49 = vor.u32 %v10824_v33, %v8108_v32  ;;  %v1243_v53 = vadd.f32 %v7837_v39, %v12010_v38  ;;  %v10884_v33 = vld [vmem:[#allocation5 + $0xf4] sm:$0xf0] }
 0x19e   :  { %v12016_v58 = vpop.eup %11494  ;;  %v935_v59 = vadd.f32 %v11989_v18, %v934_v44  ;;  %v7969_v62 = vmul.f32 -1.442695, %v1244_v45  ;;  %v981_v44 = vand.u32 2147483648, %v11987_v12  ;;  %1800 = vmatpush.bf16.msra.mxu3 %v8129_v31  ;;  %1775 = vmatpush.bf16.msra.mxu1 %v8105_v41  ;;  %v8355_v31 = vld [vmem:[#allocation5 + $0xe8] sm:$0xf] }
 0x19f   :  { %v954_v2 = vadd.f32 %v11991_v21, %v953_v36  ;;  %v11497_v10 = vpop.eup %11496  ;;  %v971_v15 = vmul.f32 %v12016_v58, %v11987_v12  ;;  %vm976_vm4 = vweird.f32 %v12016_v58  ;;  %v979_v36 = vand.u32 2147483647, %v11987_v12 }
 0x1a0   :  { %v939_v14 = vsel %vm12023_vm0, %v11989_v18, %v935_v59  ;;  %11500 = vpow2.f32 %v7969_v62  ;;  %v11499_v19 = vpop.eup %11498  ;;  %v12051_v18 = vadd.f32 1.0, %v11497_v10  ;;  %1788 = vmatpush.bf16.msra.mxu2 %v8109_v49  ;;  %v982_v55 = vor.u32 1.1754944e-38, %v981_v44  ;;  %vm12076_vm6 = vmor %vm975_vm5, %vm976_vm4  ;;  %v10879_v44 = vld [vmem:[#allocation5 + $0xcc] sm:$0xf0]  ;;  %v10877_v49 = vld [vmem:[#allocation5 + $0xc4] sm:$0xf] }
 0x1a1   :  { %v944_v5 = vsel %vm12000_vm12, %v12004_v17, %v939_v14  ;;  %v958_v20 = vsel %vm12031_vm2, %v11991_v21, %v954_v2  ;;  %v12054_v43 = vadd.f32 1.0, %v11499_v19  ;;  %v972_v30 = vsub.f32 1.0, %v971_v15 }
 0x1a2   :  { %v963_v22 = vsel %vm960_vm3, %v11998_v27, %v958_v20  ;;  %v986_v23 = vmul.f32 %v11493_v4, %v944_v5  ;;  %11502 = vrcp.f32 %v12051_v18  ;;  %1801 = vmatpush.bf16.msra.mxu3 %v8113_v50  ;;  %v1260_v62 = vand.u32 2147483648, %v12051_v18  ;;  %v8333_v50 = vld [vmem:[#allocation5 + $0xd0] sm:$0xf0] }
 0x1a3   :  { %v985_v17 = vmul.f32 %v963_v22, %v100_v11  ;;  %v1226_v21 = vpop.f32.mrf.mxu2  ;;  %v1239_v28 = vpop.f32.mrf.mxu3  ;;  %11504 = vrcp.f32 %v12054_v43  ;;  %v973_v48 = vmul.f32 %v12016_v58, %v972_v30  ;;  %v1279_v61 = vand.u32 2147483648, %v12054_v43  ;;  %v8349_v30 = vld [vmem:[#allocation5 + $0xf0] sm:$0xf0] }
 0x1a4   :  { %v1258_v1 = vand.u32 2147483647, %v12051_v18  ;;  %v1277_v7 = vand.u32 2147483647, %v12054_v43  ;;  %vm980_vm9 = vcmp.eq.f32.partialorder %v979_v36, 8.507059e+37  ;;  %vm1254_vm10 = vweird.f32 %v12051_v18 }
 0x1a5   :  { %v12058_v27 = vadd.f32 %v986_v23, %v985_v17  ;;  %v974_v57 = vadd.f32 %v12016_v58, %v973_v48  ;;  %vm1273_vm11 = vweird.f32 %v12054_v43  ;;  %v1261_v37 = vor.u32 1.1754944e-38, %v1260_v62  ;;  %v8347_v28 = vld [vmem:[#allocation5 + $0xe0] sm:$0xf]  ;;  %v8323_v62 = vld [vmem:[#allocation5 + $0xa8] sm:$0xf] }
 0x1a6   :  { %v11501_v35 = vpop.eup %11500  ;;  %vm1259_vm14 = vcmp.eq.f32.partialorder %v1258_v1, 8.507059e+37  ;;  %vm1278_vm15 = vcmp.eq.f32.partialorder %v1277_v7, 8.507059e+37  ;;  %v8352_v41 = vor.u32 %v10881_v29, %v8349_v30  ;;  %v8332_v36 = vor.u32 %v10879_v44, %v8331_v46  ;;  %v8325_v1 = vld [vmem:[#allocation5 + $0xb8] sm:$0xf0]  ;;  %v10871_v7 = vld [vmem:[#allocation5 + $0x8c] sm:$0xf0] }
 0x1a7   :  { %v12064_v45 = vadd.f32 1.0, %v11501_v35  ;;  %11506 = vtanh.f32 %v12058_v27  ;;  %v978_v12 = vsel %vm12076_vm6, %v12016_v58, %v974_v57  ;;  %v1280_v58 = vor.u32 1.1754944e-38, %v1279_v61  ;;  %v8357_v35 = vld [vmem:[#allocation5 + $0xf8] sm:$0xf0]  ;;  %v8317_v61 = vld [vmem:[#allocation5 + $0xb0] sm:$0xf0] }
 0x1a8   :  { %v11503_v52 = vpop.eup %11502  ;;  %v983_v10 = vsel %vm980_vm9, %v982_v55, %v978_v12  ;;  %v8360_v48 = vor.u32 %v10882_v34, %v8357_v35  ;;  %v8315_v55 = vld [vmem:[#allocation5 + $0xa0] sm:$0xf]  ;;  %v10861_v30 = vld [vmem:[#allocation5 + $0x44] sm:$0xf]  ;;  %v10862_v34 = vld [vmem:[#allocation5 + $0x4c] sm:$0xf] }
 0x1a9   :  { %11508 = vrcp.f32 %v12064_v45  ;;  %v11505_v3 = vpop.eup %11504  ;;  %v1250_v4 = vmul.f32 %v11503_v52, %v12051_v18  ;;  %vm1255_vm7 = vweird.f32 %v11503_v52  ;;  %v1299_v26 = vand.u32 2147483648, %v12064_v45  ;;  %v8277_v35 = vld [vmem:[#allocation5 + $0x58] sm:$0xf0]  ;;  %v8251_v46 = vld [vmem:[#allocation5 + $0x20] sm:$0xf] }
 0x1aa   :  { %v1269_v54 = vmul.f32 %v11505_v3, %v12054_v43  ;;  %11510 = vtanh.f32 %v1243_v53  ;;  %vm1274_vm8 = vweird.f32 %v11505_v3  ;;  %vm1256_vm12 = vmor %vm1254_vm10, %vm1255_vm7  ;;  %vm1293_vm1 = vweird.f32 %v12064_v45  ;;  %v10880_v53 = vld [vmem:[#allocation5 + $0xd4] sm:$0xf0]  ;;  %v10859_v44 = vld [vmem:[#allocation5 + $0x2c] sm:$0xf0] }
 0x1ab   :  { %v1251_v56 = vsub.f32 1.0, %v1250_v4  ;;  %vm1275_vm13 = vmor %vm1273_vm11, %vm1274_vm8  ;;  %v1297_v13 = vand.u32 2147483647, %v12064_v45  ;;  %v1300_v21 = vor.u32 1.1754944e-38, %v1299_v26  ;;  %v8341_v4 = vld [vmem:[#allocation5 + $0xd8] sm:$0xf0] }
 0x1ac   :  { %v1270_v59 = vsub.f32 1.0, %v1269_v54  ;;  %v8336_v54 = vor.u32 %v10877_v49, %v8333_v50  ;;  %v10868_v26 = vld [vmem:[#allocation5 + $0x74] sm:$0xf0]  ;;  %v10857_v49 = vld [vmem:[#allocation5 + $0x24] sm:$0xf] }
 0x1ad   :  { %v11507_v63 = vpop.eup %11506  ;;  %v1252_v0 = vmul.f32 %v11503_v52, %v1251_v56  ;;  %vm1298_vm3 = vcmp.eq.f32.partialorder %v1297_v13, 8.507059e+37  ;;  %v10875_v56 = vld [vmem:[#allocation5 + $0xac] sm:$0xf0]  ;;  %v10866_v13 = vld [vmem:[#allocation5 + $0x6c] sm:$0xf] }
 0x1ae   :  { %v1271_v6 = vmul.f32 %v11505_v3, %v1270_v59  ;;  %v989_v14 = vmul.f32 %v11507_v63, %v983_v10  ;;  %v10873_v59 = vld [vmem:[#allocation5 + $0xa4] sm:$0xf]  ;;  %v10876_v63 = vld [vmem:[#allocation5 + $0xb4] sm:$0xf0]  ;;  %v8316_v12 = vor.u32 %v10875_v56, %v8315_v55  ;;  %v8253_v50 = vld [vmem:[#allocation5 + $0x30] sm:$0xf0] }
 0x1af   :  { %v11509_v2 = vpop.eup %11508  ;;  %v1253_v8 = vadd.f32 %v11503_v52, %v1252_v0  ;;  %v10874_v0 = vld [vmem:[#allocation5 + $0xac] sm:$0xf]  ;;  %v10869_v10 = vld [vmem:[#allocation5 + $0x84] sm:$0xf]  ;;  %v10855_v55 = vld [vmem:[#allocation5 + $0xc] sm:$0xf0] }
 0x1b0   :  { %v1289_v9 = vmul.f32 %v11509_v2, %v12064_v45  ;;  %v1272_v11 = vadd.f32 %v11505_v3, %v1271_v6  ;;  %v11511_v16 = vpop.eup %11510  ;;  %v12090_v20 = vpack.c.bf16 %v989_v14, %v989_v14  ;;  %vm1294_vm0 = vweird.f32 %v11509_v2  ;;  %v8299_v6 = vld [vmem:[#allocation5 + $0x80] sm:$0xf]  ;;  %v10872_v14 = vld [vmem:[#allocation5 + $0x94] sm:$0xf0] }
 0x1b1   :  { %v1257_v15 = vsel %vm1256_vm12, %v11503_v52, %v1253_v8  ;;  %vm1295_vm2 = vmor %vm1293_vm1, %vm1294_vm0  ;;  %v8356_v45 = vor.u32 %v10884_v33, %v8355_v31  ;;  %v8339_v52 = vld [vmem:[#allocation5 + $0xc8] sm:$0xf]  ;;  %v8324_v8 = vor.u32 %v10876_v63, %v8323_v62  ;;  %v8269_v31 = vld [vmem:[#allocation5 + $0x50] sm:$0xf0] }
 0x1b2   :  { %v1290_v47 = vsub.f32 1.0, %v1289_v9  ;;  %v1262_v19 = vsel %vm1259_vm14, %v1261_v37, %v1257_v15  ;;  %v1276_v5 = vsel %vm1275_vm13, %v11505_v3, %v1272_v11  ;;  %991 = vst [vmem:[#allocation4] sm:$0xf] %v12090_v20  ;;  %v10878_v3 = vld [vmem:[#allocation5 + $0xcc] sm:$0xf]  ;;  %v8340_v57 = vor.u32 %v10880_v53, %v8339_v52 }
 0x1b3   :  { %v1281_v18 = vsel %vm1278_vm15, %v1280_v58, %v1276_v5  ;;  %v1304_v51 = vmul.f32 %v11511_v16, %v1262_v19  ;;  %v8344_v38 = vor.u32 %v10878_v3, %v8341_v4  ;;  %v8328_v9 = vor.u32 %v10874_v0, %v8325_v1  ;;  %v8301_v37 = vld [vmem:[#allocation5 + $0x90] sm:$0xf0]  ;;  %v8307_v11 = vld [vmem:[#allocation5 + $0x88] sm:$0xf]  ;;  %v10870_v58 = vld [vmem:[#allocation5 + $0x8c] sm:$0xf] }
 0x1b4   :  { %v1291_v22 = vmul.f32 %v11509_v2, %v1290_v47  ;;  %v1303_v23 = vmul.f32 %v1281_v18, %v11941_v25  ;;  %v10883_v25 = vld [vmem:[#allocation5 + $0xec] sm:$0xf0]  ;;  %v8309_v15 = vld [vmem:[#allocation5 + $0x98] sm:$0xf0]  ;;  %v8300_v47 = vor.u32 %v10871_v7, %v8299_v6  ;;  %v8304_v16 = vor.u32 %v10869_v10, %v8301_v37  ;;  %v8283_v19 = vld [vmem:[#allocation5 + $0x60] sm:$0xf] }
 0x1b5   :  { %v8348_v40 = vor.u32 %v10883_v25, %v8347_v28  ;;  %v10867_v5 = vld [vmem:[#allocation5 + $0x6c] sm:$0xf0]  ;;  %v8308_v18 = vor.u32 %v10872_v14, %v8307_v11  ;;  %v8267_v25 = vld [vmem:[#allocation5 + $0x40] sm:$0xf]  ;;  %v10864_v33 = vld [vmem:[#allocation5 + $0x54] sm:$0xf0] }
 0x1b6   :  { %v12094_v43 = vadd.f32 %v1304_v51, %v1303_v23  ;;  %v1292_v24 = vadd.f32 %v11509_v2, %v1291_v22  ;;  %v8312_v51 = vor.u32 %v10870_v58, %v8309_v15  ;;  %v10865_v22 = vld [vmem:[#allocation5 + $0x64] sm:$0xf]  ;;  %v8285_v23 = vld [vmem:[#allocation5 + $0x70] sm:$0xf0]  ;;  %v8259_v52 = vld [vmem:[#allocation5 + $0x28] sm:$0xf] }
 0x1b7   :  { %v8288_v28 = vor.u32 %v10865_v22, %v8285_v23  ;;  %v10860_v53 = vld [vmem:[#allocation5 + $0x34] sm:$0xf0]  ;;  %v10858_v3 = vld [vmem:[#allocation5 + $0x2c] sm:$0xf]  ;;  %v8261_v4 = vld [vmem:[#allocation5 + $0x38] sm:$0xf0] }
 0x1b8   :  { %11512 = vtanh.f32 %v12094_v43  ;;  %v1296_v17 = vsel %vm1295_vm2, %v11509_v2, %v1292_v24  ;;  %v8320_v2 = vor.u32 %v10873_v59, %v8317_v61  ;;  %v8291_v24 = vld [vmem:[#allocation5 + $0x68] sm:$0xf]  ;;  %v8260_v56 = vor.u32 %v10860_v53, %v8259_v52  ;;  %v8237_v59 = vld [vmem:[#allocation5 + $0x10] sm:$0xf0]  ;;  %v10856_v62 = vld [vmem:[#allocation5 + $0x14] sm:$0xf0] }
 0x1b9   :  { %v1301_v60 = vsel %vm1298_vm3, %v1300_v21, %v1296_v17  ;;  %v8293_v17 = vld [vmem:[#allocation5 + $0x78] sm:$0xf0]  ;;  %v8284_v21 = vor.u32 %v10867_v5, %v8283_v19  ;;  %v8243_v61 = vld [vmem:[#allocation5 + $0x8] sm:$0xf]  ;;  %v10854_v63 = vld [vmem:[#allocation5 + $0xc] sm:$0xf] }
 0x1ba   :  { %v8296_v29 = vor.u32 %v10866_v13, %v8293_v17  ;;  %v8245_v0 = vld [vmem:[#allocation5 + $0x18] sm:$0xf0]  ;;  %v8478_v7 = vld [vmem:[#allocation7 + $0xe0] sm:$0xf]  ;;  %v8480_v37 = vld [vmem:[#allocation7 + $0xf0] sm:$0xf0] }
 0x1bb   :  { %v8248_v6 = vor.u32 %v10854_v63, %v8245_v0  ;;  %v8486_v11 = vld [vmem:[#allocation7 + $0xe8] sm:$0xf]  ;;  %v10916_v14 = vld [vmem:[#allocation7 + $0xf4] sm:$0xf0]  ;;  %v8462_v5 = vld [vmem:[#allocation7 + $0xc0] sm:$0xf] }
 0x1bc   :  { %v8487_v15 = vor.u32 %v10916_v14, %v8486_v11  ;;  %v8464_v22 = vld [vmem:[#allocation7 + $0xd0] sm:$0xf0]  ;;  %v8470_v23 = vld [vmem:[#allocation7 + $0xc8] sm:$0xf]  ;;  %v10910_v17 = vld [vmem:[#allocation7 + $0xcc] sm:$0xf] }
 0x1bd   :  { %v8432_v52 = vld [vmem:[#allocation7 + $0x90] sm:$0xf0]  ;;  %v8438_v53 = vld [vmem:[#allocation7 + $0x88] sm:$0xf] }
 0x1be   :  { %v11513_v42 = vpop.eup %11512 }
 0x1bf   :  { %v1307_v32 = vmul.f32 %v11513_v42, %v1301_v60  ;;  %v10863_v42 = vld [vmem:[#allocation5 + $0x4c] sm:$0xf0]  ;;  %v8292_v60 = vor.u32 %v10868_v26, %v8291_v24  ;;  %v10912_v24 = vld [vmem:[#allocation7 + $0xd4] sm:$0xf0] }
 0x1c0   :  { %v8471_v13 = vor.u32 %v10912_v24, %v8470_v23  ;;  %v8408_v23 = vld [vmem:[#allocation7 + $0x58] sm:$0xf0] }
 0x1c1   :  { %v12100_v39 = vpack.c.bf16 %v1307_v32, %v1307_v32  ;;  %v8275_v32 = vld [vmem:[#allocation5 + $0x48] sm:$0xf] }
 0x1c3   :  { %1519 = vmatmul.bf16.vlgmr.msrb.gmra.mxu0 %v12100_v39  ;;  %1532 = vmatmul.bf16.vlgmr.msrb.gmra.mxu1 %v12100_v39 }
 0x1c4   :  { %1545 = vmatmul.bf16.vlgmr.msrb.gmra.mxu2 %v12100_v39  ;;  %1558 = vmatmul.bf16.vlgmr.msrb.gmra.mxu3 %v12100_v39 }
 0x1c5   :  { %2074 = vmatpush.bf16.msrb.mxu0 %v8348_v40  ;;  %2087 = vmatpush.bf16.msrb.mxu1 %v8352_v41  ;;  %v8268_v40 = vor.u32 %v10863_v42, %v8267_v25  ;;  %v8272_v41 = vor.u32 %v10861_v30, %v8269_v31  ;;  %v8446_v25 = vld [vmem:[#allocation7 + $0xa0] sm:$0xf]  ;;  %v10907_v42 = vld [vmem:[#allocation7 + $0xac] sm:$0xf0] }
 0x1c6   :  { %2100 = vmatpush.bf16.msrb.mxu2 %v8356_v45  ;;  %2113 = vmatpush.bf16.msrb.mxu3 %v8360_v48  ;;  %v8276_v45 = vor.u32 %v10864_v33, %v8275_v32  ;;  %v8280_v48 = vor.u32 %v10862_v34, %v8277_v35  ;;  %v8447_v31 = vor.u32 %v10907_v42, %v8446_v25  ;;  %v8448_v32 = vld [vmem:[#allocation7 + $0xb0] sm:$0xf0]  ;;  %v8454_v33 = vld [vmem:[#allocation7 + $0xa8] sm:$0xf]  ;;  %v10908_v34 = vld [vmem:[#allocation7 + $0xb4] sm:$0xf0] }
 0x1c7   :  { %v10891_v25 = vld [vmem:[#allocation7 + $0x2c] sm:$0xf0]  ;;  %v10889_v42 = vld [vmem:[#allocation7 + $0x24] sm:$0xf] }
 0x1c9   :  { %2075 = vmatpush.bf16.msrb.mxu0 %v8332_v36  ;;  %2088 = vmatpush.bf16.msrb.mxu1 %v8336_v54  ;;  %v8252_v36 = vor.u32 %v10859_v44, %v8251_v46  ;;  %v8235_v54 = vld [vmem:[#allocation5] sm:$0xf]  ;;  %v8456_v46 = vld [vmem:[#allocation7 + $0xb8] sm:$0xf0] }
 0x1ca   :  { %2101 = vmatpush.bf16.msrb.mxu2 %v8340_v57  ;;  %2114 = vmatpush.bf16.msrb.mxu3 %v8344_v38  ;;  %v8264_v57 = vor.u32 %v10858_v3, %v8261_v4  ;;  %v10853_v38 = vld [vmem:[#allocation5 + $0x4] sm:$0xf]  ;;  %v8236_v1 = vor.u32 %v10855_v55, %v8235_v54  ;;  %v10904_v3 = vld [vmem:[#allocation7 + $0x94] sm:$0xf0]  ;;  %v8440_v55 = vld [vmem:[#allocation7 + $0x98] sm:$0xf0] }
 0x1cb   :  { %v12121_v54 = vld [vmem:[%s13527_s6] sm:$0xf] }
 0x1cc   :  { %v1343_v11 = vperm.slane %v12121_v54, 0  ;;  %v1344_v14 = vperm.slane %v12121_v54, 1 }
 0x1cd   :  { %2076 = vmatpush.bf16.msrb.mxu0 %v8316_v12  ;;  %2089 = vmatpush.bf16.msrb.mxu1 %v8320_v2  ;;  %v8240_v12 = vor.u32 %v10853_v38, %v8237_v59  ;;  %v8244_v2 = vor.u32 %v10856_v62, %v8243_v61  ;;  %v8414_v59 = vld [vmem:[#allocation7 + $0x60] sm:$0xf]  ;;  %v10899_v61 = vld [vmem:[#allocation7 + $0x6c] sm:$0xf0]  ;;  %v10897_v62 = vld [vmem:[#allocation7 + $0x64] sm:$0xf] }
 0x1ce   :  { %2102 = vmatpush.bf16.msrb.mxu2 %v8324_v8  ;;  %2115 = vmatpush.bf16.msrb.mxu3 %v8328_v9  ;;  %v10915_v8 = vld [vmem:[#allocation7 + $0xec] sm:$0xf0]  ;;  %v10913_v9 = vld [vmem:[#allocation7 + $0xe4] sm:$0xf] }
 0x1cf   :  { %v8479_v10 = vor.u32 %v10915_v8, %v8478_v7  ;;  %v8483_v58 = vor.u32 %v10913_v9, %v8480_v37  ;;  %v10898_v9 = vld [vmem:[#allocation7 + $0x6c] sm:$0xf] }
 0x1d1   :  { %2077 = vmatpush.bf16.msrb.mxu0 %v8300_v47  ;;  %2090 = vmatpush.bf16.msrb.mxu1 %v8304_v16  ;;  %v10914_v47 = vld [vmem:[#allocation7 + $0xec] sm:$0xf]  ;;  %v8488_v16 = vld [vmem:[#allocation7 + $0xf8] sm:$0xf0] }
 0x1d2   :  { %2103 = vmatpush.bf16.msrb.mxu2 %v8308_v18  ;;  %2116 = vmatpush.bf16.msrb.mxu3 %v8312_v51  ;;  %v8491_v19 = vor.u32 %v10914_v47, %v8488_v16  ;;  %v10911_v18 = vld [vmem:[#allocation7 + $0xcc] sm:$0xf0]  ;;  %v10909_v51 = vld [vmem:[#allocation7 + $0xc4] sm:$0xf]  ;;  %v8400_v16 = vld [vmem:[#allocation7 + $0x50] sm:$0xf0] }
 0x1d3   :  { %1763 = vmatmul.bf16.vlgmr.msra.gmra.mxu0 %v12090_v20  ;;  %1776 = vmatmul.bf16.vlgmr.msra.gmra.mxu1 %v12090_v20  ;;  %v8467_v26 = vor.u32 %v10909_v51, %v8464_v22  ;;  %v10893_v47 = vld [vmem:[#allocation7 + $0x44] sm:$0xf]  ;;  %v10896_v51 = vld [vmem:[#allocation7 + $0x54] sm:$0xf0] }
 0x1d4   :  { %1789 = vmatmul.bf16.vlgmr.msra.gmra.mxu2 %v12090_v20  ;;  %1802 = vmatmul.bf16.vlgmr.msra.gmra.mxu3 %v12090_v20  ;;  %v8256_v20 = vor.u32 %v10857_v49, %v8253_v50  ;;  %v10901_v49 = vld [vmem:[#allocation7 + $0x84] sm:$0xf] }
 0x1d5   :  { %2078 = vmatpush.bf16.msrb.mxu0 %v8284_v21  ;;  %2091 = vmatpush.bf16.msrb.mxu1 %v8288_v28  ;;  %v8472_v21 = vld [vmem:[#allocation7 + $0xd8] sm:$0xf0]  ;;  %v8435_v4 = vor.u32 %v10901_v49, %v8432_v52 }
 0x1d6   :  { %2104 = vmatpush.bf16.msrb.mxu2 %v8292_v60  ;;  %2117 = vmatpush.bf16.msrb.mxu3 %v8296_v29  ;;  %v8475_v28 = vor.u32 %v10910_v17, %v8472_v21  ;;  %v10905_v60 = vld [vmem:[#allocation7 + $0xa4] sm:$0xf] }
 0x1d7   :  { %v8451_v35 = vor.u32 %v10905_v60, %v8448_v32 }
 0x1d9   :  { %2079 = vmatpush.bf16.msrb.mxu0 %v8268_v40  ;;  %2092 = vmatpush.bf16.msrb.mxu1 %v8272_v41  ;;  %v8455_v40 = vor.u32 %v10908_v34, %v8454_v33  ;;  %v10906_v41 = vld [vmem:[#allocation7 + $0xac] sm:$0xf]  ;;  %v8384_v33 = vld [vmem:[#allocation7 + $0x30] sm:$0xf0]  ;;  %v8390_v34 = vld [vmem:[#allocation7 + $0x28] sm:$0xf] }
 0x1da   :  { %2105 = vmatpush.bf16.msrb.mxu2 %v8276_v45  ;;  %2118 = vmatpush.bf16.msrb.mxu3 %v8280_v48  ;;  %v8459_v44 = vor.u32 %v10906_v41, %v8456_v46  ;;  %v8430_v45 = vld [vmem:[#allocation7 + $0x80] sm:$0xf]  ;;  %v10903_v48 = vld [vmem:[#allocation7 + $0x8c] sm:$0xf0]  ;;  %v10890_v46 = vld [vmem:[#allocation7 + $0x2c] sm:$0xf] }
 0x1db   :  { %v8431_v50 = vor.u32 %v10903_v48, %v8430_v45  ;;  %v1345_v45 = vperm.slane %v12121_v54, 2  ;;  %v1346_v48 = vperm.slane %v12121_v54, 3  ;;  %v8229_v54 = vld [vmem:[%s13521_s0 + $0x40] sm:$0xff] }
 0x1dd   :  { %2080 = vmatpush.bf16.msrb.mxu0 %v8252_v36  ;;  %2093 = vmatpush.bf16.msrb.mxu1 %v8256_v20  ;;  %v8439_v36 = vor.u32 %v10904_v3, %v8438_v53  ;;  %v10902_v20 = vld [vmem:[#allocation7 + $0x8c] sm:$0xf]  ;;  %v8366_v53 = vld [vmem:[#allocation7] sm:$0xf]  ;;  %v10887_v3 = vld [vmem:[#allocation7 + $0xc] sm:$0xf0] }
 0x1de   :  { %2106 = vmatpush.bf16.msrb.mxu2 %v8260_v56  ;;  %2119 = vmatpush.bf16.msrb.mxu3 %v8264_v57  ;;  %v8443_v38 = vor.u32 %v10902_v20, %v8440_v55  ;;  %v8367_v20 = vor.u32 %v10887_v3, %v8366_v53 }
 0x1e1   :  { %2081 = vmatpush.bf16.msrb.mxu0 %v8236_v1  ;;  %2094 = vmatpush.bf16.msrb.mxu1 %v8240_v12  ;;  %v8415_v1 = vor.u32 %v10899_v61, %v8414_v59  ;;  %v8416_v12 = vld [vmem:[#allocation7 + $0x70] sm:$0xf0]  ;;  %v10888_v59 = vld [vmem:[#allocation7 + $0x14] sm:$0xf0]  ;;  %v10886_v61 = vld [vmem:[#allocation7 + $0xc] sm:$0xf] }
 0x1e2   :  { %2107 = vmatpush.bf16.msrb.mxu2 %v8244_v2  ;;  %2120 = vmatpush.bf16.msrb.mxu3 %v8248_v6  ;;  %v8422_v2 = vld [vmem:[#allocation7 + $0x68] sm:$0xf]  ;;  %v10900_v6 = vld [vmem:[#allocation7 + $0x74] sm:$0xf0]  ;;  %v8419_v7 = vor.u32 %v10897_v62, %v8416_v12  ;;  %v10947_v12 = vld [vmem:[#allocation9 + $0xec] sm:$0xf0] }
 0x1e3   :  { %v8423_v8 = vor.u32 %v10900_v6, %v8422_v2 }
 0x1e4   :  { %2082 = vmatmul.bf16.vlgmr.msrb.gmra.mxu0 %v12100_v39  ;;  %2095 = vmatmul.bf16.vlgmr.msrb.gmra.mxu1 %v12100_v39 }
 0x1e5   :  { %2108 = vmatmul.bf16.vlgmr.msrb.gmra.mxu2 %v12100_v39  ;;  %2121 = vmatmul.bf16.vlgmr.msrb.gmra.mxu3 %v12100_v39  ;;  %v8463_v39 = vor.u32 %v10911_v18, %v8462_v5  ;;  %v8403_v5 = vor.u32 %v10893_v47, %v8400_v16  ;;  %v8406_v18 = vld [vmem:[#allocation7 + $0x48] sm:$0xf]  ;;  %v10946_v47 = vld [vmem:[#allocation9 + $0xec] sm:$0xf]  ;;  %v8616_v16 = vld [vmem:[#allocation9 + $0xf8] sm:$0xf0] }
 0x1e6   :  { %2396 = vmatpush.bf16.msra.mxu0 %v8479_v10  ;;  %2409 = vmatpush.bf16.msra.mxu1 %v8483_v58  ;;  %v8424_v10 = vld [vmem:[#allocation7 + $0x78] sm:$0xf0]  ;;  %v8398_v58 = vld [vmem:[#allocation7 + $0x40] sm:$0xf]  ;;  %v8407_v22 = vor.u32 %v10896_v51, %v8406_v18  ;;  %v10943_v51 = vld [vmem:[#allocation9 + $0xcc] sm:$0xf0] }
 0x1e7   :  { %2422 = vmatpush.bf16.msra.mxu2 %v8487_v15  ;;  %2435 = vmatpush.bf16.msra.mxu3 %v8491_v19  ;;  %v8427_v37 = vor.u32 %v10898_v9, %v8424_v10  ;;  %v10895_v15 = vld [vmem:[#allocation7 + $0x4c] sm:$0xf0]  ;;  %v10945_v9 = vld [vmem:[#allocation9 + $0xe4] sm:$0xf]  ;;  %v8608_v10 = vld [vmem:[#allocation9 + $0xf0] sm:$0xf0] }
 0x1e8   :  { %v8399_v19 = vor.u32 %v10895_v15, %v8398_v58  ;;  %v8611_v15 = vor.u32 %v10945_v9, %v8608_v10  ;;  %v8590_v18 = vld [vmem:[#allocation9 + $0xc0] sm:$0xf] }
 0x1ea   :  { %2397 = vmatpush.bf16.msra.mxu0 %v8463_v39  ;;  %2410 = vmatpush.bf16.msra.mxu1 %v8467_v26  ;;  %v10894_v39 = vld [vmem:[#allocation7 + $0x4c] sm:$0xf] }
 0x1eb   :  { %2423 = vmatpush.bf16.msra.mxu2 %v8471_v13  ;;  %2436 = vmatpush.bf16.msra.mxu3 %v8475_v28  ;;  %v8411_v21 = vor.u32 %v10894_v39, %v8408_v23  ;;  %v8382_v28 = vld [vmem:[#allocation7 + $0x20] sm:$0xf]  ;;  %v10941_v39 = vld [vmem:[#allocation9 + $0xc4] sm:$0xf]  ;;  %v8591_v23 = vor.u32 %v10943_v51, %v8590_v18  ;;  %v10931_v51 = vld [vmem:[#allocation9 + $0x6c] sm:$0xf0] }
 0x1ec   :  { %v8383_v32 = vor.u32 %v10891_v25, %v8382_v28  ;;  %v10942_v28 = vld [vmem:[#allocation9 + $0xcc] sm:$0xf]  ;;  %v8600_v25 = vld [vmem:[#allocation9 + $0xd8] sm:$0xf0]  ;;  %v8542_v18 = vld [vmem:[#allocation9 + $0x60] sm:$0xf] }
 0x1ee   :  { %2398 = vmatpush.bf16.msra.mxu0 %v8447_v31  ;;  %2411 = vmatpush.bf16.msra.mxu1 %v8451_v35  ;;  %v10892_v35 = vld [vmem:[#allocation7 + $0x34] sm:$0xf0] }
 0x1ef   :  { %2424 = vmatpush.bf16.msra.mxu2 %v8455_v40  ;;  %2437 = vmatpush.bf16.msra.mxu3 %v8459_v44  ;;  %v8392_v44 = vld [vmem:[#allocation7 + $0x38] sm:$0xf0] }
 0x1f0   :  { %v8395_v49 = vor.u32 %v10890_v46, %v8392_v44  ;;  %v8582_v46 = vld [vmem:[#allocation9 + $0xa8] sm:$0xf] }
 0x1f2   :  { %2399 = vmatpush.bf16.msra.mxu0 %v8431_v50  ;;  %2412 = vmatpush.bf16.msra.mxu1 %v8435_v4  ;;  %v10885_v4 = vld [vmem:[#allocation7 + $0x4] sm:$0xf] }
 0x1f3   :  { %2425 = vmatpush.bf16.msra.mxu2 %v8439_v36  ;;  %2438 = vmatpush.bf16.msra.mxu3 %v8443_v38  ;;  %v8368_v36 = vld [vmem:[#allocation7 + $0x10] sm:$0xf0]  ;;  %v8374_v38 = vld [vmem:[#allocation7 + $0x8] sm:$0xf] }
 0x1f4   :  { %v8371_v55 = vor.u32 %v10885_v4, %v8368_v36  ;;  %v10938_v36 = vld [vmem:[#allocation9 + $0xac] sm:$0xf] }
 0x1f6   :  { %2400 = vmatpush.bf16.msra.mxu0 %v8415_v1  ;;  %2413 = vmatpush.bf16.msra.mxu1 %v8419_v7  ;;  %v8606_v1 = vld [vmem:[#allocation9 + $0xe0] sm:$0xf] }
 0x1f7   :  { %2426 = vmatpush.bf16.msra.mxu2 %v8423_v8  ;;  %2439 = vmatpush.bf16.msra.mxu3 %v8427_v37  ;;  %v8607_v8 = vor.u32 %v10947_v12, %v8606_v1  ;;  %v8614_v37 = vld [vmem:[#allocation9 + $0xe8] sm:$0xf] }
 0x1fa   :  { %2401 = vmatpush.bf16.msra.mxu0 %v8399_v19  ;;  %2414 = vmatpush.bf16.msra.mxu1 %v8403_v5  ;;  %v8619_v5 = vor.u32 %v10946_v47, %v8616_v16  ;;  %v8568_v47 = vld [vmem:[#allocation9 + $0x98] sm:$0xf0] }
 0x1fb   :  { %2427 = vmatpush.bf16.msra.mxu2 %v8407_v22  ;;  %2440 = vmatpush.bf16.msra.mxu3 %v8411_v21  ;;  %v10944_v21 = vld [vmem:[#allocation9 + $0xd4] sm:$0xf0] }
 0x1fe   :  { %2402 = vmatpush.bf16.msra.mxu0 %v8383_v32  ;;  %v8603_v32 = vor.u32 %v10942_v28, %v8600_v25  ;;  %v8543_v25 = vor.u32 %v10931_v51, %v8542_v18 }
 0x1ff   :  { %2441 = vmatpush.bf16.msra.mxu3 %v8395_v49 }
 0x202   :  { %2403 = vmatpush.bf16.msra.mxu0 %v8367_v20  ;;  %v8584_v20 = vld [vmem:[#allocation9 + $0xb8] sm:$0xf0] }
 0x206   :  { %2640 = vmatpush.bf16.msrb.mxu0 %v8607_v8  ;;  %v8566_v8 = vld [vmem:[#allocation9 + $0x88] sm:$0xf] }
 0x20a   :  { %2641 = vmatpush.bf16.msrb.mxu0 %v8591_v23 }
 0x240   :  { %v12114_v29 = vpop.f32.mrf.mxu0  ;;  %v12116_v30 = vpop.f32.mrf.mxu1 }
 0x241   :  { %v1521_v24 = vadd.f32 %v12114_v29, %v1343_v11  ;;  %v1534_v26 = vadd.f32 %v12116_v30, %v1344_v14  ;;  %v8387_v29 = vor.u32 %v10889_v42, %v8384_v33  ;;  %v8391_v30 = vor.u32 %v10892_v35, %v8390_v34  ;;  %v8574_v33 = vld [vmem:[#allocation9 + $0xa0] sm:$0xf]  ;;  %v10939_v34 = vld [vmem:[#allocation9 + $0xac] sm:$0xf0] }
 0x243   :  { %2415 = vmatpush.bf16.msra.mxu1 %v8387_v29  ;;  %2428 = vmatpush.bf16.msra.mxu2 %v8391_v30  ;;  %v10937_v29 = vld [vmem:[#allocation9 + $0xa4] sm:$0xf]  ;;  %v8576_v30 = vld [vmem:[#allocation9 + $0xb0] sm:$0xf0] }
 0x244   :  { %v8579_v3 = vor.u32 %v10937_v29, %v8576_v30  ;;  %v8552_v29 = vld [vmem:[#allocation9 + $0x78] sm:$0xf0] }
 0x247   :  { %v12123_v56 = vpop.f32.mrf.mxu2  ;;  %v12125_v57 = vpop.f32.mrf.mxu3  ;;  %2416 = vmatpush.bf16.msra.mxu1 %v8371_v55 }
 0x248   :  { %v1522_v63 = vpop.f32.mrf.mxu0  ;;  %v1535_v0 = vpop.f32.mrf.mxu1  ;;  %v1560_v62 = vadd.f32 %v12125_v57, %v1346_v48  ;;  %v10948_v57 = vld [vmem:[#allocation9 + $0xf4] sm:$0xf0]  ;;  %v1547_v35 = vadd.f32 %v12123_v56, %v1345_v45  ;;  %v8230_v56 = vld [vmem:[%s13521_s0 + $0x48] sm:$0xff] }
 0x249   :  { %v8375_v63 = vor.u32 %v10888_v59, %v8374_v38  ;;  %v8376_v0 = vld [vmem:[#allocation7 + $0x18] sm:$0xf0]  ;;  %v8615_v19 = vor.u32 %v10948_v57, %v8614_v37  ;;  %v10940_v45 = vld [vmem:[#allocation9 + $0xb4] sm:$0xf0] }
 0x24a   :  { %v8379_v7 = vor.u32 %v10886_v61, %v8376_v0  ;;  %v8583_v4 = vor.u32 %v10940_v45, %v8582_v46  ;;  %v8587_v61 = vor.u32 %v10938_v36, %v8584_v20  ;;  %v10936_v37 = vld [vmem:[#allocation9 + $0x94] sm:$0xf0]  ;;  %v8534_v36 = vld [vmem:[#allocation9 + $0x48] sm:$0xf] }
 0x24b   :  { %2429 = vmatpush.bf16.msra.mxu2 %v8375_v63  ;;  %2653 = vmatpush.bf16.msrb.mxu1 %v8611_v15  ;;  %v10935_v63 = vld [vmem:[#allocation9 + $0x8c] sm:$0xf0]  ;;  %v8567_v57 = vor.u32 %v10936_v37, %v8566_v8  ;;  %v10928_v20 = vld [vmem:[#allocation9 + $0x54] sm:$0xf0] }
 0x24c   :  { %2442 = vmatpush.bf16.msra.mxu3 %v8379_v7  ;;  %v8560_v7 = vld [vmem:[#allocation9 + $0x90] sm:$0xf0] }
 0x24f   :  { %v1548_v13 = vpop.f32.mrf.mxu2  ;;  %v1561_v17 = vpop.f32.mrf.mxu3  ;;  %2666 = vmatpush.bf16.msrb.mxu2 %v8615_v19 }
 0x250   :  { %v1764_v60 = vpop.f32.mrf.mxu0  ;;  %v1777_v31 = vpop.f32.mrf.mxu1  ;;  %2679 = vmatpush.bf16.msrb.mxu3 %v8619_v5  ;;  %v10922_v5 = vld [vmem:[#allocation9 + $0x2c] sm:$0xf] }
 0x251   :  { %v1807_v40 = vadd.f32 %v1764_v60, %v1521_v24  ;;  %v1808_v41 = vadd.f32 %v1777_v31, %v1534_v26  ;;  %v8592_v24 = vld [vmem:[#allocation9 + $0xd0] sm:$0xf0]  ;;  %v8598_v26 = vld [vmem:[#allocation9 + $0xc8] sm:$0xf] }
 0x252   :  { %v8595_v17 = vor.u32 %v10941_v39, %v8592_v24  ;;  %v8599_v31 = vor.u32 %v10944_v21, %v8598_v26  ;;  %v10929_v39 = vld [vmem:[#allocation9 + $0x64] sm:$0xf] }
 0x253   :  { %v8226_v50 = vmul.f32 -1.442695, %v1807_v40  ;;  %v8227_v52 = vmul.f32 -1.442695, %v1808_v41  ;;  %v8575_v41 = vor.u32 %v10939_v34, %v8574_v33 }
 0x254   :  { %2654 = vmatpush.bf16.msrb.mxu1 %v8595_v17  ;;  %2667 = vmatpush.bf16.msrb.mxu2 %v8599_v31  ;;  %v8544_v17 = vld [vmem:[#allocation9 + $0x70] sm:$0xf0]  ;;  %v10932_v31 = vld [vmem:[#allocation9 + $0x74] sm:$0xf0] }
 0x255   :  { %11514 = vpow2.f32 %v8226_v50  ;;  %2680 = vmatpush.bf16.msrb.mxu3 %v8603_v32  ;;  %2642 = vmatpush.bf16.msrb.mxu0 %v8575_v41  ;;  %v10930_v41 = vld [vmem:[#allocation9 + $0x6c] sm:$0xf] }
 0x256   :  { %11516 = vpow2.f32 %v8227_v52 }
 0x257   :  { %v1790_v2 = vpop.f32.mrf.mxu2  ;;  %v1803_v6 = vpop.f32.mrf.mxu3 }
 0x258   :  { %v1810_v11 = vadd.f32 %v1803_v6, %v1560_v62  ;;  %v1766_v14 = vpop.f32.mrf.mxu0  ;;  %v1779_v58 = vpop.f32.mrf.mxu1  ;;  %v1809_v44 = vadd.f32 %v1790_v2, %v1547_v35  ;;  %v8558_v62 = vld [vmem:[#allocation9 + $0x80] sm:$0xf]  ;;  %2655 = vmatpush.bf16.msrb.mxu1 %v8579_v3  ;;  %v10933_v6 = vld [vmem:[#allocation9 + $0x84] sm:$0xf]  ;;  %2668 = vmatpush.bf16.msrb.mxu2 %v8583_v4  ;;  %v8547_v35 = vor.u32 %v10929_v39, %v8544_v17  ;;  %v8528_v4 = vld [vmem:[#allocation9 + $0x50] sm:$0xf0] }
 0x259   :  { %v8559_v2 = vor.u32 %v10935_v63, %v8558_v62  ;;  %2681 = vmatpush.bf16.msrb.mxu3 %v8587_v61  ;;  %v8563_v10 = vor.u32 %v10933_v6, %v8560_v7  ;;  %v10926_v63 = vld [vmem:[#allocation9 + $0x4c] sm:$0xf]  ;;  %v8510_v6 = vld [vmem:[#allocation9 + $0x20] sm:$0xf]  ;;  %v10923_v7 = vld [vmem:[#allocation9 + $0x2c] sm:$0xf0] }
 0x25a   :  { %v8228_v22 = vmul.f32 -1.442695, %v1810_v11  ;;  %v10934_v11 = vld [vmem:[#allocation9 + $0x8c] sm:$0xf]  ;;  %v10924_v17 = vld [vmem:[#allocation9 + $0x34] sm:$0xf0] }
 0x25b   :  { %v11515_v13 = vpop.eup %11514  ;;  %2643 = vmatpush.bf16.msrb.mxu0 %v8559_v2  ;;  %v8571_v28 = vor.u32 %v10934_v11, %v8568_v47  ;;  %v8535_v2 = vor.u32 %v10928_v20, %v8534_v36  ;;  %v8511_v11 = vor.u32 %v10923_v7, %v8510_v6 }
 0x25c   :  { %v11517_v42 = vpop.eup %11516  ;;  %v12134_v60 = vadd.f32 1.0, %v11515_v13  ;;  %11518 = vpow2.f32 %v8228_v22  ;;  %v8232_v13 = vld [vmem:[%s13521_s0 + $0x58] sm:$0xff]  ;;  %2656 = vmatpush.bf16.msrb.mxu1 %v8563_v10  ;;  %2669 = vmatpush.bf16.msrb.mxu2 %v8567_v57 }
 0x25d   :  { %v12139_v40 = vadd.f32 1.0, %v11517_v42  ;;  %v8550_v42 = vld [vmem:[#allocation9 + $0x68] sm:$0xf]  ;;  %2682 = vmatpush.bf16.msrb.mxu3 %v8571_v28  ;;  %v8520_v28 = vld [vmem:[#allocation9 + $0x38] sm:$0xf0] }
 0x25e   :  { %11520 = vrcp.f32 %v12134_v60  ;;  %v1824_v48 = vand.u32 2147483647, %v12134_v60  ;;  %v1826_v53 = vand.u32 2147483648, %v12134_v60  ;;  %vm1820_vm8 = vweird.f32 %v12134_v60 }
 0x25f   :  { %11522 = vrcp.f32 %v12139_v40  ;;  %v1792_v49 = vpop.f32.mrf.mxu2  ;;  %v1805_v50 = vpop.f32.mrf.mxu3  ;;  %v1845_v52 = vand.u32 2147483648, %v12139_v40  ;;  %v1843_v55 = vand.u32 2147483647, %v12139_v40  ;;  %2644 = vmatpush.bf16.msrb.mxu0 %v8543_v25  ;;  %vm1839_vm10 = vweird.f32 %v12139_v40  ;;  %v8494_v25 = vld [vmem:[#allocation9] sm:$0xf] }
 0x260   :  { %11524 = vtanh.f32 %v1809_v44  ;;  %vm12161_vm4 = vcmp.eq.f32.partialorder %v1824_v48, 8.507059e+37  ;;  %v12170_v24 = vor.u32 1.1754944e-38, %v1826_v53  ;;  %v8526_v49 = vld [vmem:[#allocation9 + $0x40] sm:$0xf]  ;;  %v10927_v50 = vld [vmem:[#allocation9 + $0x4c] sm:$0xf0]  ;;  %2657 = vmatpush.bf16.msrb.mxu1 %v8547_v35  ;;  %v8555_v53 = vor.u32 %v10930_v41, %v8552_v29 }
 0x261   :  { %v2083_v38 = vpop.f32.mrf.mxu0  ;;  %v2096_v59 = vpop.f32.mrf.mxu1  ;;  %v12168_v23 = vor.u32 1.1754944e-38, %v1845_v52  ;;  %vm12172_vm5 = vcmp.eq.f32.partialorder %v1843_v55, 8.507059e+37  ;;  %v8551_v52 = vor.u32 %v10932_v31, %v8550_v42  ;;  %v8527_v3 = vor.u32 %v10927_v50, %v8526_v49  ;;  %v10919_v42 = vld [vmem:[#allocation9 + $0xc] sm:$0xf0]  ;;  %v10917_v31 = vld [vmem:[#allocation9 + $0x4] sm:$0xf] }
 0x262   :  { %v11519_v0 = vpop.eup %11518  ;;  %v2126_v1 = vadd.f32 %v8229_v54, %v2083_v38  ;;  %v2127_v12 = vadd.f32 %v8230_v56, %v2096_v59  ;;  %v10925_v54 = vld [vmem:[#allocation9 + $0x44] sm:$0xf]  ;;  %2683 = vmatpush.bf16.msrb.mxu3 %v8555_v53  ;;  %v8231_v35 = vld [vmem:[%s13521_s0 + $0x50] sm:$0xff]  ;;  %v8523_v41 = vor.u32 %v10922_v5, %v8520_v28  ;;  %v8495_v29 = vor.u32 %v10919_v42, %v8494_v25  ;;  %v8504_v50 = vld [vmem:[#allocation9 + $0x18] sm:$0xf0] }
 0x263   :  { %v12153_v9 = vadd.f32 1.0, %v11519_v0  ;;  %v8531_v62 = vor.u32 %v10925_v54, %v8528_v4  ;;  %v8536_v0 = vld [vmem:[#allocation9 + $0x58] sm:$0xf0]  ;;  %2670 = vmatpush.bf16.msrb.mxu2 %v8551_v52  ;;  %2645 = vmatpush.bf16.msrb.mxu0 %v8527_v3  ;;  %v8741_v25 = vld [vmem:[#allocation5 + $0xe0] sm:$0xf] }
 0x264   :  { %v12155_v14 = vpop.eup %11520  ;;  %v8361_v58 = vmul.f32 -1.442695, %v2126_v1  ;;  %v8362_v15 = vmul.f32 -1.442695, %v2127_v12  ;;  %v8539_v37 = vor.u32 %v10926_v63, %v8536_v0 }
 0x265   :  { %v12157_v16 = vpop.eup %11522  ;;  %v1816_v19 = vmul.f32 %v12155_v14, %v12134_v60  ;;  %11526 = vrcp.f32 %v12153_v9  ;;  %vm1821_vm6 = vweird.f32 %v12155_v14  ;;  %v10921_v60 = vld [vmem:[#allocation9 + $0x24] sm:$0xf]  ;;  %2658 = vmatpush.bf16.msrb.mxu1 %v8531_v62  ;;  %v1863_v36 = vand.u32 2147483647, %v12153_v9 }
 0x266   :  { %v1835_v22 = vmul.f32 %v12157_v16, %v12139_v40  ;;  %11528 = vpow2.f32 %v8361_v58  ;;  %vm1840_vm7 = vweird.f32 %v12157_v16  ;;  %v11525_v56 = vpop.eup %11524  ;;  %vm12193_vm9 = vmor %vm1820_vm8, %vm1821_vm6  ;;  %v8512_v58 = vld [vmem:[#allocation9 + $0x30] sm:$0xf0]  ;;  %2684 = vmatpush.bf16.msrb.mxu3 %v8539_v37  ;;  %vm1859_vm13 = vweird.f32 %v12153_v9 }
 0x267   :  { %v1817_v21 = vsub.f32 1.0, %v1816_v19  ;;  %11530 = vpow2.f32 %v8362_v15  ;;  %vm12203_vm11 = vmor %vm1839_vm10, %vm1840_vm7  ;;  %2671 = vmatpush.bf16.msrb.mxu2 %v8535_v2  ;;  %2646 = vmatpush.bf16.msrb.mxu0 %v8511_v11  ;;  %vm1864_vm1 = vcmp.eq.f32.partialorder %v1863_v36, 8.507059e+37 }
 0x268   :  { %v1836_v32 = vsub.f32 1.0, %v1835_v22  ;;  %v12180_v33 = vpop.f32.mrf.mxu2  ;;  %v2122_v34 = vpop.f32.mrf.mxu3 }
 0x269   :  { %v1818_v30 = vmul.f32 %v12155_v14, %v1817_v21  ;;  %v2129_v46 = vadd.f32 %v8232_v13, %v2122_v34  ;;  %v2085_v44 = vpop.f32.mrf.mxu0  ;;  %v2098_v48 = vpop.f32.mrf.mxu1  ;;  %v8515_v13 = vor.u32 %v10921_v60, %v8512_v58  ;;  %v8502_v34 = vld [vmem:[#allocation9 + $0x8] sm:$0xf]  ;;  %v2128_v53 = vadd.f32 %v8231_v35, %v12180_v33  ;;  %v10980_v35 = vld [vmem:[#allocation5 + $0xf4] sm:$0xf0] }
 0x26a   :  { %v1837_v45 = vmul.f32 %v12157_v16, %v1836_v32  ;;  %v8496_v32 = vld [vmem:[#allocation9 + $0x10] sm:$0xf0]  ;;  %v1865_v48 = vand.u32 2147483648, %v12153_v9  ;;  %2685 = vmatpush.bf16.msrb.mxu3 %v8523_v41  ;;  %v10978_v41 = vld [vmem:[#allocation5 + $0xec] sm:$0xf] }
 0x26b   :  { %v12186_v55 = vpop.eup %11526  ;;  %v1819_v38 = vadd.f32 %v12155_v14, %v1818_v30  ;;  %v8363_v61 = vmul.f32 -1.442695, %v2129_v46  ;;  %2659 = vmatpush.bf16.msrb.mxu1 %v8515_v13  ;;  %v10920_v30 = vld [vmem:[#allocation9 + $0x14] sm:$0xf0]  ;;  %v10918_v46 = vld [vmem:[#allocation9 + $0xc] sm:$0xf]  ;;  %2647 = vmatpush.bf16.msrb.mxu0 %v8495_v29  ;;  %v8499_v54 = vor.u32 %v10917_v31, %v8496_v32 }
 0x26c   :  { %v1838_v1 = vadd.f32 %v12157_v16, %v1837_v45  ;;  %v1855_v12 = vmul.f32 %v12186_v55, %v12153_v9  ;;  %v11529_v8 = vpop.eup %11528  ;;  %v8507_v45 = vor.u32 %v10918_v46, %v8504_v50  ;;  %vm1860_vm12 = vweird.f32 %v12186_v55  ;;  %v10977_v31 = vld [vmem:[#allocation5 + $0xe4] sm:$0xf]  ;;  %v8743_v32 = vld [vmem:[#allocation5 + $0xf0] sm:$0xf0]  ;;  %v8751_v29 = vld [vmem:[#allocation5 + $0xf8] sm:$0xf0] }
 0x26d   :  { %v1823_v40 = vsel %vm12193_vm9, %v12155_v14, %v1819_v38  ;;  %11532 = vpow2.f32 %v8363_v61  ;;  %v11531_v15 = vpop.eup %11530  ;;  %v12216_v18 = vadd.f32 1.0, %v11529_v8  ;;  %v8518_v14 = vld [vmem:[#allocation9 + $0x28] sm:$0xf]  ;;  %v1866_v38 = vor.u32 1.1754944e-38, %v1865_v48  ;;  %vm12244_vm14 = vmor %vm1859_vm13, %vm1860_vm12  ;;  %v8725_v48 = vld [vmem:[#allocation5 + $0xc0] sm:$0xf] }
 0x26e   :  { %v1828_v57 = vsel %vm12161_vm4, %v12170_v24, %v1823_v40  ;;  %v1842_v47 = vsel %vm12203_vm11, %v12157_v16, %v1838_v1  ;;  %v1856_v19 = vsub.f32 1.0, %v1855_v12  ;;  %v12221_v22 = vadd.f32 1.0, %v11531_v15  ;;  %2686 = vmatpush.bf16.msrb.mxu3 %v8507_v45  ;;  %v8727_v45 = vld [vmem:[#allocation5 + $0xd0] sm:$0xf0] }
 0x26f   :  { %v1847_v51 = vsel %vm12172_vm5, %v12168_v23, %v1842_v47  ;;  %v1870_v39 = vmul.f32 %v11525_v56, %v1828_v57  ;;  %11534 = vrcp.f32 %v12216_v18  ;;  %v8519_v26 = vor.u32 %v10924_v17, %v8518_v14  ;;  %2660 = vmatpush.bf16.msrb.mxu1 %v8499_v54 }
 0x270   :  { %v1869_v24 = vmul.f32 %v1847_v51, %v12058_v27  ;;  %v2111_v16 = vpop.f32.mrf.mxu2  ;;  %v2124_v21 = vpop.f32.mrf.mxu3  ;;  %11536 = vrcp.f32 %v12221_v22  ;;  %v1857_v44 = vmul.f32 %v12186_v55, %v1856_v19  ;;  %v8503_v56 = vor.u32 %v10920_v30, %v8502_v34  ;;  %v8749_v34 = vld [vmem:[#allocation5 + $0xe8] sm:$0xf] }
 0x271   :  { %2672 = vmatpush.bf16.msrb.mxu2 %v8519_v26  ;;  %v2164_v63 = vand.u32 2147483648, %v12221_v22  ;;  %v2145_v0 = vand.u32 2147483648, %v12216_v18  ;;  %v2143_v9 = vand.u32 2147483647, %v12216_v18  ;;  %v2162_v60 = vand.u32 2147483647, %v12221_v22 }
 0x272   :  { %v12226_v23 = vadd.f32 %v1870_v39, %v1869_v24  ;;  %v1858_v33 = vadd.f32 %v12186_v55, %v1857_v44  ;;  %vm2139_vm2 = vweird.f32 %v12216_v18  ;;  %vm2158_vm3 = vweird.f32 %v12221_v22 }
 0x273   :  { %v11533_v27 = vpop.eup %11532  ;;  %v2146_v37 = vor.u32 1.1754944e-38, %v2145_v0  ;;  %vm2144_vm6 = vcmp.eq.f32.partialorder %v2143_v9, 8.507059e+37  ;;  %vm2163_vm7 = vcmp.eq.f32.partialorder %v2162_v60, 8.507059e+37  ;;  %v8746_v44 = vor.u32 %v10977_v31, %v8743_v32  ;;  %v8717_v0 = vld [vmem:[#allocation5 + $0xa8] sm:$0xf] }
 0x274   :  { %v12233_v49 = vadd.f32 1.0, %v11533_v27  ;;  %11538 = vtanh.f32 %v12226_v23  ;;  %v1862_v2 = vsel %vm12244_vm14, %v12186_v55, %v1858_v33  ;;  %v2165_v55 = vor.u32 1.1754944e-38, %v2164_v63  ;;  %v8711_v63 = vld [vmem:[#allocation5 + $0xb0] sm:$0xf0]  ;;  %v8719_v9 = vld [vmem:[#allocation5 + $0xb8] sm:$0xf0] }
 0x275   :  { %v11535_v52 = vpop.eup %11534  ;;  %2673 = vmatpush.bf16.msrb.mxu2 %v8503_v56  ;;  %v1867_v40 = vsel %vm1864_vm1, %v1866_v38, %v1862_v2  ;;  %v8750_v50 = vor.u32 %v10980_v35, %v8749_v34  ;;  %v8754_v54 = vor.u32 %v10978_v41, %v8751_v29  ;;  %v10973_v56 = vld [vmem:[#allocation5 + $0xc4] sm:$0xf]  ;;  %v8709_v38 = vld [vmem:[#allocation5 + $0xa0] sm:$0xf]  ;;  %v10967_v60 = vld [vmem:[#allocation5 + $0x8c] sm:$0xf0] }
 0x276   :  { %11540 = vrcp.f32 %v12233_v49  ;;  %v11537_v3 = vpop.eup %11536  ;;  %v2135_v4 = vmul.f32 %v11535_v52, %v12216_v18  ;;  %vm2140_vm15 = vweird.f32 %v11535_v52  ;;  %v2184_v24 = vand.u32 2147483648, %v12233_v49  ;;  %v10957_v32 = vld [vmem:[#allocation5 + $0x44] sm:$0xf]  ;;  %v8663_v34 = vld [vmem:[#allocation5 + $0x50] sm:$0xf0] }
 0x277   :  { %v2154_v20 = vmul.f32 %v11537_v3, %v12221_v22  ;;  %11542 = vtanh.f32 %v2128_v53  ;;  %vm2159_vm0 = vweird.f32 %v11537_v3  ;;  %vm2141_vm4 = vmor %vm2139_vm2, %vm2140_vm15  ;;  %vm2178_vm9 = vweird.f32 %v12233_v49  ;;  %v10976_v53 = vld [vmem:[#allocation5 + $0xd4] sm:$0xf0]  ;;  %v10958_v41 = vld [vmem:[#allocation5 + $0x4c] sm:$0xf] }
 0x278   :  { %v2136_v59 = vsub.f32 1.0, %v2135_v4  ;;  %vm2160_vm5 = vmor %vm2158_vm3, %vm2159_vm0  ;;  %v2182_v16 = vand.u32 2147483647, %v12233_v49  ;;  %v2185_v28 = vor.u32 1.1754944e-38, %v2184_v24  ;;  %v8735_v4 = vld [vmem:[#allocation5 + $0xd8] sm:$0xf0] }
 0x279   :  { %v2155_v62 = vsub.f32 1.0, %v2154_v20  ;;  %v8730_v20 = vor.u32 %v10973_v56, %v8727_v45  ;;  %v10964_v24 = vld [vmem:[#allocation5 + $0x74] sm:$0xf0]  ;;  %v8671_v29 = vld [vmem:[#allocation5 + $0x58] sm:$0xf0] }
 0x27a   :  { %v11539_v1 = vpop.eup %11538  ;;  %v2137_v12 = vmul.f32 %v11535_v52, %v2136_v59  ;;  %vm2183_vm11 = vcmp.eq.f32.partialorder %v2182_v16, 8.507059e+37  ;;  %v10971_v59 = vld [vmem:[#allocation5 + $0xac] sm:$0xf0]  ;;  %v10962_v16 = vld [vmem:[#allocation5 + $0x6c] sm:$0xf] }
 0x27b   :  { %v2156_v7 = vmul.f32 %v11537_v3, %v2155_v62  ;;  %v1873_v58 = vmul.f32 %v11539_v1, %v1867_v40  ;;  %v10969_v62 = vld [vmem:[#allocation5 + $0xa4] sm:$0xf]  ;;  %v10972_v1 = vld [vmem:[#allocation5 + $0xb4] sm:$0xf0]  ;;  %v8710_v2 = vor.u32 %v10971_v59, %v8709_v38  ;;  %v8647_v45 = vld [vmem:[#allocation5 + $0x30] sm:$0xf0] }
 0x27c   :  { %v11541_v6 = vpop.eup %11540  ;;  %v2138_v8 = vadd.f32 %v11535_v52, %v2137_v12  ;;  %v10970_v12 = vld [vmem:[#allocation5 + $0xac] sm:$0xf]  ;;  %v10965_v40 = vld [vmem:[#allocation5 + $0x84] sm:$0xf]  ;;  %v10960_v35 = vld [vmem:[#allocation5 + $0x54] sm:$0xf0] }
 0x27d   :  { %v2174_v10 = vmul.f32 %v11541_v6, %v12233_v49  ;;  %v2157_v11 = vadd.f32 %v11537_v3, %v2156_v7  ;;  %v11543_v47 = vpop.eup %11542  ;;  %v12258_v51 = vpack.c.bf16 %v1873_v58, %v1873_v58  ;;  %vm2179_vm8 = vweird.f32 %v11541_v6  ;;  %v10975_v49 = vld [vmem:[#allocation5 + $0xcc] sm:$0xf0]  ;;  %v8693_v7 = vld [vmem:[#allocation5 + $0x80] sm:$0xf]  ;;  %v10968_v58 = vld [vmem:[#allocation5 + $0x94] sm:$0xf0] }
 0x27e   :  { %v2142_v15 = vsel %vm2141_vm4, %v11535_v52, %v2138_v8  ;;  %vm2180_vm10 = vmor %vm2178_vm9, %vm2179_vm8  ;;  %v8733_v52 = vld [vmem:[#allocation5 + $0xc8] sm:$0xf]  ;;  %v8726_v36 = vor.u32 %v10975_v49, %v8725_v48  ;;  %v8718_v8 = vor.u32 %v10972_v1, %v8717_v0  ;;  %v8645_v48 = vld [vmem:[#allocation5 + $0x20] sm:$0xf] }
 0x27f   :  { %v2175_v57 = vsub.f32 1.0, %v2174_v10  ;;  %v2147_v19 = vsel %vm2144_vm6, %v2146_v37, %v2142_v15  ;;  %v2161_v14 = vsel %vm2160_vm5, %v11537_v3, %v2157_v11  ;;  %1876 = vst [vmem:[#allocation4 + $0x4] sm:$0xf] %v12258_v51  ;;  %v10974_v3 = vld [vmem:[#allocation5 + $0xcc] sm:$0xf]  ;;  %v8734_v33 = vor.u32 %v10976_v53, %v8733_v52 }
 0x280   :  { %v2166_v18 = vsel %vm2163_vm7, %v2165_v55, %v2161_v14  ;;  %v2189_v39 = vmul.f32 %v11543_v47, %v2147_v19  ;;  %v8738_v61 = vor.u32 %v10974_v3, %v8735_v4  ;;  %v8722_v10 = vor.u32 %v10970_v12, %v8719_v9  ;;  %v8695_v37 = vld [vmem:[#allocation5 + $0x90] sm:$0xf0]  ;;  %v8701_v11 = vld [vmem:[#allocation5 + $0x88] sm:$0xf]  ;;  %v10966_v55 = vld [vmem:[#allocation5 + $0x8c] sm:$0xf] }
 0x281   :  { %v2176_v13 = vmul.f32 %v11541_v6, %v2175_v57  ;;  %v2188_v22 = vmul.f32 %v2166_v18, %v12094_v43  ;;  %v10979_v43 = vld [vmem:[#allocation5 + $0xec] sm:$0xf0]  ;;  %v8703_v15 = vld [vmem:[#allocation5 + $0x98] sm:$0xf0]  ;;  %v8694_v57 = vor.u32 %v10967_v60, %v8693_v7  ;;  %v8698_v47 = vor.u32 %v10965_v40, %v8695_v37  ;;  %v8677_v19 = vld [vmem:[#allocation5 + $0x60] sm:$0xf] }
 0x282   :  { %v8742_v46 = vor.u32 %v10979_v43, %v8741_v25  ;;  %v10963_v14 = vld [vmem:[#allocation5 + $0x6c] sm:$0xf0]  ;;  %v8702_v18 = vor.u32 %v10968_v58, %v8701_v11  ;;  %v8661_v43 = vld [vmem:[#allocation5 + $0x40] sm:$0xf]  ;;  %v10953_v56 = vld [vmem:[#allocation5 + $0x24] sm:$0xf] }
 0x283   :  { %v12262_v17 = vadd.f32 %v2189_v39, %v2188_v22  ;;  %v2177_v5 = vadd.f32 %v11541_v6, %v2176_v13  ;;  %v8706_v39 = vor.u32 %v10966_v55, %v8703_v15  ;;  %v10961_v13 = vld [vmem:[#allocation5 + $0x64] sm:$0xf]  ;;  %v8679_v22 = vld [vmem:[#allocation5 + $0x70] sm:$0xf0]  ;;  %v10955_v49 = vld [vmem:[#allocation5 + $0x2c] sm:$0xf0] }
 0x284   :  { %v8682_v25 = vor.u32 %v10961_v13, %v8679_v22  ;;  %v8653_v52 = vld [vmem:[#allocation5 + $0x28] sm:$0xf]  ;;  %v10956_v53 = vld [vmem:[#allocation5 + $0x34] sm:$0xf0]  ;;  %v10954_v3 = vld [vmem:[#allocation5 + $0x2c] sm:$0xf] }
 0x285   :  { %11544 = vtanh.f32 %v12262_v17  ;;  %v2181_v21 = vsel %vm2180_vm10, %v11541_v6, %v2177_v5  ;;  %v8714_v6 = vor.u32 %v10969_v62, %v8711_v63  ;;  %v8685_v5 = vld [vmem:[#allocation5 + $0x68] sm:$0xf]  ;;  %v8655_v4 = vld [vmem:[#allocation5 + $0x38] sm:$0xf0]  ;;  %v10951_v38 = vld [vmem:[#allocation5 + $0xc] sm:$0xf0]  ;;  %v8654_v59 = vor.u32 %v10956_v53, %v8653_v52 }
 0x286   :  { %v2186_v26 = vsel %vm2183_vm11, %v2185_v28, %v2181_v21  ;;  %v8687_v21 = vld [vmem:[#allocation5 + $0x78] sm:$0xf0]  ;;  %v8678_v28 = vor.u32 %v10963_v14, %v8677_v19  ;;  %v8631_v62 = vld [vmem:[#allocation5 + $0x10] sm:$0xf0]  ;;  %v8637_v63 = vld [vmem:[#allocation5 + $0x8] sm:$0xf] }
 0x287   :  { %v8690_v31 = vor.u32 %v10962_v16, %v8687_v21  ;;  %v10952_v0 = vld [vmem:[#allocation5 + $0x14] sm:$0xf0]  ;;  %v10950_v1 = vld [vmem:[#allocation5 + $0xc] sm:$0xf]  ;;  %v8639_v12 = vld [vmem:[#allocation5 + $0x18] sm:$0xf0] }
 0x288   :  { %v8642_v7 = vor.u32 %v10950_v1, %v8639_v12  ;;  %v11011_v40 = vld [vmem:[#allocation7 + $0xec] sm:$0xf0]  ;;  %v11009_v37 = vld [vmem:[#allocation7 + $0xe4] sm:$0xf]  ;;  %v8874_v58 = vld [vmem:[#allocation7 + $0xf0] sm:$0xf0] }
 0x289   :  { %v8880_v55 = vld [vmem:[#allocation7 + $0xe8] sm:$0xf]  ;;  %v11012_v15 = vld [vmem:[#allocation7 + $0xf4] sm:$0xf0]  ;;  %v11010_v19 = vld [vmem:[#allocation7 + $0xec] sm:$0xf] }
 0x28a   :  { %v8882_v14 = vld [vmem:[#allocation7 + $0xf8] sm:$0xf0]  ;;  %v8856_v22 = vld [vmem:[#allocation7 + $0xc0] sm:$0xf]  ;;  %v11002_v52 = vld [vmem:[#allocation7 + $0xac] sm:$0xf] }
 0x28b   :  { %v11545_v42 = vpop.eup %11544  ;;  %v8850_v53 = vld [vmem:[#allocation7 + $0xb8] sm:$0xf0]  ;;  %v8832_v1 = vld [vmem:[#allocation7 + $0x88] sm:$0xf]  ;;  %v11000_v12 = vld [vmem:[#allocation7 + $0x94] sm:$0xf0] }
 0x28c   :  { %v2192_v27 = vmul.f32 %v11545_v42, %v2186_v26  ;;  %v10959_v42 = vld [vmem:[#allocation5 + $0x4c] sm:$0xf0]  ;;  %v8686_v26 = vor.u32 %v10964_v24, %v8685_v5  ;;  %v11005_v24 = vld [vmem:[#allocation7 + $0xc4] sm:$0xf] }
 0x28d   :  { %v11007_v5 = vld [vmem:[#allocation7 + $0xcc] sm:$0xf0] }
 0x28e   :  { %v12268_v30 = vpack.c.bf16 %v2192_v27, %v2192_v27  ;;  %v8669_v27 = vld [vmem:[#allocation5 + $0x48] sm:$0xf] }
 0x290   :  { %2404 = vmatmul.bf16.vlgmr.msra.gmra.mxu0 %v12268_v30  ;;  %2417 = vmatmul.bf16.vlgmr.msra.gmra.mxu1 %v12268_v30 }
 0x291   :  { %2430 = vmatmul.bf16.vlgmr.msra.gmra.mxu2 %v12268_v30  ;;  %2443 = vmatmul.bf16.vlgmr.msra.gmra.mxu3 %v12268_v30 }
 0x292   :  { %2959 = vmatpush.bf16.msra.mxu0 %v8742_v46  ;;  %2972 = vmatpush.bf16.msra.mxu1 %v8746_v44  ;;  %v8662_v46 = vor.u32 %v10959_v42, %v8661_v43  ;;  %v8666_v44 = vor.u32 %v10957_v32, %v8663_v34  ;;  %v8864_v43 = vld [vmem:[#allocation7 + $0xc8] sm:$0xf]  ;;  %v11008_v42 = vld [vmem:[#allocation7 + $0xd4] sm:$0xf0]  ;;  %v11006_v32 = vld [vmem:[#allocation7 + $0xcc] sm:$0xf] }
 0x293   :  { %2985 = vmatpush.bf16.msra.mxu2 %v8750_v50  ;;  %2998 = vmatpush.bf16.msra.mxu3 %v8754_v54  ;;  %v8670_v50 = vor.u32 %v10960_v35, %v8669_v27  ;;  %v8674_v54 = vor.u32 %v10958_v41, %v8671_v29  ;;  %v8866_v34 = vld [vmem:[#allocation7 + $0xd8] sm:$0xf0]  ;;  %v8840_v29 = vld [vmem:[#allocation7 + $0xa0] sm:$0xf] }
 0x294   :  { %v8869_v41 = vor.u32 %v11006_v32, %v8866_v34  ;;  %v10991_v32 = vld [vmem:[#allocation7 + $0x4c] sm:$0xf0]  ;;  %v10989_v34 = vld [vmem:[#allocation7 + $0x44] sm:$0xf] }
 0x296   :  { %2960 = vmatpush.bf16.msra.mxu0 %v8726_v36  ;;  %2973 = vmatpush.bf16.msra.mxu1 %v8730_v20  ;;  %v8646_v36 = vor.u32 %v10955_v49, %v8645_v48  ;;  %v8629_v20 = vld [vmem:[#allocation5] sm:$0xf]  ;;  %v8842_v49 = vld [vmem:[#allocation7 + $0xb0] sm:$0xf0] }
 0x297   :  { %2986 = vmatpush.bf16.msra.mxu2 %v8734_v33  ;;  %2999 = vmatpush.bf16.msra.mxu3 %v8738_v61  ;;  %v8658_v33 = vor.u32 %v10954_v3, %v8655_v4  ;;  %v10949_v61 = vld [vmem:[#allocation5 + $0x4] sm:$0xf]  ;;  %v8630_v9 = vor.u32 %v10951_v38, %v8629_v20  ;;  %v8853_v3 = vor.u32 %v11002_v52, %v8850_v53  ;;  %v8824_v38 = vld [vmem:[#allocation7 + $0x80] sm:$0xf] }
 0x298   :  { %v10985_v52 = vld [vmem:[#allocation7 + $0x24] sm:$0xf] }
 0x29a   :  { %2961 = vmatpush.bf16.msra.mxu0 %v8710_v2  ;;  %2974 = vmatpush.bf16.msra.mxu1 %v8714_v6  ;;  %v8634_v2 = vor.u32 %v10949_v61, %v8631_v62  ;;  %v8638_v6 = vor.u32 %v10952_v0, %v8637_v63  ;;  %v8826_v0 = vld [vmem:[#allocation7 + $0x90] sm:$0xf0] }
 0x29b   :  { %2987 = vmatpush.bf16.msra.mxu2 %v8718_v8  ;;  %3000 = vmatpush.bf16.msra.mxu3 %v8722_v10  ;;  %v8872_v10 = vld [vmem:[#allocation7 + $0xe0] sm:$0xf] }
 0x29c   :  { %v8873_v11 = vor.u32 %v11011_v40, %v8872_v10  ;;  %v8834_v10 = vld [vmem:[#allocation7 + $0x98] sm:$0xf0] }
 0x29e   :  { %2962 = vmatpush.bf16.msra.mxu0 %v8694_v57  ;;  %2975 = vmatpush.bf16.msra.mxu1 %v8698_v47  ;;  %v8877_v57 = vor.u32 %v11009_v37, %v8874_v58  ;;  %v8881_v47 = vor.u32 %v11012_v15, %v8880_v55  ;;  %v8808_v58 = vld [vmem:[#allocation7 + $0x60] sm:$0xf]  ;;  %v10995_v55 = vld [vmem:[#allocation7 + $0x6c] sm:$0xf0]  ;;  %v10993_v15 = vld [vmem:[#allocation7 + $0x64] sm:$0xf] }
 0x29f   :  { %2988 = vmatpush.bf16.msra.mxu2 %v8702_v18  ;;  %3001 = vmatpush.bf16.msra.mxu3 %v8706_v39  ;;  %v12285_v18 = vld [vmem:[%s13527_s6] sm:$0xf] }
 0x2a0   :  { %2648 = vmatmul.bf16.vlgmr.msrb.gmra.mxu0 %v12258_v51  ;;  %2661 = vmatmul.bf16.vlgmr.msrb.gmra.mxu1 %v12258_v51  ;;  %v2228_v27 = vperm.slane %v12285_v18, 0  ;;  %v2229_v35 = vperm.slane %v12285_v18, 1 }
 0x2a1   :  { %2674 = vmatmul.bf16.vlgmr.msrb.gmra.mxu2 %v12258_v51  ;;  %2687 = vmatmul.bf16.vlgmr.msrb.gmra.mxu3 %v12258_v51  ;;  %v8650_v51 = vor.u32 %v10953_v56, %v8647_v45 }
 0x2a2   :  { %2963 = vmatpush.bf16.msra.mxu0 %v8678_v28  ;;  %2976 = vmatpush.bf16.msra.mxu1 %v8682_v25  ;;  %v8857_v28 = vor.u32 %v11007_v5, %v8856_v22  ;;  %v8858_v25 = vld [vmem:[#allocation7 + $0xd0] sm:$0xf0]  ;;  %v10994_v22 = vld [vmem:[#allocation7 + $0x6c] sm:$0xf] }
 0x2a3   :  { %2989 = vmatpush.bf16.msra.mxu2 %v8686_v26  ;;  %3002 = vmatpush.bf16.msra.mxu3 %v8690_v31  ;;  %v8861_v26 = vor.u32 %v11005_v24, %v8858_v25  ;;  %v8865_v31 = vor.u32 %v11008_v42, %v8864_v43  ;;  %v8792_v43 = vld [vmem:[#allocation7 + $0x40] sm:$0xf] }
 0x2a6   :  { %2964 = vmatpush.bf16.msra.mxu0 %v8662_v46  ;;  %2977 = vmatpush.bf16.msra.mxu1 %v8666_v44  ;;  %v11003_v46 = vld [vmem:[#allocation7 + $0xac] sm:$0xf0]  ;;  %v11001_v44 = vld [vmem:[#allocation7 + $0xa4] sm:$0xf] }
 0x2a7   :  { %2990 = vmatpush.bf16.msra.mxu2 %v8670_v50  ;;  %3003 = vmatpush.bf16.msra.mxu3 %v8674_v54  ;;  %v8841_v48 = vor.u32 %v11003_v46, %v8840_v29  ;;  %v8848_v50 = vld [vmem:[#allocation7 + $0xa8] sm:$0xf]  ;;  %v11004_v54 = vld [vmem:[#allocation7 + $0xb4] sm:$0xf0]  ;;  %v8845_v56 = vor.u32 %v11001_v44, %v8842_v49  ;;  %v10990_v46 = vld [vmem:[#allocation7 + $0x4c] sm:$0xf] }
 0x2a8   :  { %v8849_v45 = vor.u32 %v11004_v54, %v8848_v50  ;;  %v10992_v29 = vld [vmem:[#allocation7 + $0x54] sm:$0xf0]  ;;  %v8802_v49 = vld [vmem:[#allocation7 + $0x58] sm:$0xf0] }
 0x2a9   :  { %v8805_v54 = vor.u32 %v10990_v46, %v8802_v49  ;;  %v11044_v46 = vld [vmem:[#allocation9 + $0xf4] sm:$0xf0] }
 0x2aa   :  { %2965 = vmatpush.bf16.msra.mxu0 %v8646_v36  ;;  %2978 = vmatpush.bf16.msra.mxu1 %v8650_v51 }
 0x2ab   :  { %2991 = vmatpush.bf16.msra.mxu2 %v8654_v59  ;;  %3004 = vmatpush.bf16.msra.mxu3 %v8658_v33  ;;  %v10999_v59 = vld [vmem:[#allocation7 + $0x8c] sm:$0xf0]  ;;  %v10997_v33 = vld [vmem:[#allocation7 + $0x84] sm:$0xf] }
 0x2ac   :  { %v8825_v63 = vor.u32 %v10999_v59, %v8824_v38  ;;  %v10988_v59 = vld [vmem:[#allocation7 + $0x34] sm:$0xf0] }
 0x2ae   :  { %2966 = vmatpush.bf16.msra.mxu0 %v8630_v9  ;;  %2979 = vmatpush.bf16.msra.mxu1 %v8634_v2 }
 0x2af   :  { %2992 = vmatpush.bf16.msra.mxu2 %v8638_v6  ;;  %3005 = vmatpush.bf16.msra.mxu3 %v8642_v7  ;;  %v8829_v6 = vor.u32 %v10997_v33, %v8826_v0  ;;  %v8833_v7 = vor.u32 %v11000_v12, %v8832_v1  ;;  %v10986_v33 = vld [vmem:[#allocation7 + $0x2c] sm:$0xf]  ;;  %v8623_v12 = vld [vmem:[%s13521_s0 + $0x60] sm:$0xff] }
 0x2b1   :  { %2967 = vmatmul.bf16.vlgmr.msra.gmra.mxu0 %v12268_v30  ;;  %2980 = vmatmul.bf16.vlgmr.msra.gmra.mxu1 %v12268_v30 }
 0x2b2   :  { %2993 = vmatmul.bf16.vlgmr.msra.gmra.mxu2 %v12268_v30  ;;  %3006 = vmatmul.bf16.vlgmr.msra.gmra.mxu3 %v12268_v30  ;;  %v8885_v30 = vor.u32 %v11010_v19, %v8882_v14  ;;  %v8816_v14 = vld [vmem:[#allocation7 + $0x68] sm:$0xf] }
 0x2b3   :  { %3281 = vmatpush.bf16.msrb.mxu0 %v8873_v11  ;;  %3294 = vmatpush.bf16.msrb.mxu1 %v8877_v57  ;;  %v8810_v57 = vld [vmem:[#allocation7 + $0x70] sm:$0xf0] }
 0x2b4   :  { %3307 = vmatpush.bf16.msrb.mxu2 %v8881_v47  ;;  %3320 = vmatpush.bf16.msrb.mxu3 %v8885_v30  ;;  %v8809_v47 = vor.u32 %v10995_v55, %v8808_v58  ;;  %v8813_v19 = vor.u32 %v10993_v15, %v8810_v57  ;;  %v10996_v30 = vld [vmem:[#allocation7 + $0x74] sm:$0xf0]  ;;  %v8762_v55 = vld [vmem:[#allocation7 + $0x10] sm:$0xf0]  ;;  %v8768_v15 = vld [vmem:[#allocation7 + $0x8] sm:$0xf] }
 0x2b5   :  { %v8817_v24 = vor.u32 %v10996_v30, %v8816_v14  ;;  %v10984_v30 = vld [vmem:[#allocation7 + $0x14] sm:$0xf0] }
 0x2b7   :  { %3282 = vmatpush.bf16.msrb.mxu0 %v8857_v28  ;;  %3295 = vmatpush.bf16.msrb.mxu1 %v8861_v26 }
 0x2b8   :  { %3308 = vmatpush.bf16.msrb.mxu2 %v8865_v31  ;;  %3321 = vmatpush.bf16.msrb.mxu3 %v8869_v41  ;;  %v8800_v41 = vld [vmem:[#allocation7 + $0x48] sm:$0xf] }
 0x2bb   :  { %3283 = vmatpush.bf16.msrb.mxu0 %v8841_v48  ;;  %3296 = vmatpush.bf16.msrb.mxu1 %v8845_v56  ;;  %v8801_v48 = vor.u32 %v10992_v29, %v8800_v41  ;;  %v8776_v56 = vld [vmem:[#allocation7 + $0x20] sm:$0xf]  ;;  %v9002_v41 = vld [vmem:[#allocation9 + $0xf0] sm:$0xf0]  ;;  %v9008_v29 = vld [vmem:[#allocation9 + $0xe8] sm:$0xf] }
 0x2bc   :  { %3309 = vmatpush.bf16.msrb.mxu2 %v8849_v45  ;;  %3322 = vmatpush.bf16.msrb.mxu3 %v8853_v3  ;;  %v10987_v45 = vld [vmem:[#allocation7 + $0x2c] sm:$0xf0] }
 0x2bf   :  { %3284 = vmatpush.bf16.msrb.mxu0 %v8825_v63  ;;  %3297 = vmatpush.bf16.msrb.mxu1 %v8829_v6 }
 0x2c0   :  { %3310 = vmatpush.bf16.msrb.mxu2 %v8833_v7 }
 0x2c3   :  { %3285 = vmatpush.bf16.msrb.mxu0 %v8809_v47  ;;  %3298 = vmatpush.bf16.msrb.mxu1 %v8813_v19 }
 0x2c4   :  { %3311 = vmatpush.bf16.msrb.mxu2 %v8817_v24 }
 0x2c8   :  { %3312 = vmatpush.bf16.msrb.mxu2 %v8801_v48 }
 0x30d   :  { %v2405_v60 = vpop.f32.mrf.mxu0  ;;  %v2418_v8 = vpop.f32.mrf.mxu1 }
 0x30e   :  { %v2406_v4 = vadd.f32 %v2405_v60, %v2228_v27  ;;  %v2419_v36 = vadd.f32 %v2418_v8, %v2229_v35  ;;  %v10998_v60 = vld [vmem:[#allocation7 + $0x8c] sm:$0xf]  ;;  %v2231_v8 = vperm.slane %v12285_v18, 3  ;;  %v8794_v27 = vld [vmem:[#allocation7 + $0x50] sm:$0xf0]  ;;  %v8793_v35 = vor.u32 %v10991_v32, %v8792_v43 }
 0x30f   :  { %v8837_v11 = vor.u32 %v10998_v60, %v8834_v10  ;;  %v10981_v10 = vld [vmem:[#allocation7 + $0x4] sm:$0xf]  ;;  %v9000_v43 = vld [vmem:[#allocation9 + $0xe0] sm:$0xf] }
 0x310   :  { %3286 = vmatpush.bf16.msrb.mxu0 %v8793_v35  ;;  %v8765_v14 = vor.u32 %v10981_v10, %v8762_v55  ;;  %v8994_v10 = vld [vmem:[#allocation9 + $0xd8] sm:$0xf0]  ;;  %v11026_v55 = vld [vmem:[#allocation9 + $0x6c] sm:$0xf] }
 0x311   :  { %3323 = vmatpush.bf16.msrb.mxu3 %v8837_v11 }
 0x314   :  { %v12287_v39 = vpop.f32.mrf.mxu2  ;;  %v12289_v13 = vpop.f32.mrf.mxu3 }
 0x315   :  { %v2407_v16 = vpop.f32.mrf.mxu0  ;;  %v2420_v21 = vpop.f32.mrf.mxu1  ;;  %v2445_v5 = vadd.f32 %v12289_v13, %v2231_v8  ;;  %v8797_v13 = vor.u32 %v10989_v34, %v8794_v27  ;;  %v10983_v8 = vld [vmem:[#allocation7 + $0xc] sm:$0xf0]  ;;  %v11041_v27 = vld [vmem:[#allocation9 + $0xe4] sm:$0xf] }
 0x316   :  { %v8818_v16 = vld [vmem:[#allocation7 + $0x78] sm:$0xf0] }
 0x317   :  { %v8821_v25 = vor.u32 %v10994_v22, %v8818_v16  ;;  %3299 = vmatpush.bf16.msrb.mxu1 %v8797_v13  ;;  %v10982_v22 = vld [vmem:[#allocation7 + $0xc] sm:$0xf] }
 0x319   :  { %3324 = vmatpush.bf16.msrb.mxu3 %v8821_v25 }
 0x31c   :  { %v2433_v51 = vpop.f32.mrf.mxu2  ;;  %v2446_v20 = vpop.f32.mrf.mxu3 }
 0x31d   :  { %v2649_v61 = vpop.f32.mrf.mxu0  ;;  %v2662_v62 = vpop.f32.mrf.mxu1  ;;  %v8784_v51 = vld [vmem:[#allocation7 + $0x28] sm:$0xf]  ;;  %3325 = vmatpush.bf16.msrb.mxu3 %v8805_v54  ;;  %v11042_v54 = vld [vmem:[#allocation9 + $0xec] sm:$0xf] }
 0x31e   :  { %v2692_v9 = vadd.f32 %v2649_v61, %v2406_v4  ;;  %v2693_v2 = vadd.f32 %v2662_v62, %v2419_v36  ;;  %v8777_v4 = vor.u32 %v10987_v45, %v8776_v56  ;;  %v8778_v36 = vld [vmem:[#allocation7 + $0x30] sm:$0xf0]  ;;  %v2230_v61 = vperm.slane %v12285_v18, 2  ;;  %v8786_v62 = vld [vmem:[#allocation7 + $0x38] sm:$0xf0] }
 0x31f   :  { %v8781_v38 = vor.u32 %v10985_v52, %v8778_v36  ;;  %v8760_v18 = vld [vmem:[#allocation7] sm:$0xf]  ;;  %v8785_v7 = vor.u32 %v10988_v59, %v8784_v51  ;;  %v8789_v60 = vor.u32 %v10986_v33, %v8786_v62  ;;  %v9005_v45 = vor.u32 %v11041_v27, %v9002_v41  ;;  %v11039_v33 = vld [vmem:[#allocation9 + $0xcc] sm:$0xf0] }
 0x320   :  { %v8620_v40 = vmul.f32 -1.442695, %v2692_v9  ;;  %v8621_v37 = vmul.f32 -1.442695, %v2693_v2  ;;  %v8624_v9 = vld [vmem:[%s13521_s0 + $0x68] sm:$0xff]  ;;  %3287 = vmatpush.bf16.msrb.mxu0 %v8777_v4  ;;  %v8761_v58 = vor.u32 %v10983_v8, %v8760_v18  ;;  %v2432_v24 = vadd.f32 %v12287_v39, %v2230_v61 }
 0x321   :  { %3300 = vmatpush.bf16.msrb.mxu1 %v8781_v38  ;;  %3313 = vmatpush.bf16.msrb.mxu2 %v8785_v7  ;;  %v9009_v52 = vor.u32 %v11044_v46, %v9008_v29  ;;  %v8984_v4 = vld [vmem:[#allocation9 + $0xc0] sm:$0xf]  ;;  %v11037_v61 = vld [vmem:[#allocation9 + $0xc4] sm:$0xf]  ;;  %v11040_v18 = vld [vmem:[#allocation9 + $0xd4] sm:$0xf0] }
 0x322   :  { %11546 = vpow2.f32 %v8620_v40  ;;  %3326 = vmatpush.bf16.msrb.mxu3 %v8789_v60  ;;  %v11038_v8 = vld [vmem:[#allocation9 + $0xcc] sm:$0xf] }
 0x323   :  { %11548 = vpow2.f32 %v8621_v37 }
 0x324   :  { %v12295_v21 = vpop.f32.mrf.mxu2  ;;  %v2688_v28 = vpop.f32.mrf.mxu3  ;;  %3288 = vmatpush.bf16.msrb.mxu0 %v8761_v58 }
 0x325   :  { %v2695_v42 = vadd.f32 %v2688_v28, %v2445_v5  ;;  %v2651_v26 = vpop.f32.mrf.mxu0  ;;  %v2664_v31 = vpop.f32.mrf.mxu1  ;;  %v8770_v5 = vld [vmem:[#allocation7 + $0x18] sm:$0xf0]  ;;  %v8769_v28 = vor.u32 %v10984_v30, %v8768_v15  ;;  %3301 = vmatpush.bf16.msrb.mxu1 %v8765_v14  ;;  %v2694_v39 = vadd.f32 %v12295_v21, %v2432_v24  ;;  %v8626_v21 = vld [vmem:[%s13521_s0 + $0x78] sm:$0xff]  ;;  %v11036_v24 = vld [vmem:[#allocation9 + $0xb4] sm:$0xf0] }
 0x326   :  { %v8773_v25 = vor.u32 %v10982_v22, %v8770_v5  ;;  %v8976_v5 = vld [vmem:[#allocation9 + $0xa8] sm:$0xf] }
 0x327   :  { %v8622_v44 = vmul.f32 -1.442695, %v2695_v42  ;;  %v11043_v42 = vld [vmem:[#allocation9 + $0xec] sm:$0xf0]  ;;  %3314 = vmatpush.bf16.msrb.mxu2 %v8769_v28 }
 0x328   :  { %v11547_v50 = vpop.eup %11546  ;;  %v9001_v34 = vor.u32 %v11043_v42, %v9000_v43  ;;  %3327 = vmatpush.bf16.msrb.mxu3 %v8773_v25 }
 0x329   :  { %v11549_v53 = vpop.eup %11548  ;;  %v12297_v3 = vadd.f32 1.0, %v11547_v50  ;;  %11550 = vpow2.f32 %v8622_v44  ;;  %3538 = vmatpush.bf16.msra.mxu1 %v9005_v45  ;;  %v8960_v45 = vld [vmem:[#allocation9 + $0x88] sm:$0xf] }
 0x32a   :  { %v12299_v20 = vadd.f32 1.0, %v11549_v53  ;;  %3525 = vmatpush.bf16.msra.mxu0 %v9001_v34  ;;  %v9010_v53 = vld [vmem:[#allocation9 + $0xf8] sm:$0xf0] }
 0x32b   :  { %11552 = vrcp.f32 %v12297_v3  ;;  %v2709_v63 = vand.u32 2147483647, %v12297_v3  ;;  %v2711_v6 = vand.u32 2147483648, %v12297_v3  ;;  %v9013_v59 = vor.u32 %v11042_v54, %v9010_v53  ;;  %3551 = vmatpush.bf16.msra.mxu2 %v9009_v52  ;;  %v8978_v34 = vld [vmem:[#allocation9 + $0xb8] sm:$0xf0] }
 0x32c   :  { %11554 = vrcp.f32 %v12299_v20  ;;  %v2677_v0 = vpop.f32.mrf.mxu2  ;;  %v2690_v1 = vpop.f32.mrf.mxu3  ;;  %v2730_v2 = vand.u32 2147483648, %v12299_v20  ;;  %v2728_v40 = vand.u32 2147483647, %v12299_v20  ;;  %vm2705_vm15 = vweird.f32 %v12297_v3  ;;  %v11031_v54 = vld [vmem:[#allocation9 + $0x8c] sm:$0xf0] }
 0x32d   :  { %vm12329_vm12 = vcmp.eq.f32.partialorder %v2709_v63, 8.507059e+37  ;;  %v12333_v50 = vor.u32 1.1754944e-38, %v2711_v6  ;;  %3564 = vmatpush.bf16.msra.mxu3 %v9013_v59  ;;  %v8985_v6 = vor.u32 %v11039_v33, %v8984_v4  ;;  %vm2724_vm1 = vweird.f32 %v12299_v20  ;;  %v11032_v52 = vld [vmem:[#allocation9 + $0x94] sm:$0xf0]  ;;  %v11030_v59 = vld [vmem:[#allocation9 + $0x8c] sm:$0xf] }
 0x32e   :  { %v2968_v37 = vpop.f32.mrf.mxu0  ;;  %v2981_v11 = vpop.f32.mrf.mxu1  ;;  %v12327_v48 = vor.u32 1.1754944e-38, %v2730_v2  ;;  %vm2729_vm3 = vcmp.eq.f32.partialorder %v2728_v40, 8.507059e+37  ;;  %v8962_v33 = vld [vmem:[#allocation9 + $0x98] sm:$0xf0] }
 0x32f   :  { %v11551_v57 = vpop.eup %11550  ;;  %v3011_v47 = vadd.f32 %v8623_v12, %v2968_v37  ;;  %v3012_v19 = vadd.f32 %v8624_v9, %v2981_v11  ;;  %v8986_v12 = vld [vmem:[#allocation9 + $0xd0] sm:$0xf0]  ;;  %v8992_v9 = vld [vmem:[#allocation9 + $0xc8] sm:$0xf]  ;;  %v8968_v37 = vld [vmem:[#allocation9 + $0xa0] sm:$0xf]  ;;  %3526 = vmatpush.bf16.msra.mxu0 %v8985_v6 }
 0x330   :  { %v12315_v16 = vadd.f32 1.0, %v11551_v57  ;;  %v8989_v7 = vor.u32 %v11037_v61, %v8986_v12  ;;  %v8993_v60 = vor.u32 %v11040_v18, %v8992_v9  ;;  %v8997_v57 = vor.u32 %v11038_v8, %v8994_v10  ;;  %v8936_v61 = vld [vmem:[#allocation9 + $0x60] sm:$0xf]  ;;  %v11027_v12 = vld [vmem:[#allocation9 + $0x6c] sm:$0xf0] }
 0x331   :  { %v12317_v26 = vpop.eup %11552  ;;  %v8755_v31 = vmul.f32 -1.442695, %v3011_v47  ;;  %v8756_v32 = vmul.f32 -1.442695, %v3012_v19  ;;  %v11035_v47 = vld [vmem:[#allocation9 + $0xac] sm:$0xf0]  ;;  %v8937_v8 = vor.u32 %v11027_v12, %v8936_v61 }
 0x332   :  { %v12319_v35 = vpop.eup %11554  ;;  %v2701_v13 = vmul.f32 %v12317_v26, %v12297_v3  ;;  %11556 = vrcp.f32 %v12315_v16  ;;  %vm2706_vm13 = vweird.f32 %v12317_v26  ;;  %v11033_v19 = vld [vmem:[#allocation9 + $0xa4] sm:$0xf]  ;;  %v8969_v22 = vor.u32 %v11035_v47, %v8968_v37  ;;  %v8970_v3 = vld [vmem:[#allocation9 + $0xb0] sm:$0xf0]  ;;  %3539 = vmatpush.bf16.msra.mxu1 %v8989_v7  ;;  %3552 = vmatpush.bf16.msra.mxu2 %v8993_v60  ;;  %v8944_v37 = vld [vmem:[#allocation9 + $0x68] sm:$0xf] }
 0x333   :  { %v2720_v44 = vmul.f32 %v12319_v35, %v12299_v20  ;;  %11558 = vpow2.f32 %v8755_v31  ;;  %vm2725_vm14 = vweird.f32 %v12319_v35  ;;  %vm12352_vm0 = vmor %vm2705_vm15, %vm2706_vm13  ;;  %v8973_v42 = vor.u32 %v11033_v19, %v8970_v3  ;;  %3565 = vmatpush.bf16.msra.mxu3 %v8997_v57  ;;  %v11025_v9 = vld [vmem:[#allocation9 + $0x64] sm:$0xf]  ;;  %v8938_v7 = vld [vmem:[#allocation9 + $0x70] sm:$0xf0] }
 0x334   :  { %v2702_v56 = vsub.f32 1.0, %v2701_v13  ;;  %11560 = vpow2.f32 %v8756_v32  ;;  %vm12364_vm2 = vmor %vm2724_vm1, %vm2725_vm14  ;;  %v8977_v31 = vor.u32 %v11036_v24, %v8976_v5  ;;  %v11034_v32 = vld [vmem:[#allocation9 + $0xac] sm:$0xf]  ;;  %3527 = vmatpush.bf16.msra.mxu0 %v8969_v22  ;;  %v2748_v49 = vand.u32 2147483647, %v12315_v16 }
 0x335   :  { %v2721_v36 = vsub.f32 1.0, %v2720_v44  ;;  %v12339_v51 = vpop.f32.mrf.mxu2  ;;  %v3007_v38 = vpop.f32.mrf.mxu3  ;;  %11562 = vtanh.f32 %v2694_v39  ;;  %v2750_v39 = vand.u32 2147483648, %v12315_v16  ;;  %vm2744_vm4 = vweird.f32 %v12315_v16  ;;  %v8946_v19 = vld [vmem:[#allocation9 + $0x78] sm:$0xf0]  ;;  %v8920_v5 = vld [vmem:[#allocation9 + $0x40] sm:$0xf] }
 0x336   :  { %v2703_v62 = vmul.f32 %v12317_v26, %v2702_v56  ;;  %v3014_v63 = vadd.f32 %v8626_v21, %v3007_v38  ;;  %v2970_v0 = vpop.f32.mrf.mxu0  ;;  %v2983_v1 = vpop.f32.mrf.mxu1  ;;  %v8981_v21 = vor.u32 %v11034_v32, %v8978_v34  ;;  %v8954_v56 = vld [vmem:[#allocation9 + $0x90] sm:$0xf0]  ;;  %3540 = vmatpush.bf16.msra.mxu1 %v8973_v42  ;;  %3553 = vmatpush.bf16.msra.mxu2 %v8977_v31  ;;  %v11023_v24 = vld [vmem:[#allocation9 + $0x4c] sm:$0xf0]  ;;  %v8928_v32 = vld [vmem:[#allocation9 + $0x48] sm:$0xf] }
 0x337   :  { %v2722_v2 = vmul.f32 %v12319_v35, %v2721_v36  ;;  %v8961_v1 = vor.u32 %v11032_v52, %v8960_v45  ;;  %v8965_v60 = vor.u32 %v11030_v59, %v8962_v33  ;;  %v8941_v10 = vor.u32 %v11025_v9, %v8938_v7  ;;  %v8922_v31 = vld [vmem:[#allocation9 + $0x50] sm:$0xf0]  ;;  %v11019_v52 = vld [vmem:[#allocation9 + $0x2c] sm:$0xf0]  ;;  %v8912_v59 = vld [vmem:[#allocation9 + $0x28] sm:$0xf] }
 0x338   :  { %v12345_v11 = vpop.eup %11556  ;;  %v2704_v58 = vadd.f32 %v12317_v26, %v2703_v62  ;;  %v8757_v15 = vmul.f32 -1.442695, %v3014_v63  ;;  %3566 = vmatpush.bf16.msra.mxu3 %v8981_v21  ;;  %v12393_v63 = vor.u32 1.1754944e-38, %v2750_v39  ;;  %v8949_v3 = vor.u32 %v11026_v55, %v8946_v19  ;;  %v11020_v33 = vld [vmem:[#allocation9 + $0x34] sm:$0xf0] }
 0x339   :  { %v2723_v14 = vadd.f32 %v12319_v35, %v2722_v2  ;;  %v12360_v30 = vmul.f32 %v12345_v11, %v12315_v16  ;;  %v11559_v28 = vpop.eup %11558  ;;  %vm2745_vm5 = vweird.f32 %v12345_v11  ;;  %v11018_v61 = vld [vmem:[#allocation9 + $0x2c] sm:$0xf]  ;;  %v8914_v12 = vld [vmem:[#allocation9 + $0x38] sm:$0xf0]  ;;  %v8888_v9 = vld [vmem:[#allocation9] sm:$0xf] }
 0x33a   :  { %v2708_v43 = vsel %vm12352_vm0, %v12317_v26, %v2704_v58  ;;  %11564 = vpow2.f32 %v8757_v15  ;;  %v11561_v27 = vpop.eup %11560  ;;  %v12377_v41 = vadd.f32 1.0, %v11559_v28  ;;  %v8952_v26 = vld [vmem:[#allocation9 + $0x80] sm:$0xf]  ;;  %3554 = vmatpush.bf16.msra.mxu2 %v8961_v1  ;;  %v11028_v58 = vld [vmem:[#allocation9 + $0x74] sm:$0xf0]  ;;  %vm12427_vm7 = vmor %vm2744_vm4, %vm2745_vm5  ;;  %v8913_v1 = vor.u32 %v11020_v33, %v8912_v59 }
 0x33b   :  { %v2727_v13 = vsel %vm12364_vm2, %v12319_v35, %v2723_v14  ;;  %v2713_v29 = vsel %vm12329_vm12, %v12333_v50, %v2708_v43  ;;  %v12383_v44 = vadd.f32 1.0, %v11561_v27  ;;  %v11029_v35 = vld [vmem:[#allocation9 + $0x84] sm:$0xf]  ;;  %v11563_v53 = vpop.eup %11562  ;;  %v2741_v4 = vsub.f32 1.0, %v12360_v30  ;;  %v9121_v33 = vld [vmem:[#allocation5 + $0xd0] sm:$0xf0] }
 0x33c   :  { %v2732_v46 = vsel %vm2729_vm3, %v12327_v48, %v2727_v13  ;;  %11566 = vrcp.f32 %v12377_v41  ;;  %v8625_v48 = vld [vmem:[%s13521_s0 + $0x70] sm:$0xff]  ;;  %v2755_v36 = vmul.f32 %v11563_v53, %v2713_v29  ;;  %v8953_v38 = vor.u32 %v11031_v54, %v8952_v26  ;;  %3567 = vmatpush.bf16.msra.mxu3 %v8965_v60  ;;  %v11021_v28 = vld [vmem:[#allocation9 + $0x44] sm:$0xf]  ;;  %v11024_v26 = vld [vmem:[#allocation9 + $0x54] sm:$0xf0] }
 0x33d   :  { %v2996_v20 = vpop.f32.mrf.mxu2  ;;  %v3009_v40 = vpop.f32.mrf.mxu3  ;;  %11568 = vrcp.f32 %v12383_v44  ;;  %v2754_v50 = vmul.f32 %v2732_v46, %v12226_v23  ;;  %v8957_v0 = vor.u32 %v11029_v35, %v8954_v56  ;;  %v3049_v18 = vand.u32 2147483648, %v12383_v44  ;;  %v11022_v29 = vld [vmem:[#allocation9 + $0x4c] sm:$0xf]  ;;  %v8930_v35 = vld [vmem:[#allocation9 + $0x58] sm:$0xf0] }
 0x33e   :  { %v3013_v2 = vadd.f32 %v8625_v48, %v12339_v51  ;;  %v3028_v6 = vand.u32 2147483647, %v12377_v41  ;;  %3528 = vmatpush.bf16.msra.mxu0 %v8953_v38  ;;  %v2742_v51 = vmul.f32 %v12345_v11, %v2741_v4  ;;  %v3047_v47 = vand.u32 2147483647, %v12383_v44  ;;  %v8904_v20 = vld [vmem:[#allocation9 + $0x20] sm:$0xf] }
 0x33f   :  { %3541 = vmatpush.bf16.msra.mxu1 %v8957_v0  ;;  %v12403_v57 = vadd.f32 %v2755_v36, %v2754_v50  ;;  %v8945_v22 = vor.u32 %v11028_v58, %v8944_v37  ;;  %v12415_v43 = vor.u32 1.1754944e-38, %v3049_v18  ;;  %v3030_v42 = vand.u32 2147483648, %v12377_v41  ;;  %v11017_v53 = vld [vmem:[#allocation9 + $0x24] sm:$0xf]  ;;  %v8906_v4 = vld [vmem:[#allocation9 + $0x30] sm:$0xf0] }
 0x340   :  { %v11565_v62 = vpop.eup %11564  ;;  %vm12418_vm6 = vcmp.eq.f32.partialorder %v3028_v6, 8.507059e+37  ;;  %v8921_v13 = vor.u32 %v11023_v24, %v8920_v5  ;;  %v8925_v39 = vor.u32 %v11021_v28, %v8922_v31  ;;  %v8929_v54 = vor.u32 %v11024_v26, %v8928_v32  ;;  %3568 = vmatpush.bf16.msra.mxu3 %v8949_v3  ;;  %v11015_v18 = vld [vmem:[#allocation9 + $0xc] sm:$0xf0]  ;;  %v8890_v37 = vld [vmem:[#allocation9 + $0x10] sm:$0xf0] }
 0x341   :  { %v12398_v23 = vadd.f32 1.0, %v11565_v62  ;;  %3555 = vmatpush.bf16.msra.mxu2 %v8945_v22  ;;  %v2743_v40 = vadd.f32 %v12345_v11, %v2742_v51  ;;  %vm3024_vm8 = vweird.f32 %v12377_v41  ;;  %v8933_v45 = vor.u32 %v11022_v29, %v8930_v35  ;;  %v11016_v22 = vld [vmem:[#allocation9 + $0x14] sm:$0xf0]  ;;  %v11014_v28 = vld [vmem:[#allocation9 + $0xc] sm:$0xf] }
 0x342   :  { %v12401_v15 = vpop.eup %11566  ;;  %3529 = vmatpush.bf16.msra.mxu0 %v8937_v8  ;;  %v8905_v36 = vor.u32 %v11019_v52, %v8904_v20  ;;  %v8909_v38 = vor.u32 %v11017_v53, %v8906_v4  ;;  %vm3043_vm11 = vweird.f32 %v12383_v44  ;;  %v3031_v7 = vor.u32 1.1754944e-38, %v3030_v42  ;;  %v9135_v26 = vld [vmem:[#allocation5 + $0xe0] sm:$0xf]  ;;  %v11075_v29 = vld [vmem:[#allocation5 + $0xec] sm:$0xf0] }
 0x343   :  { %11570 = vrcp.f32 %v12398_v23  ;;  %v12408_v14 = vpop.eup %11568  ;;  %v3020_v30 = vmul.f32 %v12401_v15, %v12377_v41  ;;  %3542 = vmatpush.bf16.msra.mxu1 %v8941_v10  ;;  %vm3025_vm9 = vweird.f32 %v12401_v15  ;;  %vm12454_vm13 = vcmp.eq.f32.partialorder %v3047_v47, 8.507059e+37  ;;  %v11013_v10 = vld [vmem:[#allocation9 + $0x4] sm:$0xf]  ;;  %v9137_v35 = vld [vmem:[#allocation5 + $0xf0] sm:$0xf0] }
 0x344   :  { %v3039_v25 = vmul.f32 %v12408_v14, %v12383_v44  ;;  %11572 = vtanh.f32 %v3013_v2  ;;  %vm3044_vm10 = vweird.f32 %v12408_v14  ;;  %vm12447_vm12 = vmor %vm3024_vm8, %vm3025_vm9  ;;  %v2747_v58 = vsel %vm12427_vm7, %v12345_v11, %v2743_v40  ;;  %3569 = vmatpush.bf16.msra.mxu3 %v8933_v45  ;;  %v9143_v20 = vld [vmem:[#allocation5 + $0xe8] sm:$0xf]  ;;  %v9145_v45 = vld [vmem:[#allocation5 + $0xf8] sm:$0xf0] }
 0x345   :  { %v3021_v34 = vsub.f32 1.0, %v3020_v30  ;;  %11574 = vtanh.f32 %v12403_v57  ;;  %3556 = vmatpush.bf16.msra.mxu2 %v8929_v54  ;;  %vm12465_vm14 = vmor %vm3043_vm11, %vm3044_vm10  ;;  %v8917_v47 = vor.u32 %v11018_v61, %v8914_v12  ;;  %v8889_v19 = vor.u32 %v11015_v18, %v8888_v9  ;;  %v8896_v30 = vld [vmem:[#allocation9 + $0x8] sm:$0xf]  ;;  %v11073_v54 = vld [vmem:[#allocation5 + $0xe4] sm:$0xf] }
 0x346   :  { %v3040_v21 = vsub.f32 1.0, %v3039_v25  ;;  %3530 = vmatpush.bf16.msra.mxu0 %v8921_v13  ;;  %v8893_v5 = vor.u32 %v11013_v10, %v8890_v37  ;;  %v8897_v24 = vor.u32 %v11016_v22, %v8896_v30  ;;  %v8898_v25 = vld [vmem:[#allocation9 + $0x18] sm:$0xf0]  ;;  %vm2749_vm15 = vcmp.eq.f32.partialorder %v2748_v49, 8.507059e+37  ;;  %v11069_v59 = vld [vmem:[#allocation5 + $0xc4] sm:$0xf] }
 0x347   :  { %v3022_v56 = vmul.f32 %v12401_v15, %v3021_v34  ;;  %3543 = vmatpush.bf16.msra.mxu1 %v8925_v39  ;;  %v8901_v34 = vor.u32 %v11014_v28, %v8898_v25  ;;  %v3067_v16 = vand.u32 2147483647, %v12398_v23  ;;  %vm3063_vm1 = vweird.f32 %v12398_v23  ;;  %v9127_v61 = vld [vmem:[#allocation5 + $0xc8] sm:$0xf]  ;;  %v9103_v18 = vld [vmem:[#allocation5 + $0xa0] sm:$0xf] }
 0x348   :  { %v3041_v50 = vmul.f32 %v12408_v14, %v3040_v21  ;;  %3570 = vmatpush.bf16.msra.mxu3 %v8917_v47  ;;  %v9136_v53 = vor.u32 %v11075_v29, %v9135_v26  ;;  %v9140_v4 = vor.u32 %v11073_v54, %v9137_v35  ;;  %v9124_v9 = vor.u32 %v11069_v59, %v9121_v33  ;;  %v9105_v8 = vld [vmem:[#allocation5 + $0xb0] sm:$0xf0]  ;;  %v9111_v10 = vld [vmem:[#allocation5 + $0xa8] sm:$0xf]  ;;  %v11068_v37 = vld [vmem:[#allocation5 + $0xb4] sm:$0xf0] }
 0x349   :  { %v12435_v48 = vpop.eup %11570  ;;  %v3023_v62 = vadd.f32 %v12401_v15, %v3022_v56  ;;  %3557 = vmatpush.bf16.msra.mxu2 %v8913_v1  ;;  %vm3068_vm3 = vcmp.eq.f32.partialorder %v3067_v16, 8.507059e+37  ;;  %v11076_v56 = vld [vmem:[#allocation5 + $0xf4] sm:$0xf0]  ;;  %v9129_v1 = vld [vmem:[#allocation5 + $0xd8] sm:$0xf0]  ;;  %v9112_v30 = vor.u32 %v11068_v37, %v9111_v10 }
 0x34a   :  { %v3059_v0 = vmul.f32 %v12435_v48, %v12398_v23  ;;  %v11573_v2 = vpop.eup %11572  ;;  %v3042_v60 = vadd.f32 %v12408_v14, %v3041_v50  ;;  %3531 = vmatpush.bf16.msra.mxu0 %v8905_v36  ;;  %vm3064_vm0 = vweird.f32 %v12435_v48  ;;  %v11071_v50 = vld [vmem:[#allocation5 + $0xcc] sm:$0xf0]  ;;  %v9144_v36 = vor.u32 %v11076_v56, %v9143_v20  ;;  %v9113_v41 = vld [vmem:[#allocation5 + $0xb8] sm:$0xf0]  ;;  %v9087_v47 = vld [vmem:[#allocation5 + $0x80] sm:$0xf] }
 0x34b   :  { %v3027_v55 = vsel %vm12447_vm12, %v12401_v15, %v3023_v62  ;;  %v11575_v3 = vpop.eup %11574  ;;  %3544 = vmatpush.bf16.msra.mxu1 %v8909_v38  ;;  %vm3065_vm2 = vmor %vm3063_vm1, %vm3064_vm0  ;;  %v11072_v62 = vld [vmem:[#allocation5 + $0xd4] sm:$0xf0]  ;;  %v9097_v28 = vld [vmem:[#allocation5 + $0x98] sm:$0xf0] }
 0x34c   :  { %v3060_v51 = vsub.f32 1.0, %v3059_v0  ;;  %v3032_v11 = vsel %vm12418_vm6, %v3031_v7, %v3027_v55  ;;  %v3046_v44 = vsel %vm12465_vm14, %v12408_v14, %v3042_v60  ;;  %v2752_v14 = vsel %vm2749_vm15, %v12393_v63, %v2747_v58  ;;  %3571 = vmatpush.bf16.msra.mxu3 %v8901_v34  ;;  %v11070_v0 = vld [vmem:[#allocation5 + $0xcc] sm:$0xf]  ;;  %v11065_v60 = vld [vmem:[#allocation5 + $0xa4] sm:$0xf] }
 0x34d   :  { %v3051_v15 = vsel %vm12454_vm13, %v12415_v43, %v3046_v44  ;;  %v3074_v42 = vmul.f32 %v11573_v2, %v3032_v11  ;;  %v2758_v27 = vmul.f32 %v11575_v3, %v2752_v14  ;;  %3558 = vmatpush.bf16.msra.mxu2 %v8897_v24  ;;  %v11067_v2 = vld [vmem:[#allocation5 + $0xac] sm:$0xf0]  ;;  %v9128_v6 = vor.u32 %v11072_v62, %v9127_v61  ;;  %v11066_v58 = vld [vmem:[#allocation5 + $0xac] sm:$0xf]  ;;  %v11061_v3 = vld [vmem:[#allocation5 + $0x84] sm:$0xf] }
 0x34e   :  { %v3061_v31 = vmul.f32 %v12435_v48, %v3060_v51  ;;  %v3073_v32 = vmul.f32 %v3051_v15, %v12262_v17  ;;  %3532 = vmatpush.bf16.msra.mxu0 %v8889_v19  ;;  %v3069_v17 = vand.u32 2147483648, %v12398_v23  ;;  %v11074_v23 = vld [vmem:[#allocation5 + $0xec] sm:$0xf]  ;;  %v9132_v7 = vor.u32 %v11070_v0, %v9129_v1  ;;  %v11063_v19 = vld [vmem:[#allocation5 + $0x8c] sm:$0xf0] }
 0x34f   :  { %3545 = vmatpush.bf16.msra.mxu1 %v8893_v5  ;;  %v12493_v49 = vpack.c.bf16 %v2758_v27, %v2758_v27  ;;  %v9148_v38 = vor.u32 %v11074_v23, %v9145_v45  ;;  %v9104_v55 = vor.u32 %v11067_v2, %v9103_v18  ;;  %v9108_v51 = vor.u32 %v11065_v60, %v9105_v8  ;;  %v9089_v11 = vld [vmem:[#allocation5 + $0x90] sm:$0xf0]  ;;  %v9095_v44 = vld [vmem:[#allocation5 + $0x88] sm:$0xf]  ;;  %v11064_v5 = vld [vmem:[#allocation5 + $0x94] sm:$0xf0] }
 0x350   :  { %v12485_v13 = vadd.f32 %v3074_v42, %v3073_v32  ;;  %v3062_v43 = vadd.f32 %v12435_v48, %v3061_v31  ;;  %v3070_v39 = vor.u32 1.1754944e-38, %v3069_v17  ;;  %v9116_v22 = vor.u32 %v11066_v58, %v9113_v41  ;;  %v11062_v24 = vld [vmem:[#allocation5 + $0x8c] sm:$0xf]  ;;  %v9071_v42 = vld [vmem:[#allocation5 + $0x60] sm:$0xf] }
 0x351   :  { %2761 = vst [vmem:[#allocation4 + $0x8] sm:$0xf] %v12493_v49  ;;  %v9088_v25 = vor.u32 %v11063_v19, %v9087_v47  ;;  %v9092_v15 = vor.u32 %v11061_v3, %v9089_v11  ;;  %v11059_v31 = vld [vmem:[#allocation5 + $0x6c] sm:$0xf0]  ;;  %v9096_v32 = vor.u32 %v11064_v5, %v9095_v44  ;;  %v9100_v14 = vor.u32 %v11062_v24, %v9097_v28  ;;  %v11057_v34 = vld [vmem:[#allocation5 + $0x64] sm:$0xf] }
 0x352   :  { %11576 = vtanh.f32 %v12485_v13  ;;  %v3066_v63 = vsel %vm3065_vm2, %v12435_v48, %v3062_v43  ;;  %v9119_v48 = vld [vmem:[#allocation5 + $0xc0] sm:$0xf]  ;;  %v9073_v27 = vld [vmem:[#allocation5 + $0x70] sm:$0xf0]  ;;  %v9079_v43 = vld [vmem:[#allocation5 + $0x68] sm:$0xf] }
 0x353   :  { %v3071_v21 = vsel %vm3068_vm3, %v3070_v39, %v3066_v63  ;;  %v9120_v12 = vor.u32 %v11071_v50, %v9119_v48  ;;  %v11060_v16 = vld [vmem:[#allocation5 + $0x74] sm:$0xf0]  ;;  %v11058_v17 = vld [vmem:[#allocation5 + $0x6c] sm:$0xf]  ;;  %v9081_v63 = vld [vmem:[#allocation5 + $0x78] sm:$0xf0]  ;;  %v9072_v39 = vor.u32 %v11059_v31, %v9071_v42  ;;  %v9076_v26 = vor.u32 %v11057_v34, %v9073_v27 }
 0x354   :  { %v9055_v29 = vld [vmem:[#allocation5 + $0x40] sm:$0xf]  ;;  %v9084_v54 = vor.u32 %v11058_v17, %v9081_v63  ;;  %v11053_v35 = vld [vmem:[#allocation5 + $0x44] sm:$0xf]  ;;  %v9057_v20 = vld [vmem:[#allocation5 + $0x50] sm:$0xf0] }
 0x355   :  { %v11056_v56 = vld [vmem:[#allocation5 + $0x54] sm:$0xf0]  ;;  %v11054_v23 = vld [vmem:[#allocation5 + $0x4c] sm:$0xf]  ;;  %v9065_v45 = vld [vmem:[#allocation5 + $0x58] sm:$0xf0] }
 0x356   :  { %v9039_v48 = vld [vmem:[#allocation5 + $0x20] sm:$0xf]  ;;  %v11051_v50 = vld [vmem:[#allocation5 + $0x2c] sm:$0xf0]  ;;  %v11049_v59 = vld [vmem:[#allocation5 + $0x24] sm:$0xf] }
 0x357   :  { %v9041_v33 = vld [vmem:[#allocation5 + $0x30] sm:$0xf0]  ;;  %v9047_v61 = vld [vmem:[#allocation5 + $0x28] sm:$0xf]  ;;  %v11052_v62 = vld [vmem:[#allocation5 + $0x34] sm:$0xf0] }
 0x358   :  { %v11577_v46 = vpop.eup %11576  ;;  %v11050_v0 = vld [vmem:[#allocation5 + $0x2c] sm:$0xf]  ;;  %v9049_v1 = vld [vmem:[#allocation5 + $0x38] sm:$0xf0]  ;;  %v11047_v18 = vld [vmem:[#allocation5 + $0xc] sm:$0xf0]  ;;  %v9048_v2 = vor.u32 %v11052_v62, %v9047_v61 }
 0x359   :  { %v3077_v40 = vmul.f32 %v11577_v46, %v3071_v21  ;;  %v11055_v46 = vld [vmem:[#allocation5 + $0x4c] sm:$0xf0]  ;;  %v9080_v21 = vor.u32 %v11060_v16, %v9079_v43  ;;  %v9025_v60 = vld [vmem:[#allocation5 + $0x10] sm:$0xf0]  ;;  %v9031_v8 = vld [vmem:[#allocation5 + $0x8] sm:$0xf] }
 0x35a   :  { %v11048_v10 = vld [vmem:[#allocation5 + $0x14] sm:$0xf0]  ;;  %v11046_v37 = vld [vmem:[#allocation5 + $0xc] sm:$0xf]  ;;  %v9033_v58 = vld [vmem:[#allocation5 + $0x18] sm:$0xf0] }
 0x35b   :  { %v12497_v52 = vpack.c.bf16 %v3077_v40, %v3077_v40  ;;  %v9063_v40 = vld [vmem:[#allocation5 + $0x48] sm:$0xf]  ;;  %v9036_v47 = vor.u32 %v11046_v37, %v9033_v58  ;;  %v11107_v3 = vld [vmem:[#allocation7 + $0xec] sm:$0xf0]  ;;  %v11105_v11 = vld [vmem:[#allocation7 + $0xe4] sm:$0xf] }
 0x35c   :  { %v9268_v5 = vld [vmem:[#allocation7 + $0xf0] sm:$0xf0]  ;;  %v9274_v24 = vld [vmem:[#allocation7 + $0xe8] sm:$0xf]  ;;  %v11108_v28 = vld [vmem:[#allocation7 + $0xf4] sm:$0xf0] }
 0x35d   :  { %3289 = vmatmul.bf16.vlgmr.msrb.gmra.mxu0 %v12497_v52  ;;  %3302 = vmatmul.bf16.vlgmr.msrb.gmra.mxu1 %v12497_v52  ;;  %v11106_v42 = vld [vmem:[#allocation7 + $0xec] sm:$0xf]  ;;  %v9276_v31 = vld [vmem:[#allocation7 + $0xf8] sm:$0xf0]  ;;  %v9250_v27 = vld [vmem:[#allocation7 + $0xc0] sm:$0xf] }
 0x35e   :  { %3315 = vmatmul.bf16.vlgmr.msrb.gmra.mxu2 %v12497_v52  ;;  %3328 = vmatmul.bf16.vlgmr.msrb.gmra.mxu3 %v12497_v52  ;;  %v11103_v43 = vld [vmem:[#allocation7 + $0xcc] sm:$0xf0]  ;;  %v11101_v16 = vld [vmem:[#allocation7 + $0xc4] sm:$0xf]  ;;  %v11098_v61 = vld [vmem:[#allocation7 + $0xac] sm:$0xf] }
 0x35f   :  { %3844 = vmatpush.bf16.msrb.mxu0 %v9136_v53  ;;  %3857 = vmatpush.bf16.msrb.mxu1 %v9140_v4  ;;  %v9056_v53 = vor.u32 %v11055_v46, %v9055_v29  ;;  %v9060_v4 = vor.u32 %v11053_v35, %v9057_v20  ;;  %v9258_v29 = vld [vmem:[#allocation7 + $0xc8] sm:$0xf]  ;;  %v11104_v46 = vld [vmem:[#allocation7 + $0xd4] sm:$0xf0]  ;;  %v11102_v35 = vld [vmem:[#allocation7 + $0xcc] sm:$0xf] }
 0x360   :  { %3870 = vmatpush.bf16.msrb.mxu2 %v9144_v36  ;;  %3883 = vmatpush.bf16.msrb.mxu3 %v9148_v38  ;;  %v9064_v36 = vor.u32 %v11056_v56, %v9063_v40  ;;  %v9068_v38 = vor.u32 %v11054_v23, %v9065_v45  ;;  %v9260_v20 = vld [vmem:[#allocation7 + $0xd8] sm:$0xf0]  ;;  %v9234_v45 = vld [vmem:[#allocation7 + $0xa0] sm:$0xf]  ;;  %v9226_v37 = vld [vmem:[#allocation7 + $0x88] sm:$0xf] }
 0x361   :  { %v9263_v23 = vor.u32 %v11102_v35, %v9260_v20  ;;  %v9244_v62 = vld [vmem:[#allocation7 + $0xb8] sm:$0xf0]  ;;  %v11096_v58 = vld [vmem:[#allocation7 + $0x94] sm:$0xf0]  ;;  %v11087_v35 = vld [vmem:[#allocation7 + $0x4c] sm:$0xf0] }
 0x362   :  { %v11085_v20 = vld [vmem:[#allocation7 + $0x44] sm:$0xf] }
 0x363   :  { %3845 = vmatpush.bf16.msrb.mxu0 %v9120_v12  ;;  %3858 = vmatpush.bf16.msrb.mxu1 %v9124_v9  ;;  %v9040_v12 = vor.u32 %v11051_v50, %v9039_v48  ;;  %v9023_v9 = vld [vmem:[#allocation5] sm:$0xf]  ;;  %v9236_v50 = vld [vmem:[#allocation7 + $0xb0] sm:$0xf0] }
 0x364   :  { %3871 = vmatpush.bf16.msrb.mxu2 %v9128_v6  ;;  %3884 = vmatpush.bf16.msrb.mxu3 %v9132_v7  ;;  %v9052_v6 = vor.u32 %v11050_v0, %v9049_v1  ;;  %v11045_v7 = vld [vmem:[#allocation5 + $0x4] sm:$0xf]  ;;  %v9024_v41 = vor.u32 %v11047_v18, %v9023_v9  ;;  %v9247_v0 = vor.u32 %v11098_v61, %v9244_v62  ;;  %v9218_v18 = vld [vmem:[#allocation7 + $0x80] sm:$0xf] }
 0x365   :  { %v11081_v61 = vld [vmem:[#allocation7 + $0x24] sm:$0xf] }
 0x367   :  { %3846 = vmatpush.bf16.msrb.mxu0 %v9104_v55  ;;  %3859 = vmatpush.bf16.msrb.mxu1 %v9108_v51  ;;  %v9028_v55 = vor.u32 %v11045_v7, %v9025_v60  ;;  %v9032_v51 = vor.u32 %v11048_v10, %v9031_v8  ;;  %v9220_v10 = vld [vmem:[#allocation7 + $0x90] sm:$0xf0] }
 0x368   :  { %3872 = vmatpush.bf16.msrb.mxu2 %v9112_v30  ;;  %3885 = vmatpush.bf16.msrb.mxu3 %v9116_v22  ;;  %v9266_v22 = vld [vmem:[#allocation7 + $0xe0] sm:$0xf] }
 0x369   :  { %v9267_v44 = vor.u32 %v11107_v3, %v9266_v22  ;;  %v9228_v22 = vld [vmem:[#allocation7 + $0x98] sm:$0xf0] }
 0x36b   :  { %3847 = vmatpush.bf16.msrb.mxu0 %v9088_v25  ;;  %3860 = vmatpush.bf16.msrb.mxu1 %v9092_v15  ;;  %v9271_v25 = vor.u32 %v11105_v11, %v9268_v5  ;;  %v9275_v15 = vor.u32 %v11108_v28, %v9274_v24  ;;  %v9202_v5 = vld [vmem:[#allocation7 + $0x60] sm:$0xf]  ;;  %v11091_v24 = vld [vmem:[#allocation7 + $0x6c] sm:$0xf0]  ;;  %v11089_v28 = vld [vmem:[#allocation7 + $0x64] sm:$0xf] }
 0x36c   :  { %3873 = vmatpush.bf16.msrb.mxu2 %v9096_v32  ;;  %3886 = vmatpush.bf16.msrb.mxu3 %v9100_v14  ;;  %v12514_v32 = vld [vmem:[%s13527_s6] sm:$0xf] }
 0x36d   :  { %3533 = vmatmul.bf16.vlgmr.msra.gmra.mxu0 %v12493_v49  ;;  %3546 = vmatmul.bf16.vlgmr.msra.gmra.mxu1 %v12493_v49  ;;  %v3113_v40 = vperm.slane %v12514_v32, 0  ;;  %v3114_v56 = vperm.slane %v12514_v32, 1 }
 0x36e   :  { %3559 = vmatmul.bf16.vlgmr.msra.gmra.mxu2 %v12493_v49  ;;  %3572 = vmatmul.bf16.vlgmr.msra.gmra.mxu3 %v12493_v49  ;;  %v9044_v49 = vor.u32 %v11049_v59, %v9041_v33 }
 0x36f   :  { %3848 = vmatpush.bf16.msrb.mxu0 %v9072_v39  ;;  %3861 = vmatpush.bf16.msrb.mxu1 %v9076_v26  ;;  %v9251_v39 = vor.u32 %v11103_v43, %v9250_v27  ;;  %v9252_v26 = vld [vmem:[#allocation7 + $0xd0] sm:$0xf0]  ;;  %v11090_v27 = vld [vmem:[#allocation7 + $0x6c] sm:$0xf] }
 0x370   :  { %3874 = vmatpush.bf16.msrb.mxu2 %v9080_v21  ;;  %3887 = vmatpush.bf16.msrb.mxu3 %v9084_v54  ;;  %v9255_v21 = vor.u32 %v11101_v16, %v9252_v26  ;;  %v9259_v54 = vor.u32 %v11104_v46, %v9258_v29  ;;  %v9186_v29 = vld [vmem:[#allocation7 + $0x40] sm:$0xf] }
 0x373   :  { %3849 = vmatpush.bf16.msrb.mxu0 %v9056_v53  ;;  %3862 = vmatpush.bf16.msrb.mxu1 %v9060_v4  ;;  %v11099_v53 = vld [vmem:[#allocation7 + $0xac] sm:$0xf0]  ;;  %v11097_v4 = vld [vmem:[#allocation7 + $0xa4] sm:$0xf] }
 0x374   :  { %3875 = vmatpush.bf16.msrb.mxu2 %v9064_v36  ;;  %3888 = vmatpush.bf16.msrb.mxu3 %v9068_v38  ;;  %v9235_v48 = vor.u32 %v11099_v53, %v9234_v45  ;;  %v9242_v36 = vld [vmem:[#allocation7 + $0xa8] sm:$0xf]  ;;  %v11100_v38 = vld [vmem:[#allocation7 + $0xb4] sm:$0xf0]  ;;  %v9239_v59 = vor.u32 %v11097_v4, %v9236_v50  ;;  %v11086_v53 = vld [vmem:[#allocation7 + $0x4c] sm:$0xf] }
 0x375   :  { %v9243_v33 = vor.u32 %v11100_v38, %v9242_v36  ;;  %v11088_v45 = vld [vmem:[#allocation7 + $0x54] sm:$0xf0]  ;;  %v9196_v50 = vld [vmem:[#allocation7 + $0x58] sm:$0xf0] }
 0x376   :  { %v9199_v38 = vor.u32 %v11086_v53, %v9196_v50  ;;  %v11140_v53 = vld [vmem:[#allocation9 + $0xf4] sm:$0xf0] }
 0x377   :  { %3850 = vmatpush.bf16.msrb.mxu0 %v9040_v12  ;;  %3863 = vmatpush.bf16.msrb.mxu1 %v9044_v49 }
 0x378   :  { %3876 = vmatpush.bf16.msrb.mxu2 %v9048_v2  ;;  %3889 = vmatpush.bf16.msrb.mxu3 %v9052_v6  ;;  %v11095_v2 = vld [vmem:[#allocation7 + $0x8c] sm:$0xf0]  ;;  %v11093_v6 = vld [vmem:[#allocation7 + $0x84] sm:$0xf] }
 0x379   :  { %v9219_v8 = vor.u32 %v11095_v2, %v9218_v18  ;;  %v11084_v2 = vld [vmem:[#allocation7 + $0x34] sm:$0xf0] }
 0x37b   :  { %3851 = vmatpush.bf16.msrb.mxu0 %v9024_v41  ;;  %3864 = vmatpush.bf16.msrb.mxu1 %v9028_v55 }
 0x37c   :  { %3877 = vmatpush.bf16.msrb.mxu2 %v9032_v51  ;;  %3890 = vmatpush.bf16.msrb.mxu3 %v9036_v47  ;;  %v9223_v51 = vor.u32 %v11093_v6, %v9220_v10  ;;  %v9227_v47 = vor.u32 %v11096_v58, %v9226_v37  ;;  %v11082_v6 = vld [vmem:[#allocation7 + $0x2c] sm:$0xf]  ;;  %v9017_v58 = vld [vmem:[%s13521_s0 + $0x80] sm:$0xff] }
 0x37e   :  { %3852 = vmatmul.bf16.vlgmr.msrb.gmra.mxu0 %v12497_v52  ;;  %3865 = vmatmul.bf16.vlgmr.msrb.gmra.mxu1 %v12497_v52 }
 0x37f   :  { %3878 = vmatmul.bf16.vlgmr.msrb.gmra.mxu2 %v12497_v52  ;;  %3891 = vmatmul.bf16.vlgmr.msrb.gmra.mxu3 %v12497_v52  ;;  %v9279_v52 = vor.u32 %v11106_v42, %v9276_v31  ;;  %v9210_v31 = vld [vmem:[#allocation7 + $0x68] sm:$0xf] }
 0x380   :  { %4166 = vmatpush.bf16.msra.mxu0 %v9267_v44  ;;  %4179 = vmatpush.bf16.msra.mxu1 %v9271_v25  ;;  %v9204_v25 = vld [vmem:[#allocation7 + $0x70] sm:$0xf0] }
 0x381   :  { %4192 = vmatpush.bf16.msra.mxu2 %v9275_v15  ;;  %4205 = vmatpush.bf16.msra.mxu3 %v9279_v52  ;;  %v9203_v15 = vor.u32 %v11091_v24, %v9202_v5  ;;  %v9207_v42 = vor.u32 %v11089_v28, %v9204_v25  ;;  %v11092_v52 = vld [vmem:[#allocation7 + $0x74] sm:$0xf0]  ;;  %v9156_v24 = vld [vmem:[#allocation7 + $0x10] sm:$0xf0]  ;;  %v9162_v28 = vld [vmem:[#allocation7 + $0x8] sm:$0xf] }
 0x382   :  { %v9211_v16 = vor.u32 %v11092_v52, %v9210_v31  ;;  %v11080_v52 = vld [vmem:[#allocation7 + $0x14] sm:$0xf0] }
 0x384   :  { %4167 = vmatpush.bf16.msra.mxu0 %v9251_v39  ;;  %4180 = vmatpush.bf16.msra.mxu1 %v9255_v21 }
 0x385   :  { %4193 = vmatpush.bf16.msra.mxu2 %v9259_v54  ;;  %4206 = vmatpush.bf16.msra.mxu3 %v9263_v23  ;;  %v9194_v23 = vld [vmem:[#allocation7 + $0x48] sm:$0xf] }
 0x388   :  { %4168 = vmatpush.bf16.msra.mxu0 %v9235_v48  ;;  %4181 = vmatpush.bf16.msra.mxu1 %v9239_v59  ;;  %v9195_v48 = vor.u32 %v11088_v45, %v9194_v23  ;;  %v9170_v59 = vld [vmem:[#allocation7 + $0x20] sm:$0xf]  ;;  %v9396_v23 = vld [vmem:[#allocation9 + $0xf0] sm:$0xf0]  ;;  %v9402_v45 = vld [vmem:[#allocation9 + $0xe8] sm:$0xf] }
 0x389   :  { %4194 = vmatpush.bf16.msra.mxu2 %v9243_v33  ;;  %4207 = vmatpush.bf16.msra.mxu3 %v9247_v0  ;;  %v11083_v33 = vld [vmem:[#allocation7 + $0x2c] sm:$0xf0] }
 0x38c   :  { %4169 = vmatpush.bf16.msra.mxu0 %v9219_v8  ;;  %4182 = vmatpush.bf16.msra.mxu1 %v9223_v51 }
 0x38d   :  { %4195 = vmatpush.bf16.msra.mxu2 %v9227_v47 }
 0x390   :  { %4170 = vmatpush.bf16.msra.mxu0 %v9203_v15  ;;  %4183 = vmatpush.bf16.msra.mxu1 %v9207_v42 }
 0x391   :  { %4196 = vmatpush.bf16.msra.mxu2 %v9211_v16 }
 0x395   :  { %4197 = vmatpush.bf16.msra.mxu2 %v9195_v48 }
 0x3da   :  { %v3290_v19 = vpop.f32.mrf.mxu0  ;;  %v3303_v30 = vpop.f32.mrf.mxu1 }
 0x3db   :  { %v3291_v1 = vadd.f32 %v3290_v19, %v3113_v40  ;;  %v3304_v12 = vadd.f32 %v3303_v30, %v3114_v56  ;;  %v11094_v19 = vld [vmem:[#allocation7 + $0x8c] sm:$0xf]  ;;  %v3116_v30 = vperm.slane %v12514_v32, 3  ;;  %v9188_v40 = vld [vmem:[#allocation7 + $0x50] sm:$0xf0]  ;;  %v9187_v56 = vor.u32 %v11087_v35, %v9186_v29 }
 0x3dc   :  { %v9231_v44 = vor.u32 %v11094_v19, %v9228_v22  ;;  %v11077_v22 = vld [vmem:[#allocation7 + $0x4] sm:$0xf]  ;;  %v9394_v29 = vld [vmem:[#allocation9 + $0xe0] sm:$0xf] }
 0x3dd   :  { %4171 = vmatpush.bf16.msra.mxu0 %v9187_v56  ;;  %v9159_v31 = vor.u32 %v11077_v22, %v9156_v24  ;;  %v9388_v22 = vld [vmem:[#allocation9 + $0xd8] sm:$0xf0]  ;;  %v11122_v24 = vld [vmem:[#allocation9 + $0x6c] sm:$0xf] }
 0x3de   :  { %4208 = vmatpush.bf16.msra.mxu3 %v9231_v44 }
 0x3e1   :  { %v12516_v14 = vpop.f32.mrf.mxu2  ;;  %v12518_v34 = vpop.f32.mrf.mxu3 }
 0x3e2   :  { %v3292_v17 = vpop.f32.mrf.mxu0  ;;  %v3305_v63 = vpop.f32.mrf.mxu1  ;;  %v3330_v43 = vadd.f32 %v12518_v34, %v3116_v30  ;;  %v9191_v34 = vor.u32 %v11085_v20, %v9188_v40  ;;  %v11079_v30 = vld [vmem:[#allocation7 + $0xc] sm:$0xf0]  ;;  %v11137_v40 = vld [vmem:[#allocation9 + $0xe4] sm:$0xf] }
 0x3e3   :  { %v9212_v17 = vld [vmem:[#allocation7 + $0x78] sm:$0xf0] }
 0x3e4   :  { %v9215_v26 = vor.u32 %v11090_v27, %v9212_v17  ;;  %4184 = vmatpush.bf16.msra.mxu1 %v9191_v34  ;;  %v11078_v27 = vld [vmem:[#allocation7 + $0xc] sm:$0xf] }
 0x3e6   :  { %4209 = vmatpush.bf16.msra.mxu3 %v9215_v26 }
 0x3e9   :  { %v3318_v49 = vpop.f32.mrf.mxu2  ;;  %v3331_v9 = vpop.f32.mrf.mxu3 }
 0x3ea   :  { %v3534_v7 = vpop.f32.mrf.mxu0  ;;  %v3547_v60 = vpop.f32.mrf.mxu1  ;;  %v9178_v49 = vld [vmem:[#allocation7 + $0x28] sm:$0xf]  ;;  %4210 = vmatpush.bf16.msra.mxu3 %v9199_v38  ;;  %v11138_v38 = vld [vmem:[#allocation9 + $0xec] sm:$0xf] }
 0x3eb   :  { %v3577_v41 = vadd.f32 %v3534_v7, %v3291_v1  ;;  %v3578_v55 = vadd.f32 %v3547_v60, %v3304_v12  ;;  %v9171_v1 = vor.u32 %v11083_v33, %v9170_v59  ;;  %v9172_v12 = vld [vmem:[#allocation7 + $0x30] sm:$0xf0]  ;;  %v3115_v7 = vperm.slane %v12514_v32, 2  ;;  %v9180_v60 = vld [vmem:[#allocation7 + $0x38] sm:$0xf0] }
 0x3ec   :  { %v9175_v18 = vor.u32 %v11081_v61, %v9172_v12  ;;  %v9154_v32 = vld [vmem:[#allocation7] sm:$0xf]  ;;  %v9179_v47 = vor.u32 %v11084_v2, %v9178_v49  ;;  %v9183_v19 = vor.u32 %v11082_v6, %v9180_v60  ;;  %v9399_v33 = vor.u32 %v11137_v40, %v9396_v23  ;;  %v11135_v6 = vld [vmem:[#allocation9 + $0xcc] sm:$0xf0] }
 0x3ed   :  { %v9014_v3 = vmul.f32 -1.442695, %v3577_v41  ;;  %v9015_v11 = vmul.f32 -1.442695, %v3578_v55  ;;  %v9018_v41 = vld [vmem:[%s13521_s0 + $0x88] sm:$0xff]  ;;  %4172 = vmatpush.bf16.msra.mxu0 %v9171_v1  ;;  %v9155_v5 = vor.u32 %v11079_v30, %v9154_v32  ;;  %v3317_v16 = vadd.f32 %v12516_v14, %v3115_v7 }
 0x3ee   :  { %4185 = vmatpush.bf16.msra.mxu1 %v9175_v18  ;;  %4198 = vmatpush.bf16.msra.mxu2 %v9179_v47  ;;  %v9403_v61 = vor.u32 %v11140_v53, %v9402_v45  ;;  %v9378_v1 = vld [vmem:[#allocation9 + $0xc0] sm:$0xf]  ;;  %v11133_v7 = vld [vmem:[#allocation9 + $0xc4] sm:$0xf]  ;;  %v11136_v32 = vld [vmem:[#allocation9 + $0xd4] sm:$0xf0] }
 0x3ef   :  { %11578 = vpow2.f32 %v9014_v3  ;;  %4211 = vmatpush.bf16.msra.mxu3 %v9183_v19  ;;  %v11134_v30 = vld [vmem:[#allocation9 + $0xcc] sm:$0xf] }
 0x3f0   :  { %11580 = vpow2.f32 %v9015_v11 }
 0x3f1   :  { %v12524_v63 = vpop.f32.mrf.mxu2  ;;  %v3573_v39 = vpop.f32.mrf.mxu3  ;;  %4173 = vmatpush.bf16.msra.mxu0 %v9155_v5 }
 0x3f2   :  { %v3580_v46 = vadd.f32 %v3573_v39, %v3330_v43  ;;  %v3536_v21 = vpop.f32.mrf.mxu0  ;;  %v3549_v54 = vpop.f32.mrf.mxu1  ;;  %v9164_v43 = vld [vmem:[#allocation7 + $0x18] sm:$0xf0]  ;;  %v9163_v39 = vor.u32 %v11080_v52, %v9162_v28  ;;  %4186 = vmatpush.bf16.msra.mxu1 %v9159_v31  ;;  %v3579_v14 = vadd.f32 %v12524_v63, %v3317_v16  ;;  %v9020_v63 = vld [vmem:[%s13521_s0 + $0x98] sm:$0xff]  ;;  %v11132_v16 = vld [vmem:[#allocation9 + $0xb4] sm:$0xf0] }
 0x3f3   :  { %v9167_v26 = vor.u32 %v11078_v27, %v9164_v43  ;;  %v9370_v43 = vld [vmem:[#allocation9 + $0xa8] sm:$0xf] }
 0x3f4   :  { %v9016_v4 = vmul.f32 -1.442695, %v3580_v46  ;;  %v11139_v46 = vld [vmem:[#allocation9 + $0xec] sm:$0xf0]  ;;  %4199 = vmatpush.bf16.msra.mxu2 %v9163_v39 }
 0x3f5   :  { %v11579_v36 = vpop.eup %11578  ;;  %v9395_v20 = vor.u32 %v11139_v46, %v9394_v29  ;;  %4212 = vmatpush.bf16.msra.mxu3 %v9167_v26 }
 0x3f6   :  { %v11581_v62 = vpop.eup %11580  ;;  %v12526_v0 = vadd.f32 1.0, %v11579_v36  ;;  %11582 = vpow2.f32 %v9016_v4  ;;  %4423 = vmatpush.bf16.msrb.mxu1 %v9399_v33  ;;  %v9354_v33 = vld [vmem:[#allocation9 + $0x88] sm:$0xf] }
 0x3f7   :  { %v12528_v9 = vadd.f32 1.0, %v11581_v62  ;;  %4410 = vmatpush.bf16.msrb.mxu0 %v9395_v20  ;;  %v9404_v62 = vld [vmem:[#allocation9 + $0xf8] sm:$0xf0] }
 0x3f8   :  { %11584 = vrcp.f32 %v12526_v0  ;;  %v3594_v8 = vand.u32 2147483647, %v12526_v0  ;;  %v3596_v51 = vand.u32 2147483648, %v12526_v0  ;;  %v9407_v2 = vor.u32 %v11138_v38, %v9404_v62  ;;  %4436 = vmatpush.bf16.msrb.mxu2 %v9403_v61  ;;  %v9372_v20 = vld [vmem:[#allocation9 + $0xb8] sm:$0xf0] }
 0x3f9   :  { %11586 = vrcp.f32 %v12528_v9  ;;  %v3562_v10 = vpop.f32.mrf.mxu2  ;;  %v3575_v37 = vpop.f32.mrf.mxu3  ;;  %v3615_v55 = vand.u32 2147483648, %v12528_v9  ;;  %v3613_v3 = vand.u32 2147483647, %v12528_v9  ;;  %vm3590_vm7 = vweird.f32 %v12526_v0  ;;  %v11127_v38 = vld [vmem:[#allocation9 + $0x8c] sm:$0xf0] }
 0x3fa   :  { %vm12558_vm4 = vcmp.eq.f32.partialorder %v3594_v8, 8.507059e+37  ;;  %v12562_v36 = vor.u32 1.1754944e-38, %v3596_v51  ;;  %4449 = vmatpush.bf16.msrb.mxu3 %v9407_v2  ;;  %v9379_v51 = vor.u32 %v11135_v6, %v9378_v1  ;;  %vm3609_vm9 = vweird.f32 %v12528_v9  ;;  %v11128_v61 = vld [vmem:[#allocation9 + $0x94] sm:$0xf0]  ;;  %v11126_v2 = vld [vmem:[#allocation9 + $0x8c] sm:$0xf] }
 0x3fb   :  { %v3853_v11 = vpop.f32.mrf.mxu0  ;;  %v3866_v44 = vpop.f32.mrf.mxu1  ;;  %v12556_v48 = vor.u32 1.1754944e-38, %v3615_v55  ;;  %vm3614_vm11 = vcmp.eq.f32.partialorder %v3613_v3, 8.507059e+37  ;;  %v9356_v6 = vld [vmem:[#allocation9 + $0x98] sm:$0xf0] }
 0x3fc   :  { %v11583_v25 = vpop.eup %11582  ;;  %v3896_v15 = vadd.f32 %v9017_v58, %v3853_v11  ;;  %v3897_v42 = vadd.f32 %v9018_v41, %v3866_v44  ;;  %v9380_v58 = vld [vmem:[#allocation9 + $0xd0] sm:$0xf0]  ;;  %v9386_v41 = vld [vmem:[#allocation9 + $0xc8] sm:$0xf]  ;;  %v9362_v11 = vld [vmem:[#allocation9 + $0xa0] sm:$0xf]  ;;  %4411 = vmatpush.bf16.msrb.mxu0 %v9379_v51 }
 0x3fd   :  { %v12544_v17 = vadd.f32 1.0, %v11583_v25  ;;  %v9383_v47 = vor.u32 %v11133_v7, %v9380_v58  ;;  %v9387_v19 = vor.u32 %v11136_v32, %v9386_v41  ;;  %v9391_v25 = vor.u32 %v11134_v30, %v9388_v22  ;;  %v9330_v7 = vld [vmem:[#allocation9 + $0x60] sm:$0xf]  ;;  %v11123_v58 = vld [vmem:[#allocation9 + $0x6c] sm:$0xf0] }
 0x3fe   :  { %v12546_v21 = vpop.eup %11584  ;;  %v9149_v54 = vmul.f32 -1.442695, %v3896_v15  ;;  %v9150_v35 = vmul.f32 -1.442695, %v3897_v42  ;;  %v11131_v15 = vld [vmem:[#allocation9 + $0xac] sm:$0xf0]  ;;  %v9331_v30 = vor.u32 %v11123_v58, %v9330_v7 }
 0x3ff   :  { %v12548_v56 = vpop.eup %11586  ;;  %v3586_v34 = vmul.f32 %v12546_v21, %v12526_v0  ;;  %11588 = vrcp.f32 %v12544_v17  ;;  %vm3591_vm5 = vweird.f32 %v12546_v21  ;;  %v11129_v42 = vld [vmem:[#allocation9 + $0xa4] sm:$0xf]  ;;  %v9363_v27 = vor.u32 %v11131_v15, %v9362_v11  ;;  %v9364_v0 = vld [vmem:[#allocation9 + $0xb0] sm:$0xf0]  ;;  %4424 = vmatpush.bf16.msrb.mxu1 %v9383_v47  ;;  %4437 = vmatpush.bf16.msrb.mxu2 %v9387_v19  ;;  %v9338_v11 = vld [vmem:[#allocation9 + $0x68] sm:$0xf] }
 0x400   :  { %v3605_v4 = vmul.f32 %v12548_v56, %v12528_v9  ;;  %11590 = vpow2.f32 %v9149_v54  ;;  %vm3610_vm6 = vweird.f32 %v12548_v56  ;;  %vm12581_vm8 = vmor %vm3590_vm7, %vm3591_vm5  ;;  %v9367_v46 = vor.u32 %v11129_v42, %v9364_v0  ;;  %4450 = vmatpush.bf16.msrb.mxu3 %v9391_v25  ;;  %v11121_v41 = vld [vmem:[#allocation9 + $0x64] sm:$0xf]  ;;  %v9332_v47 = vld [vmem:[#allocation9 + $0x70] sm:$0xf0] }
 0x401   :  { %v3587_v59 = vsub.f32 1.0, %v3586_v34  ;;  %11592 = vpow2.f32 %v9150_v35  ;;  %vm12593_vm10 = vmor %vm3609_vm9, %vm3610_vm6  ;;  %v9371_v54 = vor.u32 %v11132_v16, %v9370_v43  ;;  %v11130_v35 = vld [vmem:[#allocation9 + $0xac] sm:$0xf]  ;;  %4412 = vmatpush.bf16.msrb.mxu0 %v9363_v27  ;;  %v3633_v50 = vand.u32 2147483647, %v12544_v17 }
 0x402   :  { %v3606_v12 = vsub.f32 1.0, %v3605_v4  ;;  %v12568_v49 = vpop.f32.mrf.mxu2  ;;  %v3892_v18 = vpop.f32.mrf.mxu3  ;;  %11594 = vtanh.f32 %v3579_v14  ;;  %v3635_v14 = vand.u32 2147483648, %v12544_v17  ;;  %vm3629_vm12 = vweird.f32 %v12544_v17  ;;  %v9340_v42 = vld [vmem:[#allocation9 + $0x78] sm:$0xf0]  ;;  %v9314_v43 = vld [vmem:[#allocation9 + $0x40] sm:$0xf] }
 0x403   :  { %v3588_v60 = vmul.f32 %v12546_v21, %v3587_v59  ;;  %v3899_v8 = vadd.f32 %v9020_v63, %v3892_v18  ;;  %v3855_v10 = vpop.f32.mrf.mxu0  ;;  %v3868_v37 = vpop.f32.mrf.mxu1  ;;  %v9375_v63 = vor.u32 %v11130_v35, %v9372_v20  ;;  %v9348_v59 = vld [vmem:[#allocation9 + $0x90] sm:$0xf0]  ;;  %4425 = vmatpush.bf16.msrb.mxu1 %v9367_v46  ;;  %4438 = vmatpush.bf16.msrb.mxu2 %v9371_v54  ;;  %v11119_v16 = vld [vmem:[#allocation9 + $0x4c] sm:$0xf0]  ;;  %v9322_v35 = vld [vmem:[#allocation9 + $0x48] sm:$0xf] }
 0x404   :  { %v3607_v55 = vmul.f32 %v12548_v56, %v3606_v12  ;;  %v9355_v37 = vor.u32 %v11128_v61, %v9354_v33  ;;  %v9359_v19 = vor.u32 %v11126_v2, %v9356_v6  ;;  %v9335_v22 = vor.u32 %v11121_v41, %v9332_v47  ;;  %v9316_v54 = vld [vmem:[#allocation9 + $0x50] sm:$0xf0]  ;;  %v11115_v61 = vld [vmem:[#allocation9 + $0x2c] sm:$0xf0]  ;;  %v9306_v2 = vld [vmem:[#allocation9 + $0x28] sm:$0xf] }
 0x405   :  { %v12574_v44 = vpop.eup %11588  ;;  %v3589_v5 = vadd.f32 %v12546_v21, %v3588_v60  ;;  %v9151_v28 = vmul.f32 -1.442695, %v3899_v8  ;;  %4451 = vmatpush.bf16.msrb.mxu3 %v9375_v63  ;;  %v12622_v8 = vor.u32 1.1754944e-38, %v3635_v14  ;;  %v9343_v0 = vor.u32 %v11122_v24, %v9340_v42  ;;  %v11116_v6 = vld [vmem:[#allocation9 + $0x34] sm:$0xf0] }
 0x406   :  { %v3608_v31 = vadd.f32 %v12548_v56, %v3607_v55  ;;  %v12589_v52 = vmul.f32 %v12574_v44, %v12544_v17  ;;  %v11591_v39 = vpop.eup %11590  ;;  %vm3630_vm13 = vweird.f32 %v12574_v44  ;;  %v11114_v7 = vld [vmem:[#allocation9 + $0x2c] sm:$0xf]  ;;  %v9308_v58 = vld [vmem:[#allocation9 + $0x38] sm:$0xf0]  ;;  %v9282_v41 = vld [vmem:[#allocation9] sm:$0xf] }
 0x407   :  { %v3593_v29 = vsel %vm12581_vm8, %v12546_v21, %v3589_v5  ;;  %11596 = vpow2.f32 %v9151_v28  ;;  %v11593_v40 = vpop.eup %11592  ;;  %v12606_v23 = vadd.f32 1.0, %v11591_v39  ;;  %v9346_v21 = vld [vmem:[#allocation9 + $0x80] sm:$0xf]  ;;  %4439 = vmatpush.bf16.msrb.mxu2 %v9355_v37  ;;  %v11124_v5 = vld [vmem:[#allocation9 + $0x74] sm:$0xf0]  ;;  %vm12656_vm15 = vmor %vm3629_vm12, %vm3630_vm13  ;;  %v9307_v37 = vor.u32 %v11116_v6, %v9306_v2 }
 0x408   :  { %v3612_v34 = vsel %vm12593_vm10, %v12548_v56, %v3608_v31  ;;  %v3598_v45 = vsel %vm12558_vm4, %v12562_v36, %v3593_v29  ;;  %v12612_v4 = vadd.f32 1.0, %v11593_v40  ;;  %v11125_v56 = vld [vmem:[#allocation9 + $0x84] sm:$0xf]  ;;  %v11595_v62 = vpop.eup %11594  ;;  %v3626_v1 = vsub.f32 1.0, %v12589_v52  ;;  %v9515_v6 = vld [vmem:[#allocation5 + $0xd0] sm:$0xf0] }
 0x409   :  { %v3617_v53 = vsel %vm3614_vm11, %v12556_v48, %v3612_v34  ;;  %11598 = vrcp.f32 %v12606_v23  ;;  %v9019_v48 = vld [vmem:[%s13521_s0 + $0x90] sm:$0xff]  ;;  %v3640_v12 = vmul.f32 %v11595_v62, %v3598_v45  ;;  %v9347_v18 = vor.u32 %v11127_v38, %v9346_v21  ;;  %4452 = vmatpush.bf16.msrb.mxu3 %v9359_v19  ;;  %v11117_v39 = vld [vmem:[#allocation9 + $0x44] sm:$0xf]  ;;  %v11120_v21 = vld [vmem:[#allocation9 + $0x54] sm:$0xf0] }
 0x40a   :  { %v3881_v9 = vpop.f32.mrf.mxu2  ;;  %v3894_v3 = vpop.f32.mrf.mxu3  ;;  %11600 = vrcp.f32 %v12612_v4  ;;  %v3639_v36 = vmul.f32 %v3617_v53, %v12403_v57  ;;  %v9351_v10 = vor.u32 %v11125_v56, %v9348_v59  ;;  %v3934_v32 = vand.u32 2147483648, %v12612_v4  ;;  %v11118_v45 = vld [vmem:[#allocation9 + $0x4c] sm:$0xf]  ;;  %v9324_v56 = vld [vmem:[#allocation9 + $0x58] sm:$0xf0] }
 0x40b   :  { %v3898_v55 = vadd.f32 %v9019_v48, %v12568_v49  ;;  %v3913_v51 = vand.u32 2147483647, %v12606_v23  ;;  %4413 = vmatpush.bf16.msrb.mxu0 %v9347_v18  ;;  %v3627_v49 = vmul.f32 %v12574_v44, %v3626_v1  ;;  %v3932_v15 = vand.u32 2147483647, %v12612_v4  ;;  %v9298_v9 = vld [vmem:[#allocation9 + $0x20] sm:$0xf] }
 0x40c   :  { %4426 = vmatpush.bf16.msrb.mxu1 %v9351_v10  ;;  %v12632_v25 = vadd.f32 %v3640_v12, %v3639_v36  ;;  %v9339_v27 = vor.u32 %v11124_v5, %v9338_v11  ;;  %v12644_v29 = vor.u32 1.1754944e-38, %v3934_v32  ;;  %v3915_v46 = vand.u32 2147483648, %v12606_v23  ;;  %v11113_v62 = vld [vmem:[#allocation9 + $0x24] sm:$0xf]  ;;  %v9300_v1 = vld [vmem:[#allocation9 + $0x30] sm:$0xf0] }
 0x40d   :  { %v11597_v60 = vpop.eup %11596  ;;  %vm12647_vm14 = vcmp.eq.f32.partialorder %v3913_v51, 8.507059e+37  ;;  %v9315_v34 = vor.u32 %v11119_v16, %v9314_v43  ;;  %v9319_v14 = vor.u32 %v11117_v39, %v9316_v54  ;;  %v9323_v38 = vor.u32 %v11120_v21, %v9322_v35  ;;  %4453 = vmatpush.bf16.msrb.mxu3 %v9343_v0  ;;  %v11111_v32 = vld [vmem:[#allocation9 + $0xc] sm:$0xf0]  ;;  %v9284_v11 = vld [vmem:[#allocation9 + $0x10] sm:$0xf0] }
 0x40e   :  { %v12627_v57 = vadd.f32 1.0, %v11597_v60  ;;  %4440 = vmatpush.bf16.msrb.mxu2 %v9339_v27  ;;  %v3628_v3 = vadd.f32 %v12574_v44, %v3627_v49  ;;  %vm3909_vm0 = vweird.f32 %v12606_v23  ;;  %v9327_v33 = vor.u32 %v11118_v45, %v9324_v56  ;;  %v11112_v27 = vld [vmem:[#allocation9 + $0x14] sm:$0xf0]  ;;  %v11110_v39 = vld [vmem:[#allocation9 + $0xc] sm:$0xf] }
 0x40f   :  { %v12630_v28 = vpop.eup %11598  ;;  %4414 = vmatpush.bf16.msrb.mxu0 %v9331_v30  ;;  %v9299_v12 = vor.u32 %v11115_v61, %v9298_v9  ;;  %v9303_v18 = vor.u32 %v11113_v62, %v9300_v1  ;;  %vm3928_vm3 = vweird.f32 %v12612_v4  ;;  %v3916_v47 = vor.u32 1.1754944e-38, %v3915_v46  ;;  %v9529_v21 = vld [vmem:[#allocation5 + $0xe0] sm:$0xf]  ;;  %v11171_v45 = vld [vmem:[#allocation5 + $0xec] sm:$0xf0] }
 0x410   :  { %11602 = vrcp.f32 %v12627_v57  ;;  %v12637_v31 = vpop.eup %11600  ;;  %v3905_v52 = vmul.f32 %v12630_v28, %v12606_v23  ;;  %4427 = vmatpush.bf16.msrb.mxu1 %v9335_v22  ;;  %vm3910_vm1 = vweird.f32 %v12630_v28  ;;  %vm12683_vm5 = vcmp.eq.f32.partialorder %v3932_v15, 8.507059e+37  ;;  %v11109_v22 = vld [vmem:[#allocation9 + $0x4] sm:$0xf]  ;;  %v9531_v56 = vld [vmem:[#allocation5 + $0xf0] sm:$0xf0] }
 0x411   :  { %v3924_v26 = vmul.f32 %v12637_v31, %v12612_v4  ;;  %11604 = vtanh.f32 %v3898_v55  ;;  %vm3929_vm2 = vweird.f32 %v12637_v31  ;;  %vm12676_vm4 = vmor %vm3909_vm0, %vm3910_vm1  ;;  %v3632_v5 = vsel %vm12656_vm15, %v12574_v44, %v3628_v3  ;;  %4454 = vmatpush.bf16.msrb.mxu3 %v9327_v33  ;;  %v9537_v9 = vld [vmem:[#allocation5 + $0xe8] sm:$0xf]  ;;  %v9539_v33 = vld [vmem:[#allocation5 + $0xf8] sm:$0xf0] }
 0x412   :  { %v3906_v20 = vsub.f32 1.0, %v3905_v52  ;;  %11606 = vtanh.f32 %v12632_v25  ;;  %4441 = vmatpush.bf16.msrb.mxu2 %v9323_v38  ;;  %vm12694_vm6 = vmor %vm3928_vm3, %vm3929_vm2  ;;  %v9311_v15 = vor.u32 %v11114_v7, %v9308_v58  ;;  %v9283_v42 = vor.u32 %v11111_v32, %v9282_v41  ;;  %v9290_v52 = vld [vmem:[#allocation9 + $0x8] sm:$0xf]  ;;  %v11169_v38 = vld [vmem:[#allocation5 + $0xe4] sm:$0xf] }
 0x413   :  { %v3925_v63 = vsub.f32 1.0, %v3924_v26  ;;  %4415 = vmatpush.bf16.msrb.mxu0 %v9315_v34  ;;  %v9287_v43 = vor.u32 %v11109_v22, %v9284_v11  ;;  %v9291_v16 = vor.u32 %v11112_v27, %v9290_v52  ;;  %v9292_v26 = vld [vmem:[#allocation9 + $0x18] sm:$0xf0]  ;;  %vm3634_vm7 = vcmp.eq.f32.partialorder %v3633_v50, 8.507059e+37  ;;  %v11165_v2 = vld [vmem:[#allocation5 + $0xc4] sm:$0xf] }
 0x414   :  { %v3907_v59 = vmul.f32 %v12630_v28, %v3906_v20  ;;  %4428 = vmatpush.bf16.msrb.mxu1 %v9319_v14  ;;  %v9295_v20 = vor.u32 %v11110_v39, %v9292_v26  ;;  %v3952_v17 = vand.u32 2147483647, %v12627_v57  ;;  %vm3948_vm9 = vweird.f32 %v12627_v57  ;;  %v9521_v7 = vld [vmem:[#allocation5 + $0xc8] sm:$0xf]  ;;  %v9497_v32 = vld [vmem:[#allocation5 + $0xa0] sm:$0xf] }
 0x415   :  { %v3926_v36 = vmul.f32 %v12637_v31, %v3925_v63  ;;  %4455 = vmatpush.bf16.msrb.mxu3 %v9311_v15  ;;  %v9530_v62 = vor.u32 %v11171_v45, %v9529_v21  ;;  %v9534_v1 = vor.u32 %v11169_v38, %v9531_v56  ;;  %v9518_v41 = vor.u32 %v11165_v2, %v9515_v6  ;;  %v9499_v30 = vld [vmem:[#allocation5 + $0xb0] sm:$0xf0]  ;;  %v9505_v22 = vld [vmem:[#allocation5 + $0xa8] sm:$0xf]  ;;  %v11164_v11 = vld [vmem:[#allocation5 + $0xb4] sm:$0xf0] }
 0x416   :  { %v12664_v48 = vpop.eup %11602  ;;  %v3908_v60 = vadd.f32 %v12630_v28, %v3907_v59  ;;  %4442 = vmatpush.bf16.msrb.mxu2 %v9307_v37  ;;  %vm3953_vm11 = vcmp.eq.f32.partialorder %v3952_v17, 8.507059e+37  ;;  %v11172_v59 = vld [vmem:[#allocation5 + $0xf4] sm:$0xf0]  ;;  %v9523_v37 = vld [vmem:[#allocation5 + $0xd8] sm:$0xf0]  ;;  %v9506_v52 = vor.u32 %v11164_v11, %v9505_v22 }
 0x417   :  { %v3944_v10 = vmul.f32 %v12664_v48, %v12627_v57  ;;  %v11605_v55 = vpop.eup %11604  ;;  %v3927_v19 = vadd.f32 %v12637_v31, %v3926_v36  ;;  %4416 = vmatpush.bf16.msrb.mxu0 %v9299_v12  ;;  %vm3949_vm8 = vweird.f32 %v12664_v48  ;;  %v11167_v36 = vld [vmem:[#allocation5 + $0xcc] sm:$0xf0]  ;;  %v9538_v12 = vor.u32 %v11172_v59, %v9537_v9  ;;  %v9507_v23 = vld [vmem:[#allocation5 + $0xb8] sm:$0xf0]  ;;  %v9481_v15 = vld [vmem:[#allocation5 + $0x80] sm:$0xf] }
 0x418   :  { %v3912_v24 = vsel %vm12676_vm4, %v12630_v28, %v3908_v60  ;;  %v11607_v0 = vpop.eup %11606  ;;  %4429 = vmatpush.bf16.msrb.mxu1 %v9303_v18  ;;  %vm3950_vm10 = vmor %vm3948_vm9, %vm3949_vm8  ;;  %v11168_v60 = vld [vmem:[#allocation5 + $0xd4] sm:$0xf0]  ;;  %v9491_v39 = vld [vmem:[#allocation5 + $0x98] sm:$0xf0] }
 0x419   :  { %v3945_v49 = vsub.f32 1.0, %v3944_v10  ;;  %v3917_v44 = vsel %vm12647_vm14, %v3916_v47, %v3912_v24  ;;  %v3931_v4 = vsel %vm12694_vm6, %v12637_v31, %v3927_v19  ;;  %v3637_v31 = vsel %vm3634_vm7, %v12622_v8, %v3632_v5  ;;  %4456 = vmatpush.bf16.msrb.mxu3 %v9295_v20  ;;  %v11166_v10 = vld [vmem:[#allocation5 + $0xcc] sm:$0xf]  ;;  %v11161_v19 = vld [vmem:[#allocation5 + $0xa4] sm:$0xf] }
 0x41a   :  { %v3936_v28 = vsel %vm12683_vm5, %v12644_v29, %v3931_v4  ;;  %v3959_v46 = vmul.f32 %v11605_v55, %v3917_v44  ;;  %v3643_v40 = vmul.f32 %v11607_v0, %v3637_v31  ;;  %4443 = vmatpush.bf16.msrb.mxu2 %v9291_v16  ;;  %v11163_v55 = vld [vmem:[#allocation5 + $0xac] sm:$0xf0]  ;;  %v9522_v51 = vor.u32 %v11168_v60, %v9521_v7  ;;  %v11162_v5 = vld [vmem:[#allocation5 + $0xac] sm:$0xf]  ;;  %v11157_v0 = vld [vmem:[#allocation5 + $0x84] sm:$0xf] }
 0x41b   :  { %v3946_v54 = vmul.f32 %v12664_v48, %v3945_v49  ;;  %v3958_v35 = vmul.f32 %v3936_v28, %v12485_v13  ;;  %4417 = vmatpush.bf16.msrb.mxu0 %v9283_v42  ;;  %v3954_v13 = vand.u32 2147483648, %v12627_v57  ;;  %v11170_v57 = vld [vmem:[#allocation5 + $0xec] sm:$0xf]  ;;  %v9526_v47 = vor.u32 %v11166_v10, %v9523_v37  ;;  %v11159_v42 = vld [vmem:[#allocation5 + $0x8c] sm:$0xf0] }
 0x41c   :  { %4430 = vmatpush.bf16.msrb.mxu1 %v9287_v43  ;;  %v12722_v50 = vpack.c.bf16 %v3643_v40, %v3643_v40  ;;  %v9542_v18 = vor.u32 %v11170_v57, %v9539_v33  ;;  %v9498_v24 = vor.u32 %v11163_v55, %v9497_v32  ;;  %v9502_v49 = vor.u32 %v11161_v19, %v9499_v30  ;;  %v9483_v44 = vld [vmem:[#allocation5 + $0x90] sm:$0xf0]  ;;  %v9489_v4 = vld [vmem:[#allocation5 + $0x88] sm:$0xf]  ;;  %v11160_v43 = vld [vmem:[#allocation5 + $0x94] sm:$0xf0] }
 0x41d   :  { %v12714_v34 = vadd.f32 %v3959_v46, %v3958_v35  ;;  %v3947_v29 = vadd.f32 %v12664_v48, %v3946_v54  ;;  %v3955_v14 = vor.u32 1.1754944e-38, %v3954_v13  ;;  %v9510_v27 = vor.u32 %v11162_v5, %v9507_v23  ;;  %v11158_v16 = vld [vmem:[#allocation5 + $0x8c] sm:$0xf]  ;;  %v9465_v46 = vld [vmem:[#allocation5 + $0x60] sm:$0xf] }
 0x41e   :  { %3646 = vst [vmem:[#allocation4 + $0xc] sm:$0xf] %v12722_v50  ;;  %v9482_v26 = vor.u32 %v11159_v42, %v9481_v15  ;;  %v9486_v28 = vor.u32 %v11157_v0, %v9483_v44  ;;  %v11155_v54 = vld [vmem:[#allocation5 + $0x6c] sm:$0xf0]  ;;  %v9490_v35 = vor.u32 %v11160_v43, %v9489_v4  ;;  %v9494_v31 = vor.u32 %v11158_v16, %v9491_v39  ;;  %v11153_v20 = vld [vmem:[#allocation5 + $0x64] sm:$0xf] }
 0x41f   :  { %11608 = vtanh.f32 %v12714_v34  ;;  %v3951_v8 = vsel %vm3950_vm10, %v12664_v48, %v3947_v29  ;;  %v9513_v48 = vld [vmem:[#allocation5 + $0xc0] sm:$0xf]  ;;  %v9467_v40 = vld [vmem:[#allocation5 + $0x70] sm:$0xf0]  ;;  %v9473_v29 = vld [vmem:[#allocation5 + $0x68] sm:$0xf] }
 0x420   :  { %v3956_v63 = vsel %vm3953_vm11, %v3955_v14, %v3951_v8  ;;  %v9514_v58 = vor.u32 %v11167_v36, %v9513_v48  ;;  %v11156_v17 = vld [vmem:[#allocation5 + $0x74] sm:$0xf0]  ;;  %v11154_v13 = vld [vmem:[#allocation5 + $0x6c] sm:$0xf]  ;;  %v9475_v8 = vld [vmem:[#allocation5 + $0x78] sm:$0xf0]  ;;  %v9466_v14 = vor.u32 %v11155_v54, %v9465_v46  ;;  %v9470_v21 = vor.u32 %v11153_v20, %v9467_v40 }
 0x421   :  { %v9449_v45 = vld [vmem:[#allocation5 + $0x40] sm:$0xf]  ;;  %v9478_v38 = vor.u32 %v11154_v13, %v9475_v8  ;;  %v11149_v56 = vld [vmem:[#allocation5 + $0x44] sm:$0xf]  ;;  %v9451_v9 = vld [vmem:[#allocation5 + $0x50] sm:$0xf0] }
 0x422   :  { %v11152_v59 = vld [vmem:[#allocation5 + $0x54] sm:$0xf0]  ;;  %v11150_v57 = vld [vmem:[#allocation5 + $0x4c] sm:$0xf]  ;;  %v9459_v33 = vld [vmem:[#allocation5 + $0x58] sm:$0xf0] }
 0x423   :  { %v9433_v48 = vld [vmem:[#allocation5 + $0x20] sm:$0xf]  ;;  %v11147_v36 = vld [vmem:[#allocation5 + $0x2c] sm:$0xf0]  ;;  %v11145_v2 = vld [vmem:[#allocation5 + $0x24] sm:$0xf] }
 0x424   :  { %v9435_v6 = vld [vmem:[#allocation5 + $0x30] sm:$0xf0]  ;;  %v9441_v7 = vld [vmem:[#allocation5 + $0x28] sm:$0xf]  ;;  %v11148_v60 = vld [vmem:[#allocation5 + $0x34] sm:$0xf0] }
 0x425   :  { %v11609_v53 = vpop.eup %11608  ;;  %v11146_v10 = vld [vmem:[#allocation5 + $0x2c] sm:$0xf]  ;;  %v9443_v37 = vld [vmem:[#allocation5 + $0x38] sm:$0xf0]  ;;  %v11143_v32 = vld [vmem:[#allocation5 + $0xc] sm:$0xf0]  ;;  %v9442_v55 = vor.u32 %v11148_v60, %v9441_v7 }
 0x426   :  { %v3962_v3 = vmul.f32 %v11609_v53, %v3956_v63  ;;  %v11151_v53 = vld [vmem:[#allocation5 + $0x4c] sm:$0xf0]  ;;  %v9474_v63 = vor.u32 %v11156_v17, %v9473_v29  ;;  %v9419_v19 = vld [vmem:[#allocation5 + $0x10] sm:$0xf0]  ;;  %v9425_v30 = vld [vmem:[#allocation5 + $0x8] sm:$0xf] }
 0x427   :  { %v11144_v22 = vld [vmem:[#allocation5 + $0x14] sm:$0xf0]  ;;  %v11142_v11 = vld [vmem:[#allocation5 + $0xc] sm:$0xf]  ;;  %v9427_v5 = vld [vmem:[#allocation5 + $0x18] sm:$0xf0] }
 0x428   :  { %v12726_v61 = vpack.c.bf16 %v3962_v3, %v3962_v3  ;;  %v9457_v3 = vld [vmem:[#allocation5 + $0x48] sm:$0xf]  ;;  %v9430_v15 = vor.u32 %v11142_v11, %v9427_v5  ;;  %v11203_v0 = vld [vmem:[#allocation7 + $0xec] sm:$0xf0]  ;;  %v11201_v44 = vld [vmem:[#allocation7 + $0xe4] sm:$0xf] }
 0x429   :  { %v9662_v43 = vld [vmem:[#allocation7 + $0xf0] sm:$0xf0]  ;;  %v9668_v16 = vld [vmem:[#allocation7 + $0xe8] sm:$0xf]  ;;  %v11204_v39 = vld [vmem:[#allocation7 + $0xf4] sm:$0xf0] }
 0x42a   :  { %4174 = vmatmul.bf16.vlgmr.msra.gmra.mxu0 %v12726_v61  ;;  %4187 = vmatmul.bf16.vlgmr.msra.gmra.mxu1 %v12726_v61  ;;  %v11202_v46 = vld [vmem:[#allocation7 + $0xec] sm:$0xf]  ;;  %v9670_v54 = vld [vmem:[#allocation7 + $0xf8] sm:$0xf0]  ;;  %v9644_v40 = vld [vmem:[#allocation7 + $0xc0] sm:$0xf] }
 0x42b   :  { %4200 = vmatmul.bf16.vlgmr.msra.gmra.mxu2 %v12726_v61  ;;  %4213 = vmatmul.bf16.vlgmr.msra.gmra.mxu3 %v12726_v61  ;;  %v11199_v29 = vld [vmem:[#allocation7 + $0xcc] sm:$0xf0]  ;;  %v11197_v17 = vld [vmem:[#allocation7 + $0xc4] sm:$0xf]  ;;  %v11194_v7 = vld [vmem:[#allocation7 + $0xac] sm:$0xf] }
 0x42c   :  { %4729 = vmatpush.bf16.msra.mxu0 %v9530_v62  ;;  %4742 = vmatpush.bf16.msra.mxu1 %v9534_v1  ;;  %v9450_v62 = vor.u32 %v11151_v53, %v9449_v45  ;;  %v9454_v1 = vor.u32 %v11149_v56, %v9451_v9  ;;  %v9652_v45 = vld [vmem:[#allocation7 + $0xc8] sm:$0xf]  ;;  %v11200_v53 = vld [vmem:[#allocation7 + $0xd4] sm:$0xf0]  ;;  %v11198_v56 = vld [vmem:[#allocation7 + $0xcc] sm:$0xf] }
 0x42d   :  { %4755 = vmatpush.bf16.msra.mxu2 %v9538_v12  ;;  %4768 = vmatpush.bf16.msra.mxu3 %v9542_v18  ;;  %v9458_v12 = vor.u32 %v11152_v59, %v9457_v3  ;;  %v9462_v18 = vor.u32 %v11150_v57, %v9459_v33  ;;  %v9654_v9 = vld [vmem:[#allocation7 + $0xd8] sm:$0xf0]  ;;  %v9628_v33 = vld [vmem:[#allocation7 + $0xa0] sm:$0xf]  ;;  %v9620_v11 = vld [vmem:[#allocation7 + $0x88] sm:$0xf] }
 0x42e   :  { %v9657_v57 = vor.u32 %v11198_v56, %v9654_v9  ;;  %v9638_v60 = vld [vmem:[#allocation7 + $0xb8] sm:$0xf0]  ;;  %v11192_v5 = vld [vmem:[#allocation7 + $0x94] sm:$0xf0]  ;;  %v11183_v56 = vld [vmem:[#allocation7 + $0x4c] sm:$0xf0] }
 0x42f   :  { %v11181_v9 = vld [vmem:[#allocation7 + $0x44] sm:$0xf] }
 0x430   :  { %4730 = vmatpush.bf16.msra.mxu0 %v9514_v58  ;;  %4743 = vmatpush.bf16.msra.mxu1 %v9518_v41  ;;  %v9434_v58 = vor.u32 %v11147_v36, %v9433_v48  ;;  %v9417_v41 = vld [vmem:[#allocation5] sm:$0xf]  ;;  %v9630_v36 = vld [vmem:[#allocation7 + $0xb0] sm:$0xf0] }
 0x431   :  { %4756 = vmatpush.bf16.msra.mxu2 %v9522_v51  ;;  %4769 = vmatpush.bf16.msra.mxu3 %v9526_v47  ;;  %v9446_v51 = vor.u32 %v11146_v10, %v9443_v37  ;;  %v11141_v47 = vld [vmem:[#allocation5 + $0x4] sm:$0xf]  ;;  %v9418_v23 = vor.u32 %v11143_v32, %v9417_v41  ;;  %v9641_v10 = vor.u32 %v11194_v7, %v9638_v60  ;;  %v9612_v32 = vld [vmem:[#allocation7 + $0x80] sm:$0xf] }
 0x432   :  { %v11177_v7 = vld [vmem:[#allocation7 + $0x24] sm:$0xf] }
 0x434   :  { %4731 = vmatpush.bf16.msra.mxu0 %v9498_v24  ;;  %4744 = vmatpush.bf16.msra.mxu1 %v9502_v49  ;;  %v9422_v24 = vor.u32 %v11141_v47, %v9419_v19  ;;  %v9426_v49 = vor.u32 %v11144_v22, %v9425_v30  ;;  %v9614_v22 = vld [vmem:[#allocation7 + $0x90] sm:$0xf0] }
 0x435   :  { %4757 = vmatpush.bf16.msra.mxu2 %v9506_v52  ;;  %4770 = vmatpush.bf16.msra.mxu3 %v9510_v27  ;;  %v9660_v27 = vld [vmem:[#allocation7 + $0xe0] sm:$0xf] }
 0x436   :  { %v9661_v4 = vor.u32 %v11203_v0, %v9660_v27  ;;  %v9622_v27 = vld [vmem:[#allocation7 + $0x98] sm:$0xf0] }
 0x438   :  { %4732 = vmatpush.bf16.msra.mxu0 %v9482_v26  ;;  %4745 = vmatpush.bf16.msra.mxu1 %v9486_v28  ;;  %v9665_v26 = vor.u32 %v11201_v44, %v9662_v43  ;;  %v9669_v28 = vor.u32 %v11204_v39, %v9668_v16  ;;  %v9596_v43 = vld [vmem:[#allocation7 + $0x60] sm:$0xf]  ;;  %v11187_v16 = vld [vmem:[#allocation7 + $0x6c] sm:$0xf0]  ;;  %v11185_v39 = vld [vmem:[#allocation7 + $0x64] sm:$0xf] }
 0x439   :  { %4758 = vmatpush.bf16.msra.mxu2 %v9490_v35  ;;  %4771 = vmatpush.bf16.msra.mxu3 %v9494_v31  ;;  %v12743_v35 = vld [vmem:[%s13527_s6] sm:$0xf] }
 0x43a   :  { %4418 = vmatmul.bf16.vlgmr.msrb.gmra.mxu0 %v12722_v50  ;;  %4431 = vmatmul.bf16.vlgmr.msrb.gmra.mxu1 %v12722_v50  ;;  %v3998_v3 = vperm.slane %v12743_v35, 0  ;;  %v3999_v59 = vperm.slane %v12743_v35, 1 }
 0x43b   :  { %4444 = vmatmul.bf16.vlgmr.msrb.gmra.mxu2 %v12722_v50  ;;  %4457 = vmatmul.bf16.vlgmr.msrb.gmra.mxu3 %v12722_v50  ;;  %v9438_v50 = vor.u32 %v11145_v2, %v9435_v6 }
 0x43c   :  { %4733 = vmatpush.bf16.msra.mxu0 %v9466_v14  ;;  %4746 = vmatpush.bf16.msra.mxu1 %v9470_v21  ;;  %v9645_v14 = vor.u32 %v11199_v29, %v9644_v40  ;;  %v9646_v21 = vld [vmem:[#allocation7 + $0xd0] sm:$0xf0]  ;;  %v11186_v40 = vld [vmem:[#allocation7 + $0x6c] sm:$0xf] }
 0x43d   :  { %4759 = vmatpush.bf16.msra.mxu2 %v9474_v63  ;;  %4772 = vmatpush.bf16.msra.mxu3 %v9478_v38  ;;  %v9649_v63 = vor.u32 %v11197_v17, %v9646_v21  ;;  %v9653_v38 = vor.u32 %v11200_v53, %v9652_v45  ;;  %v9580_v45 = vld [vmem:[#allocation7 + $0x40] sm:$0xf] }
 0x440   :  { %4734 = vmatpush.bf16.msra.mxu0 %v9450_v62  ;;  %4747 = vmatpush.bf16.msra.mxu1 %v9454_v1  ;;  %v11195_v62 = vld [vmem:[#allocation7 + $0xac] sm:$0xf0]  ;;  %v11193_v1 = vld [vmem:[#allocation7 + $0xa4] sm:$0xf] }
 0x441   :  { %4760 = vmatpush.bf16.msra.mxu2 %v9458_v12  ;;  %4773 = vmatpush.bf16.msra.mxu3 %v9462_v18  ;;  %v9629_v48 = vor.u32 %v11195_v62, %v9628_v33  ;;  %v9636_v12 = vld [vmem:[#allocation7 + $0xa8] sm:$0xf]  ;;  %v11196_v18 = vld [vmem:[#allocation7 + $0xb4] sm:$0xf0]  ;;  %v9633_v2 = vor.u32 %v11193_v1, %v9630_v36  ;;  %v11182_v62 = vld [vmem:[#allocation7 + $0x4c] sm:$0xf] }
 0x442   :  { %v9637_v6 = vor.u32 %v11196_v18, %v9636_v12  ;;  %v11184_v33 = vld [vmem:[#allocation7 + $0x54] sm:$0xf0]  ;;  %v9590_v36 = vld [vmem:[#allocation7 + $0x58] sm:$0xf0] }
 0x443   :  { %v9593_v18 = vor.u32 %v11182_v62, %v9590_v36  ;;  %v11236_v62 = vld [vmem:[#allocation9 + $0xf4] sm:$0xf0] }
 0x444   :  { %4735 = vmatpush.bf16.msra.mxu0 %v9434_v58  ;;  %4748 = vmatpush.bf16.msra.mxu1 %v9438_v50 }
 0x445   :  { %4761 = vmatpush.bf16.msra.mxu2 %v9442_v55  ;;  %4774 = vmatpush.bf16.msra.mxu3 %v9446_v51  ;;  %v11191_v55 = vld [vmem:[#allocation7 + $0x8c] sm:$0xf0]  ;;  %v11189_v51 = vld [vmem:[#allocation7 + $0x84] sm:$0xf] }
 0x446   :  { %v9613_v30 = vor.u32 %v11191_v55, %v9612_v32  ;;  %v11180_v55 = vld [vmem:[#allocation7 + $0x34] sm:$0xf0] }
 0x448   :  { %4736 = vmatpush.bf16.msra.mxu0 %v9418_v23  ;;  %4749 = vmatpush.bf16.msra.mxu1 %v9422_v24 }
 0x449   :  { %4762 = vmatpush.bf16.msra.mxu2 %v9426_v49  ;;  %4775 = vmatpush.bf16.msra.mxu3 %v9430_v15  ;;  %v9617_v49 = vor.u32 %v11189_v51, %v9614_v22  ;;  %v9621_v15 = vor.u32 %v11192_v5, %v9620_v11  ;;  %v11178_v51 = vld [vmem:[#allocation7 + $0x2c] sm:$0xf]  ;;  %v9411_v5 = vld [vmem:[%s13521_s0 + $0xa0] sm:$0xff] }
 0x44b   :  { %4737 = vmatmul.bf16.vlgmr.msra.gmra.mxu0 %v12726_v61  ;;  %4750 = vmatmul.bf16.vlgmr.msra.gmra.mxu1 %v12726_v61 }
 0x44c   :  { %4763 = vmatmul.bf16.vlgmr.msra.gmra.mxu2 %v12726_v61  ;;  %4776 = vmatmul.bf16.vlgmr.msra.gmra.mxu3 %v12726_v61  ;;  %v9673_v61 = vor.u32 %v11202_v46, %v9670_v54  ;;  %v9604_v54 = vld [vmem:[#allocation7 + $0x68] sm:$0xf] }
 0x44d   :  { %5051 = vmatpush.bf16.msrb.mxu0 %v9661_v4  ;;  %5064 = vmatpush.bf16.msrb.mxu1 %v9665_v26  ;;  %v9598_v26 = vld [vmem:[#allocation7 + $0x70] sm:$0xf0] }
 0x44e   :  { %5077 = vmatpush.bf16.msrb.mxu2 %v9669_v28  ;;  %5090 = vmatpush.bf16.msrb.mxu3 %v9673_v61  ;;  %v9597_v28 = vor.u32 %v11187_v16, %v9596_v43  ;;  %v9601_v46 = vor.u32 %v11185_v39, %v9598_v26  ;;  %v11188_v61 = vld [vmem:[#allocation7 + $0x74] sm:$0xf0]  ;;  %v9550_v16 = vld [vmem:[#allocation7 + $0x10] sm:$0xf0]  ;;  %v9556_v39 = vld [vmem:[#allocation7 + $0x8] sm:$0xf] }
 0x44f   :  { %v9605_v17 = vor.u32 %v11188_v61, %v9604_v54  ;;  %v11176_v61 = vld [vmem:[#allocation7 + $0x14] sm:$0xf0] }
 0x451   :  { %5052 = vmatpush.bf16.msrb.mxu0 %v9645_v14  ;;  %5065 = vmatpush.bf16.msrb.mxu1 %v9649_v63 }
 0x452   :  { %5078 = vmatpush.bf16.msrb.mxu2 %v9653_v38  ;;  %5091 = vmatpush.bf16.msrb.mxu3 %v9657_v57  ;;  %v9588_v57 = vld [vmem:[#allocation7 + $0x48] sm:$0xf] }
 0x455   :  { %5053 = vmatpush.bf16.msrb.mxu0 %v9629_v48  ;;  %5066 = vmatpush.bf16.msrb.mxu1 %v9633_v2  ;;  %v9589_v48 = vor.u32 %v11184_v33, %v9588_v57  ;;  %v9564_v2 = vld [vmem:[#allocation7 + $0x20] sm:$0xf]  ;;  %v9790_v57 = vld [vmem:[#allocation9 + $0xf0] sm:$0xf0]  ;;  %v9796_v33 = vld [vmem:[#allocation9 + $0xe8] sm:$0xf] }
 0x456   :  { %5079 = vmatpush.bf16.msrb.mxu2 %v9637_v6  ;;  %5092 = vmatpush.bf16.msrb.mxu3 %v9641_v10  ;;  %v11179_v6 = vld [vmem:[#allocation7 + $0x2c] sm:$0xf0] }
 0x459   :  { %5054 = vmatpush.bf16.msrb.mxu0 %v9613_v30  ;;  %5067 = vmatpush.bf16.msrb.mxu1 %v9617_v49 }
 0x45a   :  { %5080 = vmatpush.bf16.msrb.mxu2 %v9621_v15 }
 0x45d   :  { %5055 = vmatpush.bf16.msrb.mxu0 %v9597_v28  ;;  %5068 = vmatpush.bf16.msrb.mxu1 %v9601_v46 }
 0x45e   :  { %5081 = vmatpush.bf16.msrb.mxu2 %v9605_v17 }
 0x462   :  { %5082 = vmatpush.bf16.msrb.mxu2 %v9589_v48 }
 0x4a7   :  { %v4175_v42 = vpop.f32.mrf.mxu0  ;;  %v4188_v52 = vpop.f32.mrf.mxu1 }
 0x4a8   :  { %v4176_v37 = vadd.f32 %v4175_v42, %v3998_v3  ;;  %v4189_v58 = vadd.f32 %v4188_v52, %v3999_v59  ;;  %v11190_v42 = vld [vmem:[#allocation7 + $0x8c] sm:$0xf]  ;;  %v4001_v52 = vperm.slane %v12743_v35, 3  ;;  %v9582_v3 = vld [vmem:[#allocation7 + $0x50] sm:$0xf0]  ;;  %v9581_v59 = vor.u32 %v11183_v56, %v9580_v45 }
 0x4a9   :  { %v9625_v4 = vor.u32 %v11190_v42, %v9622_v27  ;;  %v11173_v27 = vld [vmem:[#allocation7 + $0x4] sm:$0xf]  ;;  %v9788_v45 = vld [vmem:[#allocation9 + $0xe0] sm:$0xf] }
 0x4aa   :  { %5056 = vmatpush.bf16.msrb.mxu0 %v9581_v59  ;;  %v9553_v54 = vor.u32 %v11173_v27, %v9550_v16  ;;  %v9782_v27 = vld [vmem:[#allocation9 + $0xd8] sm:$0xf0]  ;;  %v11218_v16 = vld [vmem:[#allocation9 + $0x6c] sm:$0xf] }
 0x4ab   :  { %5093 = vmatpush.bf16.msrb.mxu3 %v9625_v4 }
 0x4ae   :  { %v12745_v31 = vpop.f32.mrf.mxu2  ;;  %v12747_v20 = vpop.f32.mrf.mxu3 }
 0x4af   :  { %v4177_v13 = vpop.f32.mrf.mxu0  ;;  %v4190_v8 = vpop.f32.mrf.mxu1  ;;  %v4215_v29 = vadd.f32 %v12747_v20, %v4001_v52  ;;  %v9585_v20 = vor.u32 %v11181_v9, %v9582_v3  ;;  %v11175_v52 = vld [vmem:[#allocation7 + $0xc] sm:$0xf0]  ;;  %v11233_v3 = vld [vmem:[#allocation9 + $0xe4] sm:$0xf] }
 0x4b0   :  { %v9606_v13 = vld [vmem:[#allocation7 + $0x78] sm:$0xf0] }
 0x4b1   :  { %v9609_v21 = vor.u32 %v11186_v40, %v9606_v13  ;;  %5069 = vmatpush.bf16.msrb.mxu1 %v9585_v20  ;;  %v11174_v40 = vld [vmem:[#allocation7 + $0xc] sm:$0xf] }
 0x4b3   :  { %5094 = vmatpush.bf16.msrb.mxu3 %v9609_v21 }
 0x4b6   :  { %v4203_v50 = vpop.f32.mrf.mxu2  ;;  %v4216_v41 = vpop.f32.mrf.mxu3 }
 0x4b7   :  { %v4419_v47 = vpop.f32.mrf.mxu0  ;;  %v4432_v19 = vpop.f32.mrf.mxu1  ;;  %v9572_v50 = vld [vmem:[#allocation7 + $0x28] sm:$0xf]  ;;  %5095 = vmatpush.bf16.msrb.mxu3 %v9593_v18  ;;  %v11234_v18 = vld [vmem:[#allocation9 + $0xec] sm:$0xf] }
 0x4b8   :  { %v4462_v23 = vadd.f32 %v4419_v47, %v4176_v37  ;;  %v4463_v24 = vadd.f32 %v4432_v19, %v4189_v58  ;;  %v9565_v37 = vor.u32 %v11179_v6, %v9564_v2  ;;  %v9566_v58 = vld [vmem:[#allocation7 + $0x30] sm:$0xf0]  ;;  %v4000_v47 = vperm.slane %v12743_v35, 2  ;;  %v9574_v19 = vld [vmem:[#allocation7 + $0x38] sm:$0xf0] }
 0x4b9   :  { %v9569_v32 = vor.u32 %v11177_v7, %v9566_v58  ;;  %v9548_v35 = vld [vmem:[#allocation7] sm:$0xf]  ;;  %v9573_v15 = vor.u32 %v11180_v55, %v9572_v50  ;;  %v9577_v42 = vor.u32 %v11178_v51, %v9574_v19  ;;  %v9793_v6 = vor.u32 %v11233_v3, %v9790_v57  ;;  %v11231_v51 = vld [vmem:[#allocation9 + $0xcc] sm:$0xf0] }
 0x4ba   :  { %v9408_v0 = vmul.f32 -1.442695, %v4462_v23  ;;  %v9409_v44 = vmul.f32 -1.442695, %v4463_v24  ;;  %v9412_v23 = vld [vmem:[%s13521_s0 + $0xa8] sm:$0xff]  ;;  %5057 = vmatpush.bf16.msrb.mxu0 %v9565_v37  ;;  %v9549_v43 = vor.u32 %v11175_v52, %v9548_v35  ;;  %v4202_v17 = vadd.f32 %v12745_v31, %v4000_v47 }
 0x4bb   :  { %5070 = vmatpush.bf16.msrb.mxu1 %v9569_v32  ;;  %5083 = vmatpush.bf16.msrb.mxu2 %v9573_v15  ;;  %v9797_v7 = vor.u32 %v11236_v62, %v9796_v33  ;;  %v9772_v37 = vld [vmem:[#allocation9 + $0xc0] sm:$0xf]  ;;  %v11229_v47 = vld [vmem:[#allocation9 + $0xc4] sm:$0xf]  ;;  %v11232_v35 = vld [vmem:[#allocation9 + $0xd4] sm:$0xf0] }
 0x4bc   :  { %11610 = vpow2.f32 %v9408_v0  ;;  %5096 = vmatpush.bf16.msrb.mxu3 %v9577_v42  ;;  %v11230_v52 = vld [vmem:[#allocation9 + $0xcc] sm:$0xf] }
 0x4bd   :  { %11612 = vpow2.f32 %v9409_v44 }
 0x4be   :  { %v12753_v8 = vpop.f32.mrf.mxu2  ;;  %v4458_v14 = vpop.f32.mrf.mxu3  ;;  %5058 = vmatpush.bf16.msrb.mxu0 %v9549_v43 }
 0x4bf   :  { %v4465_v53 = vadd.f32 %v4458_v14, %v4215_v29  ;;  %v4421_v63 = vpop.f32.mrf.mxu0  ;;  %v4434_v38 = vpop.f32.mrf.mxu1  ;;  %v9558_v29 = vld [vmem:[#allocation7 + $0x18] sm:$0xf0]  ;;  %v9557_v14 = vor.u32 %v11176_v61, %v9556_v39  ;;  %5071 = vmatpush.bf16.msrb.mxu1 %v9553_v54  ;;  %v4464_v31 = vadd.f32 %v12753_v8, %v4202_v17  ;;  %v9414_v8 = vld [vmem:[%s13521_s0 + $0xb8] sm:$0xff]  ;;  %v11228_v17 = vld [vmem:[#allocation9 + $0xb4] sm:$0xf0] }
 0x4c0   :  { %v9561_v21 = vor.u32 %v11174_v40, %v9558_v29  ;;  %v9764_v29 = vld [vmem:[#allocation9 + $0xa8] sm:$0xf] }
 0x4c1   :  { %v9410_v1 = vmul.f32 -1.442695, %v4465_v53  ;;  %v11235_v53 = vld [vmem:[#allocation9 + $0xec] sm:$0xf0]  ;;  %5084 = vmatpush.bf16.msrb.mxu2 %v9557_v14 }
 0x4c2   :  { %v11611_v12 = vpop.eup %11610  ;;  %v9789_v9 = vor.u32 %v11235_v53, %v9788_v45  ;;  %5097 = vmatpush.bf16.msrb.mxu3 %v9561_v21 }
 0x4c3   :  { %v11613_v60 = vpop.eup %11612  ;;  %v12755_v10 = vadd.f32 1.0, %v11611_v12  ;;  %11614 = vpow2.f32 %v9410_v1  ;;  %5308 = vmatpush.bf16.msra.mxu1 %v9793_v6  ;;  %v9748_v6 = vld [vmem:[#allocation9 + $0x88] sm:$0xf] }
 0x4c4   :  { %v12757_v41 = vadd.f32 1.0, %v11613_v60  ;;  %5295 = vmatpush.bf16.msra.mxu0 %v9789_v9  ;;  %v9798_v60 = vld [vmem:[#allocation9 + $0xf8] sm:$0xf0] }
 0x4c5   :  { %11616 = vrcp.f32 %v12755_v10  ;;  %v4479_v30 = vand.u32 2147483647, %v12755_v10  ;;  %v4481_v49 = vand.u32 2147483648, %v12755_v10  ;;  %v9801_v55 = vor.u32 %v11234_v18, %v9798_v60  ;;  %5321 = vmatpush.bf16.msra.mxu2 %v9797_v7  ;;  %v9766_v9 = vld [vmem:[#allocation9 + $0xb8] sm:$0xf0] }
 0x4c6   :  { %11618 = vrcp.f32 %v12757_v41  ;;  %v4447_v22 = vpop.f32.mrf.mxu2  ;;  %v4460_v11 = vpop.f32.mrf.mxu3  ;;  %v4500_v24 = vand.u32 2147483648, %v12757_v41  ;;  %v4498_v0 = vand.u32 2147483647, %v12757_v41  ;;  %vm4475_vm15 = vweird.f32 %v12755_v10  ;;  %v11223_v18 = vld [vmem:[#allocation9 + $0x8c] sm:$0xf0] }
 0x4c7   :  { %vm12787_vm12 = vcmp.eq.f32.partialorder %v4479_v30, 8.507059e+37  ;;  %v12791_v12 = vor.u32 1.1754944e-38, %v4481_v49  ;;  %5334 = vmatpush.bf16.msra.mxu3 %v9801_v55  ;;  %v9773_v49 = vor.u32 %v11231_v51, %v9772_v37  ;;  %vm4494_vm1 = vweird.f32 %v12757_v41  ;;  %v11224_v7 = vld [vmem:[#allocation9 + $0x94] sm:$0xf0]  ;;  %v11222_v55 = vld [vmem:[#allocation9 + $0x8c] sm:$0xf] }
 0x4c8   :  { %v4738_v44 = vpop.f32.mrf.mxu0  ;;  %v4751_v4 = vpop.f32.mrf.mxu1  ;;  %v12785_v48 = vor.u32 1.1754944e-38, %v4500_v24  ;;  %vm4499_vm3 = vcmp.eq.f32.partialorder %v4498_v0, 8.507059e+37  ;;  %v9750_v51 = vld [vmem:[#allocation9 + $0x98] sm:$0xf0] }
 0x4c9   :  { %v11615_v26 = vpop.eup %11614  ;;  %v4781_v28 = vadd.f32 %v9411_v5, %v4738_v44  ;;  %v4782_v46 = vadd.f32 %v9412_v23, %v4751_v4  ;;  %v9774_v5 = vld [vmem:[#allocation9 + $0xd0] sm:$0xf0]  ;;  %v9780_v23 = vld [vmem:[#allocation9 + $0xc8] sm:$0xf]  ;;  %v9756_v44 = vld [vmem:[#allocation9 + $0xa0] sm:$0xf]  ;;  %5296 = vmatpush.bf16.msra.mxu0 %v9773_v49 }
 0x4ca   :  { %v12773_v13 = vadd.f32 1.0, %v11615_v26  ;;  %v9777_v15 = vor.u32 %v11229_v47, %v9774_v5  ;;  %v9781_v42 = vor.u32 %v11232_v35, %v9780_v23  ;;  %v9785_v26 = vor.u32 %v11230_v52, %v9782_v27  ;;  %v9724_v47 = vld [vmem:[#allocation9 + $0x60] sm:$0xf]  ;;  %v11219_v5 = vld [vmem:[#allocation9 + $0x6c] sm:$0xf0] }
 0x4cb   :  { %v12775_v63 = vpop.eup %11616  ;;  %v9543_v38 = vmul.f32 -1.442695, %v4781_v28  ;;  %v9544_v56 = vmul.f32 -1.442695, %v4782_v46  ;;  %v11227_v28 = vld [vmem:[#allocation9 + $0xac] sm:$0xf0]  ;;  %v9725_v52 = vor.u32 %v11219_v5, %v9724_v47 }
 0x4cc   :  { %v12777_v59 = vpop.eup %11618  ;;  %v4471_v20 = vmul.f32 %v12775_v63, %v12755_v10  ;;  %11620 = vrcp.f32 %v12773_v13  ;;  %vm4476_vm13 = vweird.f32 %v12775_v63  ;;  %v11225_v46 = vld [vmem:[#allocation9 + $0xa4] sm:$0xf]  ;;  %v9757_v40 = vor.u32 %v11227_v28, %v9756_v44  ;;  %v9758_v10 = vld [vmem:[#allocation9 + $0xb0] sm:$0xf0]  ;;  %5309 = vmatpush.bf16.msra.mxu1 %v9777_v15  ;;  %5322 = vmatpush.bf16.msra.mxu2 %v9781_v42  ;;  %v9732_v44 = vld [vmem:[#allocation9 + $0x68] sm:$0xf] }
 0x4cd   :  { %v4490_v1 = vmul.f32 %v12777_v59, %v12757_v41  ;;  %11622 = vpow2.f32 %v9543_v38  ;;  %vm4495_vm14 = vweird.f32 %v12777_v59  ;;  %vm12810_vm0 = vmor %vm4475_vm15, %vm4476_vm13  ;;  %v9761_v53 = vor.u32 %v11225_v46, %v9758_v10  ;;  %5335 = vmatpush.bf16.msra.mxu3 %v9785_v26  ;;  %v11217_v23 = vld [vmem:[#allocation9 + $0x64] sm:$0xf]  ;;  %v9726_v15 = vld [vmem:[#allocation9 + $0x70] sm:$0xf0] }
 0x4ce   :  { %v4472_v2 = vsub.f32 1.0, %v4471_v20  ;;  %11624 = vpow2.f32 %v9544_v56  ;;  %vm12822_vm2 = vmor %vm4494_vm1, %vm4495_vm14  ;;  %v9765_v38 = vor.u32 %v11228_v17, %v9764_v29  ;;  %v11226_v56 = vld [vmem:[#allocation9 + $0xac] sm:$0xf]  ;;  %5297 = vmatpush.bf16.msra.mxu0 %v9757_v40  ;;  %v4518_v36 = vand.u32 2147483647, %v12773_v13 }
 0x4cf   :  { %v4491_v58 = vsub.f32 1.0, %v4490_v1  ;;  %v12797_v50 = vpop.f32.mrf.mxu2  ;;  %v4777_v32 = vpop.f32.mrf.mxu3  ;;  %11626 = vtanh.f32 %v4464_v31  ;;  %v4520_v31 = vand.u32 2147483648, %v12773_v13  ;;  %vm4514_vm4 = vweird.f32 %v12773_v13  ;;  %v9734_v46 = vld [vmem:[#allocation9 + $0x78] sm:$0xf0]  ;;  %v9708_v29 = vld [vmem:[#allocation9 + $0x40] sm:$0xf] }
 0x4d0   :  { %v4473_v19 = vmul.f32 %v12775_v63, %v4472_v2  ;;  %v4784_v30 = vadd.f32 %v9414_v8, %v4777_v32  ;;  %v4740_v22 = vpop.f32.mrf.mxu0  ;;  %v4753_v11 = vpop.f32.mrf.mxu1  ;;  %v9769_v8 = vor.u32 %v11226_v56, %v9766_v9  ;;  %v9742_v2 = vld [vmem:[#allocation9 + $0x90] sm:$0xf0]  ;;  %5310 = vmatpush.bf16.msra.mxu1 %v9761_v53  ;;  %5323 = vmatpush.bf16.msra.mxu2 %v9765_v38  ;;  %v11215_v17 = vld [vmem:[#allocation9 + $0x4c] sm:$0xf0]  ;;  %v9716_v56 = vld [vmem:[#allocation9 + $0x48] sm:$0xf] }
 0x4d1   :  { %v4492_v24 = vmul.f32 %v12777_v59, %v4491_v58  ;;  %v9749_v11 = vor.u32 %v11224_v7, %v9748_v6  ;;  %v9753_v42 = vor.u32 %v11222_v55, %v9750_v51  ;;  %v9729_v27 = vor.u32 %v11217_v23, %v9726_v15  ;;  %v9710_v38 = vld [vmem:[#allocation9 + $0x50] sm:$0xf0]  ;;  %v11211_v7 = vld [vmem:[#allocation9 + $0x2c] sm:$0xf0]  ;;  %v9700_v55 = vld [vmem:[#allocation9 + $0x28] sm:$0xf] }
 0x4d2   :  { %v12803_v4 = vpop.eup %11620  ;;  %v4474_v43 = vadd.f32 %v12775_v63, %v4473_v19  ;;  %v9545_v39 = vmul.f32 -1.442695, %v4784_v30  ;;  %5336 = vmatpush.bf16.msra.mxu3 %v9769_v8  ;;  %v12851_v30 = vor.u32 1.1754944e-38, %v4520_v31  ;;  %v9737_v10 = vor.u32 %v11218_v16, %v9734_v46  ;;  %v11212_v51 = vld [vmem:[#allocation9 + $0x34] sm:$0xf0] }
 0x4d3   :  { %v4493_v54 = vadd.f32 %v12777_v59, %v4492_v24  ;;  %v12818_v61 = vmul.f32 %v12803_v4, %v12773_v13  ;;  %v11623_v14 = vpop.eup %11622  ;;  %vm4515_vm5 = vweird.f32 %v12803_v4  ;;  %v11210_v47 = vld [vmem:[#allocation9 + $0x2c] sm:$0xf]  ;;  %v9702_v5 = vld [vmem:[#allocation9 + $0x38] sm:$0xf0]  ;;  %v9676_v23 = vld [vmem:[#allocation9] sm:$0xf] }
 0x4d4   :  { %v4478_v45 = vsel %vm12810_vm0, %v12775_v63, %v4474_v43  ;;  %11628 = vpow2.f32 %v9545_v39  ;;  %v11625_v3 = vpop.eup %11624  ;;  %v12835_v57 = vadd.f32 1.0, %v11623_v14  ;;  %v9740_v63 = vld [vmem:[#allocation9 + $0x80] sm:$0xf]  ;;  %5324 = vmatpush.bf16.msra.mxu2 %v9749_v11  ;;  %v11220_v43 = vld [vmem:[#allocation9 + $0x74] sm:$0xf0]  ;;  %vm12885_vm7 = vmor %vm4514_vm4, %vm4515_vm5  ;;  %v9701_v11 = vor.u32 %v11212_v51, %v9700_v55 }
 0x4d5   :  { %v4497_v20 = vsel %vm12822_vm2, %v12777_v59, %v4493_v54  ;;  %v4483_v33 = vsel %vm12787_vm12, %v12791_v12, %v4478_v45  ;;  %v12841_v1 = vadd.f32 1.0, %v11625_v3  ;;  %v11221_v59 = vld [vmem:[#allocation9 + $0x84] sm:$0xf]  ;;  %v11627_v60 = vpop.eup %11626  ;;  %v4511_v37 = vsub.f32 1.0, %v12818_v61  ;;  %v9909_v51 = vld [vmem:[#allocation5 + $0xd0] sm:$0xf0] }
 0x4d6   :  { %v4502_v62 = vsel %vm4499_vm3, %v12785_v48, %v4497_v20  ;;  %11630 = vrcp.f32 %v12835_v57  ;;  %v9413_v48 = vld [vmem:[%s13521_s0 + $0xb0] sm:$0xff]  ;;  %v4525_v58 = vmul.f32 %v11627_v60, %v4483_v33  ;;  %v9741_v32 = vor.u32 %v11223_v18, %v9740_v63  ;;  %5337 = vmatpush.bf16.msra.mxu3 %v9753_v42  ;;  %v11213_v14 = vld [vmem:[#allocation9 + $0x44] sm:$0xf]  ;;  %v11216_v63 = vld [vmem:[#allocation9 + $0x54] sm:$0xf0] }
 0x4d7   :  { %v4766_v41 = vpop.f32.mrf.mxu2  ;;  %v4779_v0 = vpop.f32.mrf.mxu3  ;;  %11632 = vrcp.f32 %v12841_v1  ;;  %v4524_v12 = vmul.f32 %v4502_v62, %v12632_v25  ;;  %v9745_v22 = vor.u32 %v11221_v59, %v9742_v2  ;;  %v4819_v35 = vand.u32 2147483648, %v12841_v1  ;;  %v11214_v33 = vld [vmem:[#allocation9 + $0x4c] sm:$0xf]  ;;  %v9718_v59 = vld [vmem:[#allocation9 + $0x58] sm:$0xf0] }
 0x4d8   :  { %v4783_v24 = vadd.f32 %v9413_v48, %v12797_v50  ;;  %v4798_v49 = vand.u32 2147483647, %v12835_v57  ;;  %5298 = vmatpush.bf16.msra.mxu0 %v9741_v32  ;;  %v4512_v50 = vmul.f32 %v12803_v4, %v4511_v37  ;;  %v4817_v28 = vand.u32 2147483647, %v12841_v1  ;;  %v9692_v41 = vld [vmem:[#allocation9 + $0x20] sm:$0xf] }
 0x4d9   :  { %5311 = vmatpush.bf16.msra.mxu1 %v9745_v22  ;;  %v12861_v26 = vadd.f32 %v4525_v58, %v4524_v12  ;;  %v9733_v40 = vor.u32 %v11220_v43, %v9732_v44  ;;  %v12873_v45 = vor.u32 1.1754944e-38, %v4819_v35  ;;  %v4800_v53 = vand.u32 2147483648, %v12835_v57  ;;  %v11209_v60 = vld [vmem:[#allocation9 + $0x24] sm:$0xf]  ;;  %v9694_v37 = vld [vmem:[#allocation9 + $0x30] sm:$0xf0] }
 0x4da   :  { %v11629_v19 = vpop.eup %11628  ;;  %vm12876_vm6 = vcmp.eq.f32.partialorder %v4798_v49, 8.507059e+37  ;;  %v9709_v20 = vor.u32 %v11215_v17, %v9708_v29  ;;  %v9713_v31 = vor.u32 %v11213_v14, %v9710_v38  ;;  %v9717_v18 = vor.u32 %v11216_v63, %v9716_v56  ;;  %5338 = vmatpush.bf16.msra.mxu3 %v9737_v10  ;;  %v11207_v35 = vld [vmem:[#allocation9 + $0xc] sm:$0xf0]  ;;  %v9678_v44 = vld [vmem:[#allocation9 + $0x10] sm:$0xf0] }
 0x4db   :  { %v12856_v25 = vadd.f32 1.0, %v11629_v19  ;;  %5325 = vmatpush.bf16.msra.mxu2 %v9733_v40  ;;  %v4513_v0 = vadd.f32 %v12803_v4, %v4512_v50  ;;  %vm4794_vm8 = vweird.f32 %v12835_v57  ;;  %v9721_v6 = vor.u32 %v11214_v33, %v9718_v59  ;;  %v11208_v40 = vld [vmem:[#allocation9 + $0x14] sm:$0xf0]  ;;  %v11206_v14 = vld [vmem:[#allocation9 + $0xc] sm:$0xf] }
 0x4dc   :  { %v12859_v39 = vpop.eup %11630  ;;  %5299 = vmatpush.bf16.msra.mxu0 %v9725_v52  ;;  %v9693_v58 = vor.u32 %v11211_v7, %v9692_v41  ;;  %v9697_v32 = vor.u32 %v11209_v60, %v9694_v37  ;;  %vm4813_vm11 = vweird.f32 %v12841_v1  ;;  %v4801_v15 = vor.u32 1.1754944e-38, %v4800_v53  ;;  %v9923_v63 = vld [vmem:[#allocation5 + $0xe0] sm:$0xf]  ;;  %v11267_v33 = vld [vmem:[#allocation5 + $0xec] sm:$0xf0] }
 0x4dd   :  { %11634 = vrcp.f32 %v12856_v25  ;;  %v12866_v54 = vpop.eup %11632  ;;  %v4790_v61 = vmul.f32 %v12859_v39, %v12835_v57  ;;  %5312 = vmatpush.bf16.msra.mxu1 %v9729_v27  ;;  %vm4795_vm9 = vweird.f32 %v12859_v39  ;;  %vm12912_vm13 = vcmp.eq.f32.partialorder %v4817_v28, 8.507059e+37  ;;  %v11205_v27 = vld [vmem:[#allocation9 + $0x4] sm:$0xf]  ;;  %v9925_v59 = vld [vmem:[#allocation5 + $0xf0] sm:$0xf0] }
 0x4de   :  { %v4809_v21 = vmul.f32 %v12866_v54, %v12841_v1  ;;  %11636 = vtanh.f32 %v4783_v24  ;;  %vm4814_vm10 = vweird.f32 %v12866_v54  ;;  %vm12905_vm12 = vmor %vm4794_vm8, %vm4795_vm9  ;;  %v4517_v43 = vsel %vm12885_vm7, %v12803_v4, %v4513_v0  ;;  %5339 = vmatpush.bf16.msra.mxu3 %v9721_v6  ;;  %v9931_v41 = vld [vmem:[#allocation5 + $0xe8] sm:$0xf]  ;;  %v9933_v6 = vld [vmem:[#allocation5 + $0xf8] sm:$0xf0] }
 0x4df   :  { %v4791_v9 = vsub.f32 1.0, %v4790_v61  ;;  %11638 = vtanh.f32 %v12861_v26  ;;  %5326 = vmatpush.bf16.msra.mxu2 %v9717_v18  ;;  %vm12923_vm14 = vmor %vm4813_vm11, %vm4814_vm10  ;;  %v9705_v28 = vor.u32 %v11210_v47, %v9702_v5  ;;  %v9677_v46 = vor.u32 %v11207_v35, %v9676_v23  ;;  %v9684_v61 = vld [vmem:[#allocation9 + $0x8] sm:$0xf]  ;;  %v11265_v18 = vld [vmem:[#allocation5 + $0xe4] sm:$0xf] }
 0x4e0   :  { %v4810_v8 = vsub.f32 1.0, %v4809_v21  ;;  %5300 = vmatpush.bf16.msra.mxu0 %v9709_v20  ;;  %v9681_v29 = vor.u32 %v11205_v27, %v9678_v44  ;;  %v9685_v17 = vor.u32 %v11208_v40, %v9684_v61  ;;  %v9686_v21 = vld [vmem:[#allocation9 + $0x18] sm:$0xf0]  ;;  %vm4519_vm15 = vcmp.eq.f32.partialorder %v4518_v36, 8.507059e+37  ;;  %v11261_v55 = vld [vmem:[#allocation5 + $0xc4] sm:$0xf] }
 0x4e1   :  { %v4792_v2 = vmul.f32 %v12859_v39, %v4791_v9  ;;  %5313 = vmatpush.bf16.msra.mxu1 %v9713_v31  ;;  %v9689_v9 = vor.u32 %v11206_v14, %v9686_v21  ;;  %v4837_v13 = vand.u32 2147483647, %v12856_v25  ;;  %vm4833_vm1 = vweird.f32 %v12856_v25  ;;  %v9915_v47 = vld [vmem:[#allocation5 + $0xc8] sm:$0xf]  ;;  %v9891_v35 = vld [vmem:[#allocation5 + $0xa0] sm:$0xf] }
 0x4e2   :  { %v4811_v12 = vmul.f32 %v12866_v54, %v4810_v8  ;;  %5340 = vmatpush.bf16.msra.mxu3 %v9705_v28  ;;  %v9924_v60 = vor.u32 %v11267_v33, %v9923_v63  ;;  %v9928_v37 = vor.u32 %v11265_v18, %v9925_v59  ;;  %v9912_v23 = vor.u32 %v11261_v55, %v9909_v51  ;;  %v9893_v52 = vld [vmem:[#allocation5 + $0xb0] sm:$0xf0]  ;;  %v9899_v27 = vld [vmem:[#allocation5 + $0xa8] sm:$0xf]  ;;  %v11260_v44 = vld [vmem:[#allocation5 + $0xb4] sm:$0xf0] }
 0x4e3   :  { %v12893_v48 = vpop.eup %11634  ;;  %v4793_v19 = vadd.f32 %v12859_v39, %v4792_v2  ;;  %5327 = vmatpush.bf16.msra.mxu2 %v9701_v11  ;;  %vm4838_vm3 = vcmp.eq.f32.partialorder %v4837_v13, 8.507059e+37  ;;  %v11268_v2 = vld [vmem:[#allocation5 + $0xf4] sm:$0xf0]  ;;  %v9917_v11 = vld [vmem:[#allocation5 + $0xd8] sm:$0xf0]  ;;  %v9900_v61 = vor.u32 %v11260_v44, %v9899_v27 }
 0x4e4   :  { %v4829_v22 = vmul.f32 %v12893_v48, %v12856_v25  ;;  %v11637_v24 = vpop.eup %11636  ;;  %v4812_v42 = vadd.f32 %v12866_v54, %v4811_v12  ;;  %5301 = vmatpush.bf16.msra.mxu0 %v9693_v58  ;;  %vm4834_vm0 = vweird.f32 %v12893_v48  ;;  %v11263_v12 = vld [vmem:[#allocation5 + $0xcc] sm:$0xf0]  ;;  %v9932_v58 = vor.u32 %v11268_v2, %v9931_v41  ;;  %v9901_v57 = vld [vmem:[#allocation5 + $0xb8] sm:$0xf0]  ;;  %v9875_v28 = vld [vmem:[#allocation5 + $0x80] sm:$0xf] }
 0x4e5   :  { %v4797_v16 = vsel %vm12905_vm12, %v12859_v39, %v4793_v19  ;;  %v11639_v10 = vpop.eup %11638  ;;  %5314 = vmatpush.bf16.msra.mxu1 %v9697_v32  ;;  %vm4835_vm2 = vmor %vm4833_vm1, %vm4834_vm0  ;;  %v11264_v19 = vld [vmem:[#allocation5 + $0xd4] sm:$0xf0]  ;;  %v9885_v14 = vld [vmem:[#allocation5 + $0x98] sm:$0xf0] }
 0x4e6   :  { %v4830_v50 = vsub.f32 1.0, %v4829_v22  ;;  %v4802_v4 = vsel %vm12876_vm6, %v4801_v15, %v4797_v16  ;;  %v4816_v1 = vsel %vm12923_vm14, %v12866_v54, %v4812_v42  ;;  %v4522_v54 = vsel %vm4519_vm15, %v12851_v30, %v4517_v43  ;;  %5341 = vmatpush.bf16.msra.mxu3 %v9689_v9  ;;  %v11262_v22 = vld [vmem:[#allocation5 + $0xcc] sm:$0xf]  ;;  %v11257_v42 = vld [vmem:[#allocation5 + $0xa4] sm:$0xf] }
 0x4e7   :  { %v4821_v39 = vsel %vm12912_vm13, %v12873_v45, %v4816_v1  ;;  %v4844_v53 = vmul.f32 %v11637_v24, %v4802_v4  ;;  %v4528_v3 = vmul.f32 %v11639_v10, %v4522_v54  ;;  %5328 = vmatpush.bf16.msra.mxu2 %v9685_v17  ;;  %v11259_v24 = vld [vmem:[#allocation5 + $0xac] sm:$0xf0]  ;;  %v9916_v49 = vor.u32 %v11264_v19, %v9915_v47  ;;  %v11258_v43 = vld [vmem:[#allocation5 + $0xac] sm:$0xf]  ;;  %v11253_v10 = vld [vmem:[#allocation5 + $0x84] sm:$0xf] }
 0x4e8   :  { %v4831_v38 = vmul.f32 %v12893_v48, %v4830_v50  ;;  %v4843_v56 = vmul.f32 %v4821_v39, %v12714_v34  ;;  %5302 = vmatpush.bf16.msra.mxu0 %v9677_v46  ;;  %v4839_v34 = vand.u32 2147483648, %v12856_v25  ;;  %v11266_v25 = vld [vmem:[#allocation5 + $0xec] sm:$0xf]  ;;  %v9920_v15 = vor.u32 %v11262_v22, %v9917_v11  ;;  %v11255_v46 = vld [vmem:[#allocation5 + $0x8c] sm:$0xf0] }
 0x4e9   :  { %5315 = vmatpush.bf16.msra.mxu1 %v9681_v29  ;;  %v12951_v36 = vpack.c.bf16 %v4528_v3, %v4528_v3  ;;  %v9936_v32 = vor.u32 %v11266_v25, %v9933_v6  ;;  %v9892_v16 = vor.u32 %v11259_v24, %v9891_v35  ;;  %v9896_v50 = vor.u32 %v11257_v42, %v9893_v52  ;;  %v9877_v4 = vld [vmem:[#allocation5 + $0x90] sm:$0xf0]  ;;  %v9883_v1 = vld [vmem:[#allocation5 + $0x88] sm:$0xf]  ;;  %v11256_v29 = vld [vmem:[#allocation5 + $0x94] sm:$0xf0] }
 0x4ea   :  { %v12943_v20 = vadd.f32 %v4844_v53, %v4843_v56  ;;  %v4832_v45 = vadd.f32 %v12893_v48, %v4831_v38  ;;  %v4840_v31 = vor.u32 1.1754944e-38, %v4839_v34  ;;  %v9904_v40 = vor.u32 %v11258_v43, %v9901_v57  ;;  %v11254_v17 = vld [vmem:[#allocation5 + $0x8c] sm:$0xf]  ;;  %v9859_v53 = vld [vmem:[#allocation5 + $0x60] sm:$0xf] }
 0x4eb   :  { %4531 = vst [vmem:[#allocation4 + $0x10] sm:$0xf] %v12951_v36  ;;  %v9876_v21 = vor.u32 %v11255_v46, %v9875_v28  ;;  %v9880_v39 = vor.u32 %v11253_v10, %v9877_v4  ;;  %v11251_v38 = vld [vmem:[#allocation5 + $0x6c] sm:$0xf0]  ;;  %v9884_v56 = vor.u32 %v11256_v29, %v9883_v1  ;;  %v9888_v54 = vor.u32 %v11254_v17, %v9885_v14  ;;  %v11249_v9 = vld [vmem:[#allocation5 + $0x64] sm:$0xf] }
 0x4ec   :  { %11640 = vtanh.f32 %v12943_v20  ;;  %v4836_v30 = vsel %vm4835_vm2, %v12893_v48, %v4832_v45  ;;  %v9907_v48 = vld [vmem:[#allocation5 + $0xc0] sm:$0xf]  ;;  %v9861_v3 = vld [vmem:[#allocation5 + $0x70] sm:$0xf0]  ;;  %v9867_v45 = vld [vmem:[#allocation5 + $0x68] sm:$0xf] }
 0x4ed   :  { %v4841_v8 = vsel %vm4838_vm3, %v4840_v31, %v4836_v30  ;;  %v9908_v5 = vor.u32 %v11263_v12, %v9907_v48  ;;  %v11252_v13 = vld [vmem:[#allocation5 + $0x74] sm:$0xf0]  ;;  %v11250_v34 = vld [vmem:[#allocation5 + $0x6c] sm:$0xf]  ;;  %v9869_v30 = vld [vmem:[#allocation5 + $0x78] sm:$0xf0]  ;;  %v9860_v31 = vor.u32 %v11251_v38, %v9859_v53  ;;  %v9864_v63 = vor.u32 %v11249_v9, %v9861_v3 }
 0x4ee   :  { %v9843_v33 = vld [vmem:[#allocation5 + $0x40] sm:$0xf]  ;;  %v9872_v18 = vor.u32 %v11250_v34, %v9869_v30  ;;  %v11245_v59 = vld [vmem:[#allocation5 + $0x44] sm:$0xf]  ;;  %v9845_v41 = vld [vmem:[#allocation5 + $0x50] sm:$0xf0] }
 0x4ef   :  { %v11248_v2 = vld [vmem:[#allocation5 + $0x54] sm:$0xf0]  ;;  %v11246_v25 = vld [vmem:[#allocation5 + $0x4c] sm:$0xf]  ;;  %v9853_v6 = vld [vmem:[#allocation5 + $0x58] sm:$0xf0] }
 0x4f0   :  { %v9827_v48 = vld [vmem:[#allocation5 + $0x20] sm:$0xf]  ;;  %v11243_v12 = vld [vmem:[#allocation5 + $0x2c] sm:$0xf0]  ;;  %v11241_v55 = vld [vmem:[#allocation5 + $0x24] sm:$0xf] }
 0x4f1   :  { %v9829_v51 = vld [vmem:[#allocation5 + $0x30] sm:$0xf0]  ;;  %v9835_v47 = vld [vmem:[#allocation5 + $0x28] sm:$0xf]  ;;  %v11244_v19 = vld [vmem:[#allocation5 + $0x34] sm:$0xf0] }
 0x4f2   :  { %v11641_v62 = vpop.eup %11640  ;;  %v11242_v22 = vld [vmem:[#allocation5 + $0x2c] sm:$0xf]  ;;  %v9837_v11 = vld [vmem:[#allocation5 + $0x38] sm:$0xf0]  ;;  %v11239_v35 = vld [vmem:[#allocation5 + $0xc] sm:$0xf0]  ;;  %v9836_v24 = vor.u32 %v11244_v19, %v9835_v47 }
 0x4f3   :  { %v4847_v0 = vmul.f32 %v11641_v62, %v4841_v8  ;;  %v11247_v62 = vld [vmem:[#allocation5 + $0x4c] sm:$0xf0]  ;;  %v9868_v8 = vor.u32 %v11252_v13, %v9867_v45  ;;  %v9813_v42 = vld [vmem:[#allocation5 + $0x10] sm:$0xf0]  ;;  %v9819_v52 = vld [vmem:[#allocation5 + $0x8] sm:$0xf] }
 0x4f4   :  { %v11240_v27 = vld [vmem:[#allocation5 + $0x14] sm:$0xf0]  ;;  %v11238_v44 = vld [vmem:[#allocation5 + $0xc] sm:$0xf]  ;;  %v9821_v43 = vld [vmem:[#allocation5 + $0x18] sm:$0xf0] }
 0x4f5   :  { %v12955_v7 = vpack.c.bf16 %v4847_v0, %v4847_v0  ;;  %v9851_v0 = vld [vmem:[#allocation5 + $0x48] sm:$0xf]  ;;  %v9824_v28 = vor.u32 %v11238_v44, %v9821_v43  ;;  %v11299_v10 = vld [vmem:[#allocation7 + $0xec] sm:$0xf0]  ;;  %v11297_v4 = vld [vmem:[#allocation7 + $0xe4] sm:$0xf] }
 0x4f6   :  { %v10056_v29 = vld [vmem:[#allocation7 + $0xf0] sm:$0xf0]  ;;  %v10062_v17 = vld [vmem:[#allocation7 + $0xe8] sm:$0xf]  ;;  %v11300_v14 = vld [vmem:[#allocation7 + $0xf4] sm:$0xf0] }
 0x4f7   :  { %5059 = vmatmul.bf16.vlgmr.msrb.gmra.mxu0 %v12955_v7  ;;  %5072 = vmatmul.bf16.vlgmr.msrb.gmra.mxu1 %v12955_v7  ;;  %v11298_v53 = vld [vmem:[#allocation7 + $0xec] sm:$0xf]  ;;  %v10064_v38 = vld [vmem:[#allocation7 + $0xf8] sm:$0xf0]  ;;  %v10038_v3 = vld [vmem:[#allocation7 + $0xc0] sm:$0xf] }
 0x4f8   :  { %5085 = vmatmul.bf16.vlgmr.msrb.gmra.mxu2 %v12955_v7  ;;  %5098 = vmatmul.bf16.vlgmr.msrb.gmra.mxu3 %v12955_v7  ;;  %v11295_v45 = vld [vmem:[#allocation7 + $0xcc] sm:$0xf0]  ;;  %v11293_v13 = vld [vmem:[#allocation7 + $0xc4] sm:$0xf]  ;;  %v11290_v47 = vld [vmem:[#allocation7 + $0xac] sm:$0xf] }
 0x4f9   :  { %5614 = vmatpush.bf16.msrb.mxu0 %v9924_v60  ;;  %5627 = vmatpush.bf16.msrb.mxu1 %v9928_v37  ;;  %v9844_v60 = vor.u32 %v11247_v62, %v9843_v33  ;;  %v9848_v37 = vor.u32 %v11245_v59, %v9845_v41  ;;  %v10046_v33 = vld [vmem:[#allocation7 + $0xc8] sm:$0xf]  ;;  %v11296_v62 = vld [vmem:[#allocation7 + $0xd4] sm:$0xf0]  ;;  %v11294_v59 = vld [vmem:[#allocation7 + $0xcc] sm:$0xf] }
 0x4fa   :  { %5640 = vmatpush.bf16.msrb.mxu2 %v9932_v58  ;;  %5653 = vmatpush.bf16.msrb.mxu3 %v9936_v32  ;;  %v9852_v58 = vor.u32 %v11248_v2, %v9851_v0  ;;  %v9856_v32 = vor.u32 %v11246_v25, %v9853_v6  ;;  %v10048_v41 = vld [vmem:[#allocation7 + $0xd8] sm:$0xf0]  ;;  %v10022_v6 = vld [vmem:[#allocation7 + $0xa0] sm:$0xf]  ;;  %v10014_v44 = vld [vmem:[#allocation7 + $0x88] sm:$0xf] }
 0x4fb   :  { %v10051_v25 = vor.u32 %v11294_v59, %v10048_v41  ;;  %v10032_v19 = vld [vmem:[#allocation7 + $0xb8] sm:$0xf0]  ;;  %v11288_v43 = vld [vmem:[#allocation7 + $0x94] sm:$0xf0]  ;;  %v11279_v59 = vld [vmem:[#allocation7 + $0x4c] sm:$0xf0] }
 0x4fc   :  { %v11277_v41 = vld [vmem:[#allocation7 + $0x44] sm:$0xf] }
 0x4fd   :  { %5615 = vmatpush.bf16.msrb.mxu0 %v9908_v5  ;;  %5628 = vmatpush.bf16.msrb.mxu1 %v9912_v23  ;;  %v9828_v5 = vor.u32 %v11243_v12, %v9827_v48  ;;  %v9811_v23 = vld [vmem:[#allocation5] sm:$0xf]  ;;  %v10024_v12 = vld [vmem:[#allocation7 + $0xb0] sm:$0xf0] }
 0x4fe   :  { %5641 = vmatpush.bf16.msrb.mxu2 %v9916_v49  ;;  %5654 = vmatpush.bf16.msrb.mxu3 %v9920_v15  ;;  %v9840_v49 = vor.u32 %v11242_v22, %v9837_v11  ;;  %v11237_v15 = vld [vmem:[#allocation5 + $0x4] sm:$0xf]  ;;  %v9812_v57 = vor.u32 %v11239_v35, %v9811_v23  ;;  %v10035_v22 = vor.u32 %v11290_v47, %v10032_v19  ;;  %v10006_v35 = vld [vmem:[#allocation7 + $0x80] sm:$0xf] }
 0x4ff   :  { %v11273_v47 = vld [vmem:[#allocation7 + $0x24] sm:$0xf] }
 0x501   :  { %5616 = vmatpush.bf16.msrb.mxu0 %v9892_v16  ;;  %5629 = vmatpush.bf16.msrb.mxu1 %v9896_v50  ;;  %v9816_v16 = vor.u32 %v11237_v15, %v9813_v42  ;;  %v9820_v50 = vor.u32 %v11240_v27, %v9819_v52  ;;  %v10008_v27 = vld [vmem:[#allocation7 + $0x90] sm:$0xf0] }
 0x502   :  { %5642 = vmatpush.bf16.msrb.mxu2 %v9900_v61  ;;  %5655 = vmatpush.bf16.msrb.mxu3 %v9904_v40  ;;  %v10054_v40 = vld [vmem:[#allocation7 + $0xe0] sm:$0xf] }
 0x503   :  { %v10055_v1 = vor.u32 %v11299_v10, %v10054_v40  ;;  %v10016_v40 = vld [vmem:[#allocation7 + $0x98] sm:$0xf0] }
 0x505   :  { %5617 = vmatpush.bf16.msrb.mxu0 %v9876_v21  ;;  %5630 = vmatpush.bf16.msrb.mxu1 %v9880_v39  ;;  %v10059_v21 = vor.u32 %v11297_v4, %v10056_v29  ;;  %v10063_v39 = vor.u32 %v11300_v14, %v10062_v17  ;;  %v9990_v29 = vld [vmem:[#allocation7 + $0x60] sm:$0xf]  ;;  %v11283_v17 = vld [vmem:[#allocation7 + $0x6c] sm:$0xf0]  ;;  %v11281_v14 = vld [vmem:[#allocation7 + $0x64] sm:$0xf] }
 0x506   :  { %5643 = vmatpush.bf16.msrb.mxu2 %v9884_v56  ;;  %5656 = vmatpush.bf16.msrb.mxu3 %v9888_v54  ;;  %v12972_v56 = vld [vmem:[%s13527_s6] sm:$0xf] }
 0x507   :  { %5303 = vmatmul.bf16.vlgmr.msra.gmra.mxu0 %v12951_v36  ;;  %5316 = vmatmul.bf16.vlgmr.msra.gmra.mxu1 %v12951_v36  ;;  %v4883_v0 = vperm.slane %v12972_v56, 0  ;;  %v4884_v2 = vperm.slane %v12972_v56, 1 }
 0x508   :  { %5329 = vmatmul.bf16.vlgmr.msra.gmra.mxu2 %v12951_v36  ;;  %5342 = vmatmul.bf16.vlgmr.msra.gmra.mxu3 %v12951_v36  ;;  %v9832_v36 = vor.u32 %v11241_v55, %v9829_v51 }
 0x509   :  { %5618 = vmatpush.bf16.msrb.mxu0 %v9860_v31  ;;  %5631 = vmatpush.bf16.msrb.mxu1 %v9864_v63  ;;  %v10039_v31 = vor.u32 %v11295_v45, %v10038_v3  ;;  %v10040_v63 = vld [vmem:[#allocation7 + $0xd0] sm:$0xf0]  ;;  %v11282_v3 = vld [vmem:[#allocation7 + $0x6c] sm:$0xf] }
 0x50a   :  { %5644 = vmatpush.bf16.msrb.mxu2 %v9868_v8  ;;  %5657 = vmatpush.bf16.msrb.mxu3 %v9872_v18  ;;  %v10043_v8 = vor.u32 %v11293_v13, %v10040_v63  ;;  %v10047_v18 = vor.u32 %v11296_v62, %v10046_v33  ;;  %v9974_v33 = vld [vmem:[#allocation7 + $0x40] sm:$0xf] }
 0x50d   :  { %5619 = vmatpush.bf16.msrb.mxu0 %v9844_v60  ;;  %5632 = vmatpush.bf16.msrb.mxu1 %v9848_v37  ;;  %v11291_v60 = vld [vmem:[#allocation7 + $0xac] sm:$0xf0]  ;;  %v11289_v37 = vld [vmem:[#allocation7 + $0xa4] sm:$0xf] }
 0x50e   :  { %5645 = vmatpush.bf16.msrb.mxu2 %v9852_v58  ;;  %5658 = vmatpush.bf16.msrb.mxu3 %v9856_v32  ;;  %v10023_v48 = vor.u32 %v11291_v60, %v10022_v6  ;;  %v10030_v58 = vld [vmem:[#allocation7 + $0xa8] sm:$0xf]  ;;  %v11292_v32 = vld [vmem:[#allocation7 + $0xb4] sm:$0xf0]  ;;  %v10027_v55 = vor.u32 %v11289_v37, %v10024_v12  ;;  %v11278_v60 = vld [vmem:[#allocation7 + $0x4c] sm:$0xf] }
 0x50f   :  { %v10031_v51 = vor.u32 %v11292_v32, %v10030_v58  ;;  %v11280_v6 = vld [vmem:[#allocation7 + $0x54] sm:$0xf0]  ;;  %v9984_v12 = vld [vmem:[#allocation7 + $0x58] sm:$0xf0] }
 0x510   :  { %v9987_v32 = vor.u32 %v11278_v60, %v9984_v12  ;;  %v11332_v60 = vld [vmem:[#allocation9 + $0xf4] sm:$0xf0] }
 0x511   :  { %5620 = vmatpush.bf16.msrb.mxu0 %v9828_v5  ;;  %5633 = vmatpush.bf16.msrb.mxu1 %v9832_v36 }
 0x512   :  { %5646 = vmatpush.bf16.msrb.mxu2 %v9836_v24  ;;  %5659 = vmatpush.bf16.msrb.mxu3 %v9840_v49  ;;  %v11287_v24 = vld [vmem:[#allocation7 + $0x8c] sm:$0xf0]  ;;  %v11285_v49 = vld [vmem:[#allocation7 + $0x84] sm:$0xf] }
 0x513   :  { %v10007_v52 = vor.u32 %v11287_v24, %v10006_v35  ;;  %v11276_v24 = vld [vmem:[#allocation7 + $0x34] sm:$0xf0] }
 0x515   :  { %5621 = vmatpush.bf16.msrb.mxu0 %v9812_v57  ;;  %5634 = vmatpush.bf16.msrb.mxu1 %v9816_v16 }
 0x516   :  { %5647 = vmatpush.bf16.msrb.mxu2 %v9820_v50  ;;  %5660 = vmatpush.bf16.msrb.mxu3 %v9824_v28  ;;  %v10011_v50 = vor.u32 %v11285_v49, %v10008_v27  ;;  %v10015_v28 = vor.u32 %v11288_v43, %v10014_v44  ;;  %v11274_v49 = vld [vmem:[#allocation7 + $0x2c] sm:$0xf]  ;;  %v9805_v43 = vld [vmem:[%s13521_s0 + $0xc0] sm:$0xff] }
 0x518   :  { %5622 = vmatmul.bf16.vlgmr.msrb.gmra.mxu0 %v12955_v7  ;;  %5635 = vmatmul.bf16.vlgmr.msrb.gmra.mxu1 %v12955_v7 }
 0x519   :  { %5648 = vmatmul.bf16.vlgmr.msrb.gmra.mxu2 %v12955_v7  ;;  %5661 = vmatmul.bf16.vlgmr.msrb.gmra.mxu3 %v12955_v7  ;;  %v10067_v7 = vor.u32 %v11298_v53, %v10064_v38  ;;  %v9998_v38 = vld [vmem:[#allocation7 + $0x68] sm:$0xf] }
 0x51a   :  { %5936 = vmatpush.bf16.msra.mxu0 %v10055_v1  ;;  %5949 = vmatpush.bf16.msra.mxu1 %v10059_v21  ;;  %v9992_v21 = vld [vmem:[#allocation7 + $0x70] sm:$0xf0] }
 0x51b   :  { %5962 = vmatpush.bf16.msra.mxu2 %v10063_v39  ;;  %5975 = vmatpush.bf16.msra.mxu3 %v10067_v7  ;;  %v9991_v39 = vor.u32 %v11283_v17, %v9990_v29  ;;  %v9995_v53 = vor.u32 %v11281_v14, %v9992_v21  ;;  %v11284_v7 = vld [vmem:[#allocation7 + $0x74] sm:$0xf0]  ;;  %v9944_v17 = vld [vmem:[#allocation7 + $0x10] sm:$0xf0]  ;;  %v9950_v14 = vld [vmem:[#allocation7 + $0x8] sm:$0xf] }
 0x51c   :  { %v9999_v13 = vor.u32 %v11284_v7, %v9998_v38  ;;  %v11272_v7 = vld [vmem:[#allocation7 + $0x14] sm:$0xf0] }
 0x51e   :  { %5937 = vmatpush.bf16.msra.mxu0 %v10039_v31  ;;  %5950 = vmatpush.bf16.msra.mxu1 %v10043_v8 }
 0x51f   :  { %5963 = vmatpush.bf16.msra.mxu2 %v10047_v18  ;;  %5976 = vmatpush.bf16.msra.mxu3 %v10051_v25  ;;  %v9982_v25 = vld [vmem:[#allocation7 + $0x48] sm:$0xf] }
 0x522   :  { %5938 = vmatpush.bf16.msra.mxu0 %v10023_v48  ;;  %5951 = vmatpush.bf16.msra.mxu1 %v10027_v55  ;;  %v9983_v48 = vor.u32 %v11280_v6, %v9982_v25  ;;  %v9958_v55 = vld [vmem:[#allocation7 + $0x20] sm:$0xf]  ;;  %v10184_v25 = vld [vmem:[#allocation9 + $0xf0] sm:$0xf0]  ;;  %v10190_v6 = vld [vmem:[#allocation9 + $0xe8] sm:$0xf] }
 0x523   :  { %5964 = vmatpush.bf16.msra.mxu2 %v10031_v51  ;;  %5977 = vmatpush.bf16.msra.mxu3 %v10035_v22  ;;  %v11275_v51 = vld [vmem:[#allocation7 + $0x2c] sm:$0xf0] }
 0x526   :  { %5939 = vmatpush.bf16.msra.mxu0 %v10007_v52  ;;  %5952 = vmatpush.bf16.msra.mxu1 %v10011_v50 }
 0x527   :  { %5965 = vmatpush.bf16.msra.mxu2 %v10015_v28 }
 0x52a   :  { %5940 = vmatpush.bf16.msra.mxu0 %v9991_v39  ;;  %5953 = vmatpush.bf16.msra.mxu1 %v9995_v53 }
 0x52b   :  { %5966 = vmatpush.bf16.msra.mxu2 %v9999_v13 }
 0x52f   :  { %5967 = vmatpush.bf16.msra.mxu2 %v9983_v48 }
 0x574   :  { %v5060_v46 = vpop.f32.mrf.mxu0  ;;  %v5073_v61 = vpop.f32.mrf.mxu1 }
 0x575   :  { %v5061_v11 = vadd.f32 %v5060_v46, %v4883_v0  ;;  %v5074_v5 = vadd.f32 %v5073_v61, %v4884_v2  ;;  %v11286_v46 = vld [vmem:[#allocation7 + $0x8c] sm:$0xf]  ;;  %v4886_v61 = vperm.slane %v12972_v56, 3  ;;  %v9976_v0 = vld [vmem:[#allocation7 + $0x50] sm:$0xf0]  ;;  %v9975_v2 = vor.u32 %v11279_v59, %v9974_v33 }
 0x576   :  { %v10019_v1 = vor.u32 %v11286_v46, %v10016_v40  ;;  %v11269_v40 = vld [vmem:[#allocation7 + $0x4] sm:$0xf]  ;;  %v10182_v33 = vld [vmem:[#allocation9 + $0xe0] sm:$0xf] }
 0x577   :  { %5941 = vmatpush.bf16.msra.mxu0 %v9975_v2  ;;  %v9947_v38 = vor.u32 %v11269_v40, %v9944_v17  ;;  %v10176_v40 = vld [vmem:[#allocation9 + $0xd8] sm:$0xf0]  ;;  %v11314_v17 = vld [vmem:[#allocation9 + $0x6c] sm:$0xf] }
 0x578   :  { %5978 = vmatpush.bf16.msra.mxu3 %v10019_v1 }
 0x57b   :  { %v12974_v54 = vpop.f32.mrf.mxu2  ;;  %v12976_v9 = vpop.f32.mrf.mxu3 }
 0x57c   :  { %v5062_v34 = vpop.f32.mrf.mxu0  ;;  %v5075_v30 = vpop.f32.mrf.mxu1  ;;  %v5100_v45 = vadd.f32 %v12976_v9, %v4886_v61  ;;  %v9979_v9 = vor.u32 %v11277_v41, %v9976_v0  ;;  %v11271_v61 = vld [vmem:[#allocation7 + $0xc] sm:$0xf0]  ;;  %v11329_v0 = vld [vmem:[#allocation9 + $0xe4] sm:$0xf] }
 0x57d   :  { %v10000_v34 = vld [vmem:[#allocation7 + $0x78] sm:$0xf0] }
 0x57e   :  { %v10003_v63 = vor.u32 %v11282_v3, %v10000_v34  ;;  %5954 = vmatpush.bf16.msra.mxu1 %v9979_v9  ;;  %v11270_v3 = vld [vmem:[#allocation7 + $0xc] sm:$0xf] }
 0x580   :  { %5979 = vmatpush.bf16.msra.mxu3 %v10003_v63 }
 0x583   :  { %v5088_v36 = vpop.f32.mrf.mxu2  ;;  %v5101_v23 = vpop.f32.mrf.mxu3 }
 0x584   :  { %v5304_v15 = vpop.f32.mrf.mxu0  ;;  %v5317_v42 = vpop.f32.mrf.mxu1  ;;  %v9966_v36 = vld [vmem:[#allocation7 + $0x28] sm:$0xf]  ;;  %5980 = vmatpush.bf16.msra.mxu3 %v9987_v32  ;;  %v11330_v32 = vld [vmem:[#allocation9 + $0xec] sm:$0xf] }
 0x585   :  { %v5347_v57 = vadd.f32 %v5304_v15, %v5061_v11  ;;  %v5348_v16 = vadd.f32 %v5317_v42, %v5074_v5  ;;  %v9959_v11 = vor.u32 %v11275_v51, %v9958_v55  ;;  %v9960_v5 = vld [vmem:[#allocation7 + $0x30] sm:$0xf0]  ;;  %v4885_v15 = vperm.slane %v12972_v56, 2  ;;  %v9968_v42 = vld [vmem:[#allocation7 + $0x38] sm:$0xf0] }
 0x586   :  { %v9963_v35 = vor.u32 %v11273_v47, %v9960_v5  ;;  %v9942_v56 = vld [vmem:[#allocation7] sm:$0xf]  ;;  %v9967_v28 = vor.u32 %v11276_v24, %v9966_v36  ;;  %v9971_v46 = vor.u32 %v11274_v49, %v9968_v42  ;;  %v10187_v51 = vor.u32 %v11329_v0, %v10184_v25  ;;  %v11327_v49 = vld [vmem:[#allocation9 + $0xcc] sm:$0xf0] }
 0x587   :  { %v9802_v10 = vmul.f32 -1.442695, %v5347_v57  ;;  %v9803_v4 = vmul.f32 -1.442695, %v5348_v16  ;;  %v9806_v57 = vld [vmem:[%s13521_s0 + $0xc8] sm:$0xff]  ;;  %5942 = vmatpush.bf16.msra.mxu0 %v9959_v11  ;;  %v9943_v29 = vor.u32 %v11271_v61, %v9942_v56  ;;  %v5087_v13 = vadd.f32 %v12974_v54, %v4885_v15 }
 0x588   :  { %5955 = vmatpush.bf16.msra.mxu1 %v9963_v35  ;;  %5968 = vmatpush.bf16.msra.mxu2 %v9967_v28  ;;  %v10191_v47 = vor.u32 %v11332_v60, %v10190_v6  ;;  %v10166_v11 = vld [vmem:[#allocation9 + $0xc0] sm:$0xf]  ;;  %v11325_v15 = vld [vmem:[#allocation9 + $0xc4] sm:$0xf]  ;;  %v11328_v56 = vld [vmem:[#allocation9 + $0xd4] sm:$0xf0] }
 0x589   :  { %11642 = vpow2.f32 %v9802_v10  ;;  %5981 = vmatpush.bf16.msra.mxu3 %v9971_v46  ;;  %v11326_v61 = vld [vmem:[#allocation9 + $0xcc] sm:$0xf] }
 0x58a   :  { %11644 = vpow2.f32 %v9803_v4 }
 0x58b   :  { %v12982_v30 = vpop.f32.mrf.mxu2  ;;  %v5343_v31 = vpop.f32.mrf.mxu3  ;;  %5943 = vmatpush.bf16.msra.mxu0 %v9943_v29 }
 0x58c   :  { %v5350_v62 = vadd.f32 %v5343_v31, %v5100_v45  ;;  %v5306_v8 = vpop.f32.mrf.mxu0  ;;  %v5319_v18 = vpop.f32.mrf.mxu1  ;;  %v9952_v45 = vld [vmem:[#allocation7 + $0x18] sm:$0xf0]  ;;  %v9951_v31 = vor.u32 %v11272_v7, %v9950_v14  ;;  %5956 = vmatpush.bf16.msra.mxu1 %v9947_v38  ;;  %v5349_v54 = vadd.f32 %v12982_v30, %v5087_v13  ;;  %v9808_v30 = vld [vmem:[%s13521_s0 + $0xd8] sm:$0xff]  ;;  %v11324_v13 = vld [vmem:[#allocation9 + $0xb4] sm:$0xf0] }
 0x58d   :  { %v9955_v63 = vor.u32 %v11270_v3, %v9952_v45  ;;  %v10158_v45 = vld [vmem:[#allocation9 + $0xa8] sm:$0xf] }
 0x58e   :  { %v9804_v37 = vmul.f32 -1.442695, %v5350_v62  ;;  %v11331_v62 = vld [vmem:[#allocation9 + $0xec] sm:$0xf0]  ;;  %5969 = vmatpush.bf16.msra.mxu2 %v9951_v31 }
 0x58f   :  { %v11643_v58 = vpop.eup %11642  ;;  %v10183_v41 = vor.u32 %v11331_v62, %v10182_v33  ;;  %5982 = vmatpush.bf16.msra.mxu3 %v9955_v63 }
 0x590   :  { %v11645_v19 = vpop.eup %11644  ;;  %v12984_v22 = vadd.f32 1.0, %v11643_v58  ;;  %11646 = vpow2.f32 %v9804_v37  ;;  %6193 = vmatpush.bf16.msrb.mxu1 %v10187_v51  ;;  %v10142_v51 = vld [vmem:[#allocation9 + $0x88] sm:$0xf] }
 0x591   :  { %v12986_v23 = vadd.f32 1.0, %v11645_v19  ;;  %6180 = vmatpush.bf16.msrb.mxu0 %v10183_v41  ;;  %v10192_v19 = vld [vmem:[#allocation9 + $0xf8] sm:$0xf0] }
 0x592   :  { %11648 = vrcp.f32 %v12984_v22  ;;  %v5364_v52 = vand.u32 2147483647, %v12984_v22  ;;  %v5366_v50 = vand.u32 2147483648, %v12984_v22  ;;  %v10195_v24 = vor.u32 %v11330_v32, %v10192_v19  ;;  %6206 = vmatpush.bf16.msrb.mxu2 %v10191_v47  ;;  %v10160_v41 = vld [vmem:[#allocation9 + $0xb8] sm:$0xf0] }
 0x593   :  { %11650 = vrcp.f32 %v12986_v23  ;;  %v5332_v27 = vpop.f32.mrf.mxu2  ;;  %v5345_v44 = vpop.f32.mrf.mxu3  ;;  %v5385_v16 = vand.u32 2147483648, %v12986_v23  ;;  %v5383_v10 = vand.u32 2147483647, %v12986_v23  ;;  %vm5360_vm7 = vweird.f32 %v12984_v22  ;;  %v11319_v32 = vld [vmem:[#allocation9 + $0x8c] sm:$0xf0] }
 0x594   :  { %vm13016_vm4 = vcmp.eq.f32.partialorder %v5364_v52, 8.507059e+37  ;;  %v13020_v58 = vor.u32 1.1754944e-38, %v5366_v50  ;;  %6219 = vmatpush.bf16.msrb.mxu3 %v10195_v24  ;;  %v10167_v50 = vor.u32 %v11327_v49, %v10166_v11  ;;  %vm5379_vm9 = vweird.f32 %v12986_v23  ;;  %v11320_v47 = vld [vmem:[#allocation9 + $0x94] sm:$0xf0]  ;;  %v11318_v24 = vld [vmem:[#allocation9 + $0x8c] sm:$0xf] }
 0x595   :  { %v5623_v4 = vpop.f32.mrf.mxu0  ;;  %v5636_v1 = vpop.f32.mrf.mxu1  ;;  %v13014_v48 = vor.u32 1.1754944e-38, %v5385_v16  ;;  %vm5384_vm11 = vcmp.eq.f32.partialorder %v5383_v10, 8.507059e+37  ;;  %v10144_v49 = vld [vmem:[#allocation9 + $0x98] sm:$0xf0] }
 0x596   :  { %v11647_v21 = vpop.eup %11646  ;;  %v5666_v39 = vadd.f32 %v9805_v43, %v5623_v4  ;;  %v5667_v53 = vadd.f32 %v9806_v57, %v5636_v1  ;;  %v10168_v43 = vld [vmem:[#allocation9 + $0xd0] sm:$0xf0]  ;;  %v10174_v57 = vld [vmem:[#allocation9 + $0xc8] sm:$0xf]  ;;  %v10150_v4 = vld [vmem:[#allocation9 + $0xa0] sm:$0xf]  ;;  %6181 = vmatpush.bf16.msrb.mxu0 %v10167_v50 }
 0x597   :  { %v13002_v34 = vadd.f32 1.0, %v11647_v21  ;;  %v10171_v28 = vor.u32 %v11325_v15, %v10168_v43  ;;  %v10175_v46 = vor.u32 %v11328_v56, %v10174_v57  ;;  %v10179_v21 = vor.u32 %v11326_v61, %v10176_v40  ;;  %v10118_v15 = vld [vmem:[#allocation9 + $0x60] sm:$0xf]  ;;  %v11315_v43 = vld [vmem:[#allocation9 + $0x6c] sm:$0xf0] }
 0x598   :  { %v13004_v8 = vpop.eup %11648  ;;  %v9937_v18 = vmul.f32 -1.442695, %v5666_v39  ;;  %v9938_v59 = vmul.f32 -1.442695, %v5667_v53  ;;  %v11323_v39 = vld [vmem:[#allocation9 + $0xac] sm:$0xf0]  ;;  %v10119_v61 = vor.u32 %v11315_v43, %v10118_v15 }
 0x599   :  { %v13006_v2 = vpop.eup %11650  ;;  %v5356_v9 = vmul.f32 %v13004_v8, %v12984_v22  ;;  %11652 = vrcp.f32 %v13002_v34  ;;  %vm5361_vm5 = vweird.f32 %v13004_v8  ;;  %v11321_v53 = vld [vmem:[#allocation9 + $0xa4] sm:$0xf]  ;;  %v10151_v3 = vor.u32 %v11323_v39, %v10150_v4  ;;  %v10152_v22 = vld [vmem:[#allocation9 + $0xb0] sm:$0xf0]  ;;  %6194 = vmatpush.bf16.msrb.mxu1 %v10171_v28  ;;  %6207 = vmatpush.bf16.msrb.mxu2 %v10175_v46  ;;  %v10126_v4 = vld [vmem:[#allocation9 + $0x68] sm:$0xf] }
 0x59a   :  { %v5375_v37 = vmul.f32 %v13006_v2, %v12986_v23  ;;  %11654 = vpow2.f32 %v9937_v18  ;;  %vm5380_vm6 = vweird.f32 %v13006_v2  ;;  %vm13039_vm8 = vmor %vm5360_vm7, %vm5361_vm5  ;;  %v10155_v62 = vor.u32 %v11321_v53, %v10152_v22  ;;  %6220 = vmatpush.bf16.msrb.mxu3 %v10179_v21  ;;  %v11313_v57 = vld [vmem:[#allocation9 + $0x64] sm:$0xf]  ;;  %v10120_v28 = vld [vmem:[#allocation9 + $0x70] sm:$0xf0] }
 0x59b   :  { %v5357_v55 = vsub.f32 1.0, %v5356_v9  ;;  %11656 = vpow2.f32 %v9938_v59  ;;  %vm13051_vm10 = vmor %vm5379_vm9, %vm5380_vm6  ;;  %v10159_v18 = vor.u32 %v11324_v13, %v10158_v45  ;;  %v11322_v59 = vld [vmem:[#allocation9 + $0xac] sm:$0xf]  ;;  %6182 = vmatpush.bf16.msrb.mxu0 %v10151_v3  ;;  %v5403_v12 = vand.u32 2147483647, %v13002_v34 }
 0x59c   :  { %v5376_v5 = vsub.f32 1.0, %v5375_v37  ;;  %v13026_v36 = vpop.f32.mrf.mxu2  ;;  %v5662_v35 = vpop.f32.mrf.mxu3  ;;  %11658 = vtanh.f32 %v5349_v54  ;;  %v5405_v54 = vand.u32 2147483648, %v13002_v34  ;;  %vm5399_vm12 = vweird.f32 %v13002_v34  ;;  %v10128_v53 = vld [vmem:[#allocation9 + $0x78] sm:$0xf0]  ;;  %v10102_v45 = vld [vmem:[#allocation9 + $0x40] sm:$0xf] }
 0x59d   :  { %v5358_v42 = vmul.f32 %v13004_v8, %v5357_v55  ;;  %v5669_v52 = vadd.f32 %v9808_v30, %v5662_v35  ;;  %v5625_v27 = vpop.f32.mrf.mxu0  ;;  %v5638_v44 = vpop.f32.mrf.mxu1  ;;  %v10163_v30 = vor.u32 %v11322_v59, %v10160_v41  ;;  %v10136_v55 = vld [vmem:[#allocation9 + $0x90] sm:$0xf0]  ;;  %6195 = vmatpush.bf16.msrb.mxu1 %v10155_v62  ;;  %6208 = vmatpush.bf16.msrb.mxu2 %v10159_v18  ;;  %v11311_v13 = vld [vmem:[#allocation9 + $0x4c] sm:$0xf0]  ;;  %v10110_v59 = vld [vmem:[#allocation9 + $0x48] sm:$0xf] }
 0x59e   :  { %v5377_v16 = vmul.f32 %v13006_v2, %v5376_v5  ;;  %v10143_v44 = vor.u32 %v11320_v47, %v10142_v51  ;;  %v10147_v46 = vor.u32 %v11318_v24, %v10144_v49  ;;  %v10123_v40 = vor.u32 %v11313_v57, %v10120_v28  ;;  %v10104_v18 = vld [vmem:[#allocation9 + $0x50] sm:$0xf0]  ;;  %v11307_v47 = vld [vmem:[#allocation9 + $0x2c] sm:$0xf0]  ;;  %v10094_v24 = vld [vmem:[#allocation9 + $0x28] sm:$0xf] }
 0x59f   :  { %v13032_v1 = vpop.eup %11652  ;;  %v5359_v29 = vadd.f32 %v13004_v8, %v5358_v42  ;;  %v9939_v14 = vmul.f32 -1.442695, %v5669_v52  ;;  %6221 = vmatpush.bf16.msrb.mxu3 %v10163_v30  ;;  %v13080_v52 = vor.u32 1.1754944e-38, %v5405_v54  ;;  %v10131_v22 = vor.u32 %v11314_v17, %v10128_v53  ;;  %v11308_v49 = vld [vmem:[#allocation9 + $0x34] sm:$0xf0] }
 0x5a0   :  { %v5378_v38 = vadd.f32 %v13006_v2, %v5377_v16  ;;  %v13047_v7 = vmul.f32 %v13032_v1, %v13002_v34  ;;  %v11655_v31 = vpop.eup %11654  ;;  %vm5400_vm13 = vweird.f32 %v13032_v1  ;;  %v11306_v15 = vld [vmem:[#allocation9 + $0x2c] sm:$0xf]  ;;  %v10096_v43 = vld [vmem:[#allocation9 + $0x38] sm:$0xf0]  ;;  %v10070_v57 = vld [vmem:[#allocation9] sm:$0xf] }
 0x5a1   :  { %v5363_v33 = vsel %vm13039_vm8, %v13004_v8, %v5359_v29  ;;  %11660 = vpow2.f32 %v9939_v14  ;;  %v11657_v0 = vpop.eup %11656  ;;  %v13064_v25 = vadd.f32 1.0, %v11655_v31  ;;  %v10134_v8 = vld [vmem:[#allocation9 + $0x80] sm:$0xf]  ;;  %6209 = vmatpush.bf16.msrb.mxu2 %v10143_v44  ;;  %v11316_v29 = vld [vmem:[#allocation9 + $0x74] sm:$0xf0]  ;;  %vm13114_vm15 = vmor %vm5399_vm12, %vm5400_vm13  ;;  %v10095_v44 = vor.u32 %v11308_v49, %v10094_v24 }
 0x5a2   :  { %v5382_v9 = vsel %vm13051_vm10, %v13006_v2, %v5378_v38  ;;  %v5368_v6 = vsel %vm13016_vm4, %v13020_v58, %v5363_v33  ;;  %v13070_v37 = vadd.f32 1.0, %v11657_v0  ;;  %v11317_v2 = vld [vmem:[#allocation9 + $0x84] sm:$0xf]  ;;  %v11659_v19 = vpop.eup %11658  ;;  %v5396_v11 = vsub.f32 1.0, %v13047_v7  ;;  %v10303_v49 = vld [vmem:[#allocation5 + $0xd0] sm:$0xf0] }
 0x5a3   :  { %v5387_v60 = vsel %vm5384_vm11, %v13014_v48, %v5382_v9  ;;  %11662 = vrcp.f32 %v13064_v25  ;;  %v9807_v48 = vld [vmem:[%s13521_s0 + $0xd0] sm:$0xff]  ;;  %v5410_v5 = vmul.f32 %v11659_v19, %v5368_v6  ;;  %v10135_v35 = vor.u32 %v11319_v32, %v10134_v8  ;;  %6222 = vmatpush.bf16.msrb.mxu3 %v10147_v46  ;;  %v11309_v31 = vld [vmem:[#allocation9 + $0x44] sm:$0xf]  ;;  %v11312_v8 = vld [vmem:[#allocation9 + $0x54] sm:$0xf0] }
 0x5a4   :  { %v5651_v23 = vpop.f32.mrf.mxu2  ;;  %v5664_v10 = vpop.f32.mrf.mxu3  ;;  %11664 = vrcp.f32 %v13070_v37  ;;  %v5409_v58 = vmul.f32 %v5387_v60, %v12861_v26  ;;  %v10139_v27 = vor.u32 %v11317_v2, %v10136_v55  ;;  %v5704_v56 = vand.u32 2147483648, %v13070_v37  ;;  %v11310_v6 = vld [vmem:[#allocation9 + $0x4c] sm:$0xf]  ;;  %v10112_v2 = vld [vmem:[#allocation9 + $0x58] sm:$0xf0] }
 0x5a5   :  { %v5668_v16 = vadd.f32 %v9807_v48, %v13026_v36  ;;  %v5683_v50 = vand.u32 2147483647, %v13064_v25  ;;  %6183 = vmatpush.bf16.msrb.mxu0 %v10135_v35  ;;  %v5397_v36 = vmul.f32 %v13032_v1, %v5396_v11  ;;  %v5702_v39 = vand.u32 2147483647, %v13070_v37  ;;  %v10086_v23 = vld [vmem:[#allocation9 + $0x20] sm:$0xf] }
 0x5a6   :  { %6196 = vmatpush.bf16.msrb.mxu1 %v10139_v27  ;;  %v13090_v21 = vadd.f32 %v5410_v5, %v5409_v58  ;;  %v10127_v3 = vor.u32 %v11316_v29, %v10126_v4  ;;  %v13102_v33 = vor.u32 1.1754944e-38, %v5704_v56  ;;  %v5685_v62 = vand.u32 2147483648, %v13064_v25  ;;  %v11305_v19 = vld [vmem:[#allocation9 + $0x24] sm:$0xf]  ;;  %v10088_v11 = vld [vmem:[#allocation9 + $0x30] sm:$0xf0] }
 0x5a7   :  { %v11661_v42 = vpop.eup %11660  ;;  %vm13105_vm14 = vcmp.eq.f32.partialorder %v5683_v50, 8.507059e+37  ;;  %v10103_v9 = vor.u32 %v11311_v13, %v10102_v45  ;;  %v10107_v54 = vor.u32 %v11309_v31, %v10104_v18  ;;  %v10111_v32 = vor.u32 %v11312_v8, %v10110_v59  ;;  %6223 = vmatpush.bf16.msrb.mxu3 %v10131_v22  ;;  %v11303_v56 = vld [vmem:[#allocation9 + $0xc] sm:$0xf0]  ;;  %v10072_v4 = vld [vmem:[#allocation9 + $0x10] sm:$0xf0] }
 0x5a8   :  { %v13085_v26 = vadd.f32 1.0, %v11661_v42  ;;  %6210 = vmatpush.bf16.msrb.mxu2 %v10127_v3  ;;  %v5398_v10 = vadd.f32 %v13032_v1, %v5397_v36  ;;  %vm5679_vm0 = vweird.f32 %v13064_v25  ;;  %v10115_v51 = vor.u32 %v11310_v6, %v10112_v2  ;;  %v11304_v3 = vld [vmem:[#allocation9 + $0x14] sm:$0xf0]  ;;  %v11302_v31 = vld [vmem:[#allocation9 + $0xc] sm:$0xf] }
 0x5a9   :  { %v13088_v14 = vpop.eup %11662  ;;  %6184 = vmatpush.bf16.msrb.mxu0 %v10119_v61  ;;  %v10087_v5 = vor.u32 %v11307_v47, %v10086_v23  ;;  %v10091_v35 = vor.u32 %v11305_v19, %v10088_v11  ;;  %vm5698_vm3 = vweird.f32 %v13070_v37  ;;  %v5686_v28 = vor.u32 1.1754944e-38, %v5685_v62  ;;  %v10317_v8 = vld [vmem:[#allocation5 + $0xe0] sm:$0xf]  ;;  %v11363_v6 = vld [vmem:[#allocation5 + $0xec] sm:$0xf0] }
 0x5aa   :  { %11666 = vrcp.f32 %v13085_v26  ;;  %v13095_v38 = vpop.eup %11664  ;;  %v5675_v7 = vmul.f32 %v13088_v14, %v13064_v25  ;;  %6197 = vmatpush.bf16.msrb.mxu1 %v10123_v40  ;;  %vm5680_vm1 = vweird.f32 %v13088_v14  ;;  %vm13141_vm5 = vcmp.eq.f32.partialorder %v5702_v39, 8.507059e+37  ;;  %v11301_v40 = vld [vmem:[#allocation9 + $0x4] sm:$0xf]  ;;  %v10319_v2 = vld [vmem:[#allocation5 + $0xf0] sm:$0xf0] }
 0x5ab   :  { %v5694_v63 = vmul.f32 %v13095_v38, %v13070_v37  ;;  %11668 = vtanh.f32 %v5668_v16  ;;  %vm5699_vm2 = vweird.f32 %v13095_v38  ;;  %vm13134_vm4 = vmor %vm5679_vm0, %vm5680_vm1  ;;  %v5402_v29 = vsel %vm13114_vm15, %v13032_v1, %v5398_v10  ;;  %6224 = vmatpush.bf16.msrb.mxu3 %v10115_v51  ;;  %v10325_v23 = vld [vmem:[#allocation5 + $0xe8] sm:$0xf]  ;;  %v10327_v51 = vld [vmem:[#allocation5 + $0xf8] sm:$0xf0] }
 0x5ac   :  { %v5676_v41 = vsub.f32 1.0, %v5675_v7  ;;  %11670 = vtanh.f32 %v13090_v21  ;;  %6211 = vmatpush.bf16.msrb.mxu2 %v10111_v32  ;;  %vm13152_vm6 = vmor %vm5698_vm3, %vm5699_vm2  ;;  %v10099_v39 = vor.u32 %v11306_v15, %v10096_v43  ;;  %v10071_v53 = vor.u32 %v11303_v56, %v10070_v57  ;;  %v10078_v7 = vld [vmem:[#allocation9 + $0x8] sm:$0xf]  ;;  %v11361_v32 = vld [vmem:[#allocation5 + $0xe4] sm:$0xf] }
 0x5ad   :  { %v5695_v30 = vsub.f32 1.0, %v5694_v63  ;;  %6185 = vmatpush.bf16.msrb.mxu0 %v10103_v9  ;;  %v10075_v45 = vor.u32 %v11301_v40, %v10072_v4  ;;  %v10079_v13 = vor.u32 %v11304_v3, %v10078_v7  ;;  %v10080_v63 = vld [vmem:[#allocation9 + $0x18] sm:$0xf0]  ;;  %vm5404_vm7 = vcmp.eq.f32.partialorder %v5403_v12, 8.507059e+37  ;;  %v11357_v24 = vld [vmem:[#allocation5 + $0xc4] sm:$0xf] }
 0x5ae   :  { %v5677_v55 = vmul.f32 %v13088_v14, %v5676_v41  ;;  %6198 = vmatpush.bf16.msrb.mxu1 %v10107_v54  ;;  %v10083_v41 = vor.u32 %v11302_v31, %v10080_v63  ;;  %v5722_v34 = vand.u32 2147483647, %v13085_v26  ;;  %vm5718_vm9 = vweird.f32 %v13085_v26  ;;  %v10309_v15 = vld [vmem:[#allocation5 + $0xc8] sm:$0xf]  ;;  %v10285_v56 = vld [vmem:[#allocation5 + $0xa0] sm:$0xf] }
 0x5af   :  { %v5696_v58 = vmul.f32 %v13095_v38, %v5695_v30  ;;  %6225 = vmatpush.bf16.msrb.mxu3 %v10099_v39  ;;  %v10318_v19 = vor.u32 %v11363_v6, %v10317_v8  ;;  %v10322_v11 = vor.u32 %v11361_v32, %v10319_v2  ;;  %v10306_v57 = vor.u32 %v11357_v24, %v10303_v49  ;;  %v10287_v61 = vld [vmem:[#allocation5 + $0xb0] sm:$0xf0]  ;;  %v10293_v40 = vld [vmem:[#allocation5 + $0xa8] sm:$0xf]  ;;  %v11356_v4 = vld [vmem:[#allocation5 + $0xb4] sm:$0xf0] }
 0x5b0   :  { %v13122_v48 = vpop.eup %11666  ;;  %v5678_v42 = vadd.f32 %v13088_v14, %v5677_v55  ;;  %6212 = vmatpush.bf16.msrb.mxu2 %v10095_v44  ;;  %vm5723_vm11 = vcmp.eq.f32.partialorder %v5722_v34, 8.507059e+37  ;;  %v11364_v55 = vld [vmem:[#allocation5 + $0xf4] sm:$0xf0]  ;;  %v10311_v44 = vld [vmem:[#allocation5 + $0xd8] sm:$0xf0]  ;;  %v10294_v7 = vor.u32 %v11356_v4, %v10293_v40 }
 0x5b1   :  { %v5714_v27 = vmul.f32 %v13122_v48, %v13085_v26  ;;  %v11669_v16 = vpop.eup %11668  ;;  %v5697_v46 = vadd.f32 %v13095_v38, %v5696_v58  ;;  %6186 = vmatpush.bf16.msrb.mxu0 %v10087_v5  ;;  %vm5719_vm8 = vweird.f32 %v13122_v48  ;;  %v11359_v58 = vld [vmem:[#allocation5 + $0xcc] sm:$0xf0]  ;;  %v10326_v5 = vor.u32 %v11364_v55, %v10325_v23  ;;  %v10295_v25 = vld [vmem:[#allocation5 + $0xb8] sm:$0xf0]  ;;  %v10269_v39 = vld [vmem:[#allocation5 + $0x80] sm:$0xf] }
 0x5b2   :  { %v5682_v17 = vsel %vm13134_vm4, %v13088_v14, %v5678_v42  ;;  %v11671_v22 = vpop.eup %11670  ;;  %6199 = vmatpush.bf16.msrb.mxu1 %v10091_v35  ;;  %vm5720_vm10 = vmor %vm5718_vm9, %vm5719_vm8  ;;  %v11360_v42 = vld [vmem:[#allocation5 + $0xd4] sm:$0xf0]  ;;  %v10279_v31 = vld [vmem:[#allocation5 + $0x98] sm:$0xf0] }
 0x5b3   :  { %v5715_v36 = vsub.f32 1.0, %v5714_v27  ;;  %v5687_v1 = vsel %vm13105_vm14, %v5686_v28, %v5682_v17  ;;  %v5701_v37 = vsel %vm13152_vm6, %v13095_v38, %v5697_v46  ;;  %v5407_v38 = vsel %vm5404_vm7, %v13080_v52, %v5402_v29  ;;  %6226 = vmatpush.bf16.msrb.mxu3 %v10083_v41  ;;  %v11358_v27 = vld [vmem:[#allocation5 + $0xcc] sm:$0xf]  ;;  %v11353_v46 = vld [vmem:[#allocation5 + $0xa4] sm:$0xf] }
 0x5b4   :  { %v5706_v14 = vsel %vm13141_vm5, %v13102_v33, %v5701_v37  ;;  %v5729_v62 = vmul.f32 %v11669_v16, %v5687_v1  ;;  %v5413_v0 = vmul.f32 %v11671_v22, %v5407_v38  ;;  %6213 = vmatpush.bf16.msrb.mxu2 %v10079_v13  ;;  %v11355_v16 = vld [vmem:[#allocation5 + $0xac] sm:$0xf0]  ;;  %v10310_v50 = vor.u32 %v11360_v42, %v10309_v15  ;;  %v11354_v29 = vld [vmem:[#allocation5 + $0xac] sm:$0xf]  ;;  %v11349_v22 = vld [vmem:[#allocation5 + $0x84] sm:$0xf] }
 0x5b5   :  { %v5716_v18 = vmul.f32 %v13122_v48, %v5715_v36  ;;  %v5728_v59 = vmul.f32 %v5706_v14, %v12943_v20  ;;  %6187 = vmatpush.bf16.msrb.mxu0 %v10071_v53  ;;  %v5724_v20 = vand.u32 2147483648, %v13085_v26  ;;  %v11362_v26 = vld [vmem:[#allocation5 + $0xec] sm:$0xf]  ;;  %v10314_v28 = vor.u32 %v11358_v27, %v10311_v44  ;;  %v11351_v53 = vld [vmem:[#allocation5 + $0x8c] sm:$0xf0] }
 0x5b6   :  { %6200 = vmatpush.bf16.msrb.mxu1 %v10075_v45  ;;  %v13180_v12 = vpack.c.bf16 %v5413_v0, %v5413_v0  ;;  %v10330_v35 = vor.u32 %v11362_v26, %v10327_v51  ;;  %v10286_v17 = vor.u32 %v11355_v16, %v10285_v56  ;;  %v10290_v36 = vor.u32 %v11353_v46, %v10287_v61  ;;  %v10271_v1 = vld [vmem:[#allocation5 + $0x90] sm:$0xf0]  ;;  %v10277_v37 = vld [vmem:[#allocation5 + $0x88] sm:$0xf]  ;;  %v11352_v45 = vld [vmem:[#allocation5 + $0x94] sm:$0xf0] }
 0x5b7   :  { %v13172_v9 = vadd.f32 %v5729_v62, %v5728_v59  ;;  %v5717_v33 = vadd.f32 %v13122_v48, %v5716_v18  ;;  %v5725_v54 = vor.u32 1.1754944e-38, %v5724_v20  ;;  %v10298_v3 = vor.u32 %v11354_v29, %v10295_v25  ;;  %v11350_v13 = vld [vmem:[#allocation5 + $0x8c] sm:$0xf]  ;;  %v10253_v62 = vld [vmem:[#allocation5 + $0x60] sm:$0xf] }
 0x5b8   :  { %5416 = vst [vmem:[#allocation4 + $0x14] sm:$0xf] %v13180_v12  ;;  %v10270_v63 = vor.u32 %v11351_v53, %v10269_v39  ;;  %v10274_v14 = vor.u32 %v11349_v22, %v10271_v1  ;;  %v11347_v18 = vld [vmem:[#allocation5 + $0x6c] sm:$0xf0]  ;;  %v10278_v59 = vor.u32 %v11352_v45, %v10277_v37  ;;  %v10282_v38 = vor.u32 %v11350_v13, %v10279_v31  ;;  %v11345_v41 = vld [vmem:[#allocation5 + $0x64] sm:$0xf] }
 0x5b9   :  { %11672 = vtanh.f32 %v13172_v9  ;;  %v5721_v52 = vsel %vm5720_vm10, %v13122_v48, %v5717_v33  ;;  %v10301_v48 = vld [vmem:[#allocation5 + $0xc0] sm:$0xf]  ;;  %v10255_v0 = vld [vmem:[#allocation5 + $0x70] sm:$0xf0]  ;;  %v10261_v33 = vld [vmem:[#allocation5 + $0x68] sm:$0xf] }
 0x5ba   :  { %v5726_v30 = vsel %vm5723_vm11, %v5725_v54, %v5721_v52  ;;  %v10302_v43 = vor.u32 %v11359_v58, %v10301_v48  ;;  %v11348_v34 = vld [vmem:[#allocation5 + $0x74] sm:$0xf0]  ;;  %v11346_v20 = vld [vmem:[#allocation5 + $0x6c] sm:$0xf]  ;;  %v10263_v52 = vld [vmem:[#allocation5 + $0x78] sm:$0xf0]  ;;  %v10254_v54 = vor.u32 %v11347_v18, %v10253_v62  ;;  %v10258_v8 = vor.u32 %v11345_v41, %v10255_v0 }
 0x5bb   :  { %v10237_v6 = vld [vmem:[#allocation5 + $0x40] sm:$0xf]  ;;  %v10266_v32 = vor.u32 %v11346_v20, %v10263_v52  ;;  %v11341_v2 = vld [vmem:[#allocation5 + $0x44] sm:$0xf]  ;;  %v10239_v23 = vld [vmem:[#allocation5 + $0x50] sm:$0xf0] }
 0x5bc   :  { %v11344_v55 = vld [vmem:[#allocation5 + $0x54] sm:$0xf0]  ;;  %v11342_v26 = vld [vmem:[#allocation5 + $0x4c] sm:$0xf]  ;;  %v10247_v51 = vld [vmem:[#allocation5 + $0x58] sm:$0xf0] }
 0x5bd   :  { %v10221_v48 = vld [vmem:[#allocation5 + $0x20] sm:$0xf]  ;;  %v11339_v58 = vld [vmem:[#allocation5 + $0x2c] sm:$0xf0]  ;;  %v11337_v24 = vld [vmem:[#allocation5 + $0x24] sm:$0xf] }
 0x5be   :  { %v10223_v49 = vld [vmem:[#allocation5 + $0x30] sm:$0xf0]  ;;  %v10229_v15 = vld [vmem:[#allocation5 + $0x28] sm:$0xf]  ;;  %v11340_v42 = vld [vmem:[#allocation5 + $0x34] sm:$0xf0] }
 0x5bf   :  { %v11673_v60 = vpop.eup %11672  ;;  %v11338_v27 = vld [vmem:[#allocation5 + $0x2c] sm:$0xf]  ;;  %v10231_v44 = vld [vmem:[#allocation5 + $0x38] sm:$0xf0]  ;;  %v11335_v56 = vld [vmem:[#allocation5 + $0xc] sm:$0xf0]  ;;  %v10230_v16 = vor.u32 %v11340_v42, %v10229_v15 }
 0x5c0   :  { %v5732_v10 = vmul.f32 %v11673_v60, %v5726_v30  ;;  %v11343_v60 = vld [vmem:[#allocation5 + $0x4c] sm:$0xf0]  ;;  %v10262_v30 = vor.u32 %v11348_v34, %v10261_v33  ;;  %v10207_v46 = vld [vmem:[#allocation5 + $0x10] sm:$0xf0]  ;;  %v10213_v61 = vld [vmem:[#allocation5 + $0x8] sm:$0xf] }
 0x5c1   :  { %v11336_v40 = vld [vmem:[#allocation5 + $0x14] sm:$0xf0]  ;;  %v11334_v4 = vld [vmem:[#allocation5 + $0xc] sm:$0xf]  ;;  %v10215_v29 = vld [vmem:[#allocation5 + $0x18] sm:$0xf0] }
 0x5c2   :  { %v13184_v47 = vpack.c.bf16 %v5732_v10, %v5732_v10  ;;  %v10245_v10 = vld [vmem:[#allocation5 + $0x48] sm:$0xf]  ;;  %v10218_v39 = vor.u32 %v11334_v4, %v10215_v29  ;;  %v11395_v22 = vld [vmem:[#allocation7 + $0xec] sm:$0xf0]  ;;  %v10432_v13 = vld [vmem:[#allocation7 + $0xc0] sm:$0xf] }
 0x5c3   :  { %v11391_v31 = vld [vmem:[#allocation7 + $0xcc] sm:$0xf0]  ;;  %v11389_v42 = vld [vmem:[#allocation7 + $0xc4] sm:$0xf]  ;;  %v10368_v4 = vld [vmem:[#allocation7 + $0x40] sm:$0xf] }
 0x5c4   :  { %5944 = vmatmul.bf16.vlgmr.msra.gmra.mxu0 %v13184_v47  ;;  %5957 = vmatmul.bf16.vlgmr.msra.gmra.mxu1 %v13184_v47  ;;  %v10433_v18 = vor.u32 %v11391_v31, %v10432_v13  ;;  %v11387_v41 = vld [vmem:[#allocation7 + $0xac] sm:$0xf0] }
 0x5c5   :  { %5970 = vmatmul.bf16.vlgmr.msra.gmra.mxu2 %v13184_v47  ;;  %5983 = vmatmul.bf16.vlgmr.msra.gmra.mxu3 %v13184_v47  ;;  %v11379_v15 = vld [vmem:[#allocation7 + $0x6c] sm:$0xf0] }
 0x5c6   :  { %6499 = vmatpush.bf16.msra.mxu0 %v10318_v19  ;;  %6512 = vmatpush.bf16.msra.mxu1 %v10322_v11  ;;  %v10238_v19 = vor.u32 %v11343_v60, %v10237_v6  ;;  %v10242_v11 = vor.u32 %v11341_v2, %v10239_v23  ;;  %v10450_v2 = vld [vmem:[#allocation7 + $0xf0] sm:$0xf0]  ;;  %v10456_v23 = vld [vmem:[#allocation7 + $0xe8] sm:$0xf] }
 0x5c7   :  { %6525 = vmatpush.bf16.msra.mxu2 %v10326_v5  ;;  %6538 = vmatpush.bf16.msra.mxu3 %v10330_v35  ;;  %v10246_v5 = vor.u32 %v11344_v55, %v10245_v10  ;;  %v10250_v35 = vor.u32 %v11342_v26, %v10247_v51  ;;  %v11396_v51 = vld [vmem:[#allocation7 + $0xf4] sm:$0xf0] }
 0x5ca   :  { %6500 = vmatpush.bf16.msra.mxu0 %v10302_v43  ;;  %6513 = vmatpush.bf16.msra.mxu1 %v10306_v57  ;;  %v10222_v43 = vor.u32 %v11339_v58, %v10221_v48  ;;  %v10205_v57 = vld [vmem:[#allocation5] sm:$0xf]  ;;  %v11394_v48 = vld [vmem:[#allocation7 + $0xec] sm:$0xf]  ;;  %v10458_v58 = vld [vmem:[#allocation7 + $0xf8] sm:$0xf0] }
 0x5cb   :  { %6526 = vmatpush.bf16.msra.mxu2 %v10310_v50  ;;  %6539 = vmatpush.bf16.msra.mxu3 %v10314_v28  ;;  %v10234_v50 = vor.u32 %v11338_v27, %v10231_v44  ;;  %v11333_v28 = vld [vmem:[#allocation5 + $0x4] sm:$0xf]  ;;  %v10206_v25 = vor.u32 %v11335_v56, %v10205_v57  ;;  %v10434_v27 = vld [vmem:[#allocation7 + $0xd0] sm:$0xf0]  ;;  %v11392_v57 = vld [vmem:[#allocation7 + $0xd4] sm:$0xf0] }
 0x5cc   :  { %v11390_v56 = vld [vmem:[#allocation7 + $0xcc] sm:$0xf] }
 0x5ce   :  { %6501 = vmatpush.bf16.msra.mxu0 %v10286_v17  ;;  %6514 = vmatpush.bf16.msra.mxu1 %v10290_v36  ;;  %v10210_v17 = vor.u32 %v11333_v28, %v10207_v46  ;;  %v10214_v36 = vor.u32 %v11336_v40, %v10213_v61  ;;  %v10442_v28 = vld [vmem:[#allocation7 + $0xd8] sm:$0xf0] }
 0x5cf   :  { %6527 = vmatpush.bf16.msra.mxu2 %v10294_v7  ;;  %6540 = vmatpush.bf16.msra.mxu3 %v10298_v3  ;;  %v10448_v3 = vld [vmem:[#allocation7 + $0xe0] sm:$0xf]  ;;  %v10445_v40 = vor.u32 %v11390_v56, %v10442_v28  ;;  %v11380_v56 = vld [vmem:[#allocation7 + $0x74] sm:$0xf0] }
 0x5d0   :  { %v10449_v1 = vor.u32 %v11395_v22, %v10448_v3  ;;  %v10424_v22 = vld [vmem:[#allocation7 + $0xa8] sm:$0xf] }
 0x5d2   :  { %6502 = vmatpush.bf16.msra.mxu0 %v10270_v63  ;;  %6515 = vmatpush.bf16.msra.mxu1 %v10274_v14  ;;  %v13203_v63 = vld [vmem:[%s13527_s6] sm:$0xf] }
 0x5d3   :  { %6528 = vmatpush.bf16.msra.mxu2 %v10278_v59  ;;  %6541 = vmatpush.bf16.msra.mxu3 %v10282_v38  ;;  %v5769_v59 = vperm.slane %v13203_v63, 1  ;;  %v10416_v38 = vld [vmem:[#allocation7 + $0xa0] sm:$0xf]  ;;  %v5770_v13 = vperm.slane %v13203_v63, 2 }
 0x5d4   :  { %6188 = vmatmul.bf16.vlgmr.msrb.gmra.mxu0 %v13180_v12  ;;  %6201 = vmatmul.bf16.vlgmr.msrb.gmra.mxu1 %v13180_v12  ;;  %v10417_v0 = vor.u32 %v11387_v41, %v10416_v38  ;;  %v11371_v38 = vld [vmem:[#allocation7 + $0x2c] sm:$0xf0] }
 0x5d5   :  { %6214 = vmatmul.bf16.vlgmr.msrb.gmra.mxu2 %v13180_v12  ;;  %6227 = vmatmul.bf16.vlgmr.msrb.gmra.mxu3 %v13180_v12  ;;  %v10226_v12 = vor.u32 %v11337_v24, %v10223_v49  ;;  %v10461_v24 = vor.u32 %v11394_v48, %v10458_v58  ;;  %v10384_v49 = vld [vmem:[#allocation7 + $0x60] sm:$0xf]  ;;  %v11367_v58 = vld [vmem:[#allocation7 + $0xc] sm:$0xf0] }
 0x5d6   :  { %6503 = vmatpush.bf16.msra.mxu0 %v10254_v54  ;;  %6516 = vmatpush.bf16.msra.mxu1 %v10258_v8  ;;  %v10400_v54 = vld [vmem:[#allocation7 + $0x80] sm:$0xf]  ;;  %v11383_v8 = vld [vmem:[#allocation7 + $0x8c] sm:$0xf0]  ;;  %v10385_v44 = vor.u32 %v11379_v15, %v10384_v49  ;;  %v11377_v15 = vld [vmem:[#allocation7 + $0x64] sm:$0xf] }
 0x5d7   :  { %6529 = vmatpush.bf16.msra.mxu2 %v10262_v30  ;;  %6542 = vmatpush.bf16.msra.mxu3 %v10266_v32  ;;  %v10401_v30 = vor.u32 %v11383_v8, %v10400_v54  ;;  %v11393_v32 = vld [vmem:[#allocation7 + $0xe4] sm:$0xf]  ;;  %v10408_v54 = vld [vmem:[#allocation7 + $0x88] sm:$0xf]  ;;  %v11384_v8 = vld [vmem:[#allocation7 + $0x94] sm:$0xf0] }
 0x5d8   :  { %v10453_v26 = vor.u32 %v11393_v32, %v10450_v2  ;;  %v10336_v48 = vld [vmem:[#allocation7] sm:$0xf] }
 0x5d9   :  { %v10337_v49 = vor.u32 %v11367_v58, %v10336_v48  ;;  %v11372_v48 = vld [vmem:[#allocation7 + $0x34] sm:$0xf0]  ;;  %v11370_v58 = vld [vmem:[#allocation7 + $0x2c] sm:$0xf] }
 0x5da   :  { %6504 = vmatpush.bf16.msra.mxu0 %v10238_v19  ;;  %6517 = vmatpush.bf16.msra.mxu1 %v10242_v11  ;;  %v5771_v19 = vperm.slane %v13203_v63, 3  ;;  %v10457_v11 = vor.u32 %v11396_v51, %v10456_v23 }
 0x5db   :  { %6530 = vmatpush.bf16.msra.mxu2 %v10246_v5  ;;  %6543 = vmatpush.bf16.msra.mxu3 %v10250_v35 }
 0x5de   :  { %6505 = vmatpush.bf16.msra.mxu0 %v10222_v43  ;;  %6518 = vmatpush.bf16.msra.mxu1 %v10226_v12  ;;  %v10437_v43 = vor.u32 %v11389_v42, %v10434_v27  ;;  %v10440_v12 = vld [vmem:[#allocation7 + $0xc8] sm:$0xf]  ;;  %v10386_v42 = vld [vmem:[#allocation7 + $0x70] sm:$0xf0] }
 0x5df   :  { %6531 = vmatpush.bf16.msra.mxu2 %v10230_v16  ;;  %6544 = vmatpush.bf16.msra.mxu3 %v10234_v50  ;;  %v10441_v50 = vor.u32 %v11392_v57, %v10440_v12  ;;  %v10389_v12 = vor.u32 %v11377_v15, %v10386_v42  ;;  %v10392_v57 = vld [vmem:[#allocation7 + $0x68] sm:$0xf] }
 0x5e2   :  { %6506 = vmatpush.bf16.msra.mxu0 %v10206_v25  ;;  %6519 = vmatpush.bf16.msra.mxu1 %v10210_v17 }
 0x5e3   :  { %6532 = vmatpush.bf16.msra.mxu2 %v10214_v36  ;;  %6545 = vmatpush.bf16.msra.mxu3 %v10218_v39  ;;  %v11375_v36 = vld [vmem:[#allocation7 + $0x4c] sm:$0xf0]  ;;  %v11385_v39 = vld [vmem:[#allocation7 + $0xa4] sm:$0xf] }
 0x5e5   :  { %6507 = vmatmul.bf16.vlgmr.msra.gmra.mxu0 %v13184_v47  ;;  %6520 = vmatmul.bf16.vlgmr.msra.gmra.mxu1 %v13184_v47 }
 0x5e6   :  { %6533 = vmatmul.bf16.vlgmr.msra.gmra.mxu2 %v13184_v47  ;;  %6546 = vmatmul.bf16.vlgmr.msra.gmra.mxu3 %v13184_v47  ;;  %v5768_v47 = vperm.slane %v13203_v63, 0 }
 0x5e7   :  { %6821 = vmatpush.bf16.msrb.mxu0 %v10449_v1  ;;  %6834 = vmatpush.bf16.msrb.mxu1 %v10453_v26  ;;  %v11388_v1 = vld [vmem:[#allocation7 + $0xb4] sm:$0xf0] }
 0x5e8   :  { %6847 = vmatpush.bf16.msrb.mxu2 %v10457_v11  ;;  %6860 = vmatpush.bf16.msrb.mxu3 %v10461_v24 }
 0x5eb   :  { %6822 = vmatpush.bf16.msrb.mxu0 %v10433_v18  ;;  %6835 = vmatpush.bf16.msrb.mxu1 %v10437_v43 }
 0x5ec   :  { %6848 = vmatpush.bf16.msrb.mxu2 %v10441_v50  ;;  %6861 = vmatpush.bf16.msrb.mxu3 %v10445_v40  ;;  %v10576_v40 = vld [vmem:[#allocation9 + $0xe0] sm:$0xf] }
 0x5ef   :  { %6823 = vmatpush.bf16.msrb.mxu0 %v10417_v0 }
 0x5f3   :  { %6824 = vmatpush.bf16.msrb.mxu0 %v10401_v30  ;;  %v11382_v30 = vld [vmem:[#allocation7 + $0x8c] sm:$0xf] }
 0x5f7   :  { %6825 = vmatpush.bf16.msrb.mxu0 %v10385_v44 }
 0x641   :  { %v5945_v53 = vpop.f32.mrf.mxu0  ;;  %v5958_v7 = vpop.f32.mrf.mxu1 }
 0x642   :  { %v5946_v33 = vadd.f32 %v5945_v53, %v5768_v47  ;;  %v5959_v34 = vadd.f32 %v5958_v7, %v5769_v59  ;;  %v10418_v53 = vld [vmem:[#allocation7 + $0xb0] sm:$0xf0]  ;;  %v10369_v7 = vor.u32 %v11375_v36, %v10368_v4  ;;  %v10352_v59 = vld [vmem:[#allocation7 + $0x20] sm:$0xf]  ;;  %v11427_v36 = vld [vmem:[#allocation9 + $0xec] sm:$0xf0] }
 0x643   :  { %v10421_v3 = vor.u32 %v11385_v39, %v10418_v53 }
 0x644   :  { %6826 = vmatpush.bf16.msrb.mxu0 %v10369_v7 }
 0x645   :  { %6836 = vmatpush.bf16.msrb.mxu1 %v10421_v3  ;;  %v11373_v3 = vld [vmem:[#allocation7 + $0x44] sm:$0xf] }
 0x648   :  { %v13198_v37 = vpop.f32.mrf.mxu2  ;;  %v5984_v45 = vpop.f32.mrf.mxu3 }
 0x649   :  { %v5947_v14 = vpop.f32.mrf.mxu0  ;;  %v5960_v62 = vpop.f32.mrf.mxu1  ;;  %v5985_v16 = vadd.f32 %v5984_v45, %v5771_v19  ;;  %v11386_v45 = vld [vmem:[#allocation7 + $0xac] sm:$0xf]  ;;  %v10409_v19 = vor.u32 %v11384_v8, %v10408_v54  ;;  %v10560_v8 = vld [vmem:[#allocation9 + $0xc0] sm:$0xf] }
 0x64a   :  { %v10425_v14 = vor.u32 %v11388_v1, %v10424_v22  ;;  %v10426_v62 = vld [vmem:[#allocation7 + $0xb8] sm:$0xf0]  ;;  %v10370_v22 = vld [vmem:[#allocation7 + $0x50] sm:$0xf0]  ;;  %v10376_v1 = vld [vmem:[#allocation7 + $0x48] sm:$0xf] }
 0x64b   :  { %v10429_v47 = vor.u32 %v11386_v45, %v10426_v62  ;;  %v11376_v62 = vld [vmem:[#allocation7 + $0x54] sm:$0xf0] }
 0x64c   :  { %6849 = vmatpush.bf16.msrb.mxu2 %v10425_v14  ;;  %v10202_v14 = vld [vmem:[%s13521_s0 + $0xf8] sm:$0xff]  ;;  %v10377_v54 = vor.u32 %v11376_v62, %v10376_v1 }
 0x64d   :  { %6862 = vmatpush.bf16.msrb.mxu3 %v10429_v47  ;;  %v10577_v47 = vor.u32 %v11427_v36, %v10576_v40 }
 0x650   :  { %v5973_v20 = vpop.f32.mrf.mxu2  ;;  %v5986_v52 = vpop.f32.mrf.mxu3  ;;  %6850 = vmatpush.bf16.msrb.mxu2 %v10409_v19 }
 0x651   :  { %v6189_v6 = vpop.f32.mrf.mxu0  ;;  %v6202_v60 = vpop.f32.mrf.mxu1  ;;  %v10402_v20 = vld [vmem:[#allocation7 + $0x90] sm:$0xf0] }
 0x652   :  { %v6232_v10 = vadd.f32 %v6189_v6, %v5946_v33  ;;  %v6233_v55 = vadd.f32 %v6202_v60, %v5959_v34  ;;  %v10353_v33 = vor.u32 %v11371_v38, %v10352_v59  ;;  %v11381_v34 = vld [vmem:[#allocation7 + $0x84] sm:$0xf]  ;;  %v5972_v6 = vadd.f32 %v13198_v37, %v5770_v13  ;;  %v10199_v60 = vld [vmem:[%s13521_s0 + $0xe0] sm:$0xff]  ;;  %v11374_v38 = vld [vmem:[#allocation7 + $0x4c] sm:$0xf] }
 0x653   :  { %v10405_v63 = vor.u32 %v11381_v34, %v10402_v20  ;;  %v10410_v37 = vld [vmem:[#allocation7 + $0x98] sm:$0xf0]  ;;  %v10373_v59 = vor.u32 %v11373_v3, %v10370_v22 }
 0x654   :  { %v10196_v5 = vmul.f32 -1.442695, %v6232_v10  ;;  %v10197_v35 = vmul.f32 -1.442695, %v6233_v55  ;;  %v10200_v55 = vld [vmem:[%s13521_s0 + $0xe8] sm:$0xff]  ;;  %6827 = vmatpush.bf16.msrb.mxu0 %v10353_v33  ;;  %v10413_v11 = vor.u32 %v11382_v30, %v10410_v37 }
 0x655   :  { %6837 = vmatpush.bf16.msrb.mxu1 %v10405_v63 }
 0x656   :  { %11674 = vpow2.f32 %v10196_v5  ;;  %6863 = vmatpush.bf16.msrb.mxu3 %v10413_v11 }
 0x657   :  { %11676 = vpow2.f32 %v10197_v35 }
 0x658   :  { %v6215_v46 = vpop.f32.mrf.mxu2  ;;  %v6228_v61 = vpop.f32.mrf.mxu3  ;;  %6828 = vmatpush.bf16.msrb.mxu0 %v10337_v49  ;;  %v11424_v49 = vld [vmem:[#allocation9 + $0xd4] sm:$0xf0] }
 0x659   :  { %v6235_v29 = vadd.f32 %v6228_v61, %v5985_v16  ;;  %v6191_v25 = vpop.f32.mrf.mxu0  ;;  %v6204_v17 = vpop.f32.mrf.mxu1  ;;  %v6234_v51 = vadd.f32 %v6215_v46, %v5972_v6  ;;  %v11378_v16 = vld [vmem:[#allocation7 + $0x6c] sm:$0xf]  ;;  %v10393_v46 = vor.u32 %v11380_v56, %v10392_v57  ;;  %v10394_v61 = vld [vmem:[#allocation7 + $0x78] sm:$0xf0]  ;;  %6838 = vmatpush.bf16.msrb.mxu1 %v10389_v12  ;;  %v11423_v6 = vld [vmem:[#allocation9 + $0xcc] sm:$0xf0] }
 0x65a   :  { %v10397_v17 = vor.u32 %v11378_v16, %v10394_v61  ;;  %v10561_v19 = vor.u32 %v11423_v6, %v10560_v8  ;;  %v11365_v57 = vld [vmem:[#allocation7 + $0x4] sm:$0xf]  ;;  %v10338_v56 = vld [vmem:[#allocation7 + $0x10] sm:$0xf0]  ;;  %v10344_v16 = vld [vmem:[#allocation7 + $0x8] sm:$0xf] }
 0x65b   :  { %v10198_v31 = vmul.f32 -1.442695, %v6235_v29  ;;  %6851 = vmatpush.bf16.msrb.mxu2 %v10393_v46  ;;  %v10341_v40 = vor.u32 %v11365_v57, %v10338_v56  ;;  %v11426_v8 = vld [vmem:[#allocation9 + $0xec] sm:$0xf]  ;;  %v10586_v6 = vld [vmem:[#allocation9 + $0xf8] sm:$0xf0] }
 0x65c   :  { %v11675_v18 = vpop.eup %11674  ;;  %6864 = vmatpush.bf16.msrb.mxu3 %v10397_v17  ;;  %7065 = vmatpush.bf16.msra.mxu0 %v10577_v47 }
 0x65d   :  { %v11677_v41 = vpop.eup %11676  ;;  %v13209_v0 = vadd.f32 1.0, %v11675_v18  ;;  %11678 = vpow2.f32 %v10198_v31  ;;  %6839 = vmatpush.bf16.msrb.mxu1 %v10373_v59  ;;  %v11415_v59 = vld [vmem:[#allocation9 + $0x8c] sm:$0xf0]  ;;  %v11425_v31 = vld [vmem:[#allocation9 + $0xe4] sm:$0xf] }
 0x65e   :  { %v13211_v52 = vadd.f32 1.0, %v11677_v41  ;;  %v10378_v41 = vld [vmem:[#allocation7 + $0x58] sm:$0xf0] }
 0x65f   :  { %11680 = vrcp.f32 %v13209_v0  ;;  %v6249_v32 = vand.u32 2147483647, %v13209_v0  ;;  %v6251_v2 = vand.u32 2147483648, %v13209_v0  ;;  %vm6245_vm0 = vweird.f32 %v13209_v0  ;;  %6852 = vmatpush.bf16.msrb.mxu2 %v10377_v54 }
 0x660   :  { %11682 = vrcp.f32 %v13211_v52  ;;  %v6217_v23 = vpop.f32.mrf.mxu2  ;;  %v6230_v10 = vpop.f32.mrf.mxu3  ;;  %v6270_v26 = vand.u32 2147483648, %v13211_v52  ;;  %v6268_v5 = vand.u32 2147483647, %v13211_v52  ;;  %vm6264_vm2 = vweird.f32 %v13211_v52  ;;  %7066 = vmatpush.bf16.msra.mxu0 %v10561_v19 }
 0x661   :  { %v13226_v50 = vor.u32 1.1754944e-38, %v6251_v2  ;;  %11684 = vtanh.f32 %v6234_v51  ;;  %vm13236_vm12 = vcmp.eq.f32.partialorder %v6249_v32, 8.507059e+37  ;;  %v11369_v23 = vld [vmem:[#allocation7 + $0x24] sm:$0xf]  ;;  %v10354_v10 = vld [vmem:[#allocation7 + $0x30] sm:$0xf0]  ;;  %v10381_v51 = vor.u32 %v11374_v38, %v10378_v41 }
 0x662   :  { %v6508_v35 = vpop.f32.mrf.mxu0  ;;  %v6521_v24 = vpop.f32.mrf.mxu1  ;;  %v13243_v13 = vor.u32 1.1754944e-38, %v6270_v26  ;;  %vm13246_vm14 = vcmp.eq.f32.partialorder %v6268_v5, 8.507059e+37  ;;  %v10357_v11 = vor.u32 %v11369_v23, %v10354_v10  ;;  %v10362_v5 = vld [vmem:[#allocation7 + $0x38] sm:$0xf0]  ;;  %v10584_v41 = vld [vmem:[#allocation9 + $0xe8] sm:$0xf] }
 0x663   :  { %v11679_v27 = vpop.eup %11678  ;;  %v6551_v44 = vadd.f32 %v10199_v60, %v6508_v35  ;;  %v6552_v43 = vadd.f32 %v10200_v55, %v6521_v24  ;;  %v10360_v55 = vld [vmem:[#allocation7 + $0x28] sm:$0xf]  ;;  %6865 = vmatpush.bf16.msrb.mxu3 %v10381_v51  ;;  %v10365_v12 = vor.u32 %v11370_v58, %v10362_v5  ;;  %v10512_v10 = vld [vmem:[#allocation9 + $0x60] sm:$0xf]  ;;  %v10562_v5 = vld [vmem:[#allocation9 + $0xd0] sm:$0xf0] }
 0x664   :  { %v13228_v28 = vadd.f32 1.0, %v11679_v27  ;;  %v10361_v42 = vor.u32 %v11372_v48, %v10360_v55  ;;  %v10544_v27 = vld [vmem:[#allocation9 + $0xa0] sm:$0xf]  ;;  %6840 = vmatpush.bf16.msrb.mxu1 %v10357_v11  ;;  %v11411_v55 = vld [vmem:[#allocation9 + $0x6c] sm:$0xf0]  ;;  %v10589_v48 = vor.u32 %v11426_v8, %v10586_v6 }
 0x665   :  { %v13230_v4 = vpop.eup %11680  ;;  %v10331_v29 = vmul.f32 -1.442695, %v6551_v44  ;;  %v10332_v25 = vmul.f32 -1.442695, %v6552_v43  ;;  %v11419_v44 = vld [vmem:[#allocation9 + $0xac] sm:$0xf0]  ;;  %v10513_v58 = vor.u32 %v11411_v55, %v10512_v10 }
 0x666   :  { %v13232_v39 = vpop.eup %11682  ;;  %v6241_v53 = vmul.f32 %v13230_v4, %v13209_v0  ;;  %11686 = vrcp.f32 %v13228_v28  ;;  %vm6246_vm13 = vweird.f32 %v13230_v4  ;;  %v6290_v34 = vand.u32 2147483648, %v13228_v28  ;;  %6853 = vmatpush.bf16.msrb.mxu2 %v10361_v42  ;;  %v11421_v11 = vld [vmem:[#allocation9 + $0xc4] sm:$0xf]  ;;  %v11407_v0 = vld [vmem:[#allocation9 + $0x4c] sm:$0xf0] }
 0x667   :  { %v6260_v45 = vmul.f32 %v13232_v39, %v13211_v52  ;;  %11688 = vpow2.f32 %v10331_v29  ;;  %vm6265_vm15 = vweird.f32 %v13232_v39  ;;  %v11685_v37 = vpop.eup %11684  ;;  %vm13267_vm1 = vmor %vm6245_vm0, %vm6246_vm13  ;;  %v10545_v52 = vor.u32 %v11419_v44, %v10544_v27  ;;  %v11368_v29 = vld [vmem:[#allocation7 + $0x14] sm:$0xf0]  ;;  %6866 = vmatpush.bf16.msrb.mxu3 %v10365_v12  ;;  %v11422_v44 = vld [vmem:[#allocation9 + $0xcc] sm:$0xf] }
 0x668   :  { %v6242_v18 = vsub.f32 1.0, %v6241_v53  ;;  %11690 = vpow2.f32 %v10332_v25  ;;  %vm13275_vm3 = vmor %vm6264_vm2, %vm6265_vm15  ;;  %v10345_v7 = vor.u32 %v11368_v29, %v10344_v16  ;;  %v6288_v38 = vand.u32 2147483647, %v13228_v28  ;;  %6841 = vmatpush.bf16.msrb.mxu1 %v10341_v40  ;;  %v10570_v16 = vld [vmem:[#allocation9 + $0xd8] sm:$0xf0] }
 0x669   :  { %v6261_v33 = vsub.f32 1.0, %v6260_v45  ;;  %v13254_v20 = vpop.f32.mrf.mxu2  ;;  %v6547_v63 = vpop.f32.mrf.mxu3  ;;  %7067 = vmatpush.bf16.msra.mxu0 %v10545_v52  ;;  %vm6284_vm4 = vweird.f32 %v13228_v28  ;;  %v10565_v57 = vor.u32 %v11421_v11, %v10562_v5  ;;  %v11417_v29 = vld [vmem:[#allocation9 + $0xa4] sm:$0xf]  ;;  %v10530_v8 = vld [vmem:[#allocation9 + $0x90] sm:$0xf0] }
 0x66a   :  { %v6243_v60 = vmul.f32 %v13230_v4, %v6242_v18  ;;  %v6554_v30 = vadd.f32 %v10202_v14, %v6547_v63  ;;  %v6510_v32 = vpop.f32.mrf.mxu0  ;;  %v6523_v2 = vpop.f32.mrf.mxu1  ;;  %v10528_v14 = vld [vmem:[#allocation9 + $0x80] sm:$0xf]  ;;  %6854 = vmatpush.bf16.msrb.mxu2 %v10345_v7  ;;  %v10536_v6 = vld [vmem:[#allocation9 + $0x88] sm:$0xf] }
 0x66b   :  { %v6262_v26 = vmul.f32 %v13232_v39, %v6261_v33  ;;  %v11428_v33 = vld [vmem:[#allocation9 + $0xf4] sm:$0xf0]  ;;  %v13310_v32 = vor.u32 1.1754944e-38, %v6290_v34  ;;  %v10529_v2 = vor.u32 %v11415_v59, %v10528_v14  ;;  %v11418_v14 = vld [vmem:[#allocation9 + $0xac] sm:$0xf] }
 0x66c   :  { %v13260_v35 = vpop.eup %11686  ;;  %v6244_v24 = vadd.f32 %v13230_v4, %v6243_v60  ;;  %v10333_v15 = vmul.f32 -1.442695, %v6554_v30  ;;  %v10585_v34 = vor.u32 %v11428_v33, %v10584_v41  ;;  %v11403_v41 = vld [vmem:[#allocation9 + $0x2c] sm:$0xf0]  ;;  %v11413_v33 = vld [vmem:[#allocation9 + $0x84] sm:$0xf] }
 0x66d   :  { %v6263_v43 = vadd.f32 %v13232_v39, %v6262_v26  ;;  %v11689_v46 = vpop.eup %11688  ;;  %v6280_v53 = vmul.f32 %v13260_v35, %v13228_v28  ;;  %vm6285_vm5 = vweird.f32 %v13260_v35  ;;  %7068 = vmatpush.bf16.msra.mxu0 %v10529_v2  ;;  %v10464_v11 = vld [vmem:[#allocation9] sm:$0xf] }
 0x66e   :  { %v6248_v61 = vsel %vm13267_vm1, %v13230_v4, %v6244_v24  ;;  %11692 = vpow2.f32 %v10333_v15  ;;  %v11691_v25 = vpop.eup %11690  ;;  %v13290_v3 = vadd.f32 1.0, %v11689_v46  ;;  %v11366_v4 = vld [vmem:[#allocation7 + $0xc] sm:$0xf]  ;;  %v10568_v24 = vld [vmem:[#allocation9 + $0xc8] sm:$0xf]  ;;  %7091 = vmatpush.bf16.msra.mxu2 %v10585_v34  ;;  %vm13342_vm7 = vmor %vm6284_vm4, %vm6285_vm5 }
 0x66f   :  { %v6253_v17 = vsel %vm13236_vm12, %v13226_v50, %v6248_v61  ;;  %v6267_v36 = vsel %vm13275_vm3, %v13232_v39, %v6263_v43  ;;  %v13295_v45 = vadd.f32 1.0, %v11691_v25  ;;  %v10201_v50 = vld [vmem:[%s13521_s0 + $0xf0] sm:$0xff]  ;;  %v10346_v39 = vld [vmem:[#allocation7 + $0x18] sm:$0xf0]  ;;  %v6281_v63 = vsub.f32 1.0, %v6280_v53 }
 0x670   :  { %v6272_v22 = vsel %vm13246_vm14, %v13243_v13, %v6267_v36  ;;  %v6295_v1 = vmul.f32 %v11685_v37, %v6253_v17  ;;  %11694 = vrcp.f32 %v13290_v3  ;;  %v10578_v13 = vld [vmem:[#allocation9 + $0xf0] sm:$0xf0]  ;;  %v10349_v54 = vor.u32 %v11366_v4, %v10346_v39  ;;  %v10496_v46 = vld [vmem:[#allocation9 + $0x40] sm:$0xf]  ;;  %v11401_v39 = vld [vmem:[#allocation9 + $0x24] sm:$0xf] }
 0x671   :  { %v6294_v62 = vmul.f32 %v6272_v22, %v13090_v21  ;;  %v6536_v18 = vpop.f32.mrf.mxu2  ;;  %v6549_v47 = vpop.f32.mrf.mxu3  ;;  %11696 = vrcp.f32 %v13295_v45  ;;  %v6589_v21 = vand.u32 2147483648, %v13295_v45  ;;  %v10581_v23 = vor.u32 %v11425_v31, %v10578_v13  ;;  %v10546_v25 = vld [vmem:[#allocation9 + $0xb0] sm:$0xf0]  ;;  %7069 = vmatpush.bf16.msra.mxu0 %v10513_v58  ;;  %v10552_v22 = vld [vmem:[#allocation9 + $0xa8] sm:$0xf] }
 0x672   :  { %v6553_v37 = vadd.f32 %v10201_v50, %v13254_v20  ;;  %v6568_v26 = vand.u32 2147483647, %v13290_v3  ;;  %v6570_v51 = vand.u32 2147483648, %v13290_v3  ;;  %6867 = vmatpush.bf16.msrb.mxu3 %v10349_v54  ;;  %v6282_v20 = vmul.f32 %v13260_v35, %v6281_v63  ;;  %v10480_v13 = vld [vmem:[#allocation9 + $0x20] sm:$0xf] }
 0x673   :  { %v13306_v30 = vadd.f32 %v6295_v1, %v6294_v62  ;;  %7078 = vmatpush.bf16.msra.mxu1 %v10581_v23  ;;  %v13321_v42 = vor.u32 1.1754944e-38, %v6589_v21  ;;  %v6587_v27 = vand.u32 2147483647, %v13295_v45  ;;  %v10569_v56 = vor.u32 %v11424_v49, %v10568_v24  ;;  %v11420_v1 = vld [vmem:[#allocation9 + $0xb4] sm:$0xf0] }
 0x674   :  { %v11693_v60 = vpop.eup %11692  ;;  %vm13332_vm6 = vcmp.eq.f32.partialorder %v6568_v26, 8.507059e+37  ;;  %v13336_v40 = vor.u32 1.1754944e-38, %v6570_v51  ;;  %v10573_v36 = vor.u32 %v11422_v44, %v10570_v16  ;;  %v10497_v53 = vor.u32 %v11407_v0, %v10496_v46  ;;  %v10554_v62 = vld [vmem:[#allocation9 + $0xb8] sm:$0xf0]  ;;  %v11414_v26 = vld [vmem:[#allocation9 + $0x8c] sm:$0xf] }
 0x675   :  { %v13315_v19 = vadd.f32 1.0, %v11693_v60  ;;  %v10549_v4 = vor.u32 %v11417_v29, %v10546_v25  ;;  %vm6564_vm8 = vweird.f32 %v13290_v3  ;;  %vm13347_vm9 = vcmp.eq.f32.partialorder %v6587_v27, 8.507059e+37  ;;  %7092 = vmatpush.bf16.msra.mxu2 %v10569_v56  ;;  %v11416_v60 = vld [vmem:[#allocation9 + $0x94] sm:$0xf0]  ;;  %v10538_v51 = vld [vmem:[#allocation9 + $0x98] sm:$0xf0] }
 0x676   :  { %v13318_v15 = vpop.eup %11694  ;;  %7104 = vmatpush.bf16.msra.mxu3 %v10589_v48  ;;  %v6283_v18 = vadd.f32 %v13260_v35, %v6282_v20  ;;  %v10553_v59 = vor.u32 %v11420_v1, %v10552_v22  ;;  %v10557_v31 = vor.u32 %v11418_v14, %v10554_v62  ;;  %v10481_v54 = vor.u32 %v11403_v41, %v10480_v13  ;;  %v11399_v24 = vld [vmem:[#allocation9 + $0xc] sm:$0xf0]  ;;  %v11409_v49 = vld [vmem:[#allocation9 + $0x64] sm:$0xf]  ;;  %v11412_v16 = vld [vmem:[#allocation9 + $0x74] sm:$0xf0] }
 0x677   :  { %11698 = vrcp.f32 %v13315_v19  ;;  %v13325_v43 = vpop.eup %11696  ;;  %v6560_v12 = vmul.f32 %v13318_v15, %v13290_v3  ;;  %7079 = vmatpush.bf16.msra.mxu1 %v10565_v57  ;;  %vm6565_vm10 = vweird.f32 %v13318_v15  ;;  %vm6583_vm12 = vweird.f32 %v13295_v45  ;;  %7070 = vmatpush.bf16.msra.mxu0 %v10497_v53  ;;  %v10520_v57 = vld [vmem:[#allocation9 + $0x68] sm:$0xf]  ;;  %v11410_v46 = vld [vmem:[#allocation9 + $0x6c] sm:$0xf]  ;;  %v10498_v25 = vld [vmem:[#allocation9 + $0x50] sm:$0xf0] }
 0x678   :  { %11700 = vtanh.f32 %v13306_v30  ;;  %v6579_v61 = vmul.f32 %v13325_v43, %v13295_v45  ;;  %vm6584_vm11 = vweird.f32 %v13325_v43  ;;  %v6287_v2 = vsel %vm13342_vm7, %v13260_v35, %v6283_v18  ;;  %vm13369_vm13 = vmor %vm6564_vm8, %vm6565_vm10  ;;  %v11406_v22 = vld [vmem:[#allocation9 + $0x4c] sm:$0xf]  ;;  %v10482_v14 = vld [vmem:[#allocation9 + $0x30] sm:$0xf0] }
 0x679   :  { %11702 = vtanh.f32 %v6553_v37  ;;  %v6561_v17 = vsub.f32 1.0, %v6560_v12  ;;  %v10533_v37 = vor.u32 %v11413_v33, %v10530_v8  ;;  %v10537_v58 = vor.u32 %v11416_v60, %v10536_v6  ;;  %vm13380_vm15 = vmor %vm6583_vm12, %vm6584_vm11  ;;  %7093 = vmatpush.bf16.msra.mxu2 %v10553_v59  ;;  %v10514_v12 = vld [vmem:[#allocation9 + $0x70] sm:$0xf0]  ;;  %v11404_v13 = vld [vmem:[#allocation9 + $0x34] sm:$0xf0] }
 0x67a   :  { %v6580_v7 = vsub.f32 1.0, %v6579_v61  ;;  %7105 = vmatpush.bf16.msra.mxu3 %v10573_v36  ;;  %v10541_v5 = vor.u32 %v11414_v26, %v10538_v51  ;;  %vm6289_vm14 = vcmp.eq.f32.partialorder %v6288_v38, 8.507059e+37  ;;  %v10465_v44 = vor.u32 %v11399_v24, %v10464_v11  ;;  %v10504_v36 = vld [vmem:[#allocation9 + $0x48] sm:$0xf]  ;;  %v11402_v41 = vld [vmem:[#allocation9 + $0x2c] sm:$0xf] }
 0x67b   :  { %v6562_v47 = vmul.f32 %v13318_v15, %v6561_v17  ;;  %7080 = vmatpush.bf16.msra.mxu1 %v10549_v4  ;;  %v6292_v28 = vsel %vm6289_vm14, %v13310_v32, %v6287_v2  ;;  %v10517_v56 = vor.u32 %v11409_v49, %v10514_v12  ;;  %7071 = vmatpush.bf16.msra.mxu0 %v10481_v54  ;;  %v11408_v4 = vld [vmem:[#allocation9 + $0x54] sm:$0xf0]  ;;  %vm6603_vm1 = vweird.f32 %v13315_v19  ;;  %v10490_v33 = vld [vmem:[#allocation9 + $0x38] sm:$0xf0]  ;;  %v11398_v51 = vld [vmem:[#allocation9 + $0xc] sm:$0xf] }
 0x67c   :  { %v6581_v21 = vmul.f32 %v13325_v43, %v6580_v7  ;;  %v6609_v7 = vand.u32 2147483648, %v13315_v19  ;;  %v6607_v18 = vand.u32 2147483647, %v13315_v19  ;;  %v10485_v54 = vor.u32 %v11401_v39, %v10482_v14  ;;  %v11400_v26 = vld [vmem:[#allocation9 + $0x14] sm:$0xf0]  ;;  %v11438_v24 = vld [vmem:[%s13528_s7 + $0x28] sm:$0xff] }
 0x67d   :  { %v13354_v63 = vpop.eup %11698  ;;  %v6563_v10 = vadd.f32 %v13318_v15, %v6562_v47  ;;  %7094 = vmatpush.bf16.msra.mxu2 %v10537_v58  ;;  %v10505_v47 = vor.u32 %v11408_v4, %v10504_v36  ;;  %v10493_v6 = vor.u32 %v11402_v41, %v10490_v33  ;;  %v10474_v11 = vld [vmem:[#allocation9 + $0x18] sm:$0xf0]  ;;  %v11436_v20 = vld [vmem:[%s13528_s7 + $0x18] sm:$0xff]  ;;  %v11429_v12 = vld [vmem:[#allocation4] sm:$0xff]  ;;  %vm7368_vm12 = vcmask 523264  }
 0x67e   :  { %v11701_v23 = vpop.eup %11700  ;;  %v6599_v55 = vmul.f32 %v13354_v63, %v13315_v19  ;;  %v6582_v48 = vadd.f32 %v13325_v43, %v6581_v21  ;;  %7106 = vmatpush.bf16.msra.mxu3 %v10557_v31  ;;  %vm6604_vm0 = vweird.f32 %v13354_v63  ;;  %v10488_v31 = vld [vmem:[#allocation9 + $0x28] sm:$0xf]  ;;  %v6610_v8 = vor.u32 1.1754944e-38, %v6609_v7  ;;  %v11437_v49 = vld [vmem:[%s13528_s7 + $0x20] sm:$0xff] }
 0x67f   :  { %v11703_v34 = vpop.eup %11702  ;;  %v6567_v3 = vsel %vm13369_vm13, %v13318_v15, %v6563_v10  ;;  %v10522_v15 = vld [vmem:[#allocation9 + $0x78] sm:$0xf0]  ;;  %v6298_v0 = vmul.f32 %v11701_v23, %v6292_v28  ;;  %7081 = vmatpush.bf16.msra.mxu1 %v10533_v37  ;;  %7072 = vmatpush.bf16.msra.mxu0 %v10465_v44  ;;  %vm13410_vm2 = vmor %vm6603_vm1, %vm6604_vm0  ;;  %vm6608_vm3 = vcmp.eq.f32.partialorder %v6607_v18, 8.507059e+37  ;;  %v10489_v19 = vor.u32 %v11404_v13, %v10488_v31  ;;  %v11397_v23 = vld [vmem:[#allocation9 + $0x4] sm:$0xf] }
 0x680   :  { %v6600_v27 = vsub.f32 1.0, %v6599_v55  ;;  %v6572_v45 = vsel %vm13332_vm6, %v13336_v40, %v6567_v3  ;;  %v6586_v38 = vsel %vm13380_vm15, %v13325_v43, %v6582_v48  ;;  %v11405_v40 = vld [vmem:[#allocation9 + $0x44] sm:$0xf]  ;;  %v10521_v43 = vor.u32 %v11412_v16, %v10520_v57  ;;  %v10466_v10 = vld [vmem:[#allocation9 + $0x10] sm:$0xf0]  ;;  %v11435_v3 = vld [vmem:[%s13528_s7 + $0x10] sm:$0xff] }
 0x681   :  { %v6591_v61 = vsel %vm13347_vm9, %v13321_v42, %v6586_v38  ;;  %v6614_v29 = vmul.f32 %v11703_v34, %v6572_v45  ;;  %v10525_v17 = vor.u32 %v11410_v46, %v10522_v15  ;;  %v10506_v42 = vld [vmem:[#allocation9 + $0x58] sm:$0xf0]  ;;  %v13400_v1 = vpack.c.bf16 %v6298_v0, %v6298_v0  ;;  %v10472_v55 = vld [vmem:[#allocation9 + $0x8] sm:$0xf]  ;;  %v11440_v34 = vld [vmem:[%s13528_s7 + $0x38] sm:$0xff] }
 0x682   :  { %v6601_v32 = vmul.f32 %v13354_v63, %v6600_v27  ;;  %v6613_v52 = vmul.f32 %v6591_v61, %v13172_v9  ;;  %7107 = vmatpush.bf16.msra.mxu3 %v10541_v5  ;;  %v10501_v9 = vor.u32 %v11405_v40, %v10498_v25  ;;  %7095 = vmatpush.bf16.msra.mxu2 %v10521_v43  ;;  %v11439_v5 = vld [vmem:[%s13528_s7 + $0x30] sm:$0xff]  ;;  %v11434_v27 = vld [vmem:[%s13528_s7 + $0x8] sm:$0xff]  ;;  %v11433_v44 = vld [vmem:[%s13528_s7] sm:$0xff] }
 0x683   :  { %7082 = vmatpush.bf16.msra.mxu1 %v10517_v56  ;;  %v10509_v59 = vor.u32 %v11406_v22, %v10506_v42  ;;  %6301 = vst [vmem:[#allocation4 + $0x18] sm:$0xf] %v13400_v1  ;;  %v10469_v35 = vor.u32 %v11397_v23, %v10466_v10  ;;  %v10473_v48 = vor.u32 %v11400_v26, %v10472_v55  ;;  %v11430_v57 = vld [vmem:[#allocation4 + $0x8] sm:$0xff]  ;;  %v11431_v28 = vld [vmem:[#allocation4 + $0x10] sm:$0xff]  ;;  %v6651_v46 = vld [vmem:[%s13527_s6] sm:$0xf] }
 0x684   :  { %v6615_v53 = vadd.f32 %v6614_v29, %v6613_v52  ;;  %v6602_v50 = vadd.f32 %v13354_v63, %v6601_v32  ;;  %v10477_v58 = vor.u32 %v11398_v51, %v10474_v11  ;;  %v6653_v61 = vperm.slane %v6651_v46, 0  ;;  %v11443_v39 = vld [vmem:[%s13530_s9 + $0x10] sm:$0xff]  ;;  %v11442_v31 = vld [vmem:[%s13530_s9 + $0x8] sm:$0xff]  ;;  %v13469_v26 = vld [vmem:[%s13529_s8] ss:$0 sm:$0xff] }
 0x685   :  { %v6654_v29 = vperm.slane %v6651_v46, 1  ;;  %v6656_v4 = vperm.slane %v6651_v46, 3 }
 0x686   :  { %11704 = vtanh.f32 %v6615_v53  ;;  %7429 = vst [vmem:[%s13534_s13] sm:$0xff] %v6615_v53  ;;  %7108 = vmatpush.bf16.msra.mxu3 %v10525_v17  ;;  %v6606_v21 = vsel %vm13410_vm2, %v13354_v63, %v6602_v50  ;;  %7096 = vmatpush.bf16.msra.mxu2 %v10505_v47 }
 0x687   :  { %7083 = vmatpush.bf16.msra.mxu1 %v10501_v9  ;;  %v6611_v2 = vsel %vm6608_vm3, %v6610_v8, %v6606_v21  ;;  %v6655_v21 = vperm.slane %v6651_v46, 2 }
 0x68a   :  { %7109 = vmatpush.bf16.msra.mxu3 %v10509_v59  ;;  %7097 = vmatpush.bf16.msra.mxu2 %v10489_v19  ;;  %v11441_v19 = vld [vmem:[%s13530_s9] sm:$0xff] }
 0x68b   :  { %7084 = vmatpush.bf16.msra.mxu1 %v10485_v54 }
 0x68c   :  { %v11705_v60 = vpop.eup %11704 }
 0x68d   :  { %v13419_v37 = vmul.f32 %v11705_v60, %v6611_v2 }
 0x68e   :  { %7110 = vmatpush.bf16.msra.mxu3 %v10493_v6  ;;  %7098 = vmatpush.bf16.msra.mxu2 %v10473_v48 }
 0x68f   :  { %v6618_v63 = vpack.c.bf16 %v13419_v37, %v13419_v37  ;;  %7085 = vmatpush.bf16.msra.mxu1 %v10469_v35 }
 0x691   :  { %6829 = vmatmul.bf16.vlgmr.msrb.gmra.mxu0 %v6618_v63  ;;  %6842 = vmatmul.bf16.vlgmr.msrb.gmra.mxu1 %v6618_v63 }
 0x692   :  { %6855 = vmatmul.bf16.vlgmr.msrb.gmra.mxu2 %v6618_v63  ;;  %6868 = vmatmul.bf16.vlgmr.msrb.gmra.mxu3 %v6618_v63 }
 0x693   :  { %7291 = vmatpush.bf16.msrb.mxu0 %v11440_v34  ;;  %7111 = vmatpush.bf16.msra.mxu3 %v10477_v58 }
 0x697   :  { %7292 = vmatpush.bf16.msrb.mxu0 %v11439_v5 }
 0x69b   :  { %7293 = vmatpush.bf16.msrb.mxu0 %v11438_v24 }
 0x69f   :  { %7294 = vmatpush.bf16.msrb.mxu0 %v11437_v49 }
 0x6a1   :  { %7073 = vmatmul.bf16.vlgmr.msra.gmra.mxu0 %v13400_v1  ;;  %7086 = vmatmul.bf16.vlgmr.msra.gmra.mxu1 %v13400_v1 }
 0x6a2   :  { %7099 = vmatmul.bf16.vlgmr.msra.gmra.mxu2 %v13400_v1  ;;  %7112 = vmatmul.bf16.vlgmr.msra.gmra.mxu3 %v13400_v1  ;;  %v11444_v1 = vld [vmem:[%s13530_s9 + $0x18] sm:$0xff] }
 0x6a3   :  { %7295 = vmatpush.bf16.msrb.mxu0 %v11436_v20  ;;  %7385 = vmatpush.bf16.msrb.mxu1 %v11444_v1 }
 0x6a7   :  { %7296 = vmatpush.bf16.msrb.mxu0 %v11435_v3  ;;  %7386 = vmatpush.bf16.msrb.mxu1 %v11443_v39 }
 0x6ab   :  { %7297 = vmatpush.bf16.msrb.mxu0 %v11434_v27  ;;  %7387 = vmatpush.bf16.msrb.mxu1 %v11442_v31 }
 0x6af   :  { %7298 = vmatpush.bf16.msrb.mxu0 %v11433_v44  ;;  %7388 = vmatpush.bf16.msrb.mxu1 %v11441_v19 }
 0x6b2   :  { %7299 = vmatmul.bf16.vlgmr.msrb.gmra.mxu0 %v11429_v12 }
 0x6c2   :  { %7304 = vmatmul.bf16.gmra.mxu0 %v11430_v57 }
 0x6d2   :  { %7309 = vmatmul.bf16.gmra.mxu0 %v11431_v28 }
 0x70e   :  { %v6830_v45 = vpop.f32.mrf.mxu0  ;;  %v6843_v38 = vpop.f32.mrf.mxu1 }
 0x70f   :  { %v6831_v32 = vadd.f32 %v6830_v45, %v6653_v61  ;;  %v6844_v52 = vadd.f32 %v6843_v38, %v6654_v29 }
 0x715   :  { %v6856_v56 = vpop.f32.mrf.mxu2  ;;  %v6869_v16 = vpop.f32.mrf.mxu3 }
 0x716   :  { %v6832_v15 = vpop.f32.mrf.mxu0  ;;  %v6845_v0 = vpop.f32.mrf.mxu1  ;;  %v6870_v50 = vadd.f32 %v6869_v16, %v6656_v4  ;;  %v6857_v2 = vadd.f32 %v6856_v56, %v6655_v21 }
 0x71d   :  { %v6858_v40 = vpop.f32.mrf.mxu2  ;;  %v6871_v25 = vpop.f32.mrf.mxu3 }
 0x71e   :  { %v7074_v43 = vpop.f32.mrf.mxu0  ;;  %v7087_v17 = vpop.f32.mrf.mxu1 }
 0x71f   :  { %v7117_v36 = vadd.f32 %v7074_v43, %v6831_v32  ;;  %v7118_v53 = vadd.f32 %v7087_v17, %v6844_v52 }
 0x721   :  { %v10590_v22 = vmul.f32 -1.442695, %v7117_v36  ;;  %v10591_v42 = vmul.f32 -1.442695, %v7118_v53 }
 0x723   :  { %11706 = vpow2.f32 %v10590_v22 }
 0x724   :  { %11708 = vpow2.f32 %v10591_v42 }
 0x725   :  { %v7100_v9 = vpop.f32.mrf.mxu2  ;;  %v7113_v7 = vpop.f32.mrf.mxu3 }
 0x726   :  { %v7120_v14 = vadd.f32 %v7113_v7, %v6870_v50  ;;  %v7076_v62 = vpop.f32.mrf.mxu0  ;;  %v7089_v18 = vpop.f32.mrf.mxu1  ;;  %v7119_v55 = vadd.f32 %v7100_v9, %v6857_v2 }
 0x728   :  { %v10592_v47 = vmul.f32 -1.442695, %v7120_v14 }
 0x729   :  { %v11707_v59 = vpop.eup %11706 }
 0x72a   :  { %v11709_v13 = vpop.eup %11708  ;;  %v7124_v41 = vadd.f32 1.0, %v11707_v59  ;;  %11710 = vpow2.f32 %v10592_v47 }
 0x72b   :  { %v7143_v33 = vadd.f32 1.0, %v11709_v13 }
 0x72c   :  { %11712 = vrcp.f32 %v7124_v41  ;;  %v7134_v35 = vand.u32 2147483647, %v7124_v41  ;;  %v7136_v48 = vand.u32 2147483648, %v7124_v41  ;;  %vm7130_vm6 = vweird.f32 %v7124_v41 }
 0x72d   :  { %11714 = vrcp.f32 %v7143_v33  ;;  %v7102_v54 = vpop.f32.mrf.mxu2  ;;  %v7115_v8 = vpop.f32.mrf.mxu3  ;;  %v7155_v24 = vand.u32 2147483648, %v7143_v33  ;;  %v7153_v20 = vand.u32 2147483647, %v7143_v33  ;;  %vm7149_vm7 = vweird.f32 %v7143_v33 }
 0x72e   :  { %vm7135_vm8 = vcmp.eq.f32.partialorder %v7134_v35, 8.507059e+37  ;;  %v7137_v28 = vor.u32 1.1754944e-38, %v7136_v48 }
 0x72f   :  { %v7300_v6 = vpop.f32.mrf.mxu0  ;;  %v7156_v46 = vor.u32 1.1754944e-38, %v7155_v24  ;;  %vm7154_vm11 = vcmp.eq.f32.partialorder %v7153_v20, 8.507059e+37 }
 0x730   :  { %v11711_v60 = vpop.eup %11710  ;;  %v7301_v5 = vadd.f32 %v13469_v26, %v7300_v6 }
 0x731   :  { %v7163_v23 = vadd.f32 1.0, %v11711_v60 }
 0x732   :  { %v11713_v10 = vpop.eup %11712  ;;  %v7320_v56 = vmax.f32 %v7301_v5, 0.0 }
 0x733   :  { %v11715_v51 = vpop.eup %11714  ;;  %v7126_v11 = vmul.f32 %v11713_v10, %v7124_v41  ;;  %11716 = vrcp.f32 %v7163_v23  ;;  %vm7131_vm4 = vweird.f32 %v11713_v10  ;;  %v7175_v22 = vand.u32 2147483648, %v7163_v23 }
 0x734   :  { %v7145_v63 = vmul.f32 %v11715_v51, %v7143_v33  ;;  %11718 = vtanh.f32 %v7119_v55  ;;  %vm7150_vm5 = vweird.f32 %v11715_v51  ;;  %vm7132_vm9 = vmor %vm7130_vm6, %vm7131_vm4  ;;  %vm7169_vm14 = vweird.f32 %v7163_v23 }
 0x735   :  { %v7127_v34 = vsub.f32 1.0, %v7126_v11  ;;  %vm7151_vm10 = vmor %vm7149_vm7, %vm7150_vm5  ;;  %v7173_v42 = vand.u32 2147483647, %v7163_v23  ;;  %v7176_v50 = vor.u32 1.1754944e-38, %v7175_v22 }
 0x736   :  { %v7146_v58 = vsub.f32 1.0, %v7145_v63 }
 0x737   :  { %v7128_v49 = vmul.f32 %v11713_v10, %v7127_v34  ;;  %v7302_v3 = vpop.f32.mrf.mxu0  ;;  %vm7174_vm0 = vcmp.eq.f32.partialorder %v7173_v42, 8.507059e+37 }
 0x738   :  { %v7147_v27 = vmul.f32 %v11715_v51, %v7146_v58  ;;  %v7303_v44 = vadd.f32 %v13469_v26, %v7302_v3 }
 0x739   :  { %v11717_v12 = vpop.eup %11716  ;;  %v7129_v57 = vadd.f32 %v11713_v10, %v7128_v49 }
 0x73a   :  { %v7148_v45 = vadd.f32 %v11715_v51, %v7147_v27  ;;  %v7165_v38 = vmul.f32 %v11717_v12, %v7163_v23  ;;  %v7321_v16 = vmax.f32 %v7303_v44, 0.0  ;;  %v11719_v0 = vpop.eup %11718  ;;  %vm7170_vm13 = vweird.f32 %v11717_v12  ;;  %v11465_v23 = vld [vmem:[%s13531_s10] ss:$0 sm:$0xff] }
 0x73b   :  { %v7133_v15 = vsel %vm7132_vm9, %v11713_v10, %v7129_v57  ;;  %vm7171_vm15 = vmor %vm7169_vm14, %vm7170_vm13 }
 0x73c   :  { %v7138_v61 = vsel %vm7135_vm8, %v7137_v28, %v7133_v15  ;;  %v7152_v29 = vsel %vm7151_vm10, %v11715_v51, %v7148_v45  ;;  %v7166_v32 = vsub.f32 1.0, %v7165_v38  ;;  %v7328_v52 = vpack.c.bf16 %v7321_v16, %v7320_v56 }
 0x73d   :  { %v7157_v40 = vsel %vm7154_vm11, %v7156_v46, %v7152_v29  ;;  %v7180_v25 = vmul.f32 %v11719_v0, %v7138_v61 }
 0x73e   :  { %v7179_v43 = vmul.f32 %v7157_v40, %v13306_v30  ;;  %v7167_v17 = vmul.f32 %v11717_v12, %v7166_v32  ;;  %10657 = vmatmul.msk.bf16.vlgmr.msrb.gmra.mxu1 %vm7368_vm12, %v7328_v52 }
 0x73f   :  { %v7305_v36 = vpop.f32.mrf.mxu0 }
 0x740   :  { %v7181_v53 = vadd.f32 %v7180_v25, %v7179_v43  ;;  %v7168_v4 = vadd.f32 %v11717_v12, %v7167_v17  ;;  %v7306_v30 = vadd.f32 %v13469_v26, %v7305_v36 }
 0x742   :  { %11720 = vtanh.f32 %v7181_v53  ;;  %7430 = vst [vmem:[%s13534_s13 + $0x8] sm:$0xff] %v7181_v53  ;;  %v7172_v1 = vsel %vm7171_vm15, %v11717_v12, %v7168_v4  ;;  %v7322_v18 = vmax.f32 %v7306_v30, 0.0 }
 0x743   :  { %v7177_v39 = vsel %vm7174_vm0, %v7176_v50, %v7172_v1 }
 0x747   :  { %v7307_v9 = vpop.f32.mrf.mxu0 }
 0x748   :  { %v11721_v7 = vpop.eup %11720  ;;  %v7308_v14 = vadd.f32 %v13469_v26, %v7307_v9 }
 0x749   :  { %v7183_v62 = vmul.f32 %v11721_v7, %v7177_v39 }
 0x74a   :  { %v7323_v47 = vmax.f32 %v7308_v14, 0.0 }
 0x74b   :  { %v7184_v59 = vpack.c.bf16 %v7183_v62, %v7183_v62  ;;  %v11453_v31 = vpack.c.bf16 %v7183_v62, %v13419_v37 }
 0x74c   :  { %v7329_v13 = vpack.c.bf16 %v7323_v47, %v7322_v18 }
 0x74d   :  { %7186 = vst [vmem:[#allocation4 + $0x1c] sm:$0xf] %v7184_v59  ;;  %v11457_v41 = vunpack.c.l.bf16 %v11453_v31  ;;  %v11458_v33 = vunpack.c.h.bf16 %v11453_v31 }
 0x74e   :  { %11454 = vst [vmem:[#allocation2] sm:$0xff] %v11453_v31   ;;  %10658 = vmatmul.msk.bf16.gmra.mxu1 %vm7368_vm12, %v7329_v13 }
 0x74f   :  { %7425 = vst [vmem:[%s13533_s12] sm:$0xff] %v11457_v41  ;;  %v7310_v21 = vpop.f32.mrf.mxu0 }
 0x750   :  { %7426 = vst [vmem:[%s13533_s12 + $0x8] sm:$0xff] %v11458_v33  ;;  %v7311_v8 = vadd.f32 %v13469_v26, %v7310_v21 }
 0x752   :  { %v7324_v6 = vmax.f32 %v7311_v8, 0.0 }
 0x754   :  { %v11432_v54 = vld [vmem:[#allocation4 + $0x18] sm:$0xff] }
 0x755   :  { %7314 = vmatmul.bf16.gmra.mxu0 %v11432_v54 }
 0x757   :  { %v7312_v37 = vpop.f32.mrf.mxu0 }
 0x758   :  { %v7313_v19 = vadd.f32 %v13469_v26, %v7312_v37 }
 0x75a   :  { %v7325_v60 = vmax.f32 %v7313_v19, 0.0 }
 0x75c   :  { %v7330_v2 = vpack.c.bf16 %v7325_v60, %v7324_v6 }
 0x75e   :  { %10659 = vmatmul.msk.bf16.gmra.mxu1 %vm7368_vm12, %v7330_v2 }
 0x7bb   :  { %v7390_v10 = vpop.f32.mrf.mxu1 }
 0x7bc   :  { %v7391_v55 = vadd.f32 %v11465_v23, %v7390_v10 }
 0x7be   :  { %7410 = vst [vmem:[%s13532_s11] sm:$0xff] %v7391_v55 }
 0x7c3   :  { %v7392_v51 = vpop.f32.mrf.mxu1 }
 0x7c4   :  { %v7393_v11 = vadd.f32 %v11465_v23, %v7392_v51 }
 0x7c6   :  { %7411 = vst [vmem:[%s13532_s11 + $0x8] sm:$0xff] %v7393_v11 }
 0x7cb   :  { %v7395_v63 = vpop.f32.mrf.mxu1 }
 0x7cc   :  { %v7396_v34 = vadd.f32 %v11465_v23, %v7395_v63 }
 0x7ce   :  { %7412 = vst [vmem:[%s13532_s11 + $0x10] sm:$0xff] %v7396_v34 }
 0x7d2   :  { %v7315_v48 = vpop.f32.mrf.mxu0 }
 0x7d3   :  { %v7397_v35 = vpop.f32.mrf.mxu1  ;;  %v7316_v5 = vadd.f32 %v13469_v26, %v7315_v48 }
 0x7d4   :  { %v7398_v58 = vadd.f32 %v11465_v23, %v7397_v35 }
 0x7d5   :  { %v7326_v27 = vmax.f32 %v7316_v5, 0.0 }
 0x7d6   :  { %7413 = vst [vmem:[%s13532_s11 + $0x18] sm:$0xff] %v7398_v58 }
 0x7da   :  { %v7317_v49 = vpop.f32.mrf.mxu0 }
 0x7db   :  { %v7400_v24 = vpop.f32.mrf.mxu1  ;;  %v7318_v3 = vadd.f32 %v13469_v26, %v7317_v49 }
 0x7dc   :  { %v7401_v20 = vadd.f32 %v11465_v23, %v7400_v24 }
 0x7dd   :  { %v7327_v44 = vmax.f32 %v7318_v3, 0.0 }
 0x7de   :  { %7414 = vst [vmem:[%s13532_s11 + $0x20] sm:$0xff] %v7401_v20 }
 0x7df   :  { %v7331_v12 = vpack.c.bf16 %v7327_v44, %v7326_v27 }
 0x7e1   :  { %10660 = vmatmul.msk.bf16.gmra.mxu1 %vm7368_vm12, %v7331_v12 }
 0x7e3   :  { %v7402_v57 = vpop.f32.mrf.mxu1 }
 0x7e4   :  { %v7403_v28 = vadd.f32 %v11465_v23, %v7402_v57 }
 0x7e6   :  { %7415 = vst [vmem:[%s13532_s11 + $0x28] sm:$0xff] %v7403_v28 }
 0x85e   :  { %v7405_v45 = vpop.f32.mrf.mxu1 }
 0x85f   :  { %v7406_v38 = vadd.f32 %v11465_v23, %v7405_v45 }
 0x861   :  { %7416 = vst [vmem:[%s13532_s11 + $0x30] sm:$0xff] %v7406_v38 }
 0x866   :  { %v7407_v26 = vpop.f32.mrf.mxu1 }
 0x867   :  { %v7408_v56 = vadd.f32 %v11465_v23, %v7407_v26 }
 0x869   :  { %7417 = vst [vmem:[%s13532_s11 + $0x38] sm:$0xff] %v7408_v56 }
 0x86a   :  { %7443 = vsyncpa [#allocation6], 1 }
 0x86b   :  { %7444 = vsyncpa [#allocation8], 1 }

</bundles_post_ra>
